<compile_context>
chip_gen: v6e
topology: v6e:2x2x1
jax: 0.10.0
libtpu: 0.0.40
codegen_flags: <defaults>
</compile_context>

<pallas_src>
import jax
import jax.numpy as jnp
from jax import lax
from jax.experimental import pallas as pl
from jax.experimental.pallas import tpu as pltpu


def _lstm_kernel(xg0_ref,      # (T, Bp, 4H)  precomputed x_t @ W_ih0 + b0 (time-major)
                 whh0_ref,     # (H, 4H)
                 wih1_ref,     # (H, 4H)
                 whh1_ref,     # (H, 4H)
                 b1_ref,       # (1, 4H)
                 wfc_ref,      # (H, O)
                 bfc_ref,      # (1, O)
                 out_ref):     # (Bp, O)
    T, B, G = xg0_ref.shape
    H = G // 4

    # Tiny weights: load once, keep live across the whole recurrence.
    whh0 = whh0_ref[...]
    wih1 = wih1_ref[...]
    whh1 = whh1_ref[...]
    b1 = b1_ref[...]

    def gates_to_state(gates, c_prev):
        # torch.nn.LSTM gate order [i, f, g, o]; H == 128 keeps these slices
        # lane-aligned (full-vreg-width chunks of the (B, 4H) gate tile).
        i = jax.nn.sigmoid(gates[:, 0 * H:1 * H])
        f = jax.nn.sigmoid(gates[:, 1 * H:2 * H])
        g = jnp.tanh(gates[:, 2 * H:3 * H])
        o = jax.nn.sigmoid(gates[:, 3 * H:4 * H])
        c_new = f * c_prev + i * g
        h_new = o * jnp.tanh(c_new)
        return h_new, c_new

    def step(t, carry):
        h0, c0, h1, c1 = carry
        # Layer 0: input projection precomputed; only the recurrent matmul is
        # on the serial path.
        g0 = xg0_ref[t] + jnp.dot(h0, whh0, preferred_element_type=jnp.float32)
        h0, c0 = gates_to_state(g0, c0)
        # Layer 1: input is layer 0's fresh hidden state.
        g1 = (jnp.dot(h0, wih1, preferred_element_type=jnp.float32)
              + jnp.dot(h1, whh1, preferred_element_type=jnp.float32) + b1)
        h1, c1 = gates_to_state(g1, c1)
        return (h0, c0, h1, c1)

    z = jnp.zeros((B, H), jnp.float32)
    _, _, h1, _ = lax.fori_loop(0, T, step, (z, z, z, z), unroll=True)

    # FC head on the last timestep's top-layer hidden state (written once).
    out_ref[...] = (jnp.dot(h1, wfc_ref[...], preferred_element_type=jnp.float32)
                    + bfc_ref[...]).astype(out_ref.dtype)


def lstm_forward(x, params):
    """x: (B, T, D_in) float32 -> (B, output_size) float32."""
    wih0, whh0, b0, wih1, whh1, b1, wfc, bfc = params
    B, T, D = x.shape
    H = whh0.shape[0]
    O = wfc.shape[1]

    # Pad batch to a full 8-sublane tile; padded rows are zeros, sliced off at
    # the end.
    Bp = max(8, -(-B // 8) * 8)
    x_p = jnp.zeros((Bp, T, D), x.dtype).at[:B, :, :].set(x)

    # One big matmul for the layer-0 input projection across all timesteps,
    # emitted in time-major layout so the kernel simply indexes xg0[t].
    xg0 = (jnp.einsum('btd,dg->tbg', x_p, wih0,
                      preferred_element_type=jnp.float32) + b0)   # (T, Bp, 4H)

    full2 = lambda r, c: pl.BlockSpec((r, c), lambda i: (0, 0))

    grid_spec = pltpu.PrefetchScalarGridSpec(
        num_scalar_prefetch=0,
        grid=(1,),                        # whole recurrence in one invocation
        in_specs=[
            pl.BlockSpec((T, Bp, 4 * H), lambda i: (0, 0, 0)),  # xg0, resident
            full2(H, 4 * H),              # W_hh layer 0
            full2(H, 4 * H),              # W_ih layer 1
            full2(H, 4 * H),              # W_hh layer 1
            full2(1, 4 * H),              # bias layer 1 (b_ih + b_hh)
            full2(H, O),                  # fc weight
            full2(1, O),                  # fc bias
        ],
        out_specs=pl.BlockSpec((Bp, O), lambda i: (0, 0)),
    )

    out = pl.pallas_call(
        _lstm_kernel,
        out_shape=jax.ShapeDtypeStruct((Bp, O), jnp.float32),
        grid_spec=grid_spec,
        compiler_params=pltpu.CompilerParams(
            dimension_semantics=("arbitrary",),
            vmem_limit_bytes=32 * 1024 * 1024,  # plenty; safe on v7x's 64 MiB
        ),
    )(xg0, whh0, wih1, whh1, b1, wfc, bfc)
    return out[:B]


def make_params(key, input_size, hidden_size, output_size):
    """Deterministic init mirroring torch.nn.LSTM/Linear (uniform +/- 1/sqrt(H)).

    Weights are stored pre-transposed: W_ih -> (in, 4H), W_hh -> (H, 4H),
    biases combined (b_ih + b_hh) as a (1, 4H) row; fc -> (H, out), (1, out).
    """
    k = 1.0 / jnp.sqrt(hidden_size)
    keys = jax.random.split(key, 10)
    u = lambda kk, shape: jax.random.uniform(kk, shape, jnp.float32, -k, k)

    wih0 = u(keys[0], (input_size, 4 * hidden_size))
    whh0 = u(keys[1], (hidden_size, 4 * hidden_size))
    b0 = u(keys[2], (1, 4 * hidden_size)) + u(keys[3], (1, 4 * hidden_size))
    wih1 = u(keys[4], (hidden_size, 4 * hidden_size))
    whh1 = u(keys[5], (hidden_size, 4 * hidden_size))
    b1 = u(keys[6], (1, 4 * hidden_size)) + u(keys[7], (1, 4 * hidden_size))
    wfc = u(keys[8], (hidden_size, output_size))
    bfc = u(keys[9], (1, output_size))
    return (wih0, whh0, b0, wih1, whh1, b1, wfc, bfc)


def lstm_reference(x, params):
    """Pure-JAX reference with identical semantics (for correctness check)."""
    wih0, whh0, b0, wih1, whh1, b1, wfc, bfc = params
    B = x.shape[0]
    H = whh0.shape[0]

    def cell(x_in, h_prev, c_prev, wih, whh, b):
        gates = x_in @ wih + h_prev @ whh + b
        i = jax.nn.sigmoid(gates[:, 0 * H:1 * H])
        f = jax.nn.sigmoid(gates[:, 1 * H:2 * H])
        g = jnp.tanh(gates[:, 2 * H:3 * H])
        o = jax.nn.sigmoid(gates[:, 3 * H:4 * H])
        c_new = f * c_prev + i * g
        return o * jnp.tanh(c_new), c_new

    def step(carry, x_t):
        h0, c0, h1, c1 = carry
        h0, c0 = cell(x_t, h0, c0, wih0, whh0, b0)
        h1, c1 = cell(h0, h1, c1, wih1, whh1, b1)
        return (h0, c0, h1, c1), h1

    init = tuple(jnp.zeros((B, H), jnp.float32) for _ in range(4))
    (h0, c0, h1, c1), _ = lax.scan(step, init, jnp.swapaxes(x, 0, 1))
    return h1 @ wfc + bfc


if __name__ == "__main__":
    # Shapes consistent with LSTMModel(input_size=7, hidden_size=128,
    # num_layers=2, output_size=1); small batch / short sequence.
    batch, seq, input_size, hidden_size, output_size = 2, 8, 7, 128, 1

    key = jax.random.PRNGKey(0)
    k_x, k_p = jax.random.split(key)
    x = jax.random.normal(k_x, (batch, seq, input_size), jnp.float32)
    params = make_params(k_p, input_size, hidden_size, output_size)

    out = jax.block_until_ready(lstm_forward(x, params))
    ref = jax.block_until_ready(lstm_reference(x, params))

    assert out.shape == (batch, output_size)
    # Default (bf16-pass) MXU precision in-kernel vs. plain-XLA reference:
    # tolerance relaxed slightly vs. the old Precision.HIGHEST version.
    assert jnp.allclose(out, ref, atol=2e-2, rtol=2e-2), (out, ref)

    print("KERNEL_OK")
</pallas_src>

<mosaic_0001>
module attributes {stable_mosaic.version = 11 : i64} {
  func.func @_lstm_kernel(%arg0: i32, %arg1: memref<8x8x512xf32, #tpu.memory_space<vmem>>, %arg2: memref<128x512xf32, #tpu.memory_space<vmem>>, %arg3: memref<128x512xf32, #tpu.memory_space<vmem>>, %arg4: memref<128x512xf32, #tpu.memory_space<vmem>>, %arg5: memref<1x512xf32, #tpu.memory_space<vmem>>, %arg6: memref<128x1xf32, #tpu.memory_space<vmem>>, %arg7: memref<1x1xf32, #tpu.memory_space<vmem>>, %arg8: memref<8x1xf32, #tpu.memory_space<vmem>>) attributes {dimension_semantics = [#tpu.dimension_semantics<arbitrary>], iteration_bounds = array<i64: 1>, scalar_prefetch = 0 : i64, scratch_operands = 0 : i64, tpu.core_type = #tpu.core_type<tc>, window_params = [{pipeline_mode = #tpu.pipeline_mode<synchronous>, transform_indices = @transform_0, window_bounds = array<i64: 8, 8, 512>}, {pipeline_mode = #tpu.pipeline_mode<synchronous>, transform_indices = @transform_1, window_bounds = array<i64: 128, 512>}, {pipeline_mode = #tpu.pipeline_mode<synchronous>, transform_indices = @transform_2, window_bounds = array<i64: 128, 512>}, {pipeline_mode = #tpu.pipeline_mode<synchronous>, transform_indices = @transform_3, window_bounds = array<i64: 128, 512>}, {pipeline_mode = #tpu.pipeline_mode<synchronous>, transform_indices = @transform_4, window_bounds = array<i64: 1, 512>}, {pipeline_mode = #tpu.pipeline_mode<synchronous>, transform_indices = @transform_5, window_bounds = array<i64: 128, 1>}, {pipeline_mode = #tpu.pipeline_mode<synchronous>, transform_indices = @transform_6, window_bounds = array<i64: 1, 1>}, {pipeline_mode = #tpu.pipeline_mode<synchronous>, transform_indices = @transform_7, window_bounds = array<i64: 8, 1>}]} {
    %c0 = arith.constant 0 : index
    %c0_0 = arith.constant 0 : index
    %0 = vector.load %arg2[%c0, %c0_0] : memref<128x512xf32, #tpu.memory_space<vmem>>, vector<128x512xf32>
    %c0_1 = arith.constant 0 : index
    %c0_2 = arith.constant 0 : index
    %1 = vector.load %arg3[%c0_1, %c0_2] : memref<128x512xf32, #tpu.memory_space<vmem>>, vector<128x512xf32>
    %c0_3 = arith.constant 0 : index
    %c0_4 = arith.constant 0 : index
    %2 = vector.load %arg4[%c0_3, %c0_4] : memref<128x512xf32, #tpu.memory_space<vmem>>, vector<128x512xf32>
    %c0_5 = arith.constant 0 : index
    %c0_6 = arith.constant 0 : index
    %3 = vector.load %arg5[%c0_5, %c0_6] : memref<1x512xf32, #tpu.memory_space<vmem>>, vector<1x512xf32>
    %cst = arith.constant 0.000000e+00 : f32
    %4 = vector.broadcast %cst : f32 to vector<8x128xf32>
    %c0_i32 = arith.constant 0 : i32
    %5 = arith.index_cast %c0_i32 : i32 to index
    %c0_7 = arith.constant 0 : index
    %c0_8 = arith.constant 0 : index
    %6 = vector.load %arg1[%5, %c0_7, %c0_8] : memref<8x8x512xf32, #tpu.memory_space<vmem>>, vector<1x8x512xf32>
    %7 = vector.shape_cast %6 : vector<1x8x512xf32> to vector<8x512xf32>
    %cst_9 = arith.constant dense<0.000000e+00> : vector<8x512xf32>
    %8 = tpu.matmul %4, %0, %cst_9 {dimension_numbers = #tpu.dot_dimension_numbers<[1], [0], [0], [1], [0, 0, 1, 1], [], []>} : vector<8x128xf32>, vector<128x512xf32>, vector<8x512xf32> -> vector<8x512xf32>
    %9 = arith.addf %7, %8 : vector<8x512xf32>
    %10 = vector.extract_strided_slice %9 {offsets = [0, 0], sizes = [8, 128], strides = [1, 1]} : vector<8x512xf32> to vector<8x128xf32>
    %11 = arith.negf %10 : vector<8x128xf32>
    %12 = math.exp %11 : vector<8x128xf32>
    %cst_10 = arith.constant 1.000000e+00 : f32
    %13 = vector.broadcast %cst_10 : f32 to vector<8x128xf32>
    %14 = arith.addf %13, %12 : vector<8x128xf32>
    %15 = arith.divf %13, %14 : vector<8x128xf32>
    %16 = vector.extract_strided_slice %9 {offsets = [0, 128], sizes = [8, 128], strides = [1, 1]} : vector<8x512xf32> to vector<8x128xf32>
    %17 = arith.negf %16 : vector<8x128xf32>
    %18 = math.exp %17 : vector<8x128xf32>
    %cst_11 = arith.constant 1.000000e+00 : f32
    %19 = vector.broadcast %cst_11 : f32 to vector<8x128xf32>
    %20 = arith.addf %19, %18 : vector<8x128xf32>
    %21 = arith.divf %19, %20 : vector<8x128xf32>
    %22 = vector.extract_strided_slice %9 {offsets = [0, 256], sizes = [8, 128], strides = [1, 1]} : vector<8x512xf32> to vector<8x128xf32>
    %23 = math.tanh %22 : vector<8x128xf32>
    %24 = vector.extract_strided_slice %9 {offsets = [0, 384], sizes = [8, 128], strides = [1, 1]} : vector<8x512xf32> to vector<8x128xf32>
    %25 = arith.negf %24 : vector<8x128xf32>
    %26 = math.exp %25 : vector<8x128xf32>
    %cst_12 = arith.constant 1.000000e+00 : f32
    %27 = vector.broadcast %cst_12 : f32 to vector<8x128xf32>
    %28 = arith.addf %27, %26 : vector<8x128xf32>
    %29 = arith.divf %27, %28 : vector<8x128xf32>
    %30 = arith.mulf %21, %4 : vector<8x128xf32>
    %31 = arith.mulf %15, %23 : vector<8x128xf32>
    %32 = arith.addf %30, %31 : vector<8x128xf32>
    %33 = math.tanh %32 : vector<8x128xf32>
    %34 = arith.mulf %29, %33 : vector<8x128xf32>
    %cst_13 = arith.constant dense<0.000000e+00> : vector<8x512xf32>
    %35 = tpu.matmul %34, %1, %cst_13 {dimension_numbers = #tpu.dot_dimension_numbers<[1], [0], [0], [1], [0, 0, 1, 1], [], []>} : vector<8x128xf32>, vector<128x512xf32>, vector<8x512xf32> -> vector<8x512xf32>
    %cst_14 = arith.constant dense<0.000000e+00> : vector<8x512xf32>
    %36 = tpu.matmul %4, %2, %cst_14 {dimension_numbers = #tpu.dot_dimension_numbers<[1], [0], [0], [1], [0, 0, 1, 1], [], []>} : vector<8x128xf32>, vector<128x512xf32>, vector<8x512xf32> -> vector<8x512xf32>
    %37 = arith.addf %35, %36 : vector<8x512xf32>
    %38 = vector.broadcast %3 : vector<1x512xf32> to vector<8x512xf32>
    %39 = arith.addf %37, %38 : vector<8x512xf32>
    %40 = vector.extract_strided_slice %39 {offsets = [0, 0], sizes = [8, 128], strides = [1, 1]} : vector<8x512xf32> to vector<8x128xf32>
    %41 = arith.negf %40 : vector<8x128xf32>
    %42 = math.exp %41 : vector<8x128xf32>
    %cst_15 = arith.constant 1.000000e+00 : f32
    %43 = vector.broadcast %cst_15 : f32 to vector<8x128xf32>
    %44 = arith.addf %43, %42 : vector<8x128xf32>
    %45 = arith.divf %43, %44 : vector<8x128xf32>
    %46 = vector.extract_strided_slice %39 {offsets = [0, 128], sizes = [8, 128], strides = [1, 1]} : vector<8x512xf32> to vector<8x128xf32>
    %47 = arith.negf %46 : vector<8x128xf32>
    %48 = math.exp %47 : vector<8x128xf32>
    %cst_16 = arith.constant 1.000000e+00 : f32
    %49 = vector.broadcast %cst_16 : f32 to vector<8x128xf32>
    %50 = arith.addf %49, %48 : vector<8x128xf32>
    %51 = arith.divf %49, %50 : vector<8x128xf32>
    %52 = vector.extract_strided_slice %39 {offsets = [0, 256], sizes = [8, 128], strides = [1, 1]} : vector<8x512xf32> to vector<8x128xf32>
    %53 = math.tanh %52 : vector<8x128xf32>
    %54 = vector.extract_strided_slice %39 {offsets = [0, 384], sizes = [8, 128], strides = [1, 1]} : vector<8x512xf32> to vector<8x128xf32>
    %55 = arith.negf %54 : vector<8x128xf32>
    %56 = math.exp %55 : vector<8x128xf32>
    %cst_17 = arith.constant 1.000000e+00 : f32
    %57 = vector.broadcast %cst_17 : f32 to vector<8x128xf32>
    %58 = arith.addf %57, %56 : vector<8x128xf32>
    %59 = arith.divf %57, %58 : vector<8x128xf32>
    %60 = arith.mulf %51, %4 : vector<8x128xf32>
    %61 = arith.mulf %45, %53 : vector<8x128xf32>
    %62 = arith.addf %60, %61 : vector<8x128xf32>
    %63 = math.tanh %62 : vector<8x128xf32>
    %64 = arith.mulf %59, %63 : vector<8x128xf32>
    %c1_i32 = arith.constant 1 : i32
    %65 = arith.index_cast %c1_i32 : i32 to index
    %c0_18 = arith.constant 0 : index
    %c0_19 = arith.constant 0 : index
    %66 = vector.load %arg1[%65, %c0_18, %c0_19] : memref<8x8x512xf32, #tpu.memory_space<vmem>>, vector<1x8x512xf32>
    %67 = vector.shape_cast %66 : vector<1x8x512xf32> to vector<8x512xf32>
    %cst_20 = arith.constant dense<0.000000e+00> : vector<8x512xf32>
    %68 = tpu.matmul %34, %0, %cst_20 {dimension_numbers = #tpu.dot_dimension_numbers<[1], [0], [0], [1], [0, 0, 1, 1], [], []>} : vector<8x128xf32>, vector<128x512xf32>, vector<8x512xf32> -> vector<8x512xf32>
    %69 = arith.addf %67, %68 : vector<8x512xf32>
    %70 = vector.extract_strided_slice %69 {offsets = [0, 0], sizes = [8, 128], strides = [1, 1]} : vector<8x512xf32> to vector<8x128xf32>
    %71 = arith.negf %70 : vector<8x128xf32>
    %72 = math.exp %71 : vector<8x128xf32>
    %cst_21 = arith.constant 1.000000e+00 : f32
    %73 = vector.broadcast %cst_21 : f32 to vector<8x128xf32>
    %74 = arith.addf %73, %72 : vector<8x128xf32>
    %75 = arith.divf %73, %74 : vector<8x128xf32>
    %76 = vector.extract_strided_slice %69 {offsets = [0, 128], sizes = [8, 128], strides = [1, 1]} : vector<8x512xf32> to vector<8x128xf32>
    %77 = arith.negf %76 : vector<8x128xf32>
    %78 = math.exp %77 : vector<8x128xf32>
    %cst_22 = arith.constant 1.000000e+00 : f32
    %79 = vector.broadcast %cst_22 : f32 to vector<8x128xf32>
    %80 = arith.addf %79, %78 : vector<8x128xf32>
    %81 = arith.divf %79, %80 : vector<8x128xf32>
    %82 = vector.extract_strided_slice %69 {offsets = [0, 256], sizes = [8, 128], strides = [1, 1]} : vector<8x512xf32> to vector<8x128xf32>
    %83 = math.tanh %82 : vector<8x128xf32>
    %84 = vector.extract_strided_slice %69 {offsets = [0, 384], sizes = [8, 128], strides = [1, 1]} : vector<8x512xf32> to vector<8x128xf32>
    %85 = arith.negf %84 : vector<8x128xf32>
    %86 = math.exp %85 : vector<8x128xf32>
    %cst_23 = arith.constant 1.000000e+00 : f32
    %87 = vector.broadcast %cst_23 : f32 to vector<8x128xf32>
    %88 = arith.addf %87, %86 : vector<8x128xf32>
    %89 = arith.divf %87, %88 : vector<8x128xf32>
    %90 = arith.mulf %81, %32 : vector<8x128xf32>
    %91 = arith.mulf %75, %83 : vector<8x128xf32>
    %92 = arith.addf %90, %91 : vector<8x128xf32>
    %93 = math.tanh %92 : vector<8x128xf32>
    %94 = arith.mulf %89, %93 : vector<8x128xf32>
    %cst_24 = arith.constant dense<0.000000e+00> : vector<8x512xf32>
    %95 = tpu.matmul %94, %1, %cst_24 {dimension_numbers = #tpu.dot_dimension_numbers<[1], [0], [0], [1], [0, 0, 1, 1], [], []>} : vector<8x128xf32>, vector<128x512xf32>, vector<8x512xf32> -> vector<8x512xf32>
    %cst_25 = arith.constant dense<0.000000e+00> : vector<8x512xf32>
    %96 = tpu.matmul %64, %2, %cst_25 {dimension_numbers = #tpu.dot_dimension_numbers<[1], [0], [0], [1], [0, 0, 1, 1], [], []>} : vector<8x128xf32>, vector<128x512xf32>, vector<8x512xf32> -> vector<8x512xf32>
    %97 = arith.addf %95, %96 : vector<8x512xf32>
    %98 = vector.broadcast %3 : vector<1x512xf32> to vector<8x512xf32>
    %99 = arith.addf %97, %98 : vector<8x512xf32>
    %100 = vector.extract_strided_slice %99 {offsets = [0, 0], sizes = [8, 128], strides = [1, 1]} : vector<8x512xf32> to vector<8x128xf32>
    %101 = arith.negf %100 : vector<8x128xf32>
    %102 = math.exp %101 : vector<8x128xf32>
    %cst_26 = arith.constant 1.000000e+00 : f32
    %103 = vector.broadcast %cst_26 : f32 to vector<8x128xf32>
    %104 = arith.addf %103, %102 : vector<8x128xf32>
    %105 = arith.divf %103, %104 : vector<8x128xf32>
    %106 = vector.extract_strided_slice %99 {offsets = [0, 128], sizes = [8, 128], strides = [1, 1]} : vector<8x512xf32> to vector<8x128xf32>
    %107 = arith.negf %106 : vector<8x128xf32>
    %108 = math.exp %107 : vector<8x128xf32>
    %cst_27 = arith.constant 1.000000e+00 : f32
    %109 = vector.broadcast %cst_27 : f32 to vector<8x128xf32>
    %110 = arith.addf %109, %108 : vector<8x128xf32>
    %111 = arith.divf %109, %110 : vector<8x128xf32>
    %112 = vector.extract_strided_slice %99 {offsets = [0, 256], sizes = [8, 128], strides = [1, 1]} : vector<8x512xf32> to vector<8x128xf32>
    %113 = math.tanh %112 : vector<8x128xf32>
    %114 = vector.extract_strided_slice %99 {offsets = [0, 384], sizes = [8, 128], strides = [1, 1]} : vector<8x512xf32> to vector<8x128xf32>
    %115 = arith.negf %114 : vector<8x128xf32>
    %116 = math.exp %115 : vector<8x128xf32>
    %cst_28 = arith.constant 1.000000e+00 : f32
    %117 = vector.broadcast %cst_28 : f32 to vector<8x128xf32>
    %118 = arith.addf %117, %116 : vector<8x128xf32>
    %119 = arith.divf %117, %118 : vector<8x128xf32>
    %120 = arith.mulf %111, %62 : vector<8x128xf32>
    %121 = arith.mulf %105, %113 : vector<8x128xf32>
    %122 = arith.addf %120, %121 : vector<8x128xf32>
    %123 = math.tanh %122 : vector<8x128xf32>
    %124 = arith.mulf %119, %123 : vector<8x128xf32>
    %c2_i32 = arith.constant 2 : i32
    %125 = arith.index_cast %c2_i32 : i32 to index
    %c0_29 = arith.constant 0 : index
    %c0_30 = arith.constant 0 : index
    %126 = vector.load %arg1[%125, %c0_29, %c0_30] : memref<8x8x512xf32, #tpu.memory_space<vmem>>, vector<1x8x512xf32>
    %127 = vector.shape_cast %126 : vector<1x8x512xf32> to vector<8x512xf32>
    %cst_31 = arith.constant dense<0.000000e+00> : vector<8x512xf32>
    %128 = tpu.matmul %94, %0, %cst_31 {dimension_numbers = #tpu.dot_dimension_numbers<[1], [0], [0], [1], [0, 0, 1, 1], [], []>} : vector<8x128xf32>, vector<128x512xf32>, vector<8x512xf32> -> vector<8x512xf32>
    %129 = arith.addf %127, %128 : vector<8x512xf32>
    %130 = vector.extract_strided_slice %129 {offsets = [0, 0], sizes = [8, 128], strides = [1, 1]} : vector<8x512xf32> to vector<8x128xf32>
    %131 = arith.negf %130 : vector<8x128xf32>
    %132 = math.exp %131 : vector<8x128xf32>
    %cst_32 = arith.constant 1.000000e+00 : f32
    %133 = vector.broadcast %cst_32 : f32 to vector<8x128xf32>
    %134 = arith.addf %133, %132 : vector<8x128xf32>
    %135 = arith.divf %133, %134 : vector<8x128xf32>
    %136 = vector.extract_strided_slice %129 {offsets = [0, 128], sizes = [8, 128], strides = [1, 1]} : vector<8x512xf32> to vector<8x128xf32>
    %137 = arith.negf %136 : vector<8x128xf32>
    %138 = math.exp %137 : vector<8x128xf32>
    %cst_33 = arith.constant 1.000000e+00 : f32
    %139 = vector.broadcast %cst_33 : f32 to vector<8x128xf32>
    %140 = arith.addf %139, %138 : vector<8x128xf32>
    %141 = arith.divf %139, %140 : vector<8x128xf32>
    %142 = vector.extract_strided_slice %129 {offsets = [0, 256], sizes = [8, 128], strides = [1, 1]} : vector<8x512xf32> to vector<8x128xf32>
    %143 = math.tanh %142 : vector<8x128xf32>
    %144 = vector.extract_strided_slice %129 {offsets = [0, 384], sizes = [8, 128], strides = [1, 1]} : vector<8x512xf32> to vector<8x128xf32>
    %145 = arith.negf %144 : vector<8x128xf32>
    %146 = math.exp %145 : vector<8x128xf32>
    %cst_34 = arith.constant 1.000000e+00 : f32
    %147 = vector.broadcast %cst_34 : f32 to vector<8x128xf32>
    %148 = arith.addf %147, %146 : vector<8x128xf32>
    %149 = arith.divf %147, %148 : vector<8x128xf32>
    %150 = arith.mulf %141, %92 : vector<8x128xf32>
    %151 = arith.mulf %135, %143 : vector<8x128xf32>
    %152 = arith.addf %150, %151 : vector<8x128xf32>
    %153 = math.tanh %152 : vector<8x128xf32>
    %154 = arith.mulf %149, %153 : vector<8x128xf32>
    %cst_35 = arith.constant dense<0.000000e+00> : vector<8x512xf32>
    %155 = tpu.matmul %154, %1, %cst_35 {dimension_numbers = #tpu.dot_dimension_numbers<[1], [0], [0], [1], [0, 0, 1, 1], [], []>} : vector<8x128xf32>, vector<128x512xf32>, vector<8x512xf32> -> vector<8x512xf32>
    %cst_36 = arith.constant dense<0.000000e+00> : vector<8x512xf32>
    %156 = tpu.matmul %124, %2, %cst_36 {dimension_numbers = #tpu.dot_dimension_numbers<[1], [0], [0], [1], [0, 0, 1, 1], [], []>} : vector<8x128xf32>, vector<128x512xf32>, vector<8x512xf32> -> vector<8x512xf32>
    %157 = arith.addf %155, %156 : vector<8x512xf32>
    %158 = vector.broadcast %3 : vector<1x512xf32> to vector<8x512xf32>
    %159 = arith.addf %157, %158 : vector<8x512xf32>
    %160 = vector.extract_strided_slice %159 {offsets = [0, 0], sizes = [8, 128], strides = [1, 1]} : vector<8x512xf32> to vector<8x128xf32>
    %161 = arith.negf %160 : vector<8x128xf32>
    %162 = math.exp %161 : vector<8x128xf32>
    %cst_37 = arith.constant 1.000000e+00 : f32
    %163 = vector.broadcast %cst_37 : f32 to vector<8x128xf32>
    %164 = arith.addf %163, %162 : vector<8x128xf32>
    %165 = arith.divf %163, %164 : vector<8x128xf32>
    %166 = vector.extract_strided_slice %159 {offsets = [0, 128], sizes = [8, 128], strides = [1, 1]} : vector<8x512xf32> to vector<8x128xf32>
    %167 = arith.negf %166 : vector<8x128xf32>
    %168 = math.exp %167 : vector<8x128xf32>
    %cst_38 = arith.constant 1.000000e+00 : f32
    %169 = vector.broadcast %cst_38 : f32 to vector<8x128xf32>
    %170 = arith.addf %169, %168 : vector<8x128xf32>
    %171 = arith.divf %169, %170 : vector<8x128xf32>
    %172 = vector.extract_strided_slice %159 {offsets = [0, 256], sizes = [8, 128], strides = [1, 1]} : vector<8x512xf32> to vector<8x128xf32>
    %173 = math.tanh %172 : vector<8x128xf32>
    %174 = vector.extract_strided_slice %159 {offsets = [0, 384], sizes = [8, 128], strides = [1, 1]} : vector<8x512xf32> to vector<8x128xf32>
    %175 = arith.negf %174 : vector<8x128xf32>
    %176 = math.exp %175 : vector<8x128xf32>
    %cst_39 = arith.constant 1.000000e+00 : f32
    %177 = vector.broadcast %cst_39 : f32 to vector<8x128xf32>
    %178 = arith.addf %177, %176 : vector<8x128xf32>
    %179 = arith.divf %177, %178 : vector<8x128xf32>
    %180 = arith.mulf %171, %122 : vector<8x128xf32>
    %181 = arith.mulf %165, %173 : vector<8x128xf32>
    %182 = arith.addf %180, %181 : vector<8x128xf32>
    %183 = math.tanh %182 : vector<8x128xf32>
    %184 = arith.mulf %179, %183 : vector<8x128xf32>
    %c3_i32 = arith.constant 3 : i32
    %185 = arith.index_cast %c3_i32 : i32 to index
    %c0_40 = arith.constant 0 : index
    %c0_41 = arith.constant 0 : index
    %186 = vector.load %arg1[%185, %c0_40, %c0_41] : memref<8x8x512xf32, #tpu.memory_space<vmem>>, vector<1x8x512xf32>
    %187 = vector.shape_cast %186 : vector<1x8x512xf32> to vector<8x512xf32>
    %cst_42 = arith.constant dense<0.000000e+00> : vector<8x512xf32>
    %188 = tpu.matmul %154, %0, %cst_42 {dimension_numbers = #tpu.dot_dimension_numbers<[1], [0], [0], [1], [0, 0, 1, 1], [], []>} : vector<8x128xf32>, vector<128x512xf32>, vector<8x512xf32> -> vector<8x512xf32>
    %189 = arith.addf %187, %188 : vector<8x512xf32>
    %190 = vector.extract_strided_slice %189 {offsets = [0, 0], sizes = [8, 128], strides = [1, 1]} : vector<8x512xf32> to vector<8x128xf32>
    %191 = arith.negf %190 : vector<8x128xf32>
    %192 = math.exp %191 : vector<8x128xf32>
    %cst_43 = arith.constant 1.000000e+00 : f32
    %193 = vector.broadcast %cst_43 : f32 to vector<8x128xf32>
    %194 = arith.addf %193, %192 : vector<8x128xf32>
    %195 = arith.divf %193, %194 : vector<8x128xf32>
    %196 = vector.extract_strided_slice %189 {offsets = [0, 128], sizes = [8, 128], strides = [1, 1]} : vector<8x512xf32> to vector<8x128xf32>
    %197 = arith.negf %196 : vector<8x128xf32>
    %198 = math.exp %197 : vector<8x128xf32>
    %cst_44 = arith.constant 1.000000e+00 : f32
    %199 = vector.broadcast %cst_44 : f32 to vector<8x128xf32>
    %200 = arith.addf %199, %198 : vector<8x128xf32>
    %201 = arith.divf %199, %200 : vector<8x128xf32>
    %202 = vector.extract_strided_slice %189 {offsets = [0, 256], sizes = [8, 128], strides = [1, 1]} : vector<8x512xf32> to vector<8x128xf32>
    %203 = math.tanh %202 : vector<8x128xf32>
    %204 = vector.extract_strided_slice %189 {offsets = [0, 384], sizes = [8, 128], strides = [1, 1]} : vector<8x512xf32> to vector<8x128xf32>
    %205 = arith.negf %204 : vector<8x128xf32>
    %206 = math.exp %205 : vector<8x128xf32>
    %cst_45 = arith.constant 1.000000e+00 : f32
    %207 = vector.broadcast %cst_45 : f32 to vector<8x128xf32>
    %208 = arith.addf %207, %206 : vector<8x128xf32>
    %209 = arith.divf %207, %208 : vector<8x128xf32>
    %210 = arith.mulf %201, %152 : vector<8x128xf32>
    %211 = arith.mulf %195, %203 : vector<8x128xf32>
    %212 = arith.addf %210, %211 : vector<8x128xf32>
    %213 = math.tanh %212 : vector<8x128xf32>
    %214 = arith.mulf %209, %213 : vector<8x128xf32>
    %cst_46 = arith.constant dense<0.000000e+00> : vector<8x512xf32>
    %215 = tpu.matmul %214, %1, %cst_46 {dimension_numbers = #tpu.dot_dimension_numbers<[1], [0], [0], [1], [0, 0, 1, 1], [], []>} : vector<8x128xf32>, vector<128x512xf32>, vector<8x512xf32> -> vector<8x512xf32>
    %cst_47 = arith.constant dense<0.000000e+00> : vector<8x512xf32>
    %216 = tpu.matmul %184, %2, %cst_47 {dimension_numbers = #tpu.dot_dimension_numbers<[1], [0], [0], [1], [0, 0, 1, 1], [], []>} : vector<8x128xf32>, vector<128x512xf32>, vector<8x512xf32> -> vector<8x512xf32>
    %217 = arith.addf %215, %216 : vector<8x512xf32>
    %218 = vector.broadcast %3 : vector<1x512xf32> to vector<8x512xf32>
    %219 = arith.addf %217, %218 : vector<8x512xf32>
    %220 = vector.extract_strided_slice %219 {offsets = [0, 0], sizes = [8, 128], strides = [1, 1]} : vector<8x512xf32> to vector<8x128xf32>
    %221 = arith.negf %220 : vector<8x128xf32>
    %222 = math.exp %221 : vector<8x128xf32>
    %cst_48 = arith.constant 1.000000e+00 : f32
    %223 = vector.broadcast %cst_48 : f32 to vector<8x128xf32>
    %224 = arith.addf %223, %222 : vector<8x128xf32>
    %225 = arith.divf %223, %224 : vector<8x128xf32>
    %226 = vector.extract_strided_slice %219 {offsets = [0, 128], sizes = [8, 128], strides = [1, 1]} : vector<8x512xf32> to vector<8x128xf32>
    %227 = arith.negf %226 : vector<8x128xf32>
    %228 = math.exp %227 : vector<8x128xf32>
    %cst_49 = arith.constant 1.000000e+00 : f32
    %229 = vector.broadcast %cst_49 : f32 to vector<8x128xf32>
    %230 = arith.addf %229, %228 : vector<8x128xf32>
    %231 = arith.divf %229, %230 : vector<8x128xf32>
    %232 = vector.extract_strided_slice %219 {offsets = [0, 256], sizes = [8, 128], strides = [1, 1]} : vector<8x512xf32> to vector<8x128xf32>
    %233 = math.tanh %232 : vector<8x128xf32>
    %234 = vector.extract_strided_slice %219 {offsets = [0, 384], sizes = [8, 128], strides = [1, 1]} : vector<8x512xf32> to vector<8x128xf32>
    %235 = arith.negf %234 : vector<8x128xf32>
    %236 = math.exp %235 : vector<8x128xf32>
    %cst_50 = arith.constant 1.000000e+00 : f32
    %237 = vector.broadcast %cst_50 : f32 to vector<8x128xf32>
    %238 = arith.addf %237, %236 : vector<8x128xf32>
    %239 = arith.divf %237, %238 : vector<8x128xf32>
    %240 = arith.mulf %231, %182 : vector<8x128xf32>
    %241 = arith.mulf %225, %233 : vector<8x128xf32>
    %242 = arith.addf %240, %241 : vector<8x128xf32>
    %243 = math.tanh %242 : vector<8x128xf32>
    %244 = arith.mulf %239, %243 : vector<8x128xf32>
    %c4_i32 = arith.constant 4 : i32
    %245 = arith.index_cast %c4_i32 : i32 to index
    %c0_51 = arith.constant 0 : index
    %c0_52 = arith.constant 0 : index
    %246 = vector.load %arg1[%245, %c0_51, %c0_52] : memref<8x8x512xf32, #tpu.memory_space<vmem>>, vector<1x8x512xf32>
    %247 = vector.shape_cast %246 : vector<1x8x512xf32> to vector<8x512xf32>
    %cst_53 = arith.constant dense<0.000000e+00> : vector<8x512xf32>
    %248 = tpu.matmul %214, %0, %cst_53 {dimension_numbers = #tpu.dot_dimension_numbers<[1], [0], [0], [1], [0, 0, 1, 1], [], []>} : vector<8x128xf32>, vector<128x512xf32>, vector<8x512xf32> -> vector<8x512xf32>
    %249 = arith.addf %247, %248 : vector<8x512xf32>
    %250 = vector.extract_strided_slice %249 {offsets = [0, 0], sizes = [8, 128], strides = [1, 1]} : vector<8x512xf32> to vector<8x128xf32>
    %251 = arith.negf %250 : vector<8x128xf32>
    %252 = math.exp %251 : vector<8x128xf32>
    %cst_54 = arith.constant 1.000000e+00 : f32
    %253 = vector.broadcast %cst_54 : f32 to vector<8x128xf32>
    %254 = arith.addf %253, %252 : vector<8x128xf32>
    %255 = arith.divf %253, %254 : vector<8x128xf32>
    %256 = vector.extract_strided_slice %249 {offsets = [0, 128], sizes = [8, 128], strides = [1, 1]} : vector<8x512xf32> to vector<8x128xf32>
    %257 = arith.negf %256 : vector<8x128xf32>
    %258 = math.exp %257 : vector<8x128xf32>
    %cst_55 = arith.constant 1.000000e+00 : f32
    %259 = vector.broadcast %cst_55 : f32 to vector<8x128xf32>
    %260 = arith.addf %259, %258 : vector<8x128xf32>
    %261 = arith.divf %259, %260 : vector<8x128xf32>
    %262 = vector.extract_strided_slice %249 {offsets = [0, 256], sizes = [8, 128], strides = [1, 1]} : vector<8x512xf32> to vector<8x128xf32>
    %263 = math.tanh %262 : vector<8x128xf32>
    %264 = vector.extract_strided_slice %249 {offsets = [0, 384], sizes = [8, 128], strides = [1, 1]} : vector<8x512xf32> to vector<8x128xf32>
    %265 = arith.negf %264 : vector<8x128xf32>
    %266 = math.exp %265 : vector<8x128xf32>
    %cst_56 = arith.constant 1.000000e+00 : f32
    %267 = vector.broadcast %cst_56 : f32 to vector<8x128xf32>
    %268 = arith.addf %267, %266 : vector<8x128xf32>
    %269 = arith.divf %267, %268 : vector<8x128xf32>
    %270 = arith.mulf %261, %212 : vector<8x128xf32>
    %271 = arith.mulf %255, %263 : vector<8x128xf32>
    %272 = arith.addf %270, %271 : vector<8x128xf32>
    %273 = math.tanh %272 : vector<8x128xf32>
    %274 = arith.mulf %269, %273 : vector<8x128xf32>
    %cst_57 = arith.constant dense<0.000000e+00> : vector<8x512xf32>
    %275 = tpu.matmul %274, %1, %cst_57 {dimension_numbers = #tpu.dot_dimension_numbers<[1], [0], [0], [1], [0, 0, 1, 1], [], []>} : vector<8x128xf32>, vector<128x512xf32>, vector<8x512xf32> -> vector<8x512xf32>
    %cst_58 = arith.constant dense<0.000000e+00> : vector<8x512xf32>
    %276 = tpu.matmul %244, %2, %cst_58 {dimension_numbers = #tpu.dot_dimension_numbers<[1], [0], [0], [1], [0, 0, 1, 1], [], []>} : vector<8x128xf32>, vector<128x512xf32>, vector<8x512xf32> -> vector<8x512xf32>
    %277 = arith.addf %275, %276 : vector<8x512xf32>
    %278 = vector.broadcast %3 : vector<1x512xf32> to vector<8x512xf32>
    %279 = arith.addf %277, %278 : vector<8x512xf32>
    %280 = vector.extract_strided_slice %279 {offsets = [0, 0], sizes = [8, 128], strides = [1, 1]} : vector<8x512xf32> to vector<8x128xf32>
    %281 = arith.negf %280 : vector<8x128xf32>
    %282 = math.exp %281 : vector<8x128xf32>
    %cst_59 = arith.constant 1.000000e+00 : f32
    %283 = vector.broadcast %cst_59 : f32 to vector<8x128xf32>
    %284 = arith.addf %283, %282 : vector<8x128xf32>
    %285 = arith.divf %283, %284 : vector<8x128xf32>
    %286 = vector.extract_strided_slice %279 {offsets = [0, 128], sizes = [8, 128], strides = [1, 1]} : vector<8x512xf32> to vector<8x128xf32>
    %287 = arith.negf %286 : vector<8x128xf32>
    %288 = math.exp %287 : vector<8x128xf32>
    %cst_60 = arith.constant 1.000000e+00 : f32
    %289 = vector.broadcast %cst_60 : f32 to vector<8x128xf32>
    %290 = arith.addf %289, %288 : vector<8x128xf32>
    %291 = arith.divf %289, %290 : vector<8x128xf32>
    %292 = vector.extract_strided_slice %279 {offsets = [0, 256], sizes = [8, 128], strides = [1, 1]} : vector<8x512xf32> to vector<8x128xf32>
    %293 = math.tanh %292 : vector<8x128xf32>
    %294 = vector.extract_strided_slice %279 {offsets = [0, 384], sizes = [8, 128], strides = [1, 1]} : vector<8x512xf32> to vector<8x128xf32>
    %295 = arith.negf %294 : vector<8x128xf32>
    %296 = math.exp %295 : vector<8x128xf32>
    %cst_61 = arith.constant 1.000000e+00 : f32
    %297 = vector.broadcast %cst_61 : f32 to vector<8x128xf32>
    %298 = arith.addf %297, %296 : vector<8x128xf32>
    %299 = arith.divf %297, %298 : vector<8x128xf32>
    %300 = arith.mulf %291, %242 : vector<8x128xf32>
    %301 = arith.mulf %285, %293 : vector<8x128xf32>
    %302 = arith.addf %300, %301 : vector<8x128xf32>
    %303 = math.tanh %302 : vector<8x128xf32>
    %304 = arith.mulf %299, %303 : vector<8x128xf32>
    %c5_i32 = arith.constant 5 : i32
    %305 = arith.index_cast %c5_i32 : i32 to index
    %c0_62 = arith.constant 0 : index
    %c0_63 = arith.constant 0 : index
    %306 = vector.load %arg1[%305, %c0_62, %c0_63] : memref<8x8x512xf32, #tpu.memory_space<vmem>>, vector<1x8x512xf32>
    %307 = vector.shape_cast %306 : vector<1x8x512xf32> to vector<8x512xf32>
    %cst_64 = arith.constant dense<0.000000e+00> : vector<8x512xf32>
    %308 = tpu.matmul %274, %0, %cst_64 {dimension_numbers = #tpu.dot_dimension_numbers<[1], [0], [0], [1], [0, 0, 1, 1], [], []>} : vector<8x128xf32>, vector<128x512xf32>, vector<8x512xf32> -> vector<8x512xf32>
    %309 = arith.addf %307, %308 : vector<8x512xf32>
    %310 = vector.extract_strided_slice %309 {offsets = [0, 0], sizes = [8, 128], strides = [1, 1]} : vector<8x512xf32> to vector<8x128xf32>
    %311 = arith.negf %310 : vector<8x128xf32>
    %312 = math.exp %311 : vector<8x128xf32>
    %cst_65 = arith.constant 1.000000e+00 : f32
    %313 = vector.broadcast %cst_65 : f32 to vector<8x128xf32>
    %314 = arith.addf %313, %312 : vector<8x128xf32>
    %315 = arith.divf %313, %314 : vector<8x128xf32>
    %316 = vector.extract_strided_slice %309 {offsets = [0, 128], sizes = [8, 128], strides = [1, 1]} : vector<8x512xf32> to vector<8x128xf32>
    %317 = arith.negf %316 : vector<8x128xf32>
    %318 = math.exp %317 : vector<8x128xf32>
    %cst_66 = arith.constant 1.000000e+00 : f32
    %319 = vector.broadcast %cst_66 : f32 to vector<8x128xf32>
    %320 = arith.addf %319, %318 : vector<8x128xf32>
    %321 = arith.divf %319, %320 : vector<8x128xf32>
    %322 = vector.extract_strided_slice %309 {offsets = [0, 256], sizes = [8, 128], strides = [1, 1]} : vector<8x512xf32> to vector<8x128xf32>
    %323 = math.tanh %322 : vector<8x128xf32>
    %324 = vector.extract_strided_slice %309 {offsets = [0, 384], sizes = [8, 128], strides = [1, 1]} : vector<8x512xf32> to vector<8x128xf32>
    %325 = arith.negf %324 : vector<8x128xf32>
    %326 = math.exp %325 : vector<8x128xf32>
    %cst_67 = arith.constant 1.000000e+00 : f32
    %327 = vector.broadcast %cst_67 : f32 to vector<8x128xf32>
    %328 = arith.addf %327, %326 : vector<8x128xf32>
    %329 = arith.divf %327, %328 : vector<8x128xf32>
    %330 = arith.mulf %321, %272 : vector<8x128xf32>
    %331 = arith.mulf %315, %323 : vector<8x128xf32>
    %332 = arith.addf %330, %331 : vector<8x128xf32>
    %333 = math.tanh %332 : vector<8x128xf32>
    %334 = arith.mulf %329, %333 : vector<8x128xf32>
    %cst_68 = arith.constant dense<0.000000e+00> : vector<8x512xf32>
    %335 = tpu.matmul %334, %1, %cst_68 {dimension_numbers = #tpu.dot_dimension_numbers<[1], [0], [0], [1], [0, 0, 1, 1], [], []>} : vector<8x128xf32>, vector<128x512xf32>, vector<8x512xf32> -> vector<8x512xf32>
    %cst_69 = arith.constant dense<0.000000e+00> : vector<8x512xf32>
    %336 = tpu.matmul %304, %2, %cst_69 {dimension_numbers = #tpu.dot_dimension_numbers<[1], [0], [0], [1], [0, 0, 1, 1], [], []>} : vector<8x128xf32>, vector<128x512xf32>, vector<8x512xf32> -> vector<8x512xf32>
    %337 = arith.addf %335, %336 : vector<8x512xf32>
    %338 = vector.broadcast %3 : vector<1x512xf32> to vector<8x512xf32>
    %339 = arith.addf %337, %338 : vector<8x512xf32>
    %340 = vector.extract_strided_slice %339 {offsets = [0, 0], sizes = [8, 128], strides = [1, 1]} : vector<8x512xf32> to vector<8x128xf32>
    %341 = arith.negf %340 : vector<8x128xf32>
    %342 = math.exp %341 : vector<8x128xf32>
    %cst_70 = arith.constant 1.000000e+00 : f32
    %343 = vector.broadcast %cst_70 : f32 to vector<8x128xf32>
    %344 = arith.addf %343, %342 : vector<8x128xf32>
    %345 = arith.divf %343, %344 : vector<8x128xf32>
    %346 = vector.extract_strided_slice %339 {offsets = [0, 128], sizes = [8, 128], strides = [1, 1]} : vector<8x512xf32> to vector<8x128xf32>
    %347 = arith.negf %346 : vector<8x128xf32>
    %348 = math.exp %347 : vector<8x128xf32>
    %cst_71 = arith.constant 1.000000e+00 : f32
    %349 = vector.broadcast %cst_71 : f32 to vector<8x128xf32>
    %350 = arith.addf %349, %348 : vector<8x128xf32>
    %351 = arith.divf %349, %350 : vector<8x128xf32>
    %352 = vector.extract_strided_slice %339 {offsets = [0, 256], sizes = [8, 128], strides = [1, 1]} : vector<8x512xf32> to vector<8x128xf32>
    %353 = math.tanh %352 : vector<8x128xf32>
    %354 = vector.extract_strided_slice %339 {offsets = [0, 384], sizes = [8, 128], strides = [1, 1]} : vector<8x512xf32> to vector<8x128xf32>
    %355 = arith.negf %354 : vector<8x128xf32>
    %356 = math.exp %355 : vector<8x128xf32>
    %cst_72 = arith.constant 1.000000e+00 : f32
    %357 = vector.broadcast %cst_72 : f32 to vector<8x128xf32>
    %358 = arith.addf %357, %356 : vector<8x128xf32>
    %359 = arith.divf %357, %358 : vector<8x128xf32>
    %360 = arith.mulf %351, %302 : vector<8x128xf32>
    %361 = arith.mulf %345, %353 : vector<8x128xf32>
    %362 = arith.addf %360, %361 : vector<8x128xf32>
    %363 = math.tanh %362 : vector<8x128xf32>
    %364 = arith.mulf %359, %363 : vector<8x128xf32>
    %c6_i32 = arith.constant 6 : i32
    %365 = arith.index_cast %c6_i32 : i32 to index
    %c0_73 = arith.constant 0 : index
    %c0_74 = arith.constant 0 : index
    %366 = vector.load %arg1[%365, %c0_73, %c0_74] : memref<8x8x512xf32, #tpu.memory_space<vmem>>, vector<1x8x512xf32>
    %367 = vector.shape_cast %366 : vector<1x8x512xf32> to vector<8x512xf32>
    %cst_75 = arith.constant dense<0.000000e+00> : vector<8x512xf32>
    %368 = tpu.matmul %334, %0, %cst_75 {dimension_numbers = #tpu.dot_dimension_numbers<[1], [0], [0], [1], [0, 0, 1, 1], [], []>} : vector<8x128xf32>, vector<128x512xf32>, vector<8x512xf32> -> vector<8x512xf32>
    %369 = arith.addf %367, %368 : vector<8x512xf32>
    %370 = vector.extract_strided_slice %369 {offsets = [0, 0], sizes = [8, 128], strides = [1, 1]} : vector<8x512xf32> to vector<8x128xf32>
    %371 = arith.negf %370 : vector<8x128xf32>
    %372 = math.exp %371 : vector<8x128xf32>
    %cst_76 = arith.constant 1.000000e+00 : f32
    %373 = vector.broadcast %cst_76 : f32 to vector<8x128xf32>
    %374 = arith.addf %373, %372 : vector<8x128xf32>
    %375 = arith.divf %373, %374 : vector<8x128xf32>
    %376 = vector.extract_strided_slice %369 {offsets = [0, 128], sizes = [8, 128], strides = [1, 1]} : vector<8x512xf32> to vector<8x128xf32>
    %377 = arith.negf %376 : vector<8x128xf32>
    %378 = math.exp %377 : vector<8x128xf32>
    %cst_77 = arith.constant 1.000000e+00 : f32
    %379 = vector.broadcast %cst_77 : f32 to vector<8x128xf32>
    %380 = arith.addf %379, %378 : vector<8x128xf32>
    %381 = arith.divf %379, %380 : vector<8x128xf32>
    %382 = vector.extract_strided_slice %369 {offsets = [0, 256], sizes = [8, 128], strides = [1, 1]} : vector<8x512xf32> to vector<8x128xf32>
    %383 = math.tanh %382 : vector<8x128xf32>
    %384 = vector.extract_strided_slice %369 {offsets = [0, 384], sizes = [8, 128], strides = [1, 1]} : vector<8x512xf32> to vector<8x128xf32>
    %385 = arith.negf %384 : vector<8x128xf32>
    %386 = math.exp %385 : vector<8x128xf32>
    %cst_78 = arith.constant 1.000000e+00 : f32
    %387 = vector.broadcast %cst_78 : f32 to vector<8x128xf32>
    %388 = arith.addf %387, %386 : vector<8x128xf32>
    %389 = arith.divf %387, %388 : vector<8x128xf32>
    %390 = arith.mulf %381, %332 : vector<8x128xf32>
    %391 = arith.mulf %375, %383 : vector<8x128xf32>
    %392 = arith.addf %390, %391 : vector<8x128xf32>
    %393 = math.tanh %392 : vector<8x128xf32>
    %394 = arith.mulf %389, %393 : vector<8x128xf32>
    %cst_79 = arith.constant dense<0.000000e+00> : vector<8x512xf32>
    %395 = tpu.matmul %394, %1, %cst_79 {dimension_numbers = #tpu.dot_dimension_numbers<[1], [0], [0], [1], [0, 0, 1, 1], [], []>} : vector<8x128xf32>, vector<128x512xf32>, vector<8x512xf32> -> vector<8x512xf32>
    %cst_80 = arith.constant dense<0.000000e+00> : vector<8x512xf32>
    %396 = tpu.matmul %364, %2, %cst_80 {dimension_numbers = #tpu.dot_dimension_numbers<[1], [0], [0], [1], [0, 0, 1, 1], [], []>} : vector<8x128xf32>, vector<128x512xf32>, vector<8x512xf32> -> vector<8x512xf32>
    %397 = arith.addf %395, %396 : vector<8x512xf32>
    %398 = vector.broadcast %3 : vector<1x512xf32> to vector<8x512xf32>
    %399 = arith.addf %397, %398 : vector<8x512xf32>
    %400 = vector.extract_strided_slice %399 {offsets = [0, 0], sizes = [8, 128], strides = [1, 1]} : vector<8x512xf32> to vector<8x128xf32>
    %401 = arith.negf %400 : vector<8x128xf32>
    %402 = math.exp %401 : vector<8x128xf32>
    %cst_81 = arith.constant 1.000000e+00 : f32
    %403 = vector.broadcast %cst_81 : f32 to vector<8x128xf32>
    %404 = arith.addf %403, %402 : vector<8x128xf32>
    %405 = arith.divf %403, %404 : vector<8x128xf32>
    %406 = vector.extract_strided_slice %399 {offsets = [0, 128], sizes = [8, 128], strides = [1, 1]} : vector<8x512xf32> to vector<8x128xf32>
    %407 = arith.negf %406 : vector<8x128xf32>
    %408 = math.exp %407 : vector<8x128xf32>
    %cst_82 = arith.constant 1.000000e+00 : f32
    %409 = vector.broadcast %cst_82 : f32 to vector<8x128xf32>
    %410 = arith.addf %409, %408 : vector<8x128xf32>
    %411 = arith.divf %409, %410 : vector<8x128xf32>
    %412 = vector.extract_strided_slice %399 {offsets = [0, 256], sizes = [8, 128], strides = [1, 1]} : vector<8x512xf32> to vector<8x128xf32>
    %413 = math.tanh %412 : vector<8x128xf32>
    %414 = vector.extract_strided_slice %399 {offsets = [0, 384], sizes = [8, 128], strides = [1, 1]} : vector<8x512xf32> to vector<8x128xf32>
    %415 = arith.negf %414 : vector<8x128xf32>
    %416 = math.exp %415 : vector<8x128xf32>
    %cst_83 = arith.constant 1.000000e+00 : f32
    %417 = vector.broadcast %cst_83 : f32 to vector<8x128xf32>
    %418 = arith.addf %417, %416 : vector<8x128xf32>
    %419 = arith.divf %417, %418 : vector<8x128xf32>
    %420 = arith.mulf %411, %362 : vector<8x128xf32>
    %421 = arith.mulf %405, %413 : vector<8x128xf32>
    %422 = arith.addf %420, %421 : vector<8x128xf32>
    %423 = math.tanh %422 : vector<8x128xf32>
    %424 = arith.mulf %419, %423 : vector<8x128xf32>
    %c7_i32 = arith.constant 7 : i32
    %425 = arith.index_cast %c7_i32 : i32 to index
    %c0_84 = arith.constant 0 : index
    %c0_85 = arith.constant 0 : index
    %426 = vector.load %arg1[%425, %c0_84, %c0_85] : memref<8x8x512xf32, #tpu.memory_space<vmem>>, vector<1x8x512xf32>
    %427 = vector.shape_cast %426 : vector<1x8x512xf32> to vector<8x512xf32>
    %cst_86 = arith.constant dense<0.000000e+00> : vector<8x512xf32>
    %428 = tpu.matmul %394, %0, %cst_86 {dimension_numbers = #tpu.dot_dimension_numbers<[1], [0], [0], [1], [0, 0, 1, 1], [], []>} : vector<8x128xf32>, vector<128x512xf32>, vector<8x512xf32> -> vector<8x512xf32>
    %429 = arith.addf %427, %428 : vector<8x512xf32>
    %430 = vector.extract_strided_slice %429 {offsets = [0, 0], sizes = [8, 128], strides = [1, 1]} : vector<8x512xf32> to vector<8x128xf32>
    %431 = arith.negf %430 : vector<8x128xf32>
    %432 = math.exp %431 : vector<8x128xf32>
    %cst_87 = arith.constant 1.000000e+00 : f32
    %433 = vector.broadcast %cst_87 : f32 to vector<8x128xf32>
    %434 = arith.addf %433, %432 : vector<8x128xf32>
    %435 = arith.divf %433, %434 : vector<8x128xf32>
    %436 = vector.extract_strided_slice %429 {offsets = [0, 128], sizes = [8, 128], strides = [1, 1]} : vector<8x512xf32> to vector<8x128xf32>
    %437 = arith.negf %436 : vector<8x128xf32>
    %438 = math.exp %437 : vector<8x128xf32>
    %cst_88 = arith.constant 1.000000e+00 : f32
    %439 = vector.broadcast %cst_88 : f32 to vector<8x128xf32>
    %440 = arith.addf %439, %438 : vector<8x128xf32>
    %441 = arith.divf %439, %440 : vector<8x128xf32>
    %442 = vector.extract_strided_slice %429 {offsets = [0, 256], sizes = [8, 128], strides = [1, 1]} : vector<8x512xf32> to vector<8x128xf32>
    %443 = math.tanh %442 : vector<8x128xf32>
    %444 = vector.extract_strided_slice %429 {offsets = [0, 384], sizes = [8, 128], strides = [1, 1]} : vector<8x512xf32> to vector<8x128xf32>
    %445 = arith.negf %444 : vector<8x128xf32>
    %446 = math.exp %445 : vector<8x128xf32>
    %cst_89 = arith.constant 1.000000e+00 : f32
    %447 = vector.broadcast %cst_89 : f32 to vector<8x128xf32>
    %448 = arith.addf %447, %446 : vector<8x128xf32>
    %449 = arith.divf %447, %448 : vector<8x128xf32>
    %450 = arith.mulf %441, %392 : vector<8x128xf32>
    %451 = arith.mulf %435, %443 : vector<8x128xf32>
    %452 = arith.addf %450, %451 : vector<8x128xf32>
    %453 = math.tanh %452 : vector<8x128xf32>
    %454 = arith.mulf %449, %453 : vector<8x128xf32>
    %cst_90 = arith.constant dense<0.000000e+00> : vector<8x512xf32>
    %455 = tpu.matmul %454, %1, %cst_90 {dimension_numbers = #tpu.dot_dimension_numbers<[1], [0], [0], [1], [0, 0, 1, 1], [], []>} : vector<8x128xf32>, vector<128x512xf32>, vector<8x512xf32> -> vector<8x512xf32>
    %cst_91 = arith.constant dense<0.000000e+00> : vector<8x512xf32>
    %456 = tpu.matmul %424, %2, %cst_91 {dimension_numbers = #tpu.dot_dimension_numbers<[1], [0], [0], [1], [0, 0, 1, 1], [], []>} : vector<8x128xf32>, vector<128x512xf32>, vector<8x512xf32> -> vector<8x512xf32>
    %457 = arith.addf %455, %456 : vector<8x512xf32>
    %458 = vector.broadcast %3 : vector<1x512xf32> to vector<8x512xf32>
    %459 = arith.addf %457, %458 : vector<8x512xf32>
    %460 = vector.extract_strided_slice %459 {offsets = [0, 0], sizes = [8, 128], strides = [1, 1]} : vector<8x512xf32> to vector<8x128xf32>
    %461 = arith.negf %460 : vector<8x128xf32>
    %462 = math.exp %461 : vector<8x128xf32>
    %cst_92 = arith.constant 1.000000e+00 : f32
    %463 = vector.broadcast %cst_92 : f32 to vector<8x128xf32>
    %464 = arith.addf %463, %462 : vector<8x128xf32>
    %465 = arith.divf %463, %464 : vector<8x128xf32>
    %466 = vector.extract_strided_slice %459 {offsets = [0, 128], sizes = [8, 128], strides = [1, 1]} : vector<8x512xf32> to vector<8x128xf32>
    %467 = arith.negf %466 : vector<8x128xf32>
    %468 = math.exp %467 : vector<8x128xf32>
    %cst_93 = arith.constant 1.000000e+00 : f32
    %469 = vector.broadcast %cst_93 : f32 to vector<8x128xf32>
    %470 = arith.addf %469, %468 : vector<8x128xf32>
    %471 = arith.divf %469, %470 : vector<8x128xf32>
    %472 = vector.extract_strided_slice %459 {offsets = [0, 256], sizes = [8, 128], strides = [1, 1]} : vector<8x512xf32> to vector<8x128xf32>
    %473 = math.tanh %472 : vector<8x128xf32>
    %474 = vector.extract_strided_slice %459 {offsets = [0, 384], sizes = [8, 128], strides = [1, 1]} : vector<8x512xf32> to vector<8x128xf32>
    %475 = arith.negf %474 : vector<8x128xf32>
    %476 = math.exp %475 : vector<8x128xf32>
    %cst_94 = arith.constant 1.000000e+00 : f32
    %477 = vector.broadcast %cst_94 : f32 to vector<8x128xf32>
    %478 = arith.addf %477, %476 : vector<8x128xf32>
    %479 = arith.divf %477, %478 : vector<8x128xf32>
    %480 = arith.mulf %471, %422 : vector<8x128xf32>
    %481 = arith.mulf %465, %473 : vector<8x128xf32>
    %482 = arith.addf %480, %481 : vector<8x128xf32>
    %483 = math.tanh %482 : vector<8x128xf32>
    %484 = arith.mulf %479, %483 : vector<8x128xf32>
    %c8_i32 = arith.constant 8 : i32
    %c0_95 = arith.constant 0 : index
    %c0_96 = arith.constant 0 : index
    %485 = vector.load %arg6[%c0_95, %c0_96] : memref<128x1xf32, #tpu.memory_space<vmem>>, vector<128x1xf32>
    %cst_97 = arith.constant dense<0.000000e+00> : vector<8x1xf32>
    %486 = tpu.matmul %484, %485, %cst_97 {dimension_numbers = #tpu.dot_dimension_numbers<[1], [0], [0], [1], [0, 0, 1, 1], [], []>} : vector<8x128xf32>, vector<128x1xf32>, vector<8x1xf32> -> vector<8x1xf32>
    %c0_98 = arith.constant 0 : index
    %c0_99 = arith.constant 0 : index
    %487 = vector.load %arg7[%c0_98, %c0_99] : memref<1x1xf32, #tpu.memory_space<vmem>>, vector<1x1xf32>
    %488 = vector.broadcast %487 : vector<1x1xf32> to vector<8x1xf32>
    %489 = arith.addf %486, %488 : vector<8x1xf32>
    %c0_100 = arith.constant 0 : index
    %c0_101 = arith.constant 0 : index
    %490 = vector.load %arg8[%c0_100, %c0_101] : memref<8x1xf32, #tpu.memory_space<vmem>>, vector<8x1xf32>
    tpu.vector_store %arg8[%c0_100, %c0_101], %489 {strides = array<i32>} : memref<8x1xf32, #tpu.memory_space<vmem>>, vector<8x1xf32>,
    return
  }
  func.func @transform_0(%arg0: i32) -> (i32, i32, i32) {
    %c0_i32 = arith.constant 0 : i32
    %c0_i32_0 = arith.constant 0 : i32
    %c0_i32_1 = arith.constant 0 : i32
    %c0_i32_2 = arith.constant 0 : i32
    return %c0_i32, %c0_i32_0, %c0_i32_1 : i32, i32, i32
  }
  func.func @transform_1(%arg0: i32) -> (i32, i32) {
    %c0_i32 = arith.constant 0 : i32
    %c0_i32_0 = arith.constant 0 : i32
    %c0_i32_1 = arith.constant 0 : i32
    return %c0_i32, %c0_i32_0 : i32, i32
  }
  func.func @transform_2(%arg0: i32) -> (i32, i32) {
    %c0_i32 = arith.constant 0 : i32
    %c0_i32_0 = arith.constant 0 : i32
    %c0_i32_1 = arith.constant 0 : i32
    return %c0_i32, %c0_i32_0 : i32, i32
  }
  func.func @transform_3(%arg0: i32) -> (i32, i32) {
    %c0_i32 = arith.constant 0 : i32
    %c0_i32_0 = arith.constant 0 : i32
    %c0_i32_1 = arith.constant 0 : i32
    return %c0_i32, %c0_i32_0 : i32, i32
  }
  func.func @transform_4(%arg0: i32) -> (i32, i32) {
    %c0_i32 = arith.constant 0 : i32
    %c0_i32_0 = arith.constant 0 : i32
    %c0_i32_1 = arith.constant 0 : i32
    return %c0_i32, %c0_i32_0 : i32, i32
  }
  func.func @transform_5(%arg0: i32) -> (i32, i32) {
    %c0_i32 = arith.constant 0 : i32
    %c0_i32_0 = arith.constant 0 : i32
    %c0_i32_1 = arith.constant 0 : i32
    return %c0_i32, %c0_i32_0 : i32, i32
  }
  func.func @transform_6(%arg0: i32) -> (i32, i32) {
    %c0_i32 = arith.constant 0 : i32
    %c0_i32_0 = arith.constant 0 : i32
    %c0_i32_1 = arith.constant 0 : i32
    return %c0_i32, %c0_i32_0 : i32, i32
  }
  func.func @transform_7(%arg0: i32) -> (i32, i32) {
    %c0_i32 = arith.constant 0 : i32
    %c0_i32_0 = arith.constant 0 : i32
    %c0_i32_1 = arith.constant 0 : i32
    return %c0_i32, %c0_i32_0 : i32, i32
  }
}

</mosaic_0001>

<bundles_post_ra>
// kernel: tpu_custom_call.1
= control target key start
LH: loop header
LB: loop body
LE: loop exit
PB: predicated region body
PF: predicated region fallthrough
CT: control target
= control target key end

     0   :  { %s8729_s0 = inlined_call_operand.hbm [shape: f32[8,8,512], index: 0, kind: input, shape index: {}]   ;;  %s8730_s1 = inlined_call_operand.hbm [shape: f32[128,512], index: 1, kind: input, shape index: {}]   ;;  %s8731_s2 = inlined_call_operand.hbm [shape: f32[128,512], index: 2, kind: input, shape index: {}]   ;;  %s8732_s3 = inlined_call_operand.hbm [shape: f32[128,512], index: 3, kind: input, shape index: {}]   ;;  %s8733_s4 = inlined_call_operand.vmem [shape: f32[1,512], index: 4, kind: input, shape index: {}]   ;;  %s8734_s5 = inlined_call_operand.vmem [shape: f32[128,1], index: 5, kind: input, shape index: {}]   ;;  %s8735_s6 = inlined_call_operand.<no memory space> [shape: f32[1,1], index: 6, kind: input, shape index: {}]   ;;  %s8736_s7 = inlined_call_operand.vmem [shape: f32[8,1], index: 7, kind: output, shape index: {}]  }
   0x1   :  { %v12_v0 = vstv %s8735_s6 }
   0x2   :  { %13 = vst [vmem:[#allocation2] sm:$0x1] %v12_v0 }
   0x3   :  { %14 = vsyncpa [#allocation4], 0 }
   0x4   :  { %15 = vsyncpa [#allocation6], 0 }
   0x5   :  { %16 = vsyncpa [#allocation9], 0  ;;  %s5321_s26 = smov [#allocation5]   ;;  %s5322_s28 = smov [#allocation3]  }
   0x6   :  { %s34_s27 = sshll.u32 %s5321_s26, 4  ;;  %s22_s29 = sshll.u32 %s5322_s28, 4  ;;  %s35_s27 = int_to_ptr.vmem [resolvable:$true] %s34_s27  ;;  %s23_s29 = int_to_ptr.vmem [resolvable:$true] %s22_s29 }
   0x7   :  { %s5243_s30 = scalar_lea.vmem %s35_s27, 8192  ;;  %p5248_p1 = scmp.lt.s32.totalorder %s35_s27, %s35_s27 }
   0x8   :  { %p5244_p0 = scmp.ne.s32.totalorder %s35_s27, %s5243_s30  ;;  %p5249_p2 = scmp.lt.s32.totalorder %s5243_s30, %s5243_s30 }
   0xa   :  { %p5250_p3 = por %p5249_p2, %p5248_p1 }
   0xc   :  { %p5251_p4 = pnand %p5250_p3, %p5244_p0 }
   0xe   :  { %5254 = shalt.err (!%p5251_p4)
}
   0xf   :  { %s5323_s8 = smov 512   ;;  %s5324_s9 = smov 32  }
  0x10   :  { %40 = dma.hbm_to_vmem [thread:$0]  %s8730_s1, 8192, %s35_s27, [#allocation6], %s5323_s8, %s5323_s8, %s5324_s9  }
  0x11   :  { %s5263_s11 = scalar_lea.vmem %s23_s29, 4096  ;;  %p5268_p6 = scmp.lt.s32.totalorder %s23_s29, %s23_s29 }
  0x12   :  { %p5264_p5 = scmp.ne.s32.totalorder %s23_s29, %s5263_s11  ;;  %p5269_p7 = scmp.lt.s32.totalorder %s5263_s11, %s5263_s11 }
  0x14   :  { %p5270_p8 = por %p5269_p7, %p5268_p6 }
  0x16   :  { %p5271_p9 = pnand %p5270_p8, %p5264_p5 }
  0x18   :  { %5274 = shalt.err (!%p5271_p9)
}
  0x19   :  { %28 = dma.hbm_to_vmem [thread:$0]  %s8729_s0, 4096, %s23_s29, [#allocation4], %s5323_s8, %s5323_s8, %s5324_s9  }
  0x1a   :  { %s5325_s14 = smov [#allocation7]   ;;  %s5326_s16 = smov [#allocation8]  }
  0x1b   :  { %s46_s15 = sshll.u32 %s5325_s14, 4  ;;  %s58_s17 = sshll.u32 %s5326_s16, 4  ;;  %s47_s15 = int_to_ptr.vmem [resolvable:$true] %s46_s15  ;;  %s59_s17 = int_to_ptr.vmem [resolvable:$true] %s58_s17 }
  0x1c   :  { %s5283_s1 = scalar_lea.vmem %s47_s15, 8192  ;;  %p5288_p11 = scmp.lt.s32.totalorder %s47_s15, %s47_s15 }
  0x1d   :  { %p5284_p10 = scmp.ne.s32.totalorder %s47_s15, %s5283_s1  ;;  %p5289_p12 = scmp.lt.s32.totalorder %s5283_s1, %s5283_s1 }
  0x1f   :  { %p5290_p13 = por %p5289_p12, %p5288_p11 }
  0x21   :  { %p5291_p0 = pnand %p5290_p13, %p5284_p10 }
  0x23   :  { %5294 = shalt.err (!%p5291_p0)
}
  0x24   :  { %52 = dma.hbm_to_vmem [thread:$0]  %s8731_s2, 8192, %s47_s15, [#allocation6], %s5323_s8, %s5323_s8, %s5324_s9  }
  0x25   :  { %s5303_s0 = scalar_lea.vmem %s59_s17, 8192  ;;  %p5308_p2 = scmp.lt.s32.totalorder %s59_s17, %s59_s17 }
  0x26   :  { %p5304_p1 = scmp.ne.s32.totalorder %s59_s17, %s5303_s0  ;;  %p5309_p3 = scmp.lt.s32.totalorder %s5303_s0, %s5303_s0 }
  0x28   :  { %p5310_p4 = por %p5309_p3, %p5308_p2 }
  0x2a   :  { %p5311_p5 = pnand %p5310_p4, %p5304_p1 }
  0x2c   :  { %5314 = shalt.err (!%p5311_p5)
}
  0x2d   :  { %64 = dma.hbm_to_vmem [thread:$0]  %s8732_s3, 8192, %s59_s17, [#allocation9], %s5323_s8, %s5323_s8, %s5324_s9  }
  0x2e   :  { %5315 = dma.done.wait [#allocation4], 4096  }
  0x2f   :  { %5316 = vsyncadd [#allocation4], 4294963200 }
  0x30   :  { %5317 = dma.done.wait [#allocation6], 16384  }
  0x31   :  { %5318 = vsyncadd [#allocation6], 4294950912 }
  0x32   :  { %5319 = dma.done.wait [#allocation9], 8192  }
  0x33   :  { %5320 = vsyncadd [#allocation9], 4294959104  ;;  %v8737_v1 = vmov 0.0   ;;  %v5398_v2 = vld [vmem:[#allocation5 + $0x1e8] sm:$0xff]  ;;  %v5400_v3 = vld [vmem:[#allocation5 + $0x1e0] sm:$0xff]  ;;  %vm5328_vm0 = vmmov 0  }
  0x34   :  { %344 = vmatprep.mubr.f32.mxu0 %v8737_v1  ;;  %415 = vmatprep.mubr.f32.mxu1 %v8737_v1  ;;  %v5402_v4 = vld [vmem:[#allocation5 + $0x1c8] sm:$0xff]  ;;  %v5405_v5 = vld [vmem:[#allocation5 + $0x1c0] sm:$0xff]  ;;  %v5419_v10 = vld [vmem:[#allocation5 + $0x1f8] sm:$0xff]  ;;  %vm4285_vm1 = vcmask 7168  }
  0x35   :  { %280 = vmatprep.subr.mxu0 %v5398_v2  ;;  %v5408_v6 = vld [vmem:[#allocation5 + $0x1a8] sm:$0xff]  ;;  %v5411_v7 = vld [vmem:[#allocation5 + $0x1a0] sm:$0xff]  ;;  %351 = vmatprep.subr.mxu1 %v5419_v10  ;;  %v5425_v12 = vld [vmem:[#allocation5 + $0x1f0] sm:$0xff] }
  0x36   :  { %281 = vmatpush1.msra.mxu0 %v5400_v3  ;;  %v5414_v8 = vld [vmem:[#allocation5 + $0x188] sm:$0xff]  ;;  %v5417_v9 = vld [vmem:[#allocation5 + $0x180] sm:$0xff]  ;;  %352 = vmatpush1.msra.mxu1 %v5425_v12  ;;  %v5431_v14 = vld [vmem:[#allocation5 + $0x1d8] sm:$0xff] }
  0x37   :  { %282 = vmatprep.subr.mxu0 %v5402_v4  ;;  %v5422_v11 = vld [vmem:[#allocation5 + $0x168] sm:$0xff]  ;;  %v5428_v13 = vld [vmem:[#allocation5 + $0x160] sm:$0xff]  ;;  %v5433_v15 = vld [vmem:[#allocation5 + $0x1d0] sm:$0xff]  ;;  %353 = vmatprep.subr.mxu1 %v5431_v14 }
  0x38   :  { %283 = vmatpush1.msra.mxu0 %v5405_v5  ;;  %v5436_v16 = vld [vmem:[#allocation5 + $0x148] sm:$0xff]  ;;  %v5439_v17 = vld [vmem:[#allocation5 + $0x1b8] sm:$0xff]  ;;  %v5442_v18 = vld [vmem:[#allocation5 + $0x140] sm:$0xff]  ;;  %354 = vmatpush1.msra.mxu1 %v5433_v15 }
  0x39   :  { %284 = vmatprep.subr.mxu0 %v5408_v6  ;;  %v5445_v19 = vld [vmem:[#allocation5 + $0x1b0] sm:$0xff]  ;;  %v5447_v20 = vld [vmem:[#allocation5 + $0x198] sm:$0xff]  ;;  %v5450_v21 = vld [vmem:[#allocation5 + $0x128] sm:$0xff]  ;;  %355 = vmatprep.subr.mxu1 %v5439_v17 }
  0x3a   :  { %285 = vmatpush1.msra.mxu0 %v5411_v7  ;;  %v5453_v22 = vld [vmem:[#allocation5 + $0x190] sm:$0xff]  ;;  %v5456_v23 = vld [vmem:[#allocation5 + $0x120] sm:$0xff]  ;;  %356 = vmatpush1.msra.mxu1 %v5445_v19  ;;  %v5459_v24 = vld [vmem:[#allocation5 + $0x178] sm:$0xff] }
  0x3b   :  { %286 = vmatprep.subr.mxu0 %v5414_v8  ;;  %v5462_v25 = vld [vmem:[#allocation5 + $0x108] sm:$0xff]  ;;  %357 = vmatprep.subr.mxu1 %v5447_v20  ;;  %v5465_v26 = vld [vmem:[#allocation5 + $0x170] sm:$0xff]  ;;  %v5468_v27 = vld [vmem:[#allocation5 + $0x100] sm:$0xff] }
  0x3c   :  { %287 = vmatpush1.msra.mxu0 %v5417_v9  ;;  %358 = vmatpush1.msra.mxu1 %v5453_v22  ;;  %v5471_v28 = vld [vmem:[#allocation5 + $0x158] sm:$0xff]  ;;  %v5474_v29 = vld [vmem:[#allocation5 + $0xe8] sm:$0xff]  ;;  %v5477_v30 = vld [vmem:[#allocation5 + $0x150] sm:$0xff] }
  0x3d   :  { %288 = vmatprep.subr.mxu0 %v5422_v11  ;;  %359 = vmatprep.subr.mxu1 %v5459_v24  ;;  %v5480_v31 = vld [vmem:[#allocation5 + $0xe0] sm:$0xff]  ;;  %v5483_v32 = vld [vmem:[#allocation5 + $0x138] sm:$0xff]  ;;  %v5486_v33 = vld [vmem:[#allocation5 + $0xc8] sm:$0xff] }
  0x3e   :  { %289 = vmatpush1.msra.mxu0 %v5428_v13  ;;  %360 = vmatpush1.msra.mxu1 %v5465_v26  ;;  %v5489_v34 = vld [vmem:[#allocation5 + $0x130] sm:$0xff]  ;;  %v5492_v35 = vld [vmem:[#allocation5 + $0xc0] sm:$0xff]  ;;  %v5495_v36 = vld [vmem:[#allocation5 + $0x118] sm:$0xff] }
  0x3f   :  { %290 = vmatprep.subr.mxu0 %v5436_v16  ;;  %361 = vmatprep.subr.mxu1 %v5471_v28  ;;  %v5498_v37 = vld [vmem:[#allocation5 + $0xa8] sm:$0xff]  ;;  %v5501_v38 = vld [vmem:[#allocation5 + $0x110] sm:$0xff]  ;;  %v5504_v39 = vld [vmem:[#allocation5 + $0xa0] sm:$0xff] }
  0x40   :  { %291 = vmatpush1.msra.mxu0 %v5442_v18  ;;  %362 = vmatpush1.msra.mxu1 %v5477_v30  ;;  %v5507_v40 = vld [vmem:[#allocation5 + $0xf8] sm:$0xff]  ;;  %v5510_v41 = vld [vmem:[#allocation5 + $0x88] sm:$0xff]  ;;  %v5513_v42 = vld [vmem:[#allocation5 + $0xf0] sm:$0xff] }
  0x41   :  { %292 = vmatprep.subr.mxu0 %v5450_v21  ;;  %363 = vmatprep.subr.mxu1 %v5483_v32  ;;  %v5516_v43 = vld [vmem:[#allocation5 + $0x80] sm:$0xff]  ;;  %v5519_v44 = vld [vmem:[#allocation5 + $0xd8] sm:$0xff]  ;;  %v5522_v45 = vld [vmem:[#allocation5 + $0x68] sm:$0xff] }
  0x42   :  { %293 = vmatpush1.msra.mxu0 %v5456_v23  ;;  %364 = vmatpush1.msra.mxu1 %v5489_v34  ;;  %9299 = vst [vmem:[#allocation13_spill] sm:$0xff] %v5522_v45  ;;  %v5525_v46 = vld [vmem:[#allocation5 + $0xd0] sm:$0xff]  ;;  %v5528_v47 = vld [vmem:[#allocation5 + $0x60] sm:$0xff]  ;;  %v5531_v48 = vld [vmem:[#allocation5 + $0xb8] sm:$0xff] }
  0x43   :  { %294 = vmatprep.subr.mxu0 %v5462_v25  ;;  %365 = vmatprep.subr.mxu1 %v5495_v36  ;;  %9300 = vst [vmem:[#allocation14_spill] sm:$0xff] %v5528_v47  ;;  %v5534_v49 = vld [vmem:[#allocation5 + $0x48] sm:$0xff]  ;;  %v5537_v50 = vld [vmem:[#allocation5 + $0xb0] sm:$0xff]  ;;  %v5540_v51 = vld [vmem:[#allocation5 + $0x40] sm:$0xff] }
  0x44   :  { %295 = vmatpush1.msra.mxu0 %v5468_v27  ;;  %366 = vmatpush1.msra.mxu1 %v5501_v38  ;;  %9301 = vst [vmem:[#allocation15_spill] sm:$0xff] %v5534_v49  ;;  %9302 = vst [vmem:[#allocation16_spill] sm:$0xff] %v5540_v51  ;;  %v5543_v52 = vld [vmem:[#allocation5 + $0x98] sm:$0xff]  ;;  %v5546_v53 = vld [vmem:[#allocation5 + $0x28] sm:$0xff] }
  0x45   :  { %296 = vmatprep.subr.mxu0 %v5474_v29  ;;  %367 = vmatprep.subr.mxu1 %v5507_v40  ;;  %9303 = vst [vmem:[#allocation17_spill] sm:$0xff] %v5546_v53  ;;  %v5549_v54 = vld [vmem:[#allocation5 + $0x90] sm:$0xff]  ;;  %v5552_v55 = vld [vmem:[#allocation5 + $0x20] sm:$0xff]  ;;  %v5555_v56 = vld [vmem:[#allocation5 + $0x78] sm:$0xff] }
  0x46   :  { %297 = vmatpush1.msra.mxu0 %v5480_v31  ;;  %368 = vmatpush1.msra.mxu1 %v5513_v42  ;;  %9304 = vst [vmem:[#allocation18_spill] sm:$0xff] %v5549_v54  ;;  %9305 = vst [vmem:[#allocation19_spill] sm:$0xff] %v5552_v55  ;;  %v5558_v57 = vld [vmem:[#allocation5 + $0x8] sm:$0xff]  ;;  %v5561_v58 = vld [vmem:[#allocation5 + $0x70] sm:$0xff] }
  0x47   :  { %298 = vmatprep.subr.mxu0 %v5486_v33  ;;  %369 = vmatprep.subr.mxu1 %v5519_v44  ;;  %9306 = vst [vmem:[#allocation20_spill] sm:$0xff] %v5555_v56  ;;  %9307 = vst [vmem:[#allocation21_spill] sm:$0xff] %v5558_v57  ;;  %v5564_v59 = vld [vmem:[#allocation5] sm:$0xff]  ;;  %v5567_v60 = vld [vmem:[#allocation5 + $0x58] sm:$0xff] }
  0x48   :  { %299 = vmatpush1.msra.mxu0 %v5492_v35  ;;  %370 = vmatpush1.msra.mxu1 %v5525_v46  ;;  %9308 = vst [vmem:[#allocation22_spill] sm:$0xff] %v5561_v58  ;;  %9309 = vst [vmem:[#allocation23_spill] sm:$0xff] %v5564_v59  ;;  %v5571_v61 = vld [vmem:[#allocation5 + $0x50] sm:$0xff]  ;;  %v5575_v62 = vld [vmem:[#allocation5 + $0x38] sm:$0xff] }
  0x49   :  { %300 = vmatprep.subr.mxu0 %v5498_v37  ;;  %371 = vmatprep.subr.mxu1 %v5531_v48  ;;  %9310 = vst [vmem:[#allocation24_spill] sm:$0xff] %v5567_v60  ;;  %9311 = vst [vmem:[#allocation25_spill] sm:$0xff] %v5571_v61  ;;  %v5577_v63 = vld [vmem:[#allocation8 + $0x1e8] sm:$0xff]  ;;  %v5581_v0 = vld [vmem:[#allocation5 + $0x30] sm:$0xff] }
  0x4a   :  { %301 = vmatpush1.msra.mxu0 %v5504_v39  ;;  %372 = vmatpush1.msra.mxu1 %v5537_v50  ;;  %9312 = vst [vmem:[#allocation26_spill] sm:$0xff] %v5575_v62  ;;  %9313 = vst [vmem:[#allocation27_spill] sm:$0xff] %v5577_v63  ;;  %v5583_v1 = vld [vmem:[#allocation8 + $0x1e0] sm:$0xff] }
  0x4b   :  { %302 = vmatprep.subr.mxu0 %v5510_v41  ;;  %373 = vmatprep.subr.mxu1 %v5543_v52  ;;  %9314 = vst [vmem:[#allocation28_spill] sm:$0xff] %v5581_v0  ;;  %9315 = vst [vmem:[#allocation29_spill] sm:$0xff] %v5583_v1 }
  0x4c   :  { %303 = vmatpush1.msra.mxu0 %v5516_v43  ;;  %374 = vmatpush1.msra.mxu1 %v5549_v54 }
  0x4d   :  { %304 = vmatprep.subr.mxu0 %v5522_v45  ;;  %375 = vmatprep.subr.mxu1 %v5555_v56 }
  0x4e   :  { %305 = vmatpush1.msra.mxu0 %v5528_v47  ;;  %376 = vmatpush1.msra.mxu1 %v5561_v58  ;;  %v278_v58 = vld [vmem:[#allocation3 + $0x10] sm:$0xff] }
  0x4f   :  { %306 = vmatprep.subr.mxu0 %v5534_v49  ;;  %377 = vmatprep.subr.mxu1 %v5567_v60  ;;  %v5598_v60 = vld [vmem:[#allocation8 + $0x1f8] sm:$0xff]  ;;  %v5605_v49 = vld [vmem:[#allocation8 + $0x1a8] sm:$0xff] }
  0x50   :  { %307 = vmatpush1.msra.mxu0 %v5540_v51  ;;  %378 = vmatpush1.msra.mxu1 %v5571_v61  ;;  %v5592_v51 = vld [vmem:[#allocation5 + $0x10] sm:$0xff]  ;;  %9321 = vst [vmem:[#allocation34_spill] sm:$0xff] %v5598_v60  ;;  %9323 = vst [vmem:[#allocation36_spill] sm:$0xff] %v5605_v49 }
  0x51   :  { %308 = vmatprep.subr.mxu0 %v5546_v53  ;;  %v5587_v53 = vld [vmem:[#allocation5 + $0x18] sm:$0xff]  ;;  %379 = vmatprep.subr.mxu1 %v5575_v62  ;;  %9319 = vst [vmem:[#allocation32_spill] sm:$0xff] %v5592_v51  ;;  %v5602_v61 = vld [vmem:[#allocation8 + $0x1f0] sm:$0xff] }
  0x52   :  { %309 = vmatpush1.msra.mxu0 %v5552_v55  ;;  %v9316_v55 = vmov 0.0   ;;  %9317 = vst [vmem:[#allocation30_spill] sm:$0xff] %v5587_v53  ;;  %380 = vmatpush1.msra.mxu1 %v5581_v0  ;;  %9322 = vst [vmem:[#allocation35_spill] sm:$0xff] %v5602_v61  ;;  %v5608_v62 = vld [vmem:[#allocation8 + $0x1d8] sm:$0xff]  ;;  %v5913_v0 = vld [vmem:[#allocation7 + $0xb0] sm:$0xff] }
  0x53   :  { %310 = vmatprep.subr.mxu0 %v5558_v57  ;;  %v5589_v57 = vld [vmem:[#allocation8 + $0x1c8] sm:$0xff]  ;;  %381 = vmatprep.subr.mxu1 %v5587_v53  ;;  %9324 = vst [vmem:[#allocation37_spill] sm:$0xff] %v5608_v62  ;;  %9424 = vst [vmem:[#allocation137_spill] sm:$0xff] %v5913_v0 }
  0x54   :  { %311 = vmatpush1.msra.mxu0 %v5564_v59  ;;  %9318 = vst [vmem:[#allocation31_spill] sm:$0xff] %v5589_v57  ;;  %v5595_v59 = vld [vmem:[#allocation8 + $0x1c0] sm:$0xff]  ;;  %382 = vmatpush1.msra.mxu1 %v5592_v51  ;;  %v5617_v53 = vld [vmem:[#allocation8 + $0x188] sm:$0xff] }
  0x55   :  { %345 = vmatmul.mubr.f32.vlgmr.msra.gmra.mxu0 %v9316_v55  ;;  %450 = vmatprep.subr.mxu0 %v5577_v63  ;;  %9320 = vst [vmem:[#allocation33_spill] sm:$0xff] %v5595_v59  ;;  %v5611_v63 = vld [vmem:[#allocation8 + $0x1a0] sm:$0xff]  ;;  %9327 = vst [vmem:[#allocation40_spill] sm:$0xff] %v5617_v53 }
  0x56   :  { %451 = vmatpush1.msra.mxu0 %v5583_v1  ;;  %9325 = vst [vmem:[#allocation38_spill] sm:$0xff] %v5611_v63  ;;  %416 = vmatmul.mubr.f32.vlgmr.msra.gmra.mxu1 %v9316_v55  ;;  %v5615_v1 = vld [vmem:[#allocation8 + $0x1d0] sm:$0xff]  ;;  %v5623_v51 = vld [vmem:[#allocation8 + $0x180] sm:$0xff] }
  0x57   :  { %452 = vmatprep.subr.mxu0 %v5589_v57  ;;  %521 = vmatprep.subr.mxu1 %v5598_v60  ;;  %9326 = vst [vmem:[#allocation39_spill] sm:$0xff] %v5615_v1  ;;  %v5621_v57 = vld [vmem:[#allocation8 + $0x1b8] sm:$0xff]  ;;  %9329 = vst [vmem:[#allocation42_spill] sm:$0xff] %v5623_v51 }
  0x58   :  { %453 = vmatpush1.msra.mxu0 %v5595_v59  ;;  %522 = vmatpush1.msra.mxu1 %v5602_v61  ;;  %9328 = vst [vmem:[#allocation41_spill] sm:$0xff] %v5621_v57  ;;  %v5627_v59 = vld [vmem:[#allocation8 + $0x1b0] sm:$0xff]  ;;  %v5631_v60 = vld [vmem:[#allocation8 + $0x198] sm:$0xff] }
  0x59   :  { %454 = vmatprep.subr.mxu0 %v5605_v49  ;;  %523 = vmatprep.subr.mxu1 %v5608_v62  ;;  %9330 = vst [vmem:[#allocation43_spill] sm:$0xff] %v5627_v59  ;;  %9331 = vst [vmem:[#allocation44_spill] sm:$0xff] %v5631_v60  ;;  %v5635_v49 = vld [vmem:[#allocation8 + $0x190] sm:$0xff]  ;;  %v5809_v62 = vld [vmem:[#allocation7 + $0x1a8] sm:$0xff] }
  0x5a   :  { %455 = vmatpush1.msra.mxu0 %v5611_v63  ;;  %524 = vmatpush1.msra.mxu1 %v5615_v1  ;;  %9332 = vst [vmem:[#allocation45_spill] sm:$0xff] %v5635_v49  ;;  %v5642_v63 = vld [vmem:[#allocation8 + $0x168] sm:$0xff]  ;;  %v5763_v1 = vld [vmem:[#allocation8 + $0x38] sm:$0xff]  ;;  %9389 = vst [vmem:[#allocation102_spill] sm:$0xff] %v5809_v62 }
  0x5b   :  { %456 = vmatprep.subr.mxu0 %v5617_v53  ;;  %525 = vmatprep.subr.mxu1 %v5621_v57  ;;  %9333 = vst [vmem:[#allocation46_spill] sm:$0xff] %v5642_v63  ;;  %v5644_v53 = vld [vmem:[#allocation8 + $0x178] sm:$0xff]  ;;  %v5650_v57 = vld [vmem:[#allocation8 + $0x170] sm:$0xff]  ;;  %9374 = vst [vmem:[#allocation87_spill] sm:$0xff] %v5763_v1 }
  0x5c   :  { %457 = vmatpush1.msra.mxu0 %v5623_v51  ;;  %526 = vmatpush1.msra.mxu1 %v5627_v59  ;;  %9334 = vst [vmem:[#allocation47_spill] sm:$0xff] %v5644_v53  ;;  %v5648_v51 = vld [vmem:[#allocation8 + $0x160] sm:$0xff]  ;;  %9336 = vst [vmem:[#allocation49_spill] sm:$0xff] %v5650_v57  ;;  %v5656_v59 = vld [vmem:[#allocation8 + $0x158] sm:$0xff] }
  0x5d   :  { %514 = vmatprep.mubr.f32.mxu0 %v9316_v55  ;;  %527 = vmatprep.subr.mxu1 %v5631_v60  ;;  %9335 = vst [vmem:[#allocation48_spill] sm:$0xff] %v5648_v51  ;;  %v5654_v60 = vld [vmem:[#allocation8 + $0x148] sm:$0xff]  ;;  %9338 = vst [vmem:[#allocation51_spill] sm:$0xff] %v5656_v59  ;;  %v5817_v61 = vld [vmem:[#allocation7 + $0x1b0] sm:$0xff] }
  0x5e   :  { %585 = vmatprep.mubr.f32.mxu1 %v9316_v55  ;;  %528 = vmatpush1.msra.mxu1 %v5635_v49  ;;  %9337 = vst [vmem:[#allocation50_spill] sm:$0xff] %v5654_v60  ;;  %v5660_v49 = vld [vmem:[#allocation8 + $0x140] sm:$0xff]  ;;  %9392 = vst [vmem:[#allocation105_spill] sm:$0xff] %v5817_v61 }
  0x5f   :  { %458 = vmatprep.subr.mxu0 %v5642_v63  ;;  %529 = vmatprep.subr.mxu1 %v5644_v53  ;;  %9339 = vst [vmem:[#allocation52_spill] sm:$0xff] %v5660_v49  ;;  %v5662_v63 = vld [vmem:[#allocation8 + $0x150] sm:$0xff]  ;;  %v5666_v53 = vld [vmem:[#allocation8 + $0x128] sm:$0xff] }
  0x60   :  { %459 = vmatpush1.msra.mxu0 %v5648_v51  ;;  %530 = vmatpush1.msra.mxu1 %v5650_v57  ;;  %9340 = vst [vmem:[#allocation53_spill] sm:$0xff] %v5662_v63  ;;  %9341 = vst [vmem:[#allocation54_spill] sm:$0xff] %v5666_v53  ;;  %v5668_v51 = vld [vmem:[#allocation8 + $0x138] sm:$0xff]  ;;  %v5672_v57 = vld [vmem:[#allocation8 + $0x120] sm:$0xff] }
  0x61   :  { %460 = vmatprep.subr.mxu0 %v5654_v60  ;;  %531 = vmatprep.subr.mxu1 %v5656_v59  ;;  %9342 = vst [vmem:[#allocation55_spill] sm:$0xff] %v5668_v51  ;;  %9343 = vst [vmem:[#allocation56_spill] sm:$0xff] %v5672_v57  ;;  %v5674_v60 = vld [vmem:[#allocation8 + $0x130] sm:$0xff]  ;;  %v5678_v59 = vld [vmem:[#allocation8 + $0x108] sm:$0xff] }
  0x62   :  { %461 = vmatpush1.msra.mxu0 %v5660_v49  ;;  %532 = vmatpush1.msra.mxu1 %v5662_v63  ;;  %9344 = vst [vmem:[#allocation57_spill] sm:$0xff] %v5674_v60  ;;  %9345 = vst [vmem:[#allocation58_spill] sm:$0xff] %v5678_v59  ;;  %v5680_v49 = vld [vmem:[#allocation8 + $0x118] sm:$0xff]  ;;  %v5684_v63 = vld [vmem:[#allocation8 + $0x100] sm:$0xff] }
  0x63   :  { %462 = vmatprep.subr.mxu0 %v5666_v53  ;;  %533 = vmatprep.subr.mxu1 %v5668_v51  ;;  %9346 = vst [vmem:[#allocation59_spill] sm:$0xff] %v5680_v49  ;;  %9347 = vst [vmem:[#allocation60_spill] sm:$0xff] %v5684_v63  ;;  %v5686_v53 = vld [vmem:[#allocation8 + $0x110] sm:$0xff]  ;;  %v5690_v51 = vld [vmem:[#allocation8 + $0xe8] sm:$0xff] }
  0x64   :  { %463 = vmatpush1.msra.mxu0 %v5672_v57  ;;  %534 = vmatpush1.msra.mxu1 %v5674_v60  ;;  %9348 = vst [vmem:[#allocation61_spill] sm:$0xff] %v5686_v53  ;;  %9349 = vst [vmem:[#allocation62_spill] sm:$0xff] %v5690_v51  ;;  %v5692_v57 = vld [vmem:[#allocation8 + $0xf8] sm:$0xff]  ;;  %v5696_v60 = vld [vmem:[#allocation8 + $0xe0] sm:$0xff] }
  0x65   :  { %464 = vmatprep.subr.mxu0 %v5678_v59  ;;  %535 = vmatprep.subr.mxu1 %v5680_v49  ;;  %9350 = vst [vmem:[#allocation63_spill] sm:$0xff] %v5692_v57  ;;  %9351 = vst [vmem:[#allocation64_spill] sm:$0xff] %v5696_v60  ;;  %v5698_v59 = vld [vmem:[#allocation8 + $0xf0] sm:$0xff]  ;;  %v5702_v49 = vld [vmem:[#allocation8 + $0xc8] sm:$0xff] }
  0x66   :  { %465 = vmatpush1.msra.mxu0 %v5684_v63  ;;  %536 = vmatpush1.msra.mxu1 %v5686_v53  ;;  %9352 = vst [vmem:[#allocation65_spill] sm:$0xff] %v5698_v59  ;;  %9353 = vst [vmem:[#allocation66_spill] sm:$0xff] %v5702_v49  ;;  %v5704_v63 = vld [vmem:[#allocation8 + $0xd8] sm:$0xff]  ;;  %v5708_v53 = vld [vmem:[#allocation8 + $0xc0] sm:$0xff] }
  0x67   :  { %466 = vmatprep.subr.mxu0 %v5690_v51  ;;  %537 = vmatprep.subr.mxu1 %v5692_v57  ;;  %9354 = vst [vmem:[#allocation67_spill] sm:$0xff] %v5704_v63  ;;  %9355 = vst [vmem:[#allocation68_spill] sm:$0xff] %v5708_v53  ;;  %v5710_v51 = vld [vmem:[#allocation8 + $0xd0] sm:$0xff]  ;;  %v5714_v57 = vld [vmem:[#allocation8 + $0xa8] sm:$0xff] }
  0x68   :  { %467 = vmatpush1.msra.mxu0 %v5696_v60  ;;  %538 = vmatpush1.msra.mxu1 %v5698_v59  ;;  %9356 = vst [vmem:[#allocation69_spill] sm:$0xff] %v5710_v51  ;;  %9357 = vst [vmem:[#allocation70_spill] sm:$0xff] %v5714_v57  ;;  %v5716_v60 = vld [vmem:[#allocation8 + $0xb8] sm:$0xff]  ;;  %v5720_v59 = vld [vmem:[#allocation8 + $0xa0] sm:$0xff] }
  0x69   :  { %468 = vmatprep.subr.mxu0 %v5702_v49  ;;  %539 = vmatprep.subr.mxu1 %v5704_v63  ;;  %9358 = vst [vmem:[#allocation71_spill] sm:$0xff] %v5716_v60  ;;  %9359 = vst [vmem:[#allocation72_spill] sm:$0xff] %v5720_v59  ;;  %v5722_v49 = vld [vmem:[#allocation8 + $0xb0] sm:$0xff]  ;;  %v5726_v63 = vld [vmem:[#allocation8 + $0x88] sm:$0xff] }
  0x6a   :  { %469 = vmatpush1.msra.mxu0 %v5708_v53  ;;  %540 = vmatpush1.msra.mxu1 %v5710_v51  ;;  %9360 = vst [vmem:[#allocation73_spill] sm:$0xff] %v5722_v49  ;;  %9361 = vst [vmem:[#allocation74_spill] sm:$0xff] %v5726_v63  ;;  %v5728_v53 = vld [vmem:[#allocation8 + $0x98] sm:$0xff]  ;;  %v5732_v51 = vld [vmem:[#allocation8 + $0x80] sm:$0xff] }
  0x6b   :  { %470 = vmatprep.subr.mxu0 %v5714_v57  ;;  %541 = vmatprep.subr.mxu1 %v5716_v60  ;;  %9362 = vst [vmem:[#allocation75_spill] sm:$0xff] %v5728_v53  ;;  %9363 = vst [vmem:[#allocation76_spill] sm:$0xff] %v5732_v51  ;;  %v5734_v57 = vld [vmem:[#allocation8 + $0x90] sm:$0xff]  ;;  %v5738_v60 = vld [vmem:[#allocation8 + $0x68] sm:$0xff] }
  0x6c   :  { %471 = vmatpush1.msra.mxu0 %v5720_v59  ;;  %542 = vmatpush1.msra.mxu1 %v5722_v49  ;;  %9364 = vst [vmem:[#allocation77_spill] sm:$0xff] %v5734_v57  ;;  %9365 = vst [vmem:[#allocation78_spill] sm:$0xff] %v5738_v60  ;;  %v5740_v59 = vld [vmem:[#allocation8 + $0x78] sm:$0xff]  ;;  %v5744_v49 = vld [vmem:[#allocation8 + $0x60] sm:$0xff] }
  0x6d   :  { %472 = vmatprep.subr.mxu0 %v5726_v63  ;;  %543 = vmatprep.subr.mxu1 %v5728_v53  ;;  %9366 = vst [vmem:[#allocation79_spill] sm:$0xff] %v5740_v59  ;;  %9367 = vst [vmem:[#allocation80_spill] sm:$0xff] %v5744_v49  ;;  %v5746_v63 = vld [vmem:[#allocation8 + $0x70] sm:$0xff]  ;;  %v5750_v53 = vld [vmem:[#allocation8 + $0x48] sm:$0xff] }
  0x6e   :  { %473 = vmatpush1.msra.mxu0 %v5732_v51  ;;  %544 = vmatpush1.msra.mxu1 %v5734_v57  ;;  %9368 = vst [vmem:[#allocation81_spill] sm:$0xff] %v5746_v63  ;;  %9369 = vst [vmem:[#allocation82_spill] sm:$0xff] %v5750_v53  ;;  %v5752_v51 = vld [vmem:[#allocation8 + $0x58] sm:$0xff]  ;;  %v5756_v57 = vld [vmem:[#allocation8 + $0x40] sm:$0xff] }
  0x6f   :  { %474 = vmatprep.subr.mxu0 %v5738_v60  ;;  %545 = vmatprep.subr.mxu1 %v5740_v59  ;;  %9370 = vst [vmem:[#allocation83_spill] sm:$0xff] %v5752_v51  ;;  %9371 = vst [vmem:[#allocation84_spill] sm:$0xff] %v5756_v57  ;;  %v5759_v59 = vld [vmem:[#allocation8 + $0x50] sm:$0xff]  ;;  %v5761_v60 = vld [vmem:[#allocation8 + $0x28] sm:$0xff] }
  0x70   :  { %475 = vmatpush1.msra.mxu0 %v5744_v49  ;;  %546 = vmatpush1.msra.mxu1 %v5746_v63  ;;  %9372 = vst [vmem:[#allocation85_spill] sm:$0xff] %v5759_v59  ;;  %9373 = vst [vmem:[#allocation86_spill] sm:$0xff] %v5761_v60  ;;  %v5767_v63 = vld [vmem:[#allocation8 + $0x20] sm:$0xff]  ;;  %v5769_v49 = vld [vmem:[#allocation8 + $0x30] sm:$0xff] }
  0x71   :  { %476 = vmatprep.subr.mxu0 %v5750_v53  ;;  %547 = vmatprep.subr.mxu1 %v5752_v51  ;;  %9375 = vst [vmem:[#allocation88_spill] sm:$0xff] %v5767_v63  ;;  %9376 = vst [vmem:[#allocation89_spill] sm:$0xff] %v5769_v49  ;;  %v5773_v51 = vld [vmem:[#allocation8 + $0x8] sm:$0xff]  ;;  %v5779_v53 = vld [vmem:[#allocation8] sm:$0xff] }
  0x72   :  { %477 = vmatpush1.msra.mxu0 %v5756_v57  ;;  %548 = vmatpush1.msra.mxu1 %v5759_v59  ;;  %9377 = vst [vmem:[#allocation90_spill] sm:$0xff] %v5773_v51  ;;  %v5775_v57 = vld [vmem:[#allocation8 + $0x18] sm:$0xff]  ;;  %9379 = vst [vmem:[#allocation92_spill] sm:$0xff] %v5779_v53  ;;  %v5781_v59 = vld [vmem:[#allocation8 + $0x10] sm:$0xff] }
  0x73   :  { %478 = vmatprep.subr.mxu0 %v5761_v60  ;;  %549 = vmatprep.subr.mxu1 %v5763_v1  ;;  %9378 = vst [vmem:[#allocation91_spill] sm:$0xff] %v5775_v57  ;;  %9380 = vst [vmem:[#allocation93_spill] sm:$0xff] %v5781_v59  ;;  %v5785_v60 = vld [vmem:[#allocation7 + $0x1e8] sm:$0xff]  ;;  %v5787_v1 = vld [vmem:[#allocation7 + $0x1f8] sm:$0xff] }
  0x74   :  { %479 = vmatpush1.msra.mxu0 %v5767_v63  ;;  %550 = vmatpush1.msra.mxu1 %v5769_v49  ;;  %9381 = vst [vmem:[#allocation94_spill] sm:$0xff] %v5785_v60  ;;  %9382 = vst [vmem:[#allocation95_spill] sm:$0xff] %v5787_v1  ;;  %v5791_v63 = vld [vmem:[#allocation7 + $0x1e0] sm:$0xff]  ;;  %v5793_v49 = vld [vmem:[#allocation7 + $0x1f0] sm:$0xff] }
  0x75   :  { %480 = vmatprep.subr.mxu0 %v5773_v51  ;;  %551 = vmatprep.subr.mxu1 %v5775_v57  ;;  %9383 = vst [vmem:[#allocation96_spill] sm:$0xff] %v5791_v63  ;;  %9384 = vst [vmem:[#allocation97_spill] sm:$0xff] %v5793_v49  ;;  %v5797_v51 = vld [vmem:[#allocation7 + $0x1c8] sm:$0xff]  ;;  %v5799_v57 = vld [vmem:[#allocation7 + $0x1d8] sm:$0xff] }
  0x76   :  { %481 = vmatpush1.msra.mxu0 %v5779_v53  ;;  %552 = vmatpush1.msra.mxu1 %v5781_v59  ;;  %9385 = vst [vmem:[#allocation98_spill] sm:$0xff] %v5797_v51  ;;  %9386 = vst [vmem:[#allocation99_spill] sm:$0xff] %v5799_v57  ;;  %v5803_v53 = vld [vmem:[#allocation7 + $0x1c0] sm:$0xff]  ;;  %v5805_v59 = vld [vmem:[#allocation7 + $0x1d0] sm:$0xff] }
  0x77   :  { %515 = vmatmul.mubr.f32.vlgmr.msra.gmra.mxu0 %v9316_v55  ;;  %592 = vmatprep.subr.mxu0 %v5785_v60  ;;  %9387 = vst [vmem:[#allocation100_spill] sm:$0xff] %v5803_v53  ;;  %9388 = vst [vmem:[#allocation101_spill] sm:$0xff] %v5805_v59  ;;  %v5811_v60 = vld [vmem:[#allocation7 + $0x1b8] sm:$0xff] }
  0x78   :  { %663 = vmatprep.subr.mxu1 %v5787_v1  ;;  %586 = vmatmul.mubr.f32.vlgmr.msra.gmra.mxu1 %v9316_v55  ;;  %9390 = vst [vmem:[#allocation103_spill] sm:$0xff] %v5811_v60  ;;  %v5815_v1 = vld [vmem:[#allocation7 + $0x1a0] sm:$0xff] }
  0x79   :  { %593 = vmatpush1.msra.mxu0 %v5791_v63  ;;  %664 = vmatpush1.msra.mxu1 %v5793_v49  ;;  %9391 = vst [vmem:[#allocation104_spill] sm:$0xff] %v5815_v1  ;;  %v5821_v63 = vld [vmem:[#allocation7 + $0x188] sm:$0xff]  ;;  %v5823_v49 = vld [vmem:[#allocation7 + $0x198] sm:$0xff] }
  0x7a   :  { %594 = vmatprep.subr.mxu0 %v5797_v51  ;;  %665 = vmatprep.subr.mxu1 %v5799_v57  ;;  %9393 = vst [vmem:[#allocation106_spill] sm:$0xff] %v5821_v63  ;;  %9394 = vst [vmem:[#allocation107_spill] sm:$0xff] %v5823_v49  ;;  %v5827_v51 = vld [vmem:[#allocation7 + $0x180] sm:$0xff]  ;;  %v5829_v57 = vld [vmem:[#allocation7 + $0x190] sm:$0xff] }
  0x7b   :  { %595 = vmatpush1.msra.mxu0 %v5803_v53  ;;  %666 = vmatpush1.msra.mxu1 %v5805_v59  ;;  %9395 = vst [vmem:[#allocation108_spill] sm:$0xff] %v5827_v51  ;;  %9396 = vst [vmem:[#allocation109_spill] sm:$0xff] %v5829_v57  ;;  %v5833_v53 = vld [vmem:[#allocation7 + $0x168] sm:$0xff]  ;;  %v5835_v59 = vld [vmem:[#allocation7 + $0x178] sm:$0xff] }
  0x7c   :  { %596 = vmatprep.subr.mxu0 %v5809_v62  ;;  %667 = vmatprep.subr.mxu1 %v5811_v60  ;;  %9397 = vst [vmem:[#allocation110_spill] sm:$0xff] %v5833_v53  ;;  %9398 = vst [vmem:[#allocation111_spill] sm:$0xff] %v5835_v59  ;;  %v5839_v62 = vld [vmem:[#allocation7 + $0x160] sm:$0xff]  ;;  %v5841_v60 = vld [vmem:[#allocation7 + $0x170] sm:$0xff] }
  0x7d   :  { %597 = vmatpush1.msra.mxu0 %v5815_v1  ;;  %668 = vmatpush1.msra.mxu1 %v5817_v61  ;;  %9399 = vst [vmem:[#allocation112_spill] sm:$0xff] %v5839_v62  ;;  %9400 = vst [vmem:[#allocation113_spill] sm:$0xff] %v5841_v60  ;;  %v5845_v1 = vld [vmem:[#allocation7 + $0x148] sm:$0xff]  ;;  %v5847_v61 = vld [vmem:[#allocation7 + $0x158] sm:$0xff] }
  0x7e   :  { %598 = vmatprep.subr.mxu0 %v5821_v63  ;;  %669 = vmatprep.subr.mxu1 %v5823_v49  ;;  %9401 = vst [vmem:[#allocation114_spill] sm:$0xff] %v5845_v1  ;;  %9402 = vst [vmem:[#allocation115_spill] sm:$0xff] %v5847_v61  ;;  %v5851_v63 = vld [vmem:[#allocation7 + $0x140] sm:$0xff]  ;;  %v5853_v49 = vld [vmem:[#allocation7 + $0x150] sm:$0xff] }
  0x7f   :  { %599 = vmatpush1.msra.mxu0 %v5827_v51  ;;  %670 = vmatpush1.msra.mxu1 %v5829_v57  ;;  %9403 = vst [vmem:[#allocation116_spill] sm:$0xff] %v5851_v63  ;;  %9404 = vst [vmem:[#allocation117_spill] sm:$0xff] %v5853_v49  ;;  %v5857_v51 = vld [vmem:[#allocation7 + $0x128] sm:$0xff]  ;;  %v5859_v57 = vld [vmem:[#allocation7 + $0x138] sm:$0xff] }
  0x80   :  { %600 = vmatprep.subr.mxu0 %v5833_v53  ;;  %671 = vmatprep.subr.mxu1 %v5835_v59  ;;  %9405 = vst [vmem:[#allocation118_spill] sm:$0xff] %v5857_v51  ;;  %9406 = vst [vmem:[#allocation119_spill] sm:$0xff] %v5859_v57  ;;  %v5863_v53 = vld [vmem:[#allocation7 + $0x120] sm:$0xff]  ;;  %v5865_v59 = vld [vmem:[#allocation7 + $0x130] sm:$0xff] }
  0x81   :  { %601 = vmatpush1.msra.mxu0 %v5839_v62  ;;  %672 = vmatpush1.msra.mxu1 %v5841_v60  ;;  %9407 = vst [vmem:[#allocation120_spill] sm:$0xff] %v5863_v53  ;;  %9408 = vst [vmem:[#allocation121_spill] sm:$0xff] %v5865_v59  ;;  %v5869_v62 = vld [vmem:[#allocation7 + $0x108] sm:$0xff]  ;;  %v5871_v60 = vld [vmem:[#allocation7 + $0x118] sm:$0xff] }
  0x82   :  { %602 = vmatprep.subr.mxu0 %v5845_v1  ;;  %673 = vmatprep.subr.mxu1 %v5847_v61  ;;  %9409 = vst [vmem:[#allocation122_spill] sm:$0xff] %v5869_v62  ;;  %9410 = vst [vmem:[#allocation123_spill] sm:$0xff] %v5871_v60  ;;  %v5875_v1 = vld [vmem:[#allocation7 + $0x100] sm:$0xff]  ;;  %v5877_v61 = vld [vmem:[#allocation7 + $0x110] sm:$0xff] }
  0x83   :  { %603 = vmatpush1.msra.mxu0 %v5851_v63  ;;  %674 = vmatpush1.msra.mxu1 %v5853_v49  ;;  %9411 = vst [vmem:[#allocation124_spill] sm:$0xff] %v5875_v1  ;;  %9412 = vst [vmem:[#allocation125_spill] sm:$0xff] %v5877_v61  ;;  %v5881_v63 = vld [vmem:[#allocation7 + $0xe8] sm:$0xff]  ;;  %v5883_v49 = vld [vmem:[#allocation7 + $0xf8] sm:$0xff] }
  0x84   :  { %604 = vmatprep.subr.mxu0 %v5857_v51  ;;  %675 = vmatprep.subr.mxu1 %v5859_v57  ;;  %9413 = vst [vmem:[#allocation126_spill] sm:$0xff] %v5881_v63  ;;  %9414 = vst [vmem:[#allocation127_spill] sm:$0xff] %v5883_v49  ;;  %v5887_v51 = vld [vmem:[#allocation7 + $0xe0] sm:$0xff]  ;;  %v5889_v57 = vld [vmem:[#allocation7 + $0xf0] sm:$0xff] }
  0x85   :  { %605 = vmatpush1.msra.mxu0 %v5863_v53  ;;  %676 = vmatpush1.msra.mxu1 %v5865_v59  ;;  %9415 = vst [vmem:[#allocation128_spill] sm:$0xff] %v5887_v51  ;;  %9416 = vst [vmem:[#allocation129_spill] sm:$0xff] %v5889_v57  ;;  %v5893_v53 = vld [vmem:[#allocation7 + $0xc8] sm:$0xff]  ;;  %v5895_v59 = vld [vmem:[#allocation7 + $0xd8] sm:$0xff] }
  0x86   :  { %606 = vmatprep.subr.mxu0 %v5869_v62  ;;  %677 = vmatprep.subr.mxu1 %v5871_v60  ;;  %9417 = vst [vmem:[#allocation130_spill] sm:$0xff] %v5893_v53  ;;  %9418 = vst [vmem:[#allocation131_spill] sm:$0xff] %v5895_v59  ;;  %v5897_v62 = vld [vmem:[#allocation7 + $0xc0] sm:$0xff]  ;;  %v5901_v60 = vld [vmem:[#allocation7 + $0xd0] sm:$0xff] }
  0x87   :  { %607 = vmatpush1.msra.mxu0 %v5875_v1  ;;  %678 = vmatpush1.msra.mxu1 %v5877_v61  ;;  %9419 = vst [vmem:[#allocation132_spill] sm:$0xff] %v5897_v62  ;;  %9420 = vst [vmem:[#allocation133_spill] sm:$0xff] %v5901_v60  ;;  %v5903_v1 = vld [vmem:[#allocation7 + $0xa8] sm:$0xff]  ;;  %v5907_v61 = vld [vmem:[#allocation7 + $0xb8] sm:$0xff] }
  0x88   :  { %608 = vmatprep.subr.mxu0 %v5881_v63  ;;  %679 = vmatprep.subr.mxu1 %v5883_v49  ;;  %9421 = vst [vmem:[#allocation134_spill] sm:$0xff] %v5903_v1  ;;  %9422 = vst [vmem:[#allocation135_spill] sm:$0xff] %v5907_v61  ;;  %v5909_v63 = vld [vmem:[#allocation7 + $0xa0] sm:$0xff]  ;;  %v5915_v49 = vld [vmem:[#allocation7 + $0x88] sm:$0xff] }
  0x89   :  { %609 = vmatpush1.msra.mxu0 %v5887_v51  ;;  %680 = vmatpush1.msra.mxu1 %v5889_v57  ;;  %9423 = vst [vmem:[#allocation136_spill] sm:$0xff] %v5909_v63  ;;  %9425 = vst [vmem:[#allocation138_spill] sm:$0xff] %v5915_v49  ;;  %v5919_v51 = vld [vmem:[#allocation7 + $0x98] sm:$0xff]  ;;  %v5921_v57 = vld [vmem:[#allocation7 + $0x80] sm:$0xff] }
  0x8a   :  { %610 = vmatprep.subr.mxu0 %v5893_v53  ;;  %681 = vmatprep.subr.mxu1 %v5895_v59  ;;  %9426 = vst [vmem:[#allocation139_spill] sm:$0xff] %v5919_v51  ;;  %9427 = vst [vmem:[#allocation140_spill] sm:$0xff] %v5921_v57  ;;  %v5925_v53 = vld [vmem:[#allocation7 + $0x90] sm:$0xff]  ;;  %v5927_v59 = vld [vmem:[#allocation7 + $0x68] sm:$0xff] }
  0x8b   :  { %611 = vmatpush1.msra.mxu0 %v5897_v62  ;;  %682 = vmatpush1.msra.mxu1 %v5901_v60  ;;  %9428 = vst [vmem:[#allocation141_spill] sm:$0xff] %v5925_v53  ;;  %9429 = vst [vmem:[#allocation142_spill] sm:$0xff] %v5927_v59  ;;  %v5931_v62 = vld [vmem:[#allocation7 + $0x78] sm:$0xff]  ;;  %v5933_v60 = vld [vmem:[#allocation7 + $0x60] sm:$0xff] }
  0x8c   :  { %612 = vmatprep.subr.mxu0 %v5903_v1  ;;  %683 = vmatprep.subr.mxu1 %v5907_v61  ;;  %9430 = vst [vmem:[#allocation143_spill] sm:$0xff] %v5931_v62  ;;  %9431 = vst [vmem:[#allocation144_spill] sm:$0xff] %v5933_v60  ;;  %v5937_v1 = vld [vmem:[#allocation7 + $0x70] sm:$0xff]  ;;  %v5939_v61 = vld [vmem:[#allocation7 + $0x48] sm:$0xff] }
  0x8d   :  { %613 = vmatpush1.msra.mxu0 %v5909_v63  ;;  %684 = vmatpush1.msra.mxu1 %v5913_v0  ;;  %9432 = vst [vmem:[#allocation145_spill] sm:$0xff] %v5937_v1  ;;  %9433 = vst [vmem:[#allocation146_spill] sm:$0xff] %v5939_v61  ;;  %v5943_v63 = vld [vmem:[#allocation7 + $0x58] sm:$0xff]  ;;  %v5945_v0 = vld [vmem:[#allocation7 + $0x40] sm:$0xff] }
  0x8e   :  { %614 = vmatprep.subr.mxu0 %v5915_v49  ;;  %685 = vmatprep.subr.mxu1 %v5919_v51  ;;  %9434 = vst [vmem:[#allocation147_spill] sm:$0xff] %v5943_v63  ;;  %9435 = vst [vmem:[#allocation148_spill] sm:$0xff] %v5945_v0  ;;  %v5949_v49 = vld [vmem:[#allocation7 + $0x50] sm:$0xff]  ;;  %v5951_v51 = vld [vmem:[#allocation7 + $0x28] sm:$0xff] }
  0x8f   :  { %615 = vmatpush1.msra.mxu0 %v5921_v57  ;;  %686 = vmatpush1.msra.mxu1 %v5925_v53  ;;  %9436 = vst [vmem:[#allocation149_spill] sm:$0xff] %v5949_v49  ;;  %9437 = vst [vmem:[#allocation150_spill] sm:$0xff] %v5951_v51  ;;  %v5955_v57 = vld [vmem:[#allocation7 + $0x38] sm:$0xff]  ;;  %v5957_v53 = vld [vmem:[#allocation7 + $0x20] sm:$0xff] }
  0x90   :  { %616 = vmatprep.subr.mxu0 %v5927_v59  ;;  %687 = vmatprep.subr.mxu1 %v5931_v62  ;;  %9438 = vst [vmem:[#allocation151_spill] sm:$0xff] %v5955_v57  ;;  %9439 = vst [vmem:[#allocation152_spill] sm:$0xff] %v5957_v53  ;;  %v5961_v59 = vld [vmem:[#allocation7 + $0x30] sm:$0xff]  ;;  %v5963_v62 = vld [vmem:[#allocation7 + $0x8] sm:$0xff] }
  0x91   :  { %617 = vmatpush1.msra.mxu0 %v5933_v60  ;;  %688 = vmatpush1.msra.mxu1 %v5937_v1  ;;  %9440 = vst [vmem:[#allocation153_spill] sm:$0xff] %v5961_v59  ;;  %9441 = vst [vmem:[#allocation154_spill] sm:$0xff] %v5963_v62  ;;  %v5967_v60 = vld [vmem:[#allocation7 + $0x18] sm:$0xff]  ;;  %v5969_v1 = vld [vmem:[#allocation7] sm:$0xff] }
  0x92   :  { %618 = vmatprep.subr.mxu0 %v5939_v61  ;;  %689 = vmatprep.subr.mxu1 %v5943_v63  ;;  %9442 = vst [vmem:[#allocation155_spill] sm:$0xff] %v5967_v60  ;;  %9443 = vst [vmem:[#allocation156_spill] sm:$0xff] %v5969_v1  ;;  %v5973_v61 = vld [vmem:[#allocation7 + $0x10] sm:$0xff] }
  0x93   :  { %619 = vmatpush1.msra.mxu0 %v5945_v0  ;;  %690 = vmatpush1.msra.mxu1 %v5949_v49  ;;  %9444 = vst [vmem:[#allocation157_spill] sm:$0xff] %v5973_v61 }
  0x94   :  { %620 = vmatprep.subr.mxu0 %v5951_v51  ;;  %691 = vmatprep.subr.mxu1 %v5955_v57  ;;  %v277_v51 = vld [vmem:[#allocation3 + $0x8] sm:$0xff] }
  0x95   :  { %621 = vmatpush1.msra.mxu0 %v5957_v53  ;;  %692 = vmatpush1.msra.mxu1 %v5961_v59  ;;  %v276_v53 = vld [vmem:[#allocation3] sm:$0xff] }
  0x96   :  { %622 = vmatprep.subr.mxu0 %v5963_v62  ;;  %693 = vmatprep.subr.mxu1 %v5967_v60 }
  0x97   :  { %623 = vmatpush1.msra.mxu0 %v5969_v1  ;;  %694 = vmatpush1.msra.mxu1 %v5973_v61  ;;  %v279_v61 = vld [vmem:[#allocation3 + $0x18] sm:$0xff] }
  0x98   :  { %656 = vmatprep.mubr.f32.mxu0 %v9316_v55  ;;  %727 = vmatprep.mubr.f32.mxu1 %v9316_v55 }
  0x99   :  { %788 = vmatprep.subr.mxu0 %v5398_v2  ;;  %859 = vmatprep.subr.mxu1 %v5419_v10 }
 0x115   :  { %v346_v57 = vpop.f32.mrf.mxu0 }
 0x116   :  { %v422_v59 = vadd.f32 %v346_v57, %v276_v53  ;;  %v417_v1 = vpop.f32.mrf.mxu1 }
 0x117   :  { %v348_v49 = vpop.f32.mrf.mxu0  ;;  %v424_v55 = vadd.f32 %v417_v1, %v278_v58  ;;  %v9492_v58 = vld [vmem:[#allocation59_spill] sm:$0xff] }
 0x118   :  { %v4294_v62 = vmul.f32 -1.442695, %v422_v59  ;;  %v423_v0 = vadd.f32 %v348_v49, %v277_v51  ;;  %v419_v63 = vpop.f32.mrf.mxu1 }
 0x119   :  { %v425_v47 = vadd.f32 %v419_v63, %v279_v61  ;;  %v9493_v61 = vld [vmem:[#allocation60_spill] sm:$0xff]  ;;  %v9494_v63 = vld [vmem:[#allocation61_spill] sm:$0xff] }
 0x11a   :  { %4403 = vpow2.f32 %v4294_v62  ;;  %v4295_v60 = vmul.f32 -1.442695, %v423_v0 }
 0x11b   :  { %v4296_v56 = vmul.f32 -1.442695, %v425_v47 }
 0x11c   :  { %4405 = vpow2.f32 %v4295_v60 }
 0x11d   :  { %4407 = vtanh.f32 %v424_v55 }
 0x11e   :  { %4409 = vpow2.f32 %v4296_v56  ;;  %v9491_v56 = vld [vmem:[#allocation58_spill] sm:$0xff] }
 0x127   :  { %v4404_v2 = vpop.eup %4403 }
 0x128   :  { %v429_v45 = vadd.f32 1.0, %v4404_v2  ;;  %v9495_v2 = vld [vmem:[#allocation62_spill] sm:$0xff] }
 0x129   :  { %v4406_v10 = vpop.eup %4405 }
 0x12a   :  { %4411 = vrcp.f32 %v429_v45  ;;  %v435_v53 = vadd.f32 1.0, %v4406_v10  ;;  %v4408_v57 = vpop.eup %4407  ;;  %v9486_v45 = vld [vmem:[#allocation53_spill] sm:$0xff]  ;;  %v9496_v10 = vld [vmem:[#allocation63_spill] sm:$0xff] }
 0x12b   :  { %v4410_v49 = vpop.eup %4409 }
 0x12c   :  { %4413 = vrcp.f32 %v435_v53  ;;  %v442_v62 = vadd.f32 1.0, %v4410_v49  ;;  %v9497_v53 = vld [vmem:[#allocation64_spill] sm:$0xff]  ;;  %v9499_v49 = vld [vmem:[#allocation66_spill] sm:$0xff] }
 0x12e   :  { %4415 = vrcp.f32 %v442_v62  ;;  %v9502_v62 = vld [vmem:[#allocation69_spill] sm:$0xff] }
 0x137   :  { %v4412_v51 = vpop.eup %4411 }
 0x138   :  { %v446_v0 = vmul.f32 %v4412_v51, %v4408_v57  ;;  %v9498_v57 = vld [vmem:[#allocation65_spill] sm:$0xff]  ;;  %v9500_v51 = vld [vmem:[#allocation67_spill] sm:$0xff] }
 0x139   :  { %v4414_v59 = vpop.eup %4413 }
 0x13a   :  { %v445_v60 = vmul.f32 0.0, %v4414_v59  ;;  %v9501_v59 = vld [vmem:[#allocation68_spill] sm:$0xff] }
 0x13b   :  { %v4416_v1 = vpop.eup %4415 }
 0x13c   :  { %v5984_v54 = vadd.f32 %v446_v0, %v445_v60  ;;  %v9503_v60 = vld [vmem:[#allocation70_spill] sm:$0xff]  ;;  %v9504_v0 = vld [vmem:[#allocation71_spill] sm:$0xff] }
 0x13e   :  { %4417 = vtanh.f32 %v5984_v54 }
 0x14b   :  { %v4418_v47 = vpop.eup %4417 }
 0x14c   :  { %v5987_v55 = vmul.f32 %v4418_v47, %v4416_v1  ;;  %v9505_v1 = vld [vmem:[#allocation72_spill] sm:$0xff]  ;;  %v9506_v47 = vld [vmem:[#allocation73_spill] sm:$0xff] }
 0x14e   :  { %657 = vmatmul.mubr.f32.vlgmr.msra.gmra.mxu0 %v5987_v55  ;;  %728 = vmatmul.mubr.f32.vlgmr.msra.gmra.mxu1 %v5987_v55 }
 0x14f   :  { %789 = vmatpush1.msra.mxu0 %v5400_v3  ;;  %860 = vmatpush1.msra.mxu1 %v5425_v12  ;;  %v9445_v3 = vld [vmem:[#allocation18_spill] sm:$0xff]  ;;  %v9453_v12 = vld [vmem:[#allocation25_spill] sm:$0xff] }
 0x150   :  { %790 = vmatprep.subr.mxu0 %v5402_v4  ;;  %861 = vmatprep.subr.mxu1 %v5431_v14  ;;  %v9446_v4 = vld [vmem:[#allocation13_spill] sm:$0xff]  ;;  %v9455_v14 = vld [vmem:[#allocation26_spill] sm:$0xff] }
 0x151   :  { %791 = vmatpush1.msra.mxu0 %v5405_v5  ;;  %862 = vmatpush1.msra.mxu1 %v5433_v15  ;;  %v9447_v5 = vld [vmem:[#allocation20_spill] sm:$0xff]  ;;  %v9456_v15 = vld [vmem:[#allocation19_spill] sm:$0xff] }
 0x152   :  { %792 = vmatprep.subr.mxu0 %v5408_v6  ;;  %863 = vmatprep.subr.mxu1 %v5439_v17  ;;  %v9448_v6 = vld [vmem:[#allocation14_spill] sm:$0xff]  ;;  %v9458_v17 = vld [vmem:[#allocation21_spill] sm:$0xff] }
 0x153   :  { %793 = vmatpush1.msra.mxu0 %v5411_v7  ;;  %864 = vmatpush1.msra.mxu1 %v5445_v19  ;;  %v9449_v7 = vld [vmem:[#allocation22_spill] sm:$0xff]  ;;  %v9460_v19 = vld [vmem:[#allocation23_spill] sm:$0xff] }
 0x154   :  { %794 = vmatprep.subr.mxu0 %v5414_v8  ;;  %865 = vmatprep.subr.mxu1 %v5447_v20  ;;  %v9450_v8 = vld [vmem:[#allocation15_spill] sm:$0xff]  ;;  %v9461_v20 = vmov 0.0  }
 0x155   :  { %795 = vmatpush1.msra.mxu0 %v5417_v9  ;;  %866 = vmatpush1.msra.mxu1 %v5453_v22  ;;  %v9451_v9 = vld [vmem:[#allocation24_spill] sm:$0xff]  ;;  %v9463_v22 = vld [vmem:[#allocation27_spill] sm:$0xff] }
 0x156   :  { %796 = vmatprep.subr.mxu0 %v5422_v11  ;;  %867 = vmatprep.subr.mxu1 %v5459_v24  ;;  %v9452_v11 = vld [vmem:[#allocation16_spill] sm:$0xff]  ;;  %v9465_v24 = vld [vmem:[#allocation29_spill] sm:$0xff] }
 0x157   :  { %797 = vmatpush1.msra.mxu0 %v5428_v13  ;;  %868 = vmatpush1.msra.mxu1 %v5465_v26  ;;  %v9454_v13 = vld [vmem:[#allocation17_spill] sm:$0xff]  ;;  %v9467_v26 = vld [vmem:[#allocation31_spill] sm:$0xff] }
 0x158   :  { %798 = vmatprep.subr.mxu0 %v5436_v16  ;;  %869 = vmatprep.subr.mxu1 %v5471_v28  ;;  %v9457_v16 = vld [vmem:[#allocation28_spill] sm:$0xff]  ;;  %v9469_v28 = vld [vmem:[#allocation33_spill] sm:$0xff] }
 0x159   :  { %799 = vmatpush1.msra.mxu0 %v5442_v18  ;;  %870 = vmatpush1.msra.mxu1 %v5477_v30  ;;  %v9459_v18 = vld [vmem:[#allocation30_spill] sm:$0xff]  ;;  %v9471_v30 = vld [vmem:[#allocation36_spill] sm:$0xff] }
 0x15a   :  { %800 = vmatprep.subr.mxu0 %v5450_v21  ;;  %871 = vmatprep.subr.mxu1 %v5483_v32  ;;  %v9462_v21 = vld [vmem:[#allocation32_spill] sm:$0xff]  ;;  %v9473_v32 = vld [vmem:[#allocation38_spill] sm:$0xff] }
 0x15b   :  { %801 = vmatpush1.msra.mxu0 %v5456_v23  ;;  %872 = vmatpush1.msra.mxu1 %v5489_v34  ;;  %v9464_v23 = vld [vmem:[#allocation34_spill] sm:$0xff]  ;;  %v9475_v34 = vld [vmem:[#allocation40_spill] sm:$0xff] }
 0x15c   :  { %802 = vmatprep.subr.mxu0 %v5462_v25  ;;  %873 = vmatprep.subr.mxu1 %v5495_v36  ;;  %v9466_v25 = vld [vmem:[#allocation35_spill] sm:$0xff]  ;;  %v9477_v36 = vld [vmem:[#allocation42_spill] sm:$0xff] }
 0x15d   :  { %803 = vmatpush1.msra.mxu0 %v5468_v27  ;;  %874 = vmatpush1.msra.mxu1 %v5501_v38  ;;  %v9468_v27 = vld [vmem:[#allocation37_spill] sm:$0xff]  ;;  %v9479_v38 = vld [vmem:[#allocation46_spill] sm:$0xff] }
 0x15e   :  { %804 = vmatprep.subr.mxu0 %v5474_v29  ;;  %875 = vmatprep.subr.mxu1 %v5507_v40  ;;  %v9470_v29 = vld [vmem:[#allocation39_spill] sm:$0xff]  ;;  %v9481_v40 = vld [vmem:[#allocation48_spill] sm:$0xff] }
 0x15f   :  { %805 = vmatpush1.msra.mxu0 %v5480_v31  ;;  %876 = vmatpush1.msra.mxu1 %v5513_v42  ;;  %v9472_v31 = vld [vmem:[#allocation41_spill] sm:$0xff]  ;;  %v9483_v42 = vld [vmem:[#allocation50_spill] sm:$0xff] }
 0x160   :  { %806 = vmatprep.subr.mxu0 %v5486_v33  ;;  %877 = vmatprep.subr.mxu1 %v5519_v44  ;;  %v9474_v33 = vld [vmem:[#allocation43_spill] sm:$0xff]  ;;  %v9485_v44 = vld [vmem:[#allocation52_spill] sm:$0xff] }
 0x161   :  { %807 = vmatpush1.msra.mxu0 %v5492_v35  ;;  %878 = vmatpush1.msra.mxu1 %v5525_v46  ;;  %v9476_v35 = vld [vmem:[#allocation44_spill] sm:$0xff]  ;;  %v9487_v46 = vld [vmem:[#allocation54_spill] sm:$0xff] }
 0x162   :  { %808 = vmatprep.subr.mxu0 %v5498_v37  ;;  %879 = vmatprep.subr.mxu1 %v5531_v48  ;;  %v9478_v37 = vld [vmem:[#allocation45_spill] sm:$0xff]  ;;  %v9488_v48 = vld [vmem:[#allocation55_spill] sm:$0xff] }
 0x163   :  { %809 = vmatpush1.msra.mxu0 %v5504_v39  ;;  %880 = vmatpush1.msra.mxu1 %v5537_v50  ;;  %v9480_v39 = vld [vmem:[#allocation47_spill] sm:$0xff]  ;;  %v9489_v50 = vld [vmem:[#allocation56_spill] sm:$0xff] }
 0x164   :  { %810 = vmatprep.subr.mxu0 %v5510_v41  ;;  %881 = vmatprep.subr.mxu1 %v5543_v52  ;;  %v9482_v41 = vld [vmem:[#allocation49_spill] sm:$0xff] }
 0x165   :  { %811 = vmatpush1.msra.mxu0 %v5516_v43  ;;  %882 = vmatpush1.msra.mxu1 %v9445_v3  ;;  %v9484_v43 = vld [vmem:[#allocation51_spill] sm:$0xff]  ;;  %v9490_v52 = vld [vmem:[#allocation57_spill] sm:$0xff] }
 0x166   :  { %812 = vmatprep.subr.mxu0 %v9446_v4  ;;  %883 = vmatprep.subr.mxu1 %v9447_v5  ;;  %v9508_v3 = vld [vmem:[#allocation75_spill] sm:$0xff]  ;;  %v9509_v4 = vld [vmem:[#allocation76_spill] sm:$0xff]  ;;  %v9510_v5 = vld [vmem:[#allocation77_spill] sm:$0xff] }
 0x167   :  { %813 = vmatpush1.msra.mxu0 %v9448_v6  ;;  %884 = vmatpush1.msra.mxu1 %v9449_v7  ;;  %v9511_v6 = vld [vmem:[#allocation78_spill] sm:$0xff]  ;;  %v9512_v7 = vld [vmem:[#allocation79_spill] sm:$0xff] }
 0x168   :  { %814 = vmatprep.subr.mxu0 %v9450_v8  ;;  %885 = vmatprep.subr.mxu1 %v9451_v9  ;;  %v9513_v8 = vld [vmem:[#allocation80_spill] sm:$0xff]  ;;  %v9514_v9 = vld [vmem:[#allocation81_spill] sm:$0xff] }
 0x169   :  { %815 = vmatpush1.msra.mxu0 %v9452_v11  ;;  %886 = vmatpush1.msra.mxu1 %v9453_v12  ;;  %v9515_v11 = vld [vmem:[#allocation82_spill] sm:$0xff]  ;;  %v9516_v12 = vld [vmem:[#allocation83_spill] sm:$0xff] }
 0x16a   :  { %816 = vmatprep.subr.mxu0 %v9454_v13  ;;  %887 = vmatprep.subr.mxu1 %v9455_v14  ;;  %v9517_v13 = vld [vmem:[#allocation84_spill] sm:$0xff]  ;;  %v9518_v14 = vld [vmem:[#allocation85_spill] sm:$0xff] }
 0x16b   :  { %817 = vmatpush1.msra.mxu0 %v9456_v15  ;;  %888 = vmatpush1.msra.mxu1 %v9457_v16  ;;  %v9519_v15 = vld [vmem:[#allocation86_spill] sm:$0xff]  ;;  %v9520_v16 = vld [vmem:[#allocation87_spill] sm:$0xff] }
 0x16c   :  { %818 = vmatprep.subr.mxu0 %v9458_v17  ;;  %889 = vmatprep.subr.mxu1 %v9459_v18  ;;  %v9521_v17 = vld [vmem:[#allocation88_spill] sm:$0xff]  ;;  %v9522_v18 = vld [vmem:[#allocation89_spill] sm:$0xff] }
 0x16d   :  { %819 = vmatpush1.msra.mxu0 %v9460_v19  ;;  %852 = vmatprep.mubr.f32.mxu0 %v9461_v20  ;;  %v9523_v19 = vld [vmem:[#allocation90_spill] sm:$0xff] }
 0x16e   :  { %890 = vmatpush1.msra.mxu1 %v9462_v21  ;;  %923 = vmatprep.mubr.f32.mxu1 %v9461_v20  ;;  %v9524_v21 = vld [vmem:[#allocation91_spill] sm:$0xff] }
 0x16f   :  { %853 = vmatmul.mubr.f32.vlgmr.msra.gmra.mxu0 %v5987_v55  ;;  %924 = vmatmul.mubr.f32.vlgmr.msra.gmra.mxu1 %v5987_v55  ;;  %v9507_v55 = vld [vmem:[#allocation74_spill] sm:$0xff] }
 0x170   :  { %958 = vmatprep.subr.mxu0 %v9463_v22  ;;  %1029 = vmatprep.subr.mxu1 %v9464_v23  ;;  %v9525_v22 = vld [vmem:[#allocation92_spill] sm:$0xff]  ;;  %v9526_v23 = vld [vmem:[#allocation93_spill] sm:$0xff] }
 0x171   :  { %959 = vmatpush1.msra.mxu0 %v9465_v24  ;;  %1030 = vmatpush1.msra.mxu1 %v9466_v25  ;;  %v9527_v24 = vld [vmem:[#allocation94_spill] sm:$0xff]  ;;  %v9528_v25 = vld [vmem:[#allocation95_spill] sm:$0xff] }
 0x172   :  { %960 = vmatprep.subr.mxu0 %v9467_v26  ;;  %1031 = vmatprep.subr.mxu1 %v9468_v27  ;;  %v735_v26 = vlaneseq }
 0x173   :  { %961 = vmatpush1.msra.mxu0 %v9469_v28  ;;  %1032 = vmatpush1.msra.mxu1 %v9470_v29  ;;  %v516_v28 = vpop.f32.mrf.mxu0 }
 0x174   :  { %962 = vmatprep.subr.mxu0 %v9471_v30  ;;  %1033 = vmatprep.subr.mxu1 %v9472_v31  ;;  %v736_v27 = vshrl.u32 %v735_v26, 7  ;;  %v275_v30 = vld [vmem:[%s8733_s4] sm:$0xf]  ;;  %v587_v31 = vpop.f32.mrf.mxu1 }
 0x175   :  { %963 = vmatpush1.msra.mxu0 %v9473_v32  ;;  %1034 = vmatpush1.msra.mxu1 %v9474_v33  ;;  %v518_v33 = vpop.f32.mrf.mxu0 }
 0x176   :  { %964 = vmatprep.subr.mxu0 %v9475_v34  ;;  %1035 = vmatprep.subr.mxu1 %v9476_v35  ;;  %v737_v29 = vsub.s32 0, %v736_v27  ;;  %v741_v32 = vsub.s32 1, %v736_v27 }
 0x177   :  { %965 = vmatpush1.msra.mxu0 %v9477_v36  ;;  %1036 = vmatpush1.msra.mxu1 %v9478_v37  ;;  %v589_v36 = vpop.f32.mrf.mxu1 }
 0x178   :  { %966 = vmatprep.subr.mxu0 %v9479_v38  ;;  %1037 = vmatprep.subr.mxu1 %v9480_v39  ;;  %v6128_v34 = vrot.slane %v275_v30, %v737_v29  ;;  %v6130_v38 = vrot.slane %v275_v30, %v741_v32  ;;  %v9530_v29 = vld [vmem:[#allocation97_spill] sm:$0xff]  ;;  %v9533_v32 = vld [vmem:[#allocation100_spill] sm:$0xff] }
 0x179   :  { %967 = vmatpush1.msra.mxu0 %v9481_v40  ;;  %1038 = vmatpush1.msra.mxu1 %v9482_v41 }
 0x17a   :  { %968 = vmatprep.subr.mxu0 %v9483_v42  ;;  %1039 = vmatprep.subr.mxu1 %v9484_v43 }
 0x17b   :  { %969 = vmatpush1.msra.mxu0 %v9485_v44  ;;  %1040 = vmatpush1.msra.mxu1 %v9486_v45  ;;  %v749_v45 = vsub.s32 3, %v736_v27 }
 0x17c   :  { %970 = vmatprep.subr.mxu0 %v9487_v46  ;;  %1041 = vmatprep.subr.mxu1 %v9488_v48 }
 0x17d   :  { %971 = vmatpush1.msra.mxu0 %v9489_v50  ;;  %1042 = vmatpush1.msra.mxu1 %v9490_v52  ;;  %v6134_v52 = vrot.slane %v275_v30, %v749_v45 }
 0x17e   :  { %972 = vmatprep.subr.mxu0 %v9491_v56  ;;  %1043 = vmatprep.subr.mxu1 %v9492_v58  ;;  %v745_v56 = vsub.s32 2, %v736_v27 }
 0x17f   :  { %973 = vmatpush1.msra.mxu0 %v9493_v61  ;;  %1044 = vmatpush1.msra.mxu1 %v9494_v63 }
 0x180   :  { %974 = vmatprep.subr.mxu0 %v9495_v2  ;;  %1045 = vmatprep.subr.mxu1 %v9496_v10  ;;  %v6137_v63 = vrot.slane %v275_v30, %v745_v56  ;;  %v9531_v30 = vld [vmem:[#allocation98_spill] sm:$0xff]  ;;  %v9545_v56 = vld [vmem:[#allocation112_spill] sm:$0xff] }
 0x181   :  { %975 = vmatpush1.msra.mxu0 %v9497_v53  ;;  %1046 = vmatpush1.msra.mxu1 %v9498_v57 }
 0x182   :  { %976 = vmatprep.subr.mxu0 %v9499_v49  ;;  %1047 = vmatprep.subr.mxu1 %v9500_v51 }
 0x183   :  { %977 = vmatpush1.msra.mxu0 %v9501_v59  ;;  %1048 = vmatpush1.msra.mxu1 %v9502_v62  ;;  %v784_v59 = vld [vmem:[#allocation3 + $0x20] sm:$0xff] }
 0x184   :  { %978 = vmatprep.subr.mxu0 %v9503_v60  ;;  %1049 = vmatprep.subr.mxu1 %v9504_v0  ;;  %v785_v60 = vld [vmem:[#allocation3 + $0x28] sm:$0xff] }
 0x185   :  { %979 = vmatpush1.msra.mxu0 %v9505_v1  ;;  %1050 = vmatpush1.msra.mxu1 %v9506_v47 }
 0x186   :  { %980 = vmatprep.subr.mxu0 %v9507_v55  ;;  %1051 = vmatprep.subr.mxu1 %v9508_v3 }
 0x187   :  { %981 = vmatpush1.msra.mxu0 %v9509_v4  ;;  %1052 = vmatpush1.msra.mxu1 %v9510_v5 }
 0x188   :  { %982 = vmatprep.subr.mxu0 %v9511_v6  ;;  %1053 = vmatprep.subr.mxu1 %v9512_v7 }
 0x189   :  { %983 = vmatpush1.msra.mxu0 %v9513_v8  ;;  %1054 = vmatpush1.msra.mxu1 %v9514_v9 }
 0x18a   :  { %984 = vmatprep.subr.mxu0 %v9515_v11  ;;  %1055 = vmatprep.subr.mxu1 %v9516_v12 }
 0x18b   :  { %985 = vmatpush1.msra.mxu0 %v9517_v13  ;;  %1056 = vmatpush1.msra.mxu1 %v9518_v14  ;;  %v787_v14 = vld [vmem:[#allocation3 + $0x38] sm:$0xff] }
 0x18c   :  { %986 = vmatprep.subr.mxu0 %v9519_v15  ;;  %1057 = vmatprep.subr.mxu1 %v9520_v16  ;;  %v786_v16 = vld [vmem:[#allocation3 + $0x30] sm:$0xff] }
 0x18d   :  { %987 = vmatpush1.msra.mxu0 %v9521_v17  ;;  %1058 = vmatpush1.msra.mxu1 %v9522_v18 }
 0x18e   :  { %988 = vmatprep.subr.mxu0 %v9523_v19  ;;  %1059 = vmatprep.subr.mxu1 %v9524_v21 }
 0x18f   :  { %989 = vmatpush1.msra.mxu0 %v9525_v22  ;;  %1060 = vmatpush1.msra.mxu1 %v9526_v23 }
 0x190   :  { %1022 = vmatprep.mubr.f32.mxu0 %v9461_v20  ;;  %1093 = vmatprep.mubr.f32.mxu1 %v9461_v20 }
 0x191   :  { %1100 = vmatprep.subr.mxu0 %v9527_v24  ;;  %1171 = vmatprep.subr.mxu1 %v9528_v25 }
 0x20e   :  { %v658_v35 = vpop.f32.mrf.mxu0  ;;  %v729_v41 = vpop.f32.mrf.mxu1 }
 0x20f   :  { %v659_v37 = vadd.f32 %v658_v35, %v516_v28  ;;  %v730_v61 = vadd.f32 %v729_v41, %v587_v31  ;;  %v9529_v28 = vld [vmem:[#allocation96_spill] sm:$0xff]  ;;  %v9532_v31 = vld [vmem:[#allocation99_spill] sm:$0xff]  ;;  %v9535_v35 = vld [vmem:[#allocation102_spill] sm:$0xff] }
 0x210   :  { %v660_v39 = vpop.f32.mrf.mxu0  ;;  %v731_v48 = vpop.f32.mrf.mxu1  ;;  %v9540_v41 = vld [vmem:[#allocation107_spill] sm:$0xff] }
 0x211   :  { %v755_v40 = vadd.f32 %v6128_v34, %v659_v37  ;;  %v661_v42 = vadd.f32 %v660_v39, %v518_v33  ;;  %v732_v50 = vadd.f32 %v731_v48, %v589_v36  ;;  %v757_v53 = vadd.f32 %v6137_v63, %v730_v61  ;;  %v9534_v33 = vld [vmem:[#allocation101_spill] sm:$0xff]  ;;  %v9536_v36 = vld [vmem:[#allocation103_spill] sm:$0xff]  ;;  %v9537_v37 = vld [vmem:[#allocation104_spill] sm:$0xff] }
 0x212   :  { %v9538_v39 = vld [vmem:[#allocation105_spill] sm:$0xff]  ;;  %v9544_v48 = vld [vmem:[#allocation111_spill] sm:$0xff] }
 0x213   :  { %v4297_v43 = vmul.f32 -1.442695, %v755_v40  ;;  %v756_v44 = vadd.f32 %v6130_v38, %v661_v42  ;;  %v758_v58 = vadd.f32 %v6134_v52, %v732_v50  ;;  %v9539_v40 = vld [vmem:[#allocation106_spill] sm:$0xff] }
 0x215   :  { %4419 = vpow2.f32 %v4297_v43  ;;  %v4298_v46 = vmul.f32 -1.442695, %v756_v44  ;;  %v4299_v2 = vmul.f32 -1.442695, %v758_v58  ;;  %v9541_v43 = vld [vmem:[#allocation108_spill] sm:$0xff]  ;;  %v9542_v44 = vld [vmem:[#allocation109_spill] sm:$0xff] }
 0x216   :  { %v9546_v58 = vld [vmem:[#allocation113_spill] sm:$0xff] }
 0x217   :  { %4421 = vpow2.f32 %v4298_v46  ;;  %v9543_v46 = vld [vmem:[#allocation110_spill] sm:$0xff] }
 0x218   :  { %4423 = vpow2.f32 %v4299_v2  ;;  %v9547_v2 = vld [vmem:[#allocation114_spill] sm:$0xff] }
 0x222   :  { %v4420_v10 = vpop.eup %4419 }
 0x223   :  { %v762_v57 = vadd.f32 1.0, %v4420_v10  ;;  %v9548_v10 = vld [vmem:[#allocation115_spill] sm:$0xff] }
 0x224   :  { %v4422_v49 = vpop.eup %4421 }
 0x225   :  { %4425 = vrcp.f32 %v762_v57  ;;  %v768_v51 = vadd.f32 1.0, %v4422_v49  ;;  %v4424_v1 = vpop.eup %4423  ;;  %v9549_v49 = vld [vmem:[#allocation116_spill] sm:$0xff] }
 0x226   :  { %4427 = vtanh.f32 %v757_v53  ;;  %v775_v7 = vadd.f32 1.0, %v4424_v1  ;;  %v9553_v1 = vld [vmem:[#allocation120_spill] sm:$0xff] }
 0x227   :  { %4429 = vrcp.f32 %v768_v51  ;;  %v9550_v51 = vld [vmem:[#allocation117_spill] sm:$0xff] }
 0x22f   :  { %v854_v62 = vpop.f32.mrf.mxu0  ;;  %v925_v12 = vpop.f32.mrf.mxu1 }
 0x230   :  { %v930_v0 = vadd.f32 %v854_v62, %v784_v59  ;;  %v932_v18 = vadd.f32 %v925_v12, %v786_v16  ;;  %v9551_v59 = vld [vmem:[#allocation118_spill] sm:$0xff]  ;;  %v9552_v62 = vld [vmem:[#allocation119_spill] sm:$0xff]  ;;  %v9565_v12 = vld [vmem:[#allocation132_spill] sm:$0xff] }
 0x231   :  { %v856_v47 = vpop.f32.mrf.mxu0  ;;  %v927_v15 = vpop.f32.mrf.mxu1  ;;  %v9568_v16 = vld [vmem:[#allocation135_spill] sm:$0xff] }
 0x232   :  { %v4426_v55 = vpop.eup %4425  ;;  %v4300_v3 = vmul.f32 -1.442695, %v930_v0  ;;  %v931_v4 = vadd.f32 %v856_v47, %v785_v60  ;;  %v933_v17 = vadd.f32 %v927_v15, %v787_v14  ;;  %v9554_v47 = vld [vmem:[#allocation121_spill] sm:$0xff]  ;;  %v9567_v15 = vld [vmem:[#allocation134_spill] sm:$0xff] }
 0x233   :  { %v4428_v5 = vpop.eup %4427  ;;  %v9566_v14 = vld [vmem:[#allocation133_spill] sm:$0xff] }
 0x234   :  { %v4430_v6 = vpop.eup %4429  ;;  %4431 = vpow2.f32 %v4300_v3  ;;  %v4301_v8 = vmul.f32 -1.442695, %v931_v4  ;;  %v779_v11 = vmul.f32 %v4428_v5, %v4426_v55  ;;  %v4302_v21 = vmul.f32 -1.442695, %v933_v17  ;;  %v9555_v55 = vld [vmem:[#allocation122_spill] sm:$0xff]  ;;  %v9556_v3 = vld [vmem:[#allocation123_spill] sm:$0xff] }
 0x235   :  { %v778_v9 = vmul.f32 0.0, %v4430_v6  ;;  %v9558_v4 = vld [vmem:[#allocation125_spill] sm:$0xff]  ;;  %v9559_v5 = vld [vmem:[#allocation126_spill] sm:$0xff]  ;;  %v9560_v6 = vld [vmem:[#allocation127_spill] sm:$0xff] }
 0x236   :  { %4433 = vpow2.f32 %v4301_v8  ;;  %v9562_v8 = vld [vmem:[#allocation129_spill] sm:$0xff]  ;;  %v9569_v17 = vld [vmem:[#allocation136_spill] sm:$0xff] }
 0x237   :  { %v6140_v13 = vadd.f32 %v779_v11, %v778_v9  ;;  %4435 = vrcp.f32 %v775_v7  ;;  %v9561_v7 = vld [vmem:[#allocation128_spill] sm:$0xff]  ;;  %v9563_v9 = vld [vmem:[#allocation130_spill] sm:$0xff]  ;;  %v9564_v11 = vld [vmem:[#allocation131_spill] sm:$0xff] }
 0x239   :  { %4437 = vtanh.f32 %v6140_v13 }
 0x23a   :  { %4439 = vtanh.f32 %v932_v18  ;;  %v9570_v18 = vld [vmem:[#allocation137_spill] sm:$0xff] }
 0x241   :  { %v4432_v19 = vpop.eup %4431 }
 0x242   :  { %v937_v22 = vadd.f32 1.0, %v4432_v19  ;;  %v9571_v19 = vld [vmem:[#allocation138_spill] sm:$0xff] }
 0x243   :  { %v4434_v23 = vpop.eup %4433 }
 0x244   :  { %4441 = vrcp.f32 %v937_v22  ;;  %v943_v24 = vadd.f32 1.0, %v4434_v23  ;;  %v4436_v25 = vpop.eup %4435  ;;  %v9573_v22 = vld [vmem:[#allocation140_spill] sm:$0xff]  ;;  %v9574_v23 = vld [vmem:[#allocation141_spill] sm:$0xff] }
 0x245   :  { %4443 = vpow2.f32 %v4302_v21  ;;  %v9572_v21 = vld [vmem:[#allocation139_spill] sm:$0xff] }
 0x246   :  { %v4438_v26 = vpop.eup %4437  ;;  %4445 = vrcp.f32 %v943_v24  ;;  %v9575_v24 = vld [vmem:[#allocation142_spill] sm:$0xff] }
 0x247   :  { %v782_v27 = vmul.f32 %v4438_v26, %v4436_v25  ;;  %v4440_v42 = vpop.eup %4439  ;;  %v9576_v25 = vld [vmem:[#allocation143_spill] sm:$0xff]  ;;  %v9577_v26 = vld [vmem:[#allocation144_spill] sm:$0xff] }
 0x249   :  { %1023 = vmatmul.mubr.f32.vlgmr.msra.gmra.mxu0 %v782_v27  ;;  %1094 = vmatmul.mubr.f32.vlgmr.msra.gmra.mxu1 %v782_v27  ;;  %v9578_v27 = vld [vmem:[#allocation145_spill] sm:$0xff] }
 0x24a   :  { %1101 = vmatpush1.msra.mxu0 %v9529_v28  ;;  %1172 = vmatpush1.msra.mxu1 %v9530_v29  ;;  %v9579_v28 = vld [vmem:[#allocation146_spill] sm:$0xff]  ;;  %v9580_v29 = vld [vmem:[#allocation147_spill] sm:$0xff] }
 0x24b   :  { %1102 = vmatprep.subr.mxu0 %v9531_v30  ;;  %1173 = vmatprep.subr.mxu1 %v9532_v31  ;;  %v9581_v30 = vld [vmem:[#allocation148_spill] sm:$0xff]  ;;  %v9582_v31 = vld [vmem:[#allocation149_spill] sm:$0xff] }
 0x24c   :  { %1103 = vmatpush1.msra.mxu0 %v9533_v32  ;;  %1174 = vmatpush1.msra.mxu1 %v9534_v33  ;;  %v9583_v33 = vld [vmem:[#allocation150_spill] sm:$0xff] }
 0x24d   :  { %1104 = vmatprep.subr.mxu0 %v9535_v35  ;;  %1175 = vmatprep.subr.mxu1 %v9536_v36  ;;  %v9584_v35 = vld [vmem:[#allocation151_spill] sm:$0xff]  ;;  %v9585_v36 = vld [vmem:[#allocation152_spill] sm:$0xff] }
 0x24e   :  { %1105 = vmatpush1.msra.mxu0 %v9537_v37  ;;  %1176 = vmatpush1.msra.mxu1 %v9538_v39  ;;  %v9586_v37 = vld [vmem:[#allocation153_spill] sm:$0xff] }
 0x24f   :  { %1106 = vmatprep.subr.mxu0 %v9539_v40  ;;  %1177 = vmatprep.subr.mxu1 %v9540_v41  ;;  %v9587_v40 = vld [vmem:[#allocation154_spill] sm:$0xff]  ;;  %v9588_v41 = vld [vmem:[#allocation155_spill] sm:$0xff] }
 0x250   :  { %1107 = vmatpush1.msra.mxu0 %v9541_v43  ;;  %1178 = vmatpush1.msra.mxu1 %v9542_v44  ;;  %v9590_v44 = vld [vmem:[#allocation157_spill] sm:$0xff] }
 0x251   :  { %v4442_v45 = vpop.eup %4441  ;;  %1108 = vmatprep.subr.mxu0 %v9543_v46  ;;  %1179 = vmatprep.subr.mxu1 %v9544_v48  ;;  %v6218_v46 = vld [vmem:[#allocation5 + $0x1f8] sm:$0xff]  ;;  %v6221_v48 = vld [vmem:[#allocation5 + $0x1e0] sm:$0xff] }
 0x252   :  { %v4444_v50 = vpop.eup %4443  ;;  %1109 = vmatpush1.msra.mxu0 %v9545_v56  ;;  %1180 = vmatpush1.msra.mxu1 %v9546_v58  ;;  %v954_v53 = vmul.f32 %v4442_v45, %v4440_v42  ;;  %v9589_v42 = vld [vmem:[#allocation156_spill] sm:$0xff]  ;;  %v6215_v45 = vld [vmem:[#allocation5 + $0x1e8] sm:$0xff] }
 0x253   :  { %v4446_v61 = vpop.eup %4445  ;;  %1110 = vmatprep.subr.mxu0 %v9547_v2  ;;  %1181 = vmatprep.subr.mxu1 %v9548_v10  ;;  %v950_v0 = vadd.f32 1.0, %v4444_v50  ;;  %v6224_v50 = vld [vmem:[#allocation5 + $0x1f0] sm:$0xff]  ;;  %v6227_v56 = vld [vmem:[#allocation5 + $0x1c8] sm:$0xff]  ;;  %v6230_v58 = vld [vmem:[#allocation5 + $0x1d8] sm:$0xff] }
 0x254   :  { %v953_v57 = vmul.f32 %v4446_v61, %v5984_v54  ;;  %1111 = vmatpush1.msra.mxu0 %v9549_v49  ;;  %1182 = vmatpush1.msra.mxu1 %v9550_v51  ;;  %v9557_v54 = vld [vmem:[#allocation124_spill] sm:$0xff]  ;;  %v6233_v61 = vld [vmem:[#allocation5 + $0x1c0] sm:$0xff]  ;;  %v6236_v2 = vld [vmem:[#allocation5 + $0x1d0] sm:$0xff] }
 0x255   :  { %1112 = vmatprep.subr.mxu0 %v9551_v59  ;;  %1183 = vmatprep.subr.mxu1 %v9552_v62  ;;  %v6239_v10 = vld [vmem:[#allocation5 + $0x1a8] sm:$0xff]  ;;  %v6248_v49 = vld [vmem:[#allocation5 + $0x1b0] sm:$0xff]  ;;  %v6254_v59 = vld [vmem:[#allocation5 + $0x198] sm:$0xff] }
 0x256   :  { %v6168_v60 = vadd.f32 %v954_v53, %v953_v57  ;;  %1113 = vmatpush1.msra.mxu0 %v9553_v1  ;;  %1184 = vmatpush1.msra.mxu1 %v9554_v47  ;;  %v6242_v53 = vld [vmem:[#allocation5 + $0x1b8] sm:$0xff]  ;;  %v6245_v57 = vld [vmem:[#allocation5 + $0x1a0] sm:$0xff]  ;;  %v6251_v51 = vld [vmem:[#allocation5 + $0x188] sm:$0xff] }
 0x257   :  { %1114 = vmatprep.subr.mxu0 %v9555_v55  ;;  %1185 = vmatprep.subr.mxu1 %v9556_v3  ;;  %v6257_v62 = vld [vmem:[#allocation5 + $0x180] sm:$0xff]  ;;  %v6263_v1 = vld [vmem:[#allocation5 + $0x168] sm:$0xff]  ;;  %v6266_v47 = vld [vmem:[#allocation5 + $0x178] sm:$0xff] }
 0x258   :  { %1115 = vmatpush1.msra.mxu0 %v9557_v54  ;;  %1186 = vmatpush1.msra.mxu1 %v9558_v4  ;;  %4447 = vtanh.f32 %v6168_v60  ;;  %v6269_v55 = vld [vmem:[#allocation5 + $0x160] sm:$0xff]  ;;  %v6272_v3 = vld [vmem:[#allocation5 + $0x170] sm:$0xff]  ;;  %v6275_v54 = vld [vmem:[#allocation5 + $0x148] sm:$0xff] }
 0x259   :  { %1116 = vmatprep.subr.mxu0 %v9559_v5  ;;  %1187 = vmatprep.subr.mxu1 %v9560_v6  ;;  %4449 = vrcp.f32 %v950_v0  ;;  %v6260_v0 = vld [vmem:[#allocation5 + $0x190] sm:$0xff]  ;;  %v6278_v4 = vld [vmem:[#allocation5 + $0x158] sm:$0xff]  ;;  %v6281_v5 = vld [vmem:[#allocation5 + $0x140] sm:$0xff] }
 0x25a   :  { %1117 = vmatpush1.msra.mxu0 %v9561_v7  ;;  %1188 = vmatpush1.msra.mxu1 %v9562_v8  ;;  %v6284_v6 = vld [vmem:[#allocation5 + $0x150] sm:$0xff]  ;;  %v6287_v7 = vld [vmem:[#allocation5 + $0x128] sm:$0xff]  ;;  %v6290_v8 = vld [vmem:[#allocation5 + $0x138] sm:$0xff] }
 0x25b   :  { %1118 = vmatprep.subr.mxu0 %v9563_v9  ;;  %1189 = vmatprep.subr.mxu1 %v9564_v11  ;;  %v6293_v9 = vld [vmem:[#allocation5 + $0x120] sm:$0xff]  ;;  %v6296_v11 = vld [vmem:[#allocation5 + $0x130] sm:$0xff] }
 0x25c   :  { %1119 = vmatpush1.msra.mxu0 %v9565_v12  ;;  %1190 = vmatpush1.msra.mxu1 %v9566_v14  ;;  %v6299_v12 = vld [vmem:[#allocation5 + $0x108] sm:$0xff]  ;;  %v6302_v14 = vld [vmem:[#allocation5 + $0x118] sm:$0xff] }
 0x25d   :  { %1120 = vmatprep.subr.mxu0 %v9567_v15  ;;  %1191 = vmatprep.subr.mxu1 %v9568_v16  ;;  %v6305_v15 = vld [vmem:[#allocation5 + $0x100] sm:$0xff]  ;;  %v6308_v16 = vld [vmem:[#allocation5 + $0x110] sm:$0xff] }
 0x25e   :  { %1121 = vmatpush1.msra.mxu0 %v9569_v17  ;;  %1192 = vmatpush1.msra.mxu1 %v9570_v18  ;;  %v6311_v17 = vld [vmem:[#allocation5 + $0xe8] sm:$0xff]  ;;  %v6314_v18 = vld [vmem:[#allocation5 + $0xf8] sm:$0xff] }
 0x25f   :  { %1122 = vmatprep.subr.mxu0 %v9571_v19  ;;  %1193 = vmatprep.subr.mxu1 %v9572_v21  ;;  %v6317_v19 = vld [vmem:[#allocation5 + $0xe0] sm:$0xff]  ;;  %v6320_v21 = vld [vmem:[#allocation5 + $0xf0] sm:$0xff] }
 0x260   :  { %1123 = vmatpush1.msra.mxu0 %v9573_v22  ;;  %1194 = vmatpush1.msra.mxu1 %v9574_v23  ;;  %v6323_v22 = vld [vmem:[#allocation5 + $0xc8] sm:$0xff]  ;;  %v6326_v23 = vld [vmem:[#allocation5 + $0xd8] sm:$0xff] }
 0x261   :  { %1124 = vmatprep.subr.mxu0 %v9575_v24  ;;  %1195 = vmatprep.subr.mxu1 %v9576_v25  ;;  %9591 = vst [vmem:[#allocation18_spill] sm:$0xff] %v6326_v23  ;;  %v6329_v24 = vld [vmem:[#allocation5 + $0xc0] sm:$0xff]  ;;  %v6332_v25 = vld [vmem:[#allocation5 + $0xd0] sm:$0xff] }
 0x262   :  { %1125 = vmatpush1.msra.mxu0 %v9577_v26  ;;  %1196 = vmatpush1.msra.mxu1 %v9578_v27  ;;  %9592 = vst [vmem:[#allocation13_spill] sm:$0xff] %v6329_v24  ;;  %9593 = vst [vmem:[#allocation20_spill] sm:$0xff] %v6332_v25  ;;  %v6335_v26 = vld [vmem:[#allocation5 + $0xa8] sm:$0xff]  ;;  %v6338_v27 = vld [vmem:[#allocation5 + $0xb8] sm:$0xff] }
 0x263   :  { %1126 = vmatprep.subr.mxu0 %v9579_v28  ;;  %1197 = vmatprep.subr.mxu1 %v9580_v29  ;;  %9594 = vst [vmem:[#allocation14_spill] sm:$0xff] %v6335_v26  ;;  %9595 = vst [vmem:[#allocation22_spill] sm:$0xff] %v6338_v27  ;;  %v6341_v28 = vld [vmem:[#allocation5 + $0xa0] sm:$0xff]  ;;  %v6344_v29 = vld [vmem:[#allocation5 + $0xb0] sm:$0xff] }
 0x264   :  { %1127 = vmatpush1.msra.mxu0 %v9581_v30  ;;  %1198 = vmatpush1.msra.mxu1 %v9582_v31  ;;  %9596 = vst [vmem:[#allocation15_spill] sm:$0xff] %v6341_v28  ;;  %9597 = vst [vmem:[#allocation24_spill] sm:$0xff] %v6344_v29  ;;  %v6347_v30 = vld [vmem:[#allocation5 + $0x88] sm:$0xff]  ;;  %v6350_v31 = vld [vmem:[#allocation5 + $0x98] sm:$0xff] }
 0x265   :  { %v4448_v32 = vpop.eup %4447  ;;  %1128 = vmatprep.subr.mxu0 %v9583_v33  ;;  %1199 = vmatprep.subr.mxu1 %v9584_v35  ;;  %9598 = vst [vmem:[#allocation16_spill] sm:$0xff] %v6347_v30  ;;  %9599 = vst [vmem:[#allocation25_spill] sm:$0xff] %v6350_v31  ;;  %v6356_v33 = vld [vmem:[#allocation5 + $0x90] sm:$0xff]  ;;  %v6359_v35 = vld [vmem:[#allocation5 + $0x68] sm:$0xff] }
 0x266   :  { %1129 = vmatpush1.msra.mxu0 %v9585_v36  ;;  %1200 = vmatpush1.msra.mxu1 %v9586_v37  ;;  %v4450_v39 = vpop.eup %4449  ;;  %9601 = vst [vmem:[#allocation26_spill] sm:$0xff] %v6356_v33  ;;  %9602 = vst [vmem:[#allocation19_spill] sm:$0xff] %v6359_v35  ;;  %v6362_v36 = vld [vmem:[#allocation5 + $0x78] sm:$0xff]  ;;  %v6365_v37 = vld [vmem:[#allocation5 + $0x60] sm:$0xff] }
 0x267   :  { %1130 = vmatprep.subr.mxu0 %v9587_v40  ;;  %1201 = vmatprep.subr.mxu1 %v9588_v41  ;;  %v6209_v43 = vmul.f32 %v4450_v39, %v4448_v32  ;;  %v6353_v32 = vld [vmem:[#allocation5 + $0x80] sm:$0xff]  ;;  %9603 = vst [vmem:[#allocation28_spill] sm:$0xff] %v6362_v36  ;;  %9604 = vst [vmem:[#allocation21_spill] sm:$0xff] %v6365_v37  ;;  %v6368_v39 = vld [vmem:[#allocation5 + $0x70] sm:$0xff] }
 0x268   :  { %1131 = vmatpush1.msra.mxu0 %v9589_v42  ;;  %1164 = vmatprep.mubr.f32.mxu0 %v9461_v20  ;;  %9600 = vst [vmem:[#allocation17_spill] sm:$0xff] %v6353_v32  ;;  %9605 = vst [vmem:[#allocation30_spill] sm:$0xff] %v6368_v39  ;;  %v6371_v40 = vld [vmem:[#allocation5 + $0x48] sm:$0xff]  ;;  %v6374_v41 = vld [vmem:[#allocation5 + $0x58] sm:$0xff] }
 0x269   :  { %1202 = vmatpush1.msra.mxu1 %v9590_v44  ;;  %1235 = vmatprep.mubr.f32.mxu1 %v9461_v20  ;;  %9606 = vst [vmem:[#allocation23_spill] sm:$0xff] %v6371_v40  ;;  %9607 = vst [vmem:[#allocation32_spill] sm:$0xff] %v6374_v41  ;;  %v6377_v42 = vld [vmem:[#allocation5 + $0x40] sm:$0xff]  ;;  %v6380_v44 = vld [vmem:[#allocation5 + $0x50] sm:$0xff] }
 0x26a   :  { %1165 = vmatmul.mubr.f32.vlgmr.msra.gmra.mxu0 %v6209_v43  ;;  %1236 = vmatmul.mubr.f32.vlgmr.msra.gmra.mxu1 %v6209_v43  ;;  %9608 = vst [vmem:[#allocation27_spill] sm:$0xff] %v6377_v42  ;;  %9609 = vst [vmem:[#allocation34_spill] sm:$0xff] %v6380_v44 }
 0x26b   :  { %1275 = vmatprep.subr.mxu0 %v6215_v45  ;;  %1346 = vmatprep.subr.mxu1 %v6218_v46 }
 0x26c   :  { %1276 = vmatpush1.msra.mxu0 %v6221_v48  ;;  %1347 = vmatpush1.msra.mxu1 %v6224_v50 }
 0x26d   :  { %1277 = vmatprep.subr.mxu0 %v6227_v56  ;;  %1348 = vmatprep.subr.mxu1 %v6230_v58 }
 0x26e   :  { %1278 = vmatpush1.msra.mxu0 %v6233_v61  ;;  %1349 = vmatpush1.msra.mxu1 %v6236_v2 }
 0x26f   :  { %1279 = vmatprep.subr.mxu0 %v6239_v10  ;;  %1350 = vmatprep.subr.mxu1 %v6242_v53 }
 0x270   :  { %1280 = vmatpush1.msra.mxu0 %v6245_v57  ;;  %1351 = vmatpush1.msra.mxu1 %v6248_v49 }
 0x271   :  { %1281 = vmatprep.subr.mxu0 %v6251_v51  ;;  %1352 = vmatprep.subr.mxu1 %v6254_v59 }
 0x272   :  { %1282 = vmatpush1.msra.mxu0 %v6257_v62  ;;  %1353 = vmatpush1.msra.mxu1 %v6260_v0 }
 0x273   :  { %1283 = vmatprep.subr.mxu0 %v6263_v1  ;;  %1354 = vmatprep.subr.mxu1 %v6266_v47 }
 0x274   :  { %1284 = vmatpush1.msra.mxu0 %v6269_v55  ;;  %1355 = vmatpush1.msra.mxu1 %v6272_v3 }
 0x275   :  { %1285 = vmatprep.subr.mxu0 %v6275_v54  ;;  %1356 = vmatprep.subr.mxu1 %v6278_v4 }
 0x276   :  { %1286 = vmatpush1.msra.mxu0 %v6281_v5  ;;  %1357 = vmatpush1.msra.mxu1 %v6284_v6 }
 0x277   :  { %1287 = vmatprep.subr.mxu0 %v6287_v7  ;;  %1358 = vmatprep.subr.mxu1 %v6290_v8 }
 0x278   :  { %1288 = vmatpush1.msra.mxu0 %v6293_v9  ;;  %1359 = vmatpush1.msra.mxu1 %v6296_v11 }
 0x279   :  { %1289 = vmatprep.subr.mxu0 %v6299_v12  ;;  %1360 = vmatprep.subr.mxu1 %v6302_v14 }
 0x27a   :  { %1290 = vmatpush1.msra.mxu0 %v6305_v15  ;;  %1361 = vmatpush1.msra.mxu1 %v6308_v16 }
 0x27b   :  { %1291 = vmatprep.subr.mxu0 %v6311_v17  ;;  %1362 = vmatprep.subr.mxu1 %v6314_v18 }
 0x27c   :  { %1292 = vmatpush1.msra.mxu0 %v6317_v19  ;;  %1363 = vmatpush1.msra.mxu1 %v6320_v21 }
 0x27d   :  { %1293 = vmatprep.subr.mxu0 %v6323_v22  ;;  %1364 = vmatprep.subr.mxu1 %v6326_v23 }
 0x27e   :  { %1294 = vmatpush1.msra.mxu0 %v6329_v24  ;;  %1365 = vmatpush1.msra.mxu1 %v6332_v25 }
 0x27f   :  { %1295 = vmatprep.subr.mxu0 %v6335_v26  ;;  %1366 = vmatprep.subr.mxu1 %v6338_v27 }
 0x280   :  { %1296 = vmatpush1.msra.mxu0 %v6341_v28  ;;  %1367 = vmatpush1.msra.mxu1 %v6344_v29 }
 0x281   :  { %1297 = vmatprep.subr.mxu0 %v6347_v30  ;;  %1368 = vmatprep.subr.mxu1 %v6350_v31 }
 0x282   :  { %1298 = vmatpush1.msra.mxu0 %v6353_v32  ;;  %1369 = vmatpush1.msra.mxu1 %v6356_v33 }
 0x283   :  { %1299 = vmatprep.subr.mxu0 %v6359_v35  ;;  %1370 = vmatprep.subr.mxu1 %v6362_v36 }
 0x284   :  { %1300 = vmatpush1.msra.mxu0 %v6365_v37  ;;  %1371 = vmatpush1.msra.mxu1 %v6368_v39  ;;  %v6383_v37 = vld [vmem:[#allocation5 + $0x28] sm:$0xff]  ;;  %v6386_v39 = vld [vmem:[#allocation5 + $0x38] sm:$0xff] }
 0x285   :  { %1301 = vmatprep.subr.mxu0 %v6371_v40  ;;  %1372 = vmatprep.subr.mxu1 %v6374_v41  ;;  %9610 = vst [vmem:[#allocation29_spill] sm:$0xff] %v6383_v37  ;;  %9611 = vst [vmem:[#allocation35_spill] sm:$0xff] %v6386_v39  ;;  %v6389_v40 = vld [vmem:[#allocation5 + $0x20] sm:$0xff]  ;;  %v6392_v41 = vld [vmem:[#allocation5 + $0x30] sm:$0xff] }
 0x286   :  { %1302 = vmatpush1.msra.mxu0 %v6377_v42  ;;  %1373 = vmatpush1.msra.mxu1 %v6380_v44  ;;  %9612 = vst [vmem:[#allocation31_spill] sm:$0xff] %v6389_v40  ;;  %9613 = vst [vmem:[#allocation37_spill] sm:$0xff] %v6392_v41  ;;  %v6395_v42 = vld [vmem:[#allocation5 + $0x8] sm:$0xff]  ;;  %v6398_v44 = vld [vmem:[#allocation5 + $0x18] sm:$0xff] }
 0x287   :  { %1303 = vmatprep.subr.mxu0 %v6383_v37  ;;  %1374 = vmatprep.subr.mxu1 %v6386_v39  ;;  %9614 = vst [vmem:[#allocation33_spill] sm:$0xff] %v6395_v42  ;;  %9615 = vst [vmem:[#allocation39_spill] sm:$0xff] %v6398_v44  ;;  %v6401_v37 = vld [vmem:[#allocation5] sm:$0xff]  ;;  %v6405_v39 = vld [vmem:[#allocation5 + $0x10] sm:$0xff] }
 0x288   :  { %1304 = vmatpush1.msra.mxu0 %v6389_v40  ;;  %1375 = vmatpush1.msra.mxu1 %v6392_v41  ;;  %9616 = vst [vmem:[#allocation36_spill] sm:$0xff] %v6401_v37  ;;  %9617 = vst [vmem:[#allocation41_spill] sm:$0xff] %v6405_v39  ;;  %v6420_v41 = vld [vmem:[#allocation8 + $0x1f0] sm:$0xff] }
 0x289   :  { %1305 = vmatprep.subr.mxu0 %v6395_v42  ;;  %1376 = vmatprep.subr.mxu1 %v6398_v44  ;;  %v6411_v42 = vld [vmem:[#allocation8 + $0x1e8] sm:$0xff]  ;;  %v6414_v44 = vld [vmem:[#allocation8 + $0x1f8] sm:$0xff]  ;;  %9621 = vst [vmem:[#allocation44_spill] sm:$0xff] %v6420_v41 }
 0x28a   :  { %1306 = vmatpush1.msra.mxu0 %v6401_v37  ;;  %1339 = vmatprep.mubr.f32.mxu0 %v9461_v20  ;;  %9618 = vst [vmem:[#allocation38_spill] sm:$0xff] %v6411_v42  ;;  %9619 = vst [vmem:[#allocation43_spill] sm:$0xff] %v6414_v44  ;;  %v6417_v37 = vld [vmem:[#allocation8 + $0x1e0] sm:$0xff] }
 0x28b   :  { %1377 = vmatpush1.msra.mxu1 %v6405_v39  ;;  %1410 = vmatprep.mubr.f32.mxu1 %v9461_v20  ;;  %9620 = vst [vmem:[#allocation40_spill] sm:$0xff] %v6417_v37  ;;  %v6423_v39 = vld [vmem:[#allocation8 + $0x1c8] sm:$0xff] }
 0x28c   :  { %1340 = vmatmul.mubr.f32.vlgmr.msra.gmra.mxu0 %v6209_v43  ;;  %1411 = vmatmul.mubr.f32.vlgmr.msra.gmra.mxu1 %v6209_v43  ;;  %9622 = vst [vmem:[#allocation42_spill] sm:$0xff] %v6423_v39  ;;  %v6426_v43 = vld [vmem:[#allocation8 + $0x1d8] sm:$0xff] }
 0x28d   :  { %1445 = vmatprep.subr.mxu0 %v6411_v42  ;;  %1516 = vmatprep.subr.mxu1 %v6414_v44  ;;  %9623 = vst [vmem:[#allocation45_spill] sm:$0xff] %v6426_v43  ;;  %v6429_v42 = vld [vmem:[#allocation8 + $0x1c0] sm:$0xff]  ;;  %v6432_v44 = vld [vmem:[#allocation8 + $0x1d0] sm:$0xff] }
 0x28e   :  { %1446 = vmatpush1.msra.mxu0 %v6417_v37  ;;  %1517 = vmatpush1.msra.mxu1 %v6420_v41  ;;  %9624 = vst [vmem:[#allocation46_spill] sm:$0xff] %v6429_v42  ;;  %9625 = vst [vmem:[#allocation47_spill] sm:$0xff] %v6432_v44  ;;  %v6435_v37 = vld [vmem:[#allocation8 + $0x1a8] sm:$0xff]  ;;  %v6438_v41 = vld [vmem:[#allocation8 + $0x1b8] sm:$0xff] }
 0x28f   :  { %1447 = vmatprep.subr.mxu0 %v6423_v39  ;;  %1518 = vmatprep.subr.mxu1 %v6426_v43  ;;  %9626 = vst [vmem:[#allocation48_spill] sm:$0xff] %v6435_v37  ;;  %9627 = vst [vmem:[#allocation49_spill] sm:$0xff] %v6438_v41  ;;  %v6441_v39 = vld [vmem:[#allocation8 + $0x1a0] sm:$0xff]  ;;  %v6444_v43 = vld [vmem:[#allocation8 + $0x1b0] sm:$0xff] }
 0x290   :  { %1448 = vmatpush1.msra.mxu0 %v6429_v42  ;;  %1519 = vmatpush1.msra.mxu1 %v6432_v44  ;;  %9628 = vst [vmem:[#allocation50_spill] sm:$0xff] %v6441_v39  ;;  %9629 = vst [vmem:[#allocation51_spill] sm:$0xff] %v6444_v43  ;;  %v6447_v42 = vld [vmem:[#allocation8 + $0x188] sm:$0xff]  ;;  %v6450_v44 = vld [vmem:[#allocation8 + $0x198] sm:$0xff] }
 0x291   :  { %1449 = vmatprep.subr.mxu0 %v6435_v37  ;;  %1520 = vmatprep.subr.mxu1 %v6438_v41  ;;  %9630 = vst [vmem:[#allocation52_spill] sm:$0xff] %v6447_v42  ;;  %9631 = vst [vmem:[#allocation53_spill] sm:$0xff] %v6450_v44  ;;  %v6453_v37 = vld [vmem:[#allocation8 + $0x180] sm:$0xff]  ;;  %v6456_v41 = vld [vmem:[#allocation8 + $0x190] sm:$0xff] }
 0x292   :  { %1450 = vmatpush1.msra.mxu0 %v6441_v39  ;;  %1521 = vmatpush1.msra.mxu1 %v6444_v43  ;;  %9632 = vst [vmem:[#allocation54_spill] sm:$0xff] %v6453_v37  ;;  %9633 = vst [vmem:[#allocation55_spill] sm:$0xff] %v6456_v41  ;;  %v6459_v39 = vld [vmem:[#allocation8 + $0x168] sm:$0xff]  ;;  %v6462_v43 = vld [vmem:[#allocation8 + $0x178] sm:$0xff] }
 0x293   :  { %1451 = vmatprep.subr.mxu0 %v6447_v42  ;;  %1522 = vmatprep.subr.mxu1 %v6450_v44  ;;  %9634 = vst [vmem:[#allocation56_spill] sm:$0xff] %v6459_v39  ;;  %9635 = vst [vmem:[#allocation57_spill] sm:$0xff] %v6462_v43  ;;  %v6465_v42 = vld [vmem:[#allocation8 + $0x160] sm:$0xff]  ;;  %v6468_v44 = vld [vmem:[#allocation8 + $0x170] sm:$0xff] }
 0x294   :  { %1452 = vmatpush1.msra.mxu0 %v6453_v37  ;;  %1523 = vmatpush1.msra.mxu1 %v6456_v41  ;;  %9636 = vst [vmem:[#allocation58_spill] sm:$0xff] %v6465_v42  ;;  %9637 = vst [vmem:[#allocation59_spill] sm:$0xff] %v6468_v44  ;;  %v6471_v37 = vld [vmem:[#allocation8 + $0x148] sm:$0xff]  ;;  %v6474_v41 = vld [vmem:[#allocation8 + $0x158] sm:$0xff] }
 0x295   :  { %1453 = vmatprep.subr.mxu0 %v6459_v39  ;;  %1524 = vmatprep.subr.mxu1 %v6462_v43  ;;  %9638 = vst [vmem:[#allocation60_spill] sm:$0xff] %v6471_v37  ;;  %9639 = vst [vmem:[#allocation61_spill] sm:$0xff] %v6474_v41  ;;  %v6477_v39 = vld [vmem:[#allocation8 + $0x140] sm:$0xff]  ;;  %v6480_v43 = vld [vmem:[#allocation8 + $0x150] sm:$0xff] }
 0x296   :  { %1454 = vmatpush1.msra.mxu0 %v6465_v42  ;;  %1525 = vmatpush1.msra.mxu1 %v6468_v44  ;;  %9640 = vst [vmem:[#allocation62_spill] sm:$0xff] %v6477_v39  ;;  %9641 = vst [vmem:[#allocation63_spill] sm:$0xff] %v6480_v43  ;;  %v6483_v42 = vld [vmem:[#allocation8 + $0x128] sm:$0xff]  ;;  %v6486_v44 = vld [vmem:[#allocation8 + $0x138] sm:$0xff] }
 0x297   :  { %1455 = vmatprep.subr.mxu0 %v6471_v37  ;;  %1526 = vmatprep.subr.mxu1 %v6474_v41  ;;  %9642 = vst [vmem:[#allocation64_spill] sm:$0xff] %v6483_v42  ;;  %9643 = vst [vmem:[#allocation65_spill] sm:$0xff] %v6486_v44  ;;  %v6489_v37 = vld [vmem:[#allocation8 + $0x120] sm:$0xff]  ;;  %v6492_v41 = vld [vmem:[#allocation8 + $0x130] sm:$0xff] }
 0x298   :  { %1456 = vmatpush1.msra.mxu0 %v6477_v39  ;;  %1527 = vmatpush1.msra.mxu1 %v6480_v43  ;;  %9644 = vst [vmem:[#allocation66_spill] sm:$0xff] %v6489_v37  ;;  %9645 = vst [vmem:[#allocation67_spill] sm:$0xff] %v6492_v41  ;;  %v6495_v39 = vld [vmem:[#allocation8 + $0x108] sm:$0xff]  ;;  %v6498_v43 = vld [vmem:[#allocation8 + $0x118] sm:$0xff] }
 0x299   :  { %1457 = vmatprep.subr.mxu0 %v6483_v42  ;;  %1528 = vmatprep.subr.mxu1 %v6486_v44  ;;  %9646 = vst [vmem:[#allocation68_spill] sm:$0xff] %v6495_v39  ;;  %9647 = vst [vmem:[#allocation69_spill] sm:$0xff] %v6498_v43  ;;  %v6501_v42 = vld [vmem:[#allocation8 + $0x100] sm:$0xff]  ;;  %v6504_v44 = vld [vmem:[#allocation8 + $0x110] sm:$0xff] }
 0x29a   :  { %1458 = vmatpush1.msra.mxu0 %v6489_v37  ;;  %1529 = vmatpush1.msra.mxu1 %v6492_v41  ;;  %9648 = vst [vmem:[#allocation70_spill] sm:$0xff] %v6501_v42  ;;  %9649 = vst [vmem:[#allocation71_spill] sm:$0xff] %v6504_v44  ;;  %v6507_v37 = vld [vmem:[#allocation8 + $0xe8] sm:$0xff]  ;;  %v6510_v41 = vld [vmem:[#allocation8 + $0xf8] sm:$0xff] }
 0x29b   :  { %1459 = vmatprep.subr.mxu0 %v6495_v39  ;;  %1530 = vmatprep.subr.mxu1 %v6498_v43  ;;  %9650 = vst [vmem:[#allocation72_spill] sm:$0xff] %v6507_v37  ;;  %9651 = vst [vmem:[#allocation73_spill] sm:$0xff] %v6510_v41  ;;  %v6513_v39 = vld [vmem:[#allocation8 + $0xe0] sm:$0xff]  ;;  %v6516_v43 = vld [vmem:[#allocation8 + $0xf0] sm:$0xff] }
 0x29c   :  { %1460 = vmatpush1.msra.mxu0 %v6501_v42  ;;  %1531 = vmatpush1.msra.mxu1 %v6504_v44  ;;  %9652 = vst [vmem:[#allocation74_spill] sm:$0xff] %v6513_v39  ;;  %9653 = vst [vmem:[#allocation75_spill] sm:$0xff] %v6516_v43  ;;  %v6519_v42 = vld [vmem:[#allocation8 + $0xc8] sm:$0xff]  ;;  %v6522_v44 = vld [vmem:[#allocation8 + $0xd8] sm:$0xff] }
 0x29d   :  { %1461 = vmatprep.subr.mxu0 %v6507_v37  ;;  %1532 = vmatprep.subr.mxu1 %v6510_v41  ;;  %9654 = vst [vmem:[#allocation76_spill] sm:$0xff] %v6519_v42  ;;  %9655 = vst [vmem:[#allocation77_spill] sm:$0xff] %v6522_v44  ;;  %v6525_v37 = vld [vmem:[#allocation8 + $0xc0] sm:$0xff]  ;;  %v6528_v41 = vld [vmem:[#allocation8 + $0xd0] sm:$0xff] }
 0x29e   :  { %1462 = vmatpush1.msra.mxu0 %v6513_v39  ;;  %1533 = vmatpush1.msra.mxu1 %v6516_v43  ;;  %9656 = vst [vmem:[#allocation78_spill] sm:$0xff] %v6525_v37  ;;  %9657 = vst [vmem:[#allocation79_spill] sm:$0xff] %v6528_v41  ;;  %v6531_v39 = vld [vmem:[#allocation8 + $0xa8] sm:$0xff]  ;;  %v6534_v43 = vld [vmem:[#allocation8 + $0xb8] sm:$0xff] }
 0x29f   :  { %1463 = vmatprep.subr.mxu0 %v6519_v42  ;;  %1534 = vmatprep.subr.mxu1 %v6522_v44  ;;  %9658 = vst [vmem:[#allocation80_spill] sm:$0xff] %v6531_v39  ;;  %9659 = vst [vmem:[#allocation81_spill] sm:$0xff] %v6534_v43  ;;  %v6537_v42 = vld [vmem:[#allocation8 + $0xa0] sm:$0xff]  ;;  %v6540_v44 = vld [vmem:[#allocation8 + $0xb0] sm:$0xff] }
 0x2a0   :  { %1464 = vmatpush1.msra.mxu0 %v6525_v37  ;;  %1535 = vmatpush1.msra.mxu1 %v6528_v41  ;;  %9660 = vst [vmem:[#allocation82_spill] sm:$0xff] %v6537_v42  ;;  %9661 = vst [vmem:[#allocation83_spill] sm:$0xff] %v6540_v44  ;;  %v6543_v37 = vld [vmem:[#allocation8 + $0x88] sm:$0xff]  ;;  %v6546_v41 = vld [vmem:[#allocation8 + $0x98] sm:$0xff] }
 0x2a1   :  { %1465 = vmatprep.subr.mxu0 %v6531_v39  ;;  %1536 = vmatprep.subr.mxu1 %v6534_v43  ;;  %9662 = vst [vmem:[#allocation84_spill] sm:$0xff] %v6543_v37  ;;  %9663 = vst [vmem:[#allocation85_spill] sm:$0xff] %v6546_v41  ;;  %v6549_v39 = vld [vmem:[#allocation8 + $0x80] sm:$0xff]  ;;  %v6552_v43 = vld [vmem:[#allocation8 + $0x90] sm:$0xff] }
 0x2a2   :  { %1466 = vmatpush1.msra.mxu0 %v6537_v42  ;;  %1537 = vmatpush1.msra.mxu1 %v6540_v44  ;;  %9664 = vst [vmem:[#allocation86_spill] sm:$0xff] %v6549_v39  ;;  %9665 = vst [vmem:[#allocation87_spill] sm:$0xff] %v6552_v43  ;;  %v6555_v42 = vld [vmem:[#allocation8 + $0x68] sm:$0xff]  ;;  %v6558_v44 = vld [vmem:[#allocation8 + $0x78] sm:$0xff] }
 0x2a3   :  { %1467 = vmatprep.subr.mxu0 %v6543_v37  ;;  %1538 = vmatprep.subr.mxu1 %v6546_v41  ;;  %9666 = vst [vmem:[#allocation88_spill] sm:$0xff] %v6555_v42  ;;  %9667 = vst [vmem:[#allocation89_spill] sm:$0xff] %v6558_v44  ;;  %v6561_v37 = vld [vmem:[#allocation8 + $0x60] sm:$0xff]  ;;  %v6564_v41 = vld [vmem:[#allocation8 + $0x70] sm:$0xff] }
 0x2a4   :  { %1468 = vmatpush1.msra.mxu0 %v6549_v39  ;;  %1539 = vmatpush1.msra.mxu1 %v6552_v43  ;;  %9668 = vst [vmem:[#allocation90_spill] sm:$0xff] %v6561_v37  ;;  %9669 = vst [vmem:[#allocation91_spill] sm:$0xff] %v6564_v41  ;;  %v6567_v39 = vld [vmem:[#allocation8 + $0x48] sm:$0xff]  ;;  %v6570_v43 = vld [vmem:[#allocation8 + $0x58] sm:$0xff] }
 0x2a5   :  { %1469 = vmatprep.subr.mxu0 %v6555_v42  ;;  %1540 = vmatprep.subr.mxu1 %v6558_v44  ;;  %9670 = vst [vmem:[#allocation92_spill] sm:$0xff] %v6567_v39  ;;  %9671 = vst [vmem:[#allocation93_spill] sm:$0xff] %v6570_v43  ;;  %v6573_v42 = vld [vmem:[#allocation8 + $0x40] sm:$0xff]  ;;  %v6576_v44 = vld [vmem:[#allocation8 + $0x50] sm:$0xff] }
 0x2a6   :  { %1470 = vmatpush1.msra.mxu0 %v6561_v37  ;;  %1541 = vmatpush1.msra.mxu1 %v6564_v41  ;;  %9672 = vst [vmem:[#allocation94_spill] sm:$0xff] %v6573_v42  ;;  %9673 = vst [vmem:[#allocation95_spill] sm:$0xff] %v6576_v44  ;;  %v6579_v37 = vld [vmem:[#allocation8 + $0x28] sm:$0xff]  ;;  %v6582_v41 = vld [vmem:[#allocation8 + $0x38] sm:$0xff] }
 0x2a7   :  { %1471 = vmatprep.subr.mxu0 %v6567_v39  ;;  %1542 = vmatprep.subr.mxu1 %v6570_v43  ;;  %9674 = vst [vmem:[#allocation96_spill] sm:$0xff] %v6579_v37  ;;  %9675 = vst [vmem:[#allocation97_spill] sm:$0xff] %v6582_v41  ;;  %v6585_v39 = vld [vmem:[#allocation8 + $0x20] sm:$0xff]  ;;  %v6588_v43 = vld [vmem:[#allocation8 + $0x30] sm:$0xff] }
 0x2a8   :  { %1472 = vmatpush1.msra.mxu0 %v6573_v42  ;;  %1543 = vmatpush1.msra.mxu1 %v6576_v44  ;;  %9676 = vst [vmem:[#allocation98_spill] sm:$0xff] %v6585_v39  ;;  %9677 = vst [vmem:[#allocation99_spill] sm:$0xff] %v6588_v43  ;;  %v6591_v42 = vld [vmem:[#allocation8 + $0x8] sm:$0xff]  ;;  %v6594_v44 = vld [vmem:[#allocation8 + $0x18] sm:$0xff] }
 0x2a9   :  { %1473 = vmatprep.subr.mxu0 %v6579_v37  ;;  %1544 = vmatprep.subr.mxu1 %v6582_v41  ;;  %9678 = vst [vmem:[#allocation100_spill] sm:$0xff] %v6591_v42  ;;  %9679 = vst [vmem:[#allocation101_spill] sm:$0xff] %v6594_v44  ;;  %v6597_v37 = vld [vmem:[#allocation8] sm:$0xff]  ;;  %v6600_v41 = vld [vmem:[#allocation8 + $0x10] sm:$0xff] }
 0x2aa   :  { %1474 = vmatpush1.msra.mxu0 %v6585_v39  ;;  %1545 = vmatpush1.msra.mxu1 %v6588_v43  ;;  %9680 = vst [vmem:[#allocation102_spill] sm:$0xff] %v6597_v37  ;;  %9681 = vst [vmem:[#allocation103_spill] sm:$0xff] %v6600_v41  ;;  %v6605_v43 = vld [vmem:[#allocation7 + $0x1e8] sm:$0xff] }
 0x2ab   :  { %1475 = vmatprep.subr.mxu0 %v6591_v42  ;;  %1546 = vmatprep.subr.mxu1 %v6594_v44  ;;  %9682 = vst [vmem:[#allocation104_spill] sm:$0xff] %v6605_v43  ;;  %v6608_v42 = vld [vmem:[#allocation7 + $0x1f8] sm:$0xff] }
 0x2ac   :  { %1476 = vmatpush1.msra.mxu0 %v6597_v37  ;;  %1547 = vmatpush1.msra.mxu1 %v6600_v41  ;;  %9683 = vst [vmem:[#allocation105_spill] sm:$0xff] %v6608_v42 }
 0x2ad   :  { %1509 = vmatprep.mubr.f32.mxu0 %v9461_v20  ;;  %1580 = vmatprep.mubr.f32.mxu1 %v9461_v20 }
 0x2ae   :  { %1587 = vmatprep.subr.mxu0 %v6605_v43  ;;  %1658 = vmatprep.subr.mxu1 %v6608_v42 }
 0x309   :  { %v1024_v44 = vpop.f32.mrf.mxu0  ;;  %v1095_v39 = vpop.f32.mrf.mxu1 }
 0x30b   :  { %v1026_v40 = vpop.f32.mrf.mxu0  ;;  %v1097_v36 = vpop.f32.mrf.mxu1 }
 0x32a   :  { %v1166_v37 = vpop.f32.mrf.mxu0  ;;  %v1237_v32 = vpop.f32.mrf.mxu1 }
 0x32b   :  { %v1167_v35 = vadd.f32 %v1166_v37, %v1024_v44  ;;  %v1238_v26 = vadd.f32 %v1237_v32, %v1095_v39 }
 0x32c   :  { %v1168_v33 = vpop.f32.mrf.mxu0  ;;  %v1239_v28 = vpop.f32.mrf.mxu1 }
 0x32d   :  { %v1242_v41 = vadd.f32 %v1167_v35, %v6128_v34  ;;  %v1169_v31 = vadd.f32 %v1168_v33, %v1026_v40  ;;  %v1240_v27 = vadd.f32 %v1239_v28, %v1097_v36  ;;  %v1244_v37 = vadd.f32 %v1238_v26, %v6137_v63 }
 0x32f   :  { %v4303_v30 = vmul.f32 -1.442695, %v1242_v41  ;;  %v1243_v29 = vadd.f32 %v1169_v31, %v6130_v38  ;;  %v1245_v42 = vadd.f32 %v1240_v27, %v6134_v52  ;;  %v1271_v31 = vld [vmem:[#allocation3 + $0x40] sm:$0xff] }
 0x331   :  { %4451 = vpow2.f32 %v4303_v30  ;;  %v4304_v43 = vmul.f32 -1.442695, %v1243_v29  ;;  %v4305_v25 = vmul.f32 -1.442695, %v1245_v42  ;;  %v1272_v29 = vld [vmem:[#allocation3 + $0x48] sm:$0xff] }
 0x333   :  { %4453 = vpow2.f32 %v4304_v43 }
 0x334   :  { %4455 = vpow2.f32 %v4305_v25 }
 0x33e   :  { %v4452_v24 = vpop.eup %4451 }
 0x33f   :  { %v1249_v44 = vadd.f32 1.0, %v4452_v24 }
 0x340   :  { %v4454_v23 = vpop.eup %4453 }
 0x341   :  { %4457 = vrcp.f32 %v1249_v44  ;;  %v1255_v33 = vadd.f32 1.0, %v4454_v23  ;;  %v4456_v35 = vpop.eup %4455 }
 0x342   :  { %4459 = vtanh.f32 %v1244_v37  ;;  %v1262_v42 = vadd.f32 1.0, %v4456_v35  ;;  %v1274_v37 = vld [vmem:[#allocation3 + $0x58] sm:$0xff] }
 0x343   :  { %4461 = vrcp.f32 %v1255_v33 }
 0x34c   :  { %v1341_v30 = vpop.f32.mrf.mxu0  ;;  %v1412_v25 = vpop.f32.mrf.mxu1 }
 0x34d   :  { %v1417_v40 = vadd.f32 %v1341_v30, %v1271_v31  ;;  %v1273_v31 = vld [vmem:[#allocation3 + $0x50] sm:$0xff] }
 0x34e   :  { %v4458_v28 = vpop.eup %4457  ;;  %v1343_v36 = vpop.f32.mrf.mxu0 }
 0x34f   :  { %v4460_v27 = vpop.eup %4459  ;;  %v4306_v32 = vmul.f32 -1.442695, %v1417_v40  ;;  %v1418_v39 = vadd.f32 %v1343_v36, %v1272_v29  ;;  %v1414_v44 = vpop.f32.mrf.mxu1  ;;  %v1419_v40 = vadd.f32 %v1412_v25, %v1273_v31  ;;  %v6634_v25 = vld [vmem:[#allocation7 + $0x1d0] sm:$0xff]  ;;  %v6649_v31 = vld [vmem:[#allocation7 + $0x188] sm:$0xff] }
 0x350   :  { %v4462_v41 = vpop.eup %4461  ;;  %v1266_v26 = vmul.f32 %v4460_v27, %v4458_v28  ;;  %v1420_v33 = vadd.f32 %v1414_v44, %v1274_v37  ;;  %v6640_v37 = vld [vmem:[#allocation7 + $0x1b8] sm:$0xff]  ;;  %v6643_v44 = vld [vmem:[#allocation7 + $0x1a0] sm:$0xff]  ;;  %9686 = vst [vmem:[#allocation108_spill] sm:$0xff] %v6649_v31 }
 0x351   :  { %v1265_v24 = vmul.f32 %v4462_v41, %v6140_v13  ;;  %4463 = vpow2.f32 %v4306_v32  ;;  %v4307_v23 = vmul.f32 -1.442695, %v1418_v39  ;;  %v6619_v39 = vld [vmem:[#allocation7 + $0x1e0] sm:$0xff]  ;;  %v6622_v41 = vld [vmem:[#allocation7 + $0x1f0] sm:$0xff]  ;;  %9684 = vst [vmem:[#allocation106_spill] sm:$0xff] %v6643_v44 }
 0x352   :  { %v4308_v30 = vmul.f32 -1.442695, %v1420_v33  ;;  %v6646_v33 = vld [vmem:[#allocation7 + $0x1b0] sm:$0xff] }
 0x353   :  { %4465 = vpow2.f32 %v4307_v23  ;;  %v6616_v43 = vadd.f32 %v1266_v26, %v1265_v24  ;;  %v6628_v26 = vld [vmem:[#allocation7 + $0x1d8] sm:$0xff]  ;;  %v6631_v24 = vld [vmem:[#allocation7 + $0x1c0] sm:$0xff]  ;;  %v6637_v23 = vld [vmem:[#allocation7 + $0x1a8] sm:$0xff]  ;;  %9685 = vst [vmem:[#allocation107_spill] sm:$0xff] %v6646_v33 }
 0x354   :  { %4467 = vrcp.f32 %v1262_v42  ;;  %v6625_v42 = vld [vmem:[#allocation7 + $0x1c8] sm:$0xff] }
 0x355   :  { %4469 = vtanh.f32 %v6616_v43 }
 0x356   :  { %4471 = vpow2.f32 %v4308_v30  ;;  %v6652_v30 = vld [vmem:[#allocation7 + $0x198] sm:$0xff] }
 0x357   :  { %9687 = vst [vmem:[#allocation109_spill] sm:$0xff] %v6652_v30 }
 0x35e   :  { %v4464_v29 = vpop.eup %4463 }
 0x35f   :  { %v1424_v35 = vadd.f32 1.0, %v4464_v29  ;;  %v6655_v29 = vld [vmem:[#allocation7 + $0x180] sm:$0xff] }
 0x360   :  { %v4466_v28 = vpop.eup %4465  ;;  %9688 = vst [vmem:[#allocation110_spill] sm:$0xff] %v6655_v29 }
 0x361   :  { %v4468_v13 = vpop.eup %4467  ;;  %4473 = vrcp.f32 %v1424_v35  ;;  %v1430_v36 = vadd.f32 1.0, %v4466_v28  ;;  %v6661_v28 = vld [vmem:[#allocation7 + $0x168] sm:$0xff] }
 0x362   :  { %v4470_v27 = vpop.eup %4469  ;;  %4475 = vtanh.f32 %v1419_v40  ;;  %v6658_v40 = vld [vmem:[#allocation7 + $0x190] sm:$0xff]  ;;  %9690 = vst [vmem:[#allocation112_spill] sm:$0xff] %v6661_v28 }
 0x363   :  { %4477 = vrcp.f32 %v1430_v36  ;;  %v1269_v32 = vmul.f32 %v4470_v27, %v4468_v13  ;;  %9689 = vst [vmem:[#allocation111_spill] sm:$0xff] %v6658_v40  ;;  %v4472_v35 = vpop.eup %4471  ;;  %v6664_v13 = vld [vmem:[#allocation7 + $0x178] sm:$0xff]  ;;  %v6667_v27 = vld [vmem:[#allocation7 + $0x160] sm:$0xff] }
 0x364   :  { %9691 = vst [vmem:[#allocation113_spill] sm:$0xff] %v6664_v13  ;;  %9692 = vst [vmem:[#allocation114_spill] sm:$0xff] %v6667_v27 }
 0x365   :  { %1510 = vmatmul.mubr.f32.vlgmr.msra.gmra.mxu0 %v1269_v32  ;;  %1581 = vmatmul.mubr.f32.vlgmr.msra.gmra.mxu1 %v1269_v32  ;;  %v6670_v32 = vld [vmem:[#allocation7 + $0x170] sm:$0xff] }
 0x366   :  { %1588 = vmatpush1.msra.mxu0 %v6619_v39  ;;  %1659 = vmatpush1.msra.mxu1 %v6622_v41  ;;  %9693 = vst [vmem:[#allocation115_spill] sm:$0xff] %v6670_v32 }
 0x367   :  { %1589 = vmatprep.subr.mxu0 %v6625_v42  ;;  %1660 = vmatprep.subr.mxu1 %v6628_v26 }
 0x368   :  { %1590 = vmatpush1.msra.mxu0 %v6631_v24  ;;  %1661 = vmatpush1.msra.mxu1 %v6634_v25 }
 0x369   :  { %1591 = vmatprep.subr.mxu0 %v6637_v23  ;;  %1662 = vmatprep.subr.mxu1 %v6640_v37 }
 0x36a   :  { %1592 = vmatpush1.msra.mxu0 %v6643_v44  ;;  %1663 = vmatpush1.msra.mxu1 %v6646_v33  ;;  %v6686_v44 = vld [vmem:[#allocation7 + $0x128] sm:$0xff] }
 0x36b   :  { %1593 = vmatprep.subr.mxu0 %v6649_v31  ;;  %1664 = vmatprep.subr.mxu1 %v6652_v30  ;;  %v6676_v30 = vld [vmem:[#allocation7 + $0x158] sm:$0xff]  ;;  %v6679_v31 = vld [vmem:[#allocation7 + $0x140] sm:$0xff] }
 0x36c   :  { %1594 = vmatpush1.msra.mxu0 %v6655_v29  ;;  %1665 = vmatpush1.msra.mxu1 %v6658_v40  ;;  %v6673_v40 = vld [vmem:[#allocation7 + $0x148] sm:$0xff]  ;;  %9695 = vst [vmem:[#allocation117_spill] sm:$0xff] %v6679_v31 }
 0x36d   :  { %1595 = vmatprep.subr.mxu0 %v6661_v28  ;;  %1666 = vmatprep.subr.mxu1 %v6664_v13  ;;  %9694 = vst [vmem:[#allocation116_spill] sm:$0xff] %v6673_v40  ;;  %v1437_v13 = vadd.f32 1.0, %v4472_v35  ;;  %v6692_v35 = vld [vmem:[#allocation7 + $0x120] sm:$0xff] }
 0x36e   :  { %v4474_v36 = vpop.eup %4473  ;;  %1596 = vmatpush1.msra.mxu0 %v6667_v27  ;;  %1667 = vmatpush1.msra.mxu1 %v6670_v32  ;;  %v6682_v27 = vld [vmem:[#allocation7 + $0x150] sm:$0xff] }
 0x36f   :  { %v4476_v29 = vpop.eup %4475  ;;  %1597 = vmatprep.subr.mxu0 %v6673_v40  ;;  %1668 = vmatprep.subr.mxu1 %v6676_v30  ;;  %9696 = vst [vmem:[#allocation118_spill] sm:$0xff] %v6682_v27  ;;  %v6689_v40 = vld [vmem:[#allocation7 + $0x138] sm:$0xff]  ;;  %4479 = vrcp.f32 %v1437_v13  ;;  %v6722_v13 = vld [vmem:[#allocation7 + $0xf0] sm:$0xff] }
 0x370   :  { %v4478_v28 = vpop.eup %4477  ;;  %1598 = vmatpush1.msra.mxu0 %v6679_v31  ;;  %1669 = vmatpush1.msra.mxu1 %v6682_v27  ;;  %v1441_v32 = vmul.f32 %v4476_v29, %v4474_v36  ;;  %v6695_v31 = vld [vmem:[#allocation7 + $0x130] sm:$0xff]  ;;  %v6700_v29 = vld [vmem:[#allocation7 + $0x108] sm:$0xff]  ;;  %9705 = vst [vmem:[#allocation127_spill] sm:$0xff] %v6722_v13 }
 0x371   :  { %v1440_v33 = vmul.f32 %v4478_v28, %v6168_v60  ;;  %1599 = vmatprep.subr.mxu0 %v6686_v44  ;;  %1670 = vmatprep.subr.mxu1 %v6689_v40  ;;  %9697 = vst [vmem:[#allocation119_spill] sm:$0xff] %v6695_v31  ;;  %9698 = vst [vmem:[#allocation120_spill] sm:$0xff] %v6700_v29  ;;  %v6703_v60 = vld [vmem:[#allocation7 + $0x118] sm:$0xff]  ;;  %v6706_v28 = vld [vmem:[#allocation7 + $0x100] sm:$0xff] }
 0x372   :  { %1600 = vmatpush1.msra.mxu0 %v6692_v35  ;;  %1671 = vmatpush1.msra.mxu1 %v6695_v31  ;;  %9699 = vst [vmem:[#allocation121_spill] sm:$0xff] %v6703_v60  ;;  %9700 = vst [vmem:[#allocation122_spill] sm:$0xff] %v6706_v28  ;;  %v6709_v36 = vld [vmem:[#allocation7 + $0x110] sm:$0xff]  ;;  %v6712_v31 = vld [vmem:[#allocation7 + $0xe8] sm:$0xff] }
 0x373   :  { %v6698_v27 = vadd.f32 %v1441_v32, %v1440_v33  ;;  %1601 = vmatprep.subr.mxu0 %v6700_v29  ;;  %1672 = vmatprep.subr.mxu1 %v6703_v60  ;;  %9701 = vst [vmem:[#allocation123_spill] sm:$0xff] %v6709_v36  ;;  %9702 = vst [vmem:[#allocation124_spill] sm:$0xff] %v6712_v31  ;;  %v6715_v33 = vld [vmem:[#allocation7 + $0xf8] sm:$0xff]  ;;  %v6719_v32 = vld [vmem:[#allocation7 + $0xe0] sm:$0xff] }
 0x374   :  { %1602 = vmatpush1.msra.mxu0 %v6706_v28  ;;  %1673 = vmatpush1.msra.mxu1 %v6709_v36  ;;  %9703 = vst [vmem:[#allocation125_spill] sm:$0xff] %v6715_v33  ;;  %9704 = vst [vmem:[#allocation126_spill] sm:$0xff] %v6719_v32  ;;  %v6725_v28 = vld [vmem:[#allocation7 + $0xc8] sm:$0xff]  ;;  %v6728_v36 = vld [vmem:[#allocation7 + $0xd8] sm:$0xff] }
 0x375   :  { %1603 = vmatprep.subr.mxu0 %v6712_v31  ;;  %1674 = vmatprep.subr.mxu1 %v6715_v33  ;;  %4481 = vtanh.f32 %v6698_v27  ;;  %9706 = vst [vmem:[#allocation128_spill] sm:$0xff] %v6725_v28  ;;  %9707 = vst [vmem:[#allocation129_spill] sm:$0xff] %v6728_v36  ;;  %v6731_v31 = vld [vmem:[#allocation7 + $0xc0] sm:$0xff]  ;;  %v6734_v33 = vld [vmem:[#allocation7 + $0xd0] sm:$0xff] }
 0x376   :  { %1604 = vmatpush1.msra.mxu0 %v6719_v32  ;;  %1675 = vmatpush1.msra.mxu1 %v6722_v13  ;;  %9708 = vst [vmem:[#allocation130_spill] sm:$0xff] %v6731_v31  ;;  %9709 = vst [vmem:[#allocation131_spill] sm:$0xff] %v6734_v33  ;;  %v6737_v32 = vld [vmem:[#allocation7 + $0xa8] sm:$0xff]  ;;  %v6740_v13 = vld [vmem:[#allocation7 + $0xb8] sm:$0xff] }
 0x377   :  { %1605 = vmatprep.subr.mxu0 %v6725_v28  ;;  %1676 = vmatprep.subr.mxu1 %v6728_v36  ;;  %9710 = vst [vmem:[#allocation132_spill] sm:$0xff] %v6737_v32  ;;  %9711 = vst [vmem:[#allocation133_spill] sm:$0xff] %v6740_v13  ;;  %v6743_v28 = vld [vmem:[#allocation7 + $0xa0] sm:$0xff]  ;;  %v6746_v36 = vld [vmem:[#allocation7 + $0xb0] sm:$0xff] }
 0x378   :  { %1606 = vmatpush1.msra.mxu0 %v6731_v31  ;;  %1677 = vmatpush1.msra.mxu1 %v6734_v33  ;;  %9712 = vst [vmem:[#allocation134_spill] sm:$0xff] %v6743_v28  ;;  %9713 = vst [vmem:[#allocation135_spill] sm:$0xff] %v6746_v36  ;;  %v6749_v31 = vld [vmem:[#allocation7 + $0x88] sm:$0xff]  ;;  %v6752_v33 = vld [vmem:[#allocation7 + $0x98] sm:$0xff] }
 0x379   :  { %1607 = vmatprep.subr.mxu0 %v6737_v32  ;;  %1678 = vmatprep.subr.mxu1 %v6740_v13  ;;  %9714 = vst [vmem:[#allocation136_spill] sm:$0xff] %v6749_v31  ;;  %9715 = vst [vmem:[#allocation137_spill] sm:$0xff] %v6752_v33  ;;  %v6755_v32 = vld [vmem:[#allocation7 + $0x80] sm:$0xff]  ;;  %v6758_v13 = vld [vmem:[#allocation7 + $0x90] sm:$0xff] }
 0x37a   :  { %1608 = vmatpush1.msra.mxu0 %v6743_v28  ;;  %1679 = vmatpush1.msra.mxu1 %v6746_v36  ;;  %9716 = vst [vmem:[#allocation138_spill] sm:$0xff] %v6755_v32  ;;  %9717 = vst [vmem:[#allocation139_spill] sm:$0xff] %v6758_v13  ;;  %v6761_v28 = vld [vmem:[#allocation7 + $0x68] sm:$0xff]  ;;  %v6764_v36 = vld [vmem:[#allocation7 + $0x78] sm:$0xff] }
 0x37b   :  { %1609 = vmatprep.subr.mxu0 %v6749_v31  ;;  %1680 = vmatprep.subr.mxu1 %v6752_v33  ;;  %9718 = vst [vmem:[#allocation140_spill] sm:$0xff] %v6761_v28  ;;  %9719 = vst [vmem:[#allocation141_spill] sm:$0xff] %v6764_v36  ;;  %v6767_v31 = vld [vmem:[#allocation7 + $0x60] sm:$0xff]  ;;  %v6770_v33 = vld [vmem:[#allocation7 + $0x70] sm:$0xff] }
 0x37c   :  { %1610 = vmatpush1.msra.mxu0 %v6755_v32  ;;  %1681 = vmatpush1.msra.mxu1 %v6758_v13  ;;  %9720 = vst [vmem:[#allocation142_spill] sm:$0xff] %v6767_v31  ;;  %9721 = vst [vmem:[#allocation143_spill] sm:$0xff] %v6770_v33  ;;  %v6773_v32 = vld [vmem:[#allocation7 + $0x48] sm:$0xff]  ;;  %v6776_v13 = vld [vmem:[#allocation7 + $0x58] sm:$0xff] }
 0x37d   :  { %1611 = vmatprep.subr.mxu0 %v6761_v28  ;;  %1682 = vmatprep.subr.mxu1 %v6764_v36  ;;  %9722 = vst [vmem:[#allocation144_spill] sm:$0xff] %v6773_v32  ;;  %9723 = vst [vmem:[#allocation145_spill] sm:$0xff] %v6776_v13  ;;  %v6779_v28 = vld [vmem:[#allocation7 + $0x40] sm:$0xff]  ;;  %v6782_v36 = vld [vmem:[#allocation7 + $0x50] sm:$0xff] }
 0x37e   :  { %1612 = vmatpush1.msra.mxu0 %v6767_v31  ;;  %1683 = vmatpush1.msra.mxu1 %v6770_v33  ;;  %9724 = vst [vmem:[#allocation146_spill] sm:$0xff] %v6779_v28  ;;  %9725 = vst [vmem:[#allocation147_spill] sm:$0xff] %v6782_v36  ;;  %v4480_v31 = vpop.eup %4479  ;;  %v6785_v60 = vld [vmem:[#allocation7 + $0x28] sm:$0xff]  ;;  %v6788_v33 = vld [vmem:[#allocation7 + $0x38] sm:$0xff] }
 0x37f   :  { %1613 = vmatprep.subr.mxu0 %v6773_v32  ;;  %1684 = vmatprep.subr.mxu1 %v6776_v13  ;;  %9726 = vst [vmem:[#allocation148_spill] sm:$0xff] %v6785_v60  ;;  %9727 = vst [vmem:[#allocation149_spill] sm:$0xff] %v6788_v33  ;;  %v6791_v29 = vld [vmem:[#allocation7 + $0x20] sm:$0xff]  ;;  %v6794_v13 = vld [vmem:[#allocation7 + $0x30] sm:$0xff] }
 0x380   :  { %1614 = vmatpush1.msra.mxu0 %v6779_v28  ;;  %1685 = vmatpush1.msra.mxu1 %v6782_v36  ;;  %9728 = vst [vmem:[#allocation150_spill] sm:$0xff] %v6791_v29  ;;  %v6797_v28 = vld [vmem:[#allocation7 + $0x8] sm:$0xff]  ;;  %v6800_v36 = vld [vmem:[#allocation7 + $0x18] sm:$0xff] }
 0x381   :  { %1615 = vmatprep.subr.mxu0 %v6785_v60  ;;  %1686 = vmatprep.subr.mxu1 %v6788_v33  ;;  %v6805_v33 = vld [vmem:[#allocation7] sm:$0xff] }
 0x382   :  { %v4482_v32 = vpop.eup %4481  ;;  %1616 = vmatpush1.msra.mxu0 %v6791_v29  ;;  %1687 = vmatpush1.msra.mxu1 %v6794_v13  ;;  %v6809_v29 = vld [vmem:[#allocation7 + $0x10] sm:$0xff] }
 0x383   :  { %1617 = vmatprep.subr.mxu0 %v6797_v28  ;;  %1688 = vmatprep.subr.mxu1 %v6800_v36  ;;  %v6803_v60 = vmul.f32 %v4482_v32, %v4480_v31  ;;  %v9766_v31 = vld [vmem:[#allocation50_spill] sm:$0xff]  ;;  %v9768_v32 = vld [vmem:[#allocation52_spill] sm:$0xff] }
 0x384   :  { %1618 = vmatpush1.msra.mxu0 %v6805_v33  ;;  %1651 = vmatprep.mubr.f32.mxu0 %v9461_v20 }
 0x385   :  { %1689 = vmatpush1.msra.mxu1 %v6809_v29  ;;  %1722 = vmatprep.mubr.f32.mxu1 %v9461_v20 }
 0x386   :  { %1652 = vmatmul.mubr.f32.vlgmr.msra.gmra.mxu0 %v6803_v60  ;;  %1723 = vmatmul.mubr.f32.vlgmr.msra.gmra.mxu1 %v6803_v60 }
 0x387   :  { %1762 = vmatprep.subr.mxu0 %v6215_v45  ;;  %1833 = vmatprep.subr.mxu1 %v6218_v46  ;;  %v9729_v45 = vld [vmem:[#allocation18_spill] sm:$0xff]  ;;  %v9730_v46 = vld [vmem:[#allocation13_spill] sm:$0xff] }
 0x388   :  { %1763 = vmatpush1.msra.mxu0 %v6221_v48  ;;  %1834 = vmatpush1.msra.mxu1 %v6224_v50  ;;  %v9731_v48 = vld [vmem:[#allocation20_spill] sm:$0xff]  ;;  %v9732_v50 = vld [vmem:[#allocation14_spill] sm:$0xff] }
 0x389   :  { %1764 = vmatprep.subr.mxu0 %v6227_v56  ;;  %1835 = vmatprep.subr.mxu1 %v6230_v58  ;;  %v9733_v56 = vld [vmem:[#allocation22_spill] sm:$0xff]  ;;  %v9734_v58 = vld [vmem:[#allocation15_spill] sm:$0xff] }
 0x38a   :  { %1765 = vmatpush1.msra.mxu0 %v6233_v61  ;;  %1836 = vmatpush1.msra.mxu1 %v6236_v2  ;;  %v9735_v61 = vld [vmem:[#allocation24_spill] sm:$0xff] }
 0x38b   :  { %1766 = vmatprep.subr.mxu0 %v6239_v10  ;;  %1837 = vmatprep.subr.mxu1 %v6242_v53  ;;  %v9736_v2 = vld [vmem:[#allocation16_spill] sm:$0xff]  ;;  %v9737_v10 = vld [vmem:[#allocation25_spill] sm:$0xff] }
 0x38c   :  { %1767 = vmatpush1.msra.mxu0 %v6245_v57  ;;  %1838 = vmatpush1.msra.mxu1 %v6248_v49  ;;  %v9738_v53 = vld [vmem:[#allocation17_spill] sm:$0xff]  ;;  %v9739_v57 = vld [vmem:[#allocation26_spill] sm:$0xff]  ;;  %v9740_v49 = vld [vmem:[#allocation19_spill] sm:$0xff] }
 0x38d   :  { %1768 = vmatprep.subr.mxu0 %v6251_v51  ;;  %1839 = vmatprep.subr.mxu1 %v6254_v59  ;;  %v9741_v51 = vld [vmem:[#allocation28_spill] sm:$0xff]  ;;  %v9742_v59 = vld [vmem:[#allocation21_spill] sm:$0xff] }
 0x38e   :  { %1769 = vmatpush1.msra.mxu0 %v6257_v62  ;;  %1840 = vmatpush1.msra.mxu1 %v6260_v0  ;;  %v9743_v62 = vld [vmem:[#allocation30_spill] sm:$0xff]  ;;  %v9744_v0 = vld [vmem:[#allocation23_spill] sm:$0xff] }
 0x38f   :  { %1770 = vmatprep.subr.mxu0 %v6263_v1  ;;  %1841 = vmatprep.subr.mxu1 %v6266_v47  ;;  %v9745_v1 = vld [vmem:[#allocation32_spill] sm:$0xff]  ;;  %v9746_v47 = vld [vmem:[#allocation27_spill] sm:$0xff] }
 0x390   :  { %1771 = vmatpush1.msra.mxu0 %v6269_v55  ;;  %1842 = vmatpush1.msra.mxu1 %v6272_v3  ;;  %v9747_v55 = vld [vmem:[#allocation34_spill] sm:$0xff]  ;;  %v9748_v3 = vld [vmem:[#allocation29_spill] sm:$0xff] }
 0x391   :  { %1772 = vmatprep.subr.mxu0 %v6275_v54  ;;  %1843 = vmatprep.subr.mxu1 %v6278_v4  ;;  %v9749_v54 = vld [vmem:[#allocation35_spill] sm:$0xff] }
 0x392   :  { %1773 = vmatpush1.msra.mxu0 %v6281_v5  ;;  %1844 = vmatpush1.msra.mxu1 %v6284_v6  ;;  %v9750_v4 = vld [vmem:[#allocation31_spill] sm:$0xff]  ;;  %v9751_v5 = vld [vmem:[#allocation37_spill] sm:$0xff] }
 0x393   :  { %1774 = vmatprep.subr.mxu0 %v6287_v7  ;;  %1845 = vmatprep.subr.mxu1 %v6290_v8  ;;  %v9752_v6 = vld [vmem:[#allocation33_spill] sm:$0xff]  ;;  %v9753_v7 = vld [vmem:[#allocation39_spill] sm:$0xff]  ;;  %v9754_v8 = vld [vmem:[#allocation36_spill] sm:$0xff] }
 0x394   :  { %1775 = vmatpush1.msra.mxu0 %v6293_v9  ;;  %1846 = vmatpush1.msra.mxu1 %v6296_v11  ;;  %v9755_v9 = vld [vmem:[#allocation41_spill] sm:$0xff]  ;;  %v9756_v11 = vld [vmem:[#allocation38_spill] sm:$0xff] }
 0x395   :  { %1776 = vmatprep.subr.mxu0 %v6299_v12  ;;  %1847 = vmatprep.subr.mxu1 %v6302_v14  ;;  %v9757_v12 = vld [vmem:[#allocation43_spill] sm:$0xff]  ;;  %v9758_v14 = vld [vmem:[#allocation40_spill] sm:$0xff] }
 0x396   :  { %1777 = vmatpush1.msra.mxu0 %v6305_v15  ;;  %1848 = vmatpush1.msra.mxu1 %v6308_v16  ;;  %v9759_v15 = vld [vmem:[#allocation44_spill] sm:$0xff]  ;;  %v9760_v16 = vld [vmem:[#allocation42_spill] sm:$0xff] }
 0x397   :  { %1778 = vmatprep.subr.mxu0 %v6311_v17  ;;  %1849 = vmatprep.subr.mxu1 %v6314_v18  ;;  %v9761_v17 = vld [vmem:[#allocation45_spill] sm:$0xff]  ;;  %v9762_v18 = vld [vmem:[#allocation46_spill] sm:$0xff] }
 0x398   :  { %1779 = vmatpush1.msra.mxu0 %v6317_v19  ;;  %1850 = vmatpush1.msra.mxu1 %v6320_v21  ;;  %v9763_v19 = vld [vmem:[#allocation47_spill] sm:$0xff]  ;;  %v9764_v21 = vld [vmem:[#allocation48_spill] sm:$0xff] }
 0x399   :  { %1780 = vmatprep.subr.mxu0 %v6323_v22  ;;  %1851 = vmatprep.subr.mxu1 %v9729_v45  ;;  %v9765_v22 = vld [vmem:[#allocation49_spill] sm:$0xff] }
 0x39a   :  { %1781 = vmatpush1.msra.mxu0 %v9730_v46  ;;  %1852 = vmatpush1.msra.mxu1 %v9731_v48  ;;  %v9769_v45 = vld [vmem:[#allocation53_spill] sm:$0xff]  ;;  %v9770_v46 = vld [vmem:[#allocation54_spill] sm:$0xff]  ;;  %v9771_v48 = vld [vmem:[#allocation55_spill] sm:$0xff] }
 0x39b   :  { %1782 = vmatprep.subr.mxu0 %v9732_v50  ;;  %1853 = vmatprep.subr.mxu1 %v9733_v56  ;;  %v9772_v50 = vld [vmem:[#allocation56_spill] sm:$0xff]  ;;  %v9773_v56 = vld [vmem:[#allocation57_spill] sm:$0xff] }
 0x39c   :  { %1783 = vmatpush1.msra.mxu0 %v9734_v58  ;;  %1854 = vmatpush1.msra.mxu1 %v9735_v61  ;;  %v9774_v58 = vld [vmem:[#allocation58_spill] sm:$0xff]  ;;  %v9775_v61 = vld [vmem:[#allocation59_spill] sm:$0xff] }
 0x39d   :  { %1784 = vmatprep.subr.mxu0 %v9736_v2  ;;  %1855 = vmatprep.subr.mxu1 %v9737_v10  ;;  %v9776_v2 = vld [vmem:[#allocation60_spill] sm:$0xff]  ;;  %v9777_v10 = vld [vmem:[#allocation61_spill] sm:$0xff] }
 0x39e   :  { %1785 = vmatpush1.msra.mxu0 %v9738_v53  ;;  %1856 = vmatpush1.msra.mxu1 %v9739_v57  ;;  %v9778_v53 = vld [vmem:[#allocation62_spill] sm:$0xff]  ;;  %v9779_v57 = vld [vmem:[#allocation63_spill] sm:$0xff] }
 0x39f   :  { %1786 = vmatprep.subr.mxu0 %v9740_v49  ;;  %1857 = vmatprep.subr.mxu1 %v9741_v51  ;;  %v9780_v49 = vld [vmem:[#allocation64_spill] sm:$0xff]  ;;  %v9781_v51 = vld [vmem:[#allocation65_spill] sm:$0xff] }
 0x3a0   :  { %1787 = vmatpush1.msra.mxu0 %v9742_v59  ;;  %1858 = vmatpush1.msra.mxu1 %v9743_v62  ;;  %v9782_v59 = vld [vmem:[#allocation66_spill] sm:$0xff]  ;;  %v9783_v62 = vld [vmem:[#allocation67_spill] sm:$0xff] }
 0x3a1   :  { %1788 = vmatprep.subr.mxu0 %v9744_v0  ;;  %1859 = vmatprep.subr.mxu1 %v9745_v1  ;;  %v9784_v0 = vld [vmem:[#allocation68_spill] sm:$0xff]  ;;  %v9785_v1 = vld [vmem:[#allocation69_spill] sm:$0xff] }
 0x3a2   :  { %1789 = vmatpush1.msra.mxu0 %v9746_v47  ;;  %1860 = vmatpush1.msra.mxu1 %v9747_v55  ;;  %v9786_v47 = vld [vmem:[#allocation70_spill] sm:$0xff]  ;;  %v9787_v55 = vld [vmem:[#allocation71_spill] sm:$0xff] }
 0x3a3   :  { %1790 = vmatprep.subr.mxu0 %v9748_v3  ;;  %1861 = vmatprep.subr.mxu1 %v9749_v54  ;;  %v9788_v3 = vld [vmem:[#allocation72_spill] sm:$0xff]  ;;  %v9789_v54 = vld [vmem:[#allocation73_spill] sm:$0xff] }
 0x3a4   :  { %1791 = vmatpush1.msra.mxu0 %v9750_v4  ;;  %1862 = vmatpush1.msra.mxu1 %v9751_v5  ;;  %v9790_v4 = vld [vmem:[#allocation74_spill] sm:$0xff]  ;;  %v9791_v5 = vld [vmem:[#allocation75_spill] sm:$0xff] }
 0x3a5   :  { %1792 = vmatprep.subr.mxu0 %v9752_v6  ;;  %1863 = vmatprep.subr.mxu1 %v9753_v7  ;;  %v9792_v6 = vld [vmem:[#allocation76_spill] sm:$0xff]  ;;  %v9793_v7 = vld [vmem:[#allocation77_spill] sm:$0xff] }
 0x3a6   :  { %1793 = vmatpush1.msra.mxu0 %v9754_v8  ;;  %1826 = vmatprep.mubr.f32.mxu0 %v9461_v20  ;;  %v9794_v8 = vld [vmem:[#allocation78_spill] sm:$0xff] }
 0x3a7   :  { %1864 = vmatpush1.msra.mxu1 %v9755_v9  ;;  %1897 = vmatprep.mubr.f32.mxu1 %v9461_v20  ;;  %v9795_v9 = vld [vmem:[#allocation79_spill] sm:$0xff] }
 0x3a8   :  { %1827 = vmatmul.mubr.f32.vlgmr.msra.gmra.mxu0 %v6803_v60  ;;  %1898 = vmatmul.mubr.f32.vlgmr.msra.gmra.mxu1 %v6803_v60  ;;  %v9767_v60 = vld [vmem:[#allocation51_spill] sm:$0xff] }
 0x3a9   :  { %1932 = vmatprep.subr.mxu0 %v9756_v11  ;;  %2003 = vmatprep.subr.mxu1 %v9757_v12  ;;  %v9796_v11 = vld [vmem:[#allocation80_spill] sm:$0xff]  ;;  %v9797_v12 = vld [vmem:[#allocation81_spill] sm:$0xff] }
 0x3aa   :  { %1933 = vmatpush1.msra.mxu0 %v9758_v14  ;;  %2004 = vmatpush1.msra.mxu1 %v9759_v15  ;;  %v9798_v14 = vld [vmem:[#allocation82_spill] sm:$0xff]  ;;  %v9799_v15 = vld [vmem:[#allocation83_spill] sm:$0xff] }
 0x3ab   :  { %1934 = vmatprep.subr.mxu0 %v9760_v16  ;;  %2005 = vmatprep.subr.mxu1 %v9761_v17  ;;  %v9800_v16 = vld [vmem:[#allocation84_spill] sm:$0xff]  ;;  %v9801_v17 = vld [vmem:[#allocation85_spill] sm:$0xff] }
 0x3ac   :  { %1935 = vmatpush1.msra.mxu0 %v9762_v18  ;;  %2006 = vmatpush1.msra.mxu1 %v9763_v19  ;;  %v9802_v18 = vld [vmem:[#allocation86_spill] sm:$0xff]  ;;  %v9803_v19 = vld [vmem:[#allocation87_spill] sm:$0xff] }
 0x3ad   :  { %1936 = vmatprep.subr.mxu0 %v9764_v21  ;;  %2007 = vmatprep.subr.mxu1 %v9765_v22  ;;  %v9804_v21 = vld [vmem:[#allocation88_spill] sm:$0xff]  ;;  %v9805_v22 = vld [vmem:[#allocation89_spill] sm:$0xff] }
 0x3ae   :  { %1937 = vmatpush1.msra.mxu0 %v9766_v31  ;;  %2008 = vmatpush1.msra.mxu1 %v9767_v60  ;;  %v9806_v31 = vld [vmem:[#allocation90_spill] sm:$0xff]  ;;  %v9807_v60 = vld [vmem:[#allocation91_spill] sm:$0xff] }
 0x3af   :  { %1938 = vmatprep.subr.mxu0 %v9768_v32  ;;  %2009 = vmatprep.subr.mxu1 %v9769_v45  ;;  %v9808_v32 = vld [vmem:[#allocation92_spill] sm:$0xff]  ;;  %v9809_v45 = vld [vmem:[#allocation93_spill] sm:$0xff] }
 0x3b0   :  { %1939 = vmatpush1.msra.mxu0 %v9770_v46  ;;  %2010 = vmatpush1.msra.mxu1 %v9771_v48  ;;  %v9810_v46 = vld [vmem:[#allocation94_spill] sm:$0xff]  ;;  %v9811_v48 = vld [vmem:[#allocation95_spill] sm:$0xff] }
 0x3b1   :  { %1940 = vmatprep.subr.mxu0 %v9772_v50  ;;  %2011 = vmatprep.subr.mxu1 %v9773_v56  ;;  %v9812_v50 = vld [vmem:[#allocation96_spill] sm:$0xff]  ;;  %v9813_v56 = vld [vmem:[#allocation97_spill] sm:$0xff] }
 0x3b2   :  { %1941 = vmatpush1.msra.mxu0 %v9774_v58  ;;  %2012 = vmatpush1.msra.mxu1 %v9775_v61  ;;  %v9814_v58 = vld [vmem:[#allocation98_spill] sm:$0xff]  ;;  %v9815_v61 = vld [vmem:[#allocation99_spill] sm:$0xff] }
 0x3b3   :  { %1942 = vmatprep.subr.mxu0 %v9776_v2  ;;  %2013 = vmatprep.subr.mxu1 %v9777_v10  ;;  %v9816_v2 = vld [vmem:[#allocation100_spill] sm:$0xff]  ;;  %v9817_v10 = vld [vmem:[#allocation101_spill] sm:$0xff] }
 0x3b4   :  { %1943 = vmatpush1.msra.mxu0 %v9778_v53  ;;  %2014 = vmatpush1.msra.mxu1 %v9779_v57  ;;  %v9818_v53 = vld [vmem:[#allocation102_spill] sm:$0xff]  ;;  %v9819_v57 = vld [vmem:[#allocation103_spill] sm:$0xff] }
 0x3b5   :  { %1944 = vmatprep.subr.mxu0 %v9780_v49  ;;  %2015 = vmatprep.subr.mxu1 %v9781_v51  ;;  %v9820_v49 = vld [vmem:[#allocation104_spill] sm:$0xff]  ;;  %v9821_v51 = vld [vmem:[#allocation105_spill] sm:$0xff] }
 0x3b6   :  { %1945 = vmatpush1.msra.mxu0 %v9782_v59  ;;  %2016 = vmatpush1.msra.mxu1 %v9783_v62 }
 0x3b7   :  { %1946 = vmatprep.subr.mxu0 %v9784_v0  ;;  %2017 = vmatprep.subr.mxu1 %v9785_v1 }
 0x3b8   :  { %1947 = vmatpush1.msra.mxu0 %v9786_v47  ;;  %2018 = vmatpush1.msra.mxu1 %v9787_v55 }
 0x3b9   :  { %1948 = vmatprep.subr.mxu0 %v9788_v3  ;;  %2019 = vmatprep.subr.mxu1 %v9789_v54 }
 0x3ba   :  { %1949 = vmatpush1.msra.mxu0 %v9790_v4  ;;  %2020 = vmatpush1.msra.mxu1 %v9791_v5 }
 0x3bb   :  { %1950 = vmatprep.subr.mxu0 %v9792_v6  ;;  %2021 = vmatprep.subr.mxu1 %v9793_v7 }
 0x3bc   :  { %1951 = vmatpush1.msra.mxu0 %v9794_v8  ;;  %2022 = vmatpush1.msra.mxu1 %v9795_v9 }
 0x3bd   :  { %1952 = vmatprep.subr.mxu0 %v9796_v11  ;;  %2023 = vmatprep.subr.mxu1 %v9797_v12 }
 0x3be   :  { %1953 = vmatpush1.msra.mxu0 %v9798_v14  ;;  %2024 = vmatpush1.msra.mxu1 %v9799_v15 }
 0x3bf   :  { %1954 = vmatprep.subr.mxu0 %v9800_v16  ;;  %2025 = vmatprep.subr.mxu1 %v9801_v17 }
 0x3c0   :  { %1955 = vmatpush1.msra.mxu0 %v9802_v18  ;;  %2026 = vmatpush1.msra.mxu1 %v9803_v19 }
 0x3c1   :  { %1956 = vmatprep.subr.mxu0 %v9804_v21  ;;  %2027 = vmatprep.subr.mxu1 %v9805_v22  ;;  %v1758_v22 = vld [vmem:[#allocation3 + $0x60] sm:$0xff] }
 0x3c2   :  { %1957 = vmatpush1.msra.mxu0 %v9806_v31  ;;  %2028 = vmatpush1.msra.mxu1 %v9807_v60  ;;  %v1759_v60 = vld [vmem:[#allocation3 + $0x68] sm:$0xff] }
 0x3c3   :  { %1958 = vmatprep.subr.mxu0 %v9808_v32  ;;  %2029 = vmatprep.subr.mxu1 %v9809_v45 }
 0x3c4   :  { %1959 = vmatpush1.msra.mxu0 %v9810_v46  ;;  %2030 = vmatpush1.msra.mxu1 %v9811_v48 }
 0x3c5   :  { %1960 = vmatprep.subr.mxu0 %v9812_v50  ;;  %2031 = vmatprep.subr.mxu1 %v9813_v56 }
 0x3c6   :  { %1961 = vmatpush1.msra.mxu0 %v9814_v58  ;;  %2032 = vmatpush1.msra.mxu1 %v9815_v61 }
 0x3c7   :  { %1962 = vmatprep.subr.mxu0 %v9816_v2  ;;  %2033 = vmatprep.subr.mxu1 %v9817_v10 }
 0x3c8   :  { %1963 = vmatpush1.msra.mxu0 %v9818_v53  ;;  %2034 = vmatpush1.msra.mxu1 %v9819_v57 }
 0x3c9   :  { %1996 = vmatprep.mubr.f32.mxu0 %v9461_v20  ;;  %2067 = vmatprep.mubr.f32.mxu1 %v9461_v20 }
 0x3ca   :  { %2074 = vmatprep.subr.mxu0 %v9820_v49  ;;  %2145 = vmatprep.subr.mxu1 %v9821_v51 }
 0x425   :  { %v1511_v59 = vpop.f32.mrf.mxu0  ;;  %v1582_v62 = vpop.f32.mrf.mxu1 }
 0x427   :  { %v1513_v0 = vpop.f32.mrf.mxu0  ;;  %v1584_v47 = vpop.f32.mrf.mxu1 }
 0x446   :  { %v1653_v1 = vpop.f32.mrf.mxu0  ;;  %v1724_v4 = vpop.f32.mrf.mxu1 }
 0x447   :  { %v1654_v55 = vadd.f32 %v1653_v1, %v1511_v59  ;;  %v1725_v14 = vadd.f32 %v1724_v4, %v1582_v62  ;;  %v1761_v59 = vld [vmem:[#allocation3 + $0x78] sm:$0xff]  ;;  %v1760_v1 = vld [vmem:[#allocation3 + $0x70] sm:$0xff] }
 0x448   :  { %v1655_v3 = vpop.f32.mrf.mxu0  ;;  %v1726_v9 = vpop.f32.mrf.mxu1 }
 0x449   :  { %v1729_v54 = vadd.f32 %v1654_v55, %v6128_v34  ;;  %v1656_v5 = vadd.f32 %v1655_v3, %v1513_v0  ;;  %v1727_v11 = vadd.f32 %v1726_v9, %v1584_v47  ;;  %v1731_v17 = vadd.f32 %v1725_v14, %v6137_v63  ;;  %v9823_v9 = vld [vmem:[#allocation107_spill] sm:$0xff] }
 0x44b   :  { %v4309_v6 = vmul.f32 -1.442695, %v1729_v54  ;;  %v1730_v7 = vadd.f32 %v1656_v5, %v6130_v38  ;;  %v1732_v12 = vadd.f32 %v1727_v11, %v6134_v52  ;;  %v9824_v11 = vld [vmem:[#allocation108_spill] sm:$0xff] }
 0x44d   :  { %4483 = vpow2.f32 %v4309_v6  ;;  %v4310_v8 = vmul.f32 -1.442695, %v1730_v7  ;;  %v4311_v15 = vmul.f32 -1.442695, %v1732_v12  ;;  %v9830_v12 = vld [vmem:[#allocation114_spill] sm:$0xff] }
 0x44f   :  { %4485 = vpow2.f32 %v4310_v8  ;;  %v9822_v8 = vld [vmem:[#allocation106_spill] sm:$0xff] }
 0x450   :  { %4487 = vpow2.f32 %v4311_v15  ;;  %v9832_v15 = vld [vmem:[#allocation116_spill] sm:$0xff] }
 0x45a   :  { %v4484_v16 = vpop.eup %4483 }
 0x45b   :  { %v1736_v18 = vadd.f32 1.0, %v4484_v16 }
 0x45c   :  { %v4486_v19 = vpop.eup %4485 }
 0x45d   :  { %4489 = vrcp.f32 %v1736_v18  ;;  %v1742_v21 = vadd.f32 1.0, %v4486_v19  ;;  %v4488_v32 = vpop.eup %4487  ;;  %v9833_v18 = vld [vmem:[#allocation117_spill] sm:$0xff]  ;;  %v9834_v19 = vld [vmem:[#allocation118_spill] sm:$0xff] }
 0x45e   :  { %4491 = vtanh.f32 %v1731_v17  ;;  %v1749_v2 = vadd.f32 1.0, %v4488_v32  ;;  %v9837_v32 = vld [vmem:[#allocation121_spill] sm:$0xff] }
 0x45f   :  { %4493 = vrcp.f32 %v1742_v21 }
 0x468   :  { %v1828_v31 = vpop.f32.mrf.mxu0  ;;  %v1899_v57 = vpop.f32.mrf.mxu1 }
 0x469   :  { %v1904_v45 = vadd.f32 %v1828_v31, %v1758_v22  ;;  %v1906_v3 = vadd.f32 %v1899_v57, %v1760_v1  ;;  %v9835_v31 = vld [vmem:[#allocation119_spill] sm:$0xff]  ;;  %v9852_v57 = vld [vmem:[#allocation136_spill] sm:$0xff]  ;;  %v9857_v1 = vld [vmem:[#allocation141_spill] sm:$0xff] }
 0x46a   :  { %v4490_v46 = vpop.eup %4489  ;;  %v1830_v48 = vpop.f32.mrf.mxu0 }
 0x46b   :  { %v4492_v50 = vpop.eup %4491  ;;  %v4312_v56 = vmul.f32 -1.442695, %v1904_v45  ;;  %v1905_v58 = vadd.f32 %v1830_v48, %v1759_v60  ;;  %v1901_v62 = vpop.f32.mrf.mxu1  ;;  %v9838_v45 = vld [vmem:[#allocation122_spill] sm:$0xff]  ;;  %v9844_v48 = vld [vmem:[#allocation128_spill] sm:$0xff] }
 0x46c   :  { %v4494_v61 = vpop.eup %4493  ;;  %v1753_v10 = vmul.f32 %v4492_v50, %v4490_v46  ;;  %v1907_v0 = vadd.f32 %v1901_v62, %v1761_v59  ;;  %v9839_v46 = vld [vmem:[#allocation123_spill] sm:$0xff]  ;;  %v9845_v50 = vld [vmem:[#allocation129_spill] sm:$0xff]  ;;  %v9854_v59 = vld [vmem:[#allocation138_spill] sm:$0xff] }
 0x46d   :  { %v1752_v53 = vmul.f32 %v4494_v61, %v6616_v43  ;;  %4495 = vpow2.f32 %v4312_v56  ;;  %v4313_v49 = vmul.f32 -1.442695, %v1905_v58  ;;  %v9846_v56 = vld [vmem:[#allocation130_spill] sm:$0xff]  ;;  %v9847_v58 = vld [vmem:[#allocation131_spill] sm:$0xff]  ;;  %v9848_v61 = vld [vmem:[#allocation132_spill] sm:$0xff] }
 0x46e   :  { %v4314_v47 = vmul.f32 -1.442695, %v1907_v0  ;;  %v9855_v62 = vld [vmem:[#allocation139_spill] sm:$0xff]  ;;  %v9856_v0 = vld [vmem:[#allocation140_spill] sm:$0xff] }
 0x46f   :  { %4497 = vpow2.f32 %v4313_v49  ;;  %v6956_v51 = vadd.f32 %v1753_v10, %v1752_v53  ;;  %v9850_v10 = vld [vmem:[#allocation134_spill] sm:$0xff]  ;;  %v9851_v53 = vld [vmem:[#allocation135_spill] sm:$0xff]  ;;  %v9853_v49 = vld [vmem:[#allocation137_spill] sm:$0xff] }
 0x470   :  { %4499 = vrcp.f32 %v1749_v2  ;;  %v9849_v2 = vld [vmem:[#allocation133_spill] sm:$0xff] }
 0x471   :  { %4501 = vtanh.f32 %v6956_v51 }
 0x472   :  { %4503 = vpow2.f32 %v4314_v47  ;;  %v9858_v47 = vld [vmem:[#allocation142_spill] sm:$0xff] }
 0x47a   :  { %v4496_v55 = vpop.eup %4495 }
 0x47b   :  { %v1911_v54 = vadd.f32 1.0, %v4496_v55  ;;  %v9859_v55 = vld [vmem:[#allocation143_spill] sm:$0xff] }
 0x47c   :  { %v4498_v4 = vpop.eup %4497 }
 0x47d   :  { %v4500_v43 = vpop.eup %4499  ;;  %4505 = vrcp.f32 %v1911_v54  ;;  %v1917_v5 = vadd.f32 1.0, %v4498_v4  ;;  %v9861_v54 = vld [vmem:[#allocation145_spill] sm:$0xff]  ;;  %v9862_v4 = vld [vmem:[#allocation146_spill] sm:$0xff] }
 0x47e   :  { %v4502_v6 = vpop.eup %4501  ;;  %4507 = vtanh.f32 %v1906_v3  ;;  %v9860_v3 = vld [vmem:[#allocation144_spill] sm:$0xff] }
 0x47f   :  { %4509 = vrcp.f32 %v1917_v5  ;;  %v1756_v7 = vmul.f32 %v4502_v6, %v4500_v43  ;;  %v9863_v43 = vld [vmem:[#allocation147_spill] sm:$0xff]  ;;  %v9864_v6 = vld [vmem:[#allocation148_spill] sm:$0xff] }
 0x481   :  { %1997 = vmatmul.mubr.f32.vlgmr.msra.gmra.mxu0 %v1756_v7  ;;  %2068 = vmatmul.mubr.f32.vlgmr.msra.gmra.mxu1 %v1756_v7  ;;  %v9865_v7 = vld [vmem:[#allocation149_spill] sm:$0xff] }
 0x482   :  { %2075 = vmatpush1.msra.mxu0 %v6619_v39  ;;  %2146 = vmatpush1.msra.mxu1 %v6622_v41  ;;  %v9825_v39 = vld [vmem:[#allocation109_spill] sm:$0xff]  ;;  %v9826_v41 = vld [vmem:[#allocation110_spill] sm:$0xff] }
 0x483   :  { %2076 = vmatprep.subr.mxu0 %v6625_v42  ;;  %2147 = vmatprep.subr.mxu1 %v6628_v26  ;;  %v9827_v42 = vld [vmem:[#allocation111_spill] sm:$0xff]  ;;  %v4504_v26 = vpop.eup %4503 }
 0x484   :  { %2077 = vmatpush1.msra.mxu0 %v6631_v24  ;;  %2148 = vmatpush1.msra.mxu1 %v6634_v25  ;;  %v9828_v24 = vld [vmem:[#allocation112_spill] sm:$0xff]  ;;  %v9829_v25 = vld [vmem:[#allocation113_spill] sm:$0xff]  ;;  %v1924_v17 = vadd.f32 1.0, %v4504_v26  ;;  %v7055_v26 = vld [vmem:[#allocation5 + $0x1a8] sm:$0xff] }
 0x485   :  { %2078 = vmatprep.subr.mxu0 %v6637_v23  ;;  %2149 = vmatprep.subr.mxu1 %v6640_v37  ;;  %v9831_v37 = vld [vmem:[#allocation115_spill] sm:$0xff] }
 0x486   :  { %2079 = vmatpush1.msra.mxu0 %v9822_v8  ;;  %2150 = vmatpush1.msra.mxu1 %v9823_v9  ;;  %4511 = vrcp.f32 %v1924_v17  ;;  %v9866_v9 = vld [vmem:[#allocation150_spill] sm:$0xff]  ;;  %v7082_v17 = vld [vmem:[#allocation5 + $0x178] sm:$0xff] }
 0x487   :  { %2080 = vmatprep.subr.mxu0 %v9824_v11  ;;  %2151 = vmatprep.subr.mxu1 %v9825_v39  ;;  %v7031_v39 = vld [vmem:[#allocation5 + $0x1e8] sm:$0xff] }
 0x488   :  { %2081 = vmatpush1.msra.mxu0 %v9826_v41  ;;  %2152 = vmatpush1.msra.mxu1 %v9827_v42  ;;  %v7049_v41 = vld [vmem:[#allocation5 + $0x1c0] sm:$0xff]  ;;  %v7052_v42 = vld [vmem:[#allocation5 + $0x1d0] sm:$0xff] }
 0x489   :  { %2082 = vmatprep.subr.mxu0 %v9828_v24  ;;  %2153 = vmatprep.subr.mxu1 %v9829_v25  ;;  %v7058_v24 = vld [vmem:[#allocation5 + $0x1b8] sm:$0xff]  ;;  %v7061_v25 = vld [vmem:[#allocation5 + $0x1a0] sm:$0xff] }
 0x48a   :  { %v4506_v23 = vpop.eup %4505  ;;  %2083 = vmatpush1.msra.mxu0 %v9830_v12  ;;  %2154 = vmatpush1.msra.mxu1 %v9831_v37  ;;  %v7067_v12 = vld [vmem:[#allocation5 + $0x188] sm:$0xff]  ;;  %v7070_v37 = vld [vmem:[#allocation5 + $0x198] sm:$0xff] }
 0x48b   :  { %v4508_v14 = vpop.eup %4507  ;;  %2084 = vmatprep.subr.mxu0 %v9832_v15  ;;  %2155 = vmatprep.subr.mxu1 %v6676_v30  ;;  %v9836_v30 = vld [vmem:[#allocation120_spill] sm:$0xff]  ;;  %v7076_v15 = vld [vmem:[#allocation5 + $0x190] sm:$0xff] }
 0x48c   :  { %v4510_v16 = vpop.eup %4509  ;;  %2085 = vmatpush1.msra.mxu0 %v9833_v18  ;;  %2156 = vmatpush1.msra.mxu1 %v9834_v19  ;;  %v1928_v21 = vmul.f32 %v4508_v14, %v4506_v23  ;;  %v7064_v23 = vld [vmem:[#allocation5 + $0x1b0] sm:$0xff]  ;;  %v7073_v14 = vld [vmem:[#allocation5 + $0x180] sm:$0xff] }
 0x48d   :  { %v1927_v22 = vmul.f32 %v4510_v16, %v6698_v27  ;;  %2086 = vmatprep.subr.mxu0 %v6686_v44  ;;  %2157 = vmatprep.subr.mxu1 %v6689_v40  ;;  %v9840_v27 = vld [vmem:[#allocation124_spill] sm:$0xff]  ;;  %v9841_v44 = vld [vmem:[#allocation125_spill] sm:$0xff]  ;;  %v9842_v40 = vld [vmem:[#allocation126_spill] sm:$0xff] }
 0x48e   :  { %2087 = vmatpush1.msra.mxu0 %v6692_v35  ;;  %2158 = vmatpush1.msra.mxu1 %v9835_v31  ;;  %v9843_v35 = vld [vmem:[#allocation127_spill] sm:$0xff]  ;;  %v7079_v16 = vld [vmem:[#allocation5 + $0x168] sm:$0xff]  ;;  %v7085_v18 = vld [vmem:[#allocation5 + $0x160] sm:$0xff] }
 0x48f   :  { %v6986_v60 = vadd.f32 %v1928_v21, %v1927_v22  ;;  %2088 = vmatprep.subr.mxu0 %v9836_v30  ;;  %2159 = vmatprep.subr.mxu1 %v9837_v32  ;;  %v7088_v19 = vld [vmem:[#allocation5 + $0x170] sm:$0xff]  ;;  %v7091_v21 = vld [vmem:[#allocation5 + $0x148] sm:$0xff]  ;;  %v7094_v22 = vld [vmem:[#allocation5 + $0x158] sm:$0xff] }
 0x490   :  { %2089 = vmatpush1.msra.mxu0 %v9838_v45  ;;  %2160 = vmatpush1.msra.mxu1 %v9839_v46  ;;  %v7097_v31 = vld [vmem:[#allocation5 + $0x140] sm:$0xff]  ;;  %v7100_v30 = vld [vmem:[#allocation5 + $0x150] sm:$0xff]  ;;  %v7103_v32 = vld [vmem:[#allocation5 + $0x128] sm:$0xff] }
 0x491   :  { %2090 = vmatprep.subr.mxu0 %v9840_v27  ;;  %2161 = vmatprep.subr.mxu1 %v9841_v44  ;;  %4513 = vtanh.f32 %v6986_v60  ;;  %v7106_v45 = vld [vmem:[#allocation5 + $0x138] sm:$0xff]  ;;  %v7109_v46 = vld [vmem:[#allocation5 + $0x120] sm:$0xff]  ;;  %v7112_v27 = vld [vmem:[#allocation5 + $0x130] sm:$0xff] }
 0x492   :  { %2091 = vmatpush1.msra.mxu0 %v9842_v40  ;;  %2162 = vmatpush1.msra.mxu1 %v9843_v35  ;;  %v7115_v44 = vld [vmem:[#allocation5 + $0x108] sm:$0xff]  ;;  %v7118_v40 = vld [vmem:[#allocation5 + $0x118] sm:$0xff]  ;;  %v7121_v35 = vld [vmem:[#allocation5 + $0x100] sm:$0xff] }
 0x493   :  { %2092 = vmatprep.subr.mxu0 %v9844_v48  ;;  %2163 = vmatprep.subr.mxu1 %v9845_v50  ;;  %v4512_v5 = vpop.eup %4511  ;;  %v7124_v48 = vld [vmem:[#allocation5 + $0x110] sm:$0xff]  ;;  %v7127_v50 = vld [vmem:[#allocation5 + $0xe8] sm:$0xff] }
 0x494   :  { %2093 = vmatpush1.msra.mxu0 %v9846_v56  ;;  %2164 = vmatpush1.msra.mxu1 %v9847_v58  ;;  %v7130_v56 = vld [vmem:[#allocation5 + $0xf8] sm:$0xff]  ;;  %v7133_v58 = vld [vmem:[#allocation5 + $0xe0] sm:$0xff] }
 0x495   :  { %2094 = vmatprep.subr.mxu0 %v9848_v61  ;;  %2165 = vmatprep.subr.mxu1 %v9849_v2  ;;  %v7136_v61 = vld [vmem:[#allocation5 + $0xf0] sm:$0xff]  ;;  %v7139_v2 = vld [vmem:[#allocation5 + $0xc8] sm:$0xff] }
 0x496   :  { %2095 = vmatpush1.msra.mxu0 %v9850_v10  ;;  %2166 = vmatpush1.msra.mxu1 %v9851_v53  ;;  %v7142_v10 = vld [vmem:[#allocation5 + $0xd8] sm:$0xff]  ;;  %v7145_v53 = vld [vmem:[#allocation5 + $0xc0] sm:$0xff] }
 0x497   :  { %2096 = vmatprep.subr.mxu0 %v9852_v57  ;;  %2167 = vmatprep.subr.mxu1 %v9853_v49  ;;  %9867 = vst [vmem:[#allocation151_spill] sm:$0xff] %v7142_v10  ;;  %9868 = vst [vmem:[#allocation152_spill] sm:$0xff] %v7145_v53  ;;  %v7148_v57 = vld [vmem:[#allocation5 + $0xd0] sm:$0xff]  ;;  %v7151_v49 = vld [vmem:[#allocation5 + $0xa8] sm:$0xff] }
 0x498   :  { %2097 = vmatpush1.msra.mxu0 %v9854_v59  ;;  %2168 = vmatpush1.msra.mxu1 %v9855_v62  ;;  %9869 = vst [vmem:[#allocation153_spill] sm:$0xff] %v7148_v57  ;;  %9870 = vst [vmem:[#allocation154_spill] sm:$0xff] %v7151_v49  ;;  %v7154_v59 = vld [vmem:[#allocation5 + $0xb8] sm:$0xff]  ;;  %v7157_v62 = vld [vmem:[#allocation5 + $0xa0] sm:$0xff] }
 0x499   :  { %2098 = vmatprep.subr.mxu0 %v9856_v0  ;;  %2169 = vmatprep.subr.mxu1 %v9857_v1  ;;  %9871 = vst [vmem:[#allocation155_spill] sm:$0xff] %v7154_v59  ;;  %9872 = vst [vmem:[#allocation156_spill] sm:$0xff] %v7157_v62  ;;  %v7160_v0 = vld [vmem:[#allocation5 + $0xb0] sm:$0xff]  ;;  %v7163_v1 = vld [vmem:[#allocation5 + $0x88] sm:$0xff] }
 0x49a   :  { %2099 = vmatpush1.msra.mxu0 %v9858_v47  ;;  %2170 = vmatpush1.msra.mxu1 %v9859_v55  ;;  %9873 = vst [vmem:[#allocation157_spill] sm:$0xff] %v7160_v0  ;;  %9874 = vst [vmem:[#allocation18_spill] sm:$0xff] %v7163_v1  ;;  %v7166_v47 = vld [vmem:[#allocation5 + $0x98] sm:$0xff]  ;;  %v7169_v55 = vld [vmem:[#allocation5 + $0x80] sm:$0xff] }
 0x49b   :  { %2100 = vmatprep.subr.mxu0 %v9860_v3  ;;  %2171 = vmatprep.subr.mxu1 %v9861_v54  ;;  %9875 = vst [vmem:[#allocation13_spill] sm:$0xff] %v7166_v47  ;;  %9876 = vst [vmem:[#allocation20_spill] sm:$0xff] %v7169_v55  ;;  %v7172_v3 = vld [vmem:[#allocation5 + $0x90] sm:$0xff]  ;;  %v7175_v54 = vld [vmem:[#allocation5 + $0x68] sm:$0xff] }
 0x49c   :  { %2101 = vmatpush1.msra.mxu0 %v9862_v4  ;;  %2172 = vmatpush1.msra.mxu1 %v9863_v43  ;;  %9877 = vst [vmem:[#allocation14_spill] sm:$0xff] %v7172_v3  ;;  %9878 = vst [vmem:[#allocation22_spill] sm:$0xff] %v7175_v54  ;;  %v7178_v4 = vld [vmem:[#allocation5 + $0x78] sm:$0xff]  ;;  %v7181_v43 = vld [vmem:[#allocation5 + $0x60] sm:$0xff] }
 0x49d   :  { %2102 = vmatprep.subr.mxu0 %v9864_v6  ;;  %2173 = vmatprep.subr.mxu1 %v9865_v7  ;;  %9879 = vst [vmem:[#allocation15_spill] sm:$0xff] %v7178_v4  ;;  %9880 = vst [vmem:[#allocation24_spill] sm:$0xff] %v7181_v43  ;;  %v7187_v6 = vld [vmem:[#allocation5 + $0x48] sm:$0xff]  ;;  %v7190_v7 = vld [vmem:[#allocation5 + $0x58] sm:$0xff] }
 0x49e   :  { %v4514_v8 = vpop.eup %4513  ;;  %2103 = vmatpush1.msra.mxu0 %v9866_v9  ;;  %2174 = vmatpush1.msra.mxu1 %v6794_v13  ;;  %v7046_v13 = vld [vmem:[#allocation5 + $0x1d8] sm:$0xff]  ;;  %9882 = vst [vmem:[#allocation25_spill] sm:$0xff] %v7187_v6  ;;  %9883 = vst [vmem:[#allocation17_spill] sm:$0xff] %v7190_v7  ;;  %v7196_v9 = vld [vmem:[#allocation5 + $0x50] sm:$0xff] }
 0x49f   :  { %2104 = vmatprep.subr.mxu0 %v6797_v28  ;;  %2175 = vmatprep.subr.mxu1 %v6800_v36  ;;  %v7023_v11 = vmul.f32 %v4514_v8, %v4512_v5  ;;  %v7034_v28 = vld [vmem:[#allocation5 + $0x1f8] sm:$0xff]  ;;  %v7037_v36 = vld [vmem:[#allocation5 + $0x1e0] sm:$0xff]  ;;  %v7184_v5 = vld [vmem:[#allocation5 + $0x70] sm:$0xff]  ;;  %9885 = vst [vmem:[#allocation19_spill] sm:$0xff] %v7196_v9 }
 0x4a0   :  { %2105 = vmatpush1.msra.mxu0 %v6805_v33  ;;  %2138 = vmatprep.mubr.f32.mxu0 %v9461_v20  ;;  %v7040_v33 = vld [vmem:[#allocation5 + $0x1f0] sm:$0xff]  ;;  %9881 = vst [vmem:[#allocation16_spill] sm:$0xff] %v7184_v5  ;;  %v7193_v8 = vld [vmem:[#allocation5 + $0x40] sm:$0xff] }
 0x4a1   :  { %2176 = vmatpush1.msra.mxu1 %v6809_v29  ;;  %2209 = vmatprep.mubr.f32.mxu1 %v9461_v20  ;;  %v7043_v29 = vld [vmem:[#allocation5 + $0x1c8] sm:$0xff]  ;;  %9884 = vst [vmem:[#allocation26_spill] sm:$0xff] %v7193_v8 }
 0x4a2   :  { %2139 = vmatmul.mubr.f32.vlgmr.msra.gmra.mxu0 %v7023_v11  ;;  %2210 = vmatmul.mubr.f32.vlgmr.msra.gmra.mxu1 %v7023_v11 }
 0x4a3   :  { %2249 = vmatprep.subr.mxu0 %v7031_v39  ;;  %2320 = vmatprep.subr.mxu1 %v7034_v28 }
 0x4a4   :  { %2250 = vmatpush1.msra.mxu0 %v7037_v36  ;;  %2321 = vmatpush1.msra.mxu1 %v7040_v33 }
 0x4a5   :  { %2251 = vmatprep.subr.mxu0 %v7043_v29  ;;  %2322 = vmatprep.subr.mxu1 %v7046_v13 }
 0x4a6   :  { %2252 = vmatpush1.msra.mxu0 %v7049_v41  ;;  %2323 = vmatpush1.msra.mxu1 %v7052_v42 }
 0x4a7   :  { %2253 = vmatprep.subr.mxu0 %v7055_v26  ;;  %2324 = vmatprep.subr.mxu1 %v7058_v24 }
 0x4a8   :  { %2254 = vmatpush1.msra.mxu0 %v7061_v25  ;;  %2325 = vmatpush1.msra.mxu1 %v7064_v23 }
 0x4a9   :  { %2255 = vmatprep.subr.mxu0 %v7067_v12  ;;  %2326 = vmatprep.subr.mxu1 %v7070_v37 }
 0x4aa   :  { %2256 = vmatpush1.msra.mxu0 %v7073_v14  ;;  %2327 = vmatpush1.msra.mxu1 %v7076_v15 }
 0x4ab   :  { %2257 = vmatprep.subr.mxu0 %v7079_v16  ;;  %2328 = vmatprep.subr.mxu1 %v7082_v17 }
 0x4ac   :  { %2258 = vmatpush1.msra.mxu0 %v7085_v18  ;;  %2329 = vmatpush1.msra.mxu1 %v7088_v19 }
 0x4ad   :  { %2259 = vmatprep.subr.mxu0 %v7091_v21  ;;  %2330 = vmatprep.subr.mxu1 %v7094_v22 }
 0x4ae   :  { %2260 = vmatpush1.msra.mxu0 %v7097_v31  ;;  %2331 = vmatpush1.msra.mxu1 %v7100_v30 }
 0x4af   :  { %2261 = vmatprep.subr.mxu0 %v7103_v32  ;;  %2332 = vmatprep.subr.mxu1 %v7106_v45 }
 0x4b0   :  { %2262 = vmatpush1.msra.mxu0 %v7109_v46  ;;  %2333 = vmatpush1.msra.mxu1 %v7112_v27 }
 0x4b1   :  { %2263 = vmatprep.subr.mxu0 %v7115_v44  ;;  %2334 = vmatprep.subr.mxu1 %v7118_v40 }
 0x4b2   :  { %2264 = vmatpush1.msra.mxu0 %v7121_v35  ;;  %2335 = vmatpush1.msra.mxu1 %v7124_v48 }
 0x4b3   :  { %2265 = vmatprep.subr.mxu0 %v7127_v50  ;;  %2336 = vmatprep.subr.mxu1 %v7130_v56 }
 0x4b4   :  { %2266 = vmatpush1.msra.mxu0 %v7133_v58  ;;  %2337 = vmatpush1.msra.mxu1 %v7136_v61 }
 0x4b5   :  { %2267 = vmatprep.subr.mxu0 %v7139_v2  ;;  %2338 = vmatprep.subr.mxu1 %v7142_v10 }
 0x4b6   :  { %2268 = vmatpush1.msra.mxu0 %v7145_v53  ;;  %2339 = vmatpush1.msra.mxu1 %v7148_v57 }
 0x4b7   :  { %2269 = vmatprep.subr.mxu0 %v7151_v49  ;;  %2340 = vmatprep.subr.mxu1 %v7154_v59 }
 0x4b8   :  { %2270 = vmatpush1.msra.mxu0 %v7157_v62  ;;  %2341 = vmatpush1.msra.mxu1 %v7160_v0 }
 0x4b9   :  { %2271 = vmatprep.subr.mxu0 %v7163_v1  ;;  %2342 = vmatprep.subr.mxu1 %v7166_v47 }
 0x4ba   :  { %2272 = vmatpush1.msra.mxu0 %v7169_v55  ;;  %2343 = vmatpush1.msra.mxu1 %v7172_v3 }
 0x4bb   :  { %2273 = vmatprep.subr.mxu0 %v7175_v54  ;;  %2344 = vmatprep.subr.mxu1 %v7178_v4 }
 0x4bc   :  { %2274 = vmatpush1.msra.mxu0 %v7181_v43  ;;  %2345 = vmatpush1.msra.mxu1 %v7184_v5  ;;  %v7199_v43 = vld [vmem:[#allocation5 + $0x28] sm:$0xff]  ;;  %v7202_v5 = vld [vmem:[#allocation5 + $0x38] sm:$0xff] }
 0x4bd   :  { %2275 = vmatprep.subr.mxu0 %v7187_v6  ;;  %2346 = vmatprep.subr.mxu1 %v7190_v7  ;;  %9886 = vst [vmem:[#allocation28_spill] sm:$0xff] %v7199_v43  ;;  %9887 = vst [vmem:[#allocation21_spill] sm:$0xff] %v7202_v5  ;;  %v7205_v6 = vld [vmem:[#allocation5 + $0x20] sm:$0xff]  ;;  %v7208_v7 = vld [vmem:[#allocation5 + $0x30] sm:$0xff] }
 0x4be   :  { %2276 = vmatpush1.msra.mxu0 %v7193_v8  ;;  %2347 = vmatpush1.msra.mxu1 %v7196_v9  ;;  %9888 = vst [vmem:[#allocation30_spill] sm:$0xff] %v7205_v6  ;;  %9889 = vst [vmem:[#allocation23_spill] sm:$0xff] %v7208_v7  ;;  %v7211_v8 = vld [vmem:[#allocation5 + $0x8] sm:$0xff]  ;;  %v7214_v9 = vld [vmem:[#allocation5 + $0x18] sm:$0xff] }
 0x4bf   :  { %2277 = vmatprep.subr.mxu0 %v7199_v43  ;;  %2348 = vmatprep.subr.mxu1 %v7202_v5  ;;  %9890 = vst [vmem:[#allocation32_spill] sm:$0xff] %v7211_v8  ;;  %9891 = vst [vmem:[#allocation27_spill] sm:$0xff] %v7214_v9  ;;  %v7217_v43 = vld [vmem:[#allocation5] sm:$0xff]  ;;  %v7221_v5 = vld [vmem:[#allocation5 + $0x10] sm:$0xff] }
 0x4c0   :  { %2278 = vmatpush1.msra.mxu0 %v7205_v6  ;;  %2349 = vmatpush1.msra.mxu1 %v7208_v7  ;;  %9892 = vst [vmem:[#allocation34_spill] sm:$0xff] %v7217_v43  ;;  %9893 = vst [vmem:[#allocation29_spill] sm:$0xff] %v7221_v5  ;;  %v7236_v7 = vld [vmem:[#allocation8 + $0x1f0] sm:$0xff] }
 0x4c1   :  { %2279 = vmatprep.subr.mxu0 %v7211_v8  ;;  %2350 = vmatprep.subr.mxu1 %v7214_v9  ;;  %v7227_v8 = vld [vmem:[#allocation8 + $0x1e8] sm:$0xff]  ;;  %v7230_v9 = vld [vmem:[#allocation8 + $0x1f8] sm:$0xff]  ;;  %9897 = vst [vmem:[#allocation33_spill] sm:$0xff] %v7236_v7 }
 0x4c2   :  { %2280 = vmatpush1.msra.mxu0 %v7217_v43  ;;  %2313 = vmatprep.mubr.f32.mxu0 %v9461_v20  ;;  %9894 = vst [vmem:[#allocation35_spill] sm:$0xff] %v7227_v8  ;;  %9895 = vst [vmem:[#allocation31_spill] sm:$0xff] %v7230_v9  ;;  %v7233_v43 = vld [vmem:[#allocation8 + $0x1e0] sm:$0xff] }
 0x4c3   :  { %2351 = vmatpush1.msra.mxu1 %v7221_v5  ;;  %2384 = vmatprep.mubr.f32.mxu1 %v9461_v20  ;;  %9896 = vst [vmem:[#allocation37_spill] sm:$0xff] %v7233_v43  ;;  %v7239_v5 = vld [vmem:[#allocation8 + $0x1c8] sm:$0xff] }
 0x4c4   :  { %2314 = vmatmul.mubr.f32.vlgmr.msra.gmra.mxu0 %v7023_v11  ;;  %2385 = vmatmul.mubr.f32.vlgmr.msra.gmra.mxu1 %v7023_v11  ;;  %9898 = vst [vmem:[#allocation39_spill] sm:$0xff] %v7239_v5  ;;  %v7242_v11 = vld [vmem:[#allocation8 + $0x1d8] sm:$0xff] }
 0x4c5   :  { %2419 = vmatprep.subr.mxu0 %v7227_v8  ;;  %2490 = vmatprep.subr.mxu1 %v7230_v9  ;;  %9899 = vst [vmem:[#allocation36_spill] sm:$0xff] %v7242_v11  ;;  %v7245_v8 = vld [vmem:[#allocation8 + $0x1c0] sm:$0xff]  ;;  %v7248_v9 = vld [vmem:[#allocation8 + $0x1d0] sm:$0xff] }
 0x4c6   :  { %2420 = vmatpush1.msra.mxu0 %v7233_v43  ;;  %2491 = vmatpush1.msra.mxu1 %v7236_v7  ;;  %9900 = vst [vmem:[#allocation41_spill] sm:$0xff] %v7245_v8  ;;  %9901 = vst [vmem:[#allocation38_spill] sm:$0xff] %v7248_v9  ;;  %v7251_v43 = vld [vmem:[#allocation8 + $0x1a8] sm:$0xff]  ;;  %v7254_v7 = vld [vmem:[#allocation8 + $0x1b8] sm:$0xff] }
 0x4c7   :  { %2421 = vmatprep.subr.mxu0 %v7239_v5  ;;  %2492 = vmatprep.subr.mxu1 %v7242_v11  ;;  %9902 = vst [vmem:[#allocation43_spill] sm:$0xff] %v7251_v43  ;;  %9903 = vst [vmem:[#allocation40_spill] sm:$0xff] %v7254_v7  ;;  %v7257_v5 = vld [vmem:[#allocation8 + $0x1a0] sm:$0xff]  ;;  %v7260_v11 = vld [vmem:[#allocation8 + $0x1b0] sm:$0xff] }
 0x4c8   :  { %2422 = vmatpush1.msra.mxu0 %v7245_v8  ;;  %2493 = vmatpush1.msra.mxu1 %v7248_v9  ;;  %9904 = vst [vmem:[#allocation44_spill] sm:$0xff] %v7257_v5  ;;  %9905 = vst [vmem:[#allocation42_spill] sm:$0xff] %v7260_v11  ;;  %v7263_v8 = vld [vmem:[#allocation8 + $0x188] sm:$0xff]  ;;  %v7266_v9 = vld [vmem:[#allocation8 + $0x198] sm:$0xff] }
 0x4c9   :  { %2423 = vmatprep.subr.mxu0 %v7251_v43  ;;  %2494 = vmatprep.subr.mxu1 %v7254_v7  ;;  %9906 = vst [vmem:[#allocation45_spill] sm:$0xff] %v7263_v8  ;;  %9907 = vst [vmem:[#allocation46_spill] sm:$0xff] %v7266_v9  ;;  %v7269_v43 = vld [vmem:[#allocation8 + $0x180] sm:$0xff]  ;;  %v7272_v7 = vld [vmem:[#allocation8 + $0x190] sm:$0xff] }
 0x4ca   :  { %2424 = vmatpush1.msra.mxu0 %v7257_v5  ;;  %2495 = vmatpush1.msra.mxu1 %v7260_v11  ;;  %9908 = vst [vmem:[#allocation47_spill] sm:$0xff] %v7269_v43  ;;  %9909 = vst [vmem:[#allocation48_spill] sm:$0xff] %v7272_v7  ;;  %v7275_v5 = vld [vmem:[#allocation8 + $0x168] sm:$0xff]  ;;  %v7278_v11 = vld [vmem:[#allocation8 + $0x178] sm:$0xff] }
 0x4cb   :  { %2425 = vmatprep.subr.mxu0 %v7263_v8  ;;  %2496 = vmatprep.subr.mxu1 %v7266_v9  ;;  %9910 = vst [vmem:[#allocation49_spill] sm:$0xff] %v7275_v5  ;;  %9911 = vst [vmem:[#allocation50_spill] sm:$0xff] %v7278_v11  ;;  %v7281_v8 = vld [vmem:[#allocation8 + $0x160] sm:$0xff]  ;;  %v7284_v9 = vld [vmem:[#allocation8 + $0x170] sm:$0xff] }
 0x4cc   :  { %2426 = vmatpush1.msra.mxu0 %v7269_v43  ;;  %2497 = vmatpush1.msra.mxu1 %v7272_v7  ;;  %9912 = vst [vmem:[#allocation51_spill] sm:$0xff] %v7281_v8  ;;  %9913 = vst [vmem:[#allocation52_spill] sm:$0xff] %v7284_v9  ;;  %v7287_v43 = vld [vmem:[#allocation8 + $0x148] sm:$0xff]  ;;  %v7290_v7 = vld [vmem:[#allocation8 + $0x158] sm:$0xff] }
 0x4cd   :  { %2427 = vmatprep.subr.mxu0 %v7275_v5  ;;  %2498 = vmatprep.subr.mxu1 %v7278_v11  ;;  %9914 = vst [vmem:[#allocation53_spill] sm:$0xff] %v7287_v43  ;;  %9915 = vst [vmem:[#allocation54_spill] sm:$0xff] %v7290_v7  ;;  %v7293_v5 = vld [vmem:[#allocation8 + $0x140] sm:$0xff]  ;;  %v7296_v11 = vld [vmem:[#allocation8 + $0x150] sm:$0xff] }
 0x4ce   :  { %2428 = vmatpush1.msra.mxu0 %v7281_v8  ;;  %2499 = vmatpush1.msra.mxu1 %v7284_v9  ;;  %9916 = vst [vmem:[#allocation55_spill] sm:$0xff] %v7293_v5  ;;  %9917 = vst [vmem:[#allocation56_spill] sm:$0xff] %v7296_v11  ;;  %v7299_v8 = vld [vmem:[#allocation8 + $0x128] sm:$0xff]  ;;  %v7302_v9 = vld [vmem:[#allocation8 + $0x138] sm:$0xff] }
 0x4cf   :  { %2429 = vmatprep.subr.mxu0 %v7287_v43  ;;  %2500 = vmatprep.subr.mxu1 %v7290_v7  ;;  %9918 = vst [vmem:[#allocation57_spill] sm:$0xff] %v7299_v8  ;;  %9919 = vst [vmem:[#allocation58_spill] sm:$0xff] %v7302_v9  ;;  %v7305_v43 = vld [vmem:[#allocation8 + $0x120] sm:$0xff]  ;;  %v7308_v7 = vld [vmem:[#allocation8 + $0x130] sm:$0xff] }
 0x4d0   :  { %2430 = vmatpush1.msra.mxu0 %v7293_v5  ;;  %2501 = vmatpush1.msra.mxu1 %v7296_v11  ;;  %9920 = vst [vmem:[#allocation59_spill] sm:$0xff] %v7305_v43  ;;  %9921 = vst [vmem:[#allocation60_spill] sm:$0xff] %v7308_v7  ;;  %v7311_v5 = vld [vmem:[#allocation8 + $0x108] sm:$0xff]  ;;  %v7314_v11 = vld [vmem:[#allocation8 + $0x118] sm:$0xff] }
 0x4d1   :  { %2431 = vmatprep.subr.mxu0 %v7299_v8  ;;  %2502 = vmatprep.subr.mxu1 %v7302_v9  ;;  %9922 = vst [vmem:[#allocation61_spill] sm:$0xff] %v7311_v5  ;;  %9923 = vst [vmem:[#allocation62_spill] sm:$0xff] %v7314_v11  ;;  %v7317_v8 = vld [vmem:[#allocation8 + $0x100] sm:$0xff]  ;;  %v7320_v9 = vld [vmem:[#allocation8 + $0x110] sm:$0xff] }
 0x4d2   :  { %2432 = vmatpush1.msra.mxu0 %v7305_v43  ;;  %2503 = vmatpush1.msra.mxu1 %v7308_v7  ;;  %9924 = vst [vmem:[#allocation63_spill] sm:$0xff] %v7317_v8  ;;  %9925 = vst [vmem:[#allocation64_spill] sm:$0xff] %v7320_v9  ;;  %v7323_v43 = vld [vmem:[#allocation8 + $0xe8] sm:$0xff]  ;;  %v7326_v7 = vld [vmem:[#allocation8 + $0xf8] sm:$0xff] }
 0x4d3   :  { %2433 = vmatprep.subr.mxu0 %v7311_v5  ;;  %2504 = vmatprep.subr.mxu1 %v7314_v11  ;;  %9926 = vst [vmem:[#allocation65_spill] sm:$0xff] %v7323_v43  ;;  %9927 = vst [vmem:[#allocation66_spill] sm:$0xff] %v7326_v7  ;;  %v7329_v5 = vld [vmem:[#allocation8 + $0xe0] sm:$0xff]  ;;  %v7332_v11 = vld [vmem:[#allocation8 + $0xf0] sm:$0xff] }
 0x4d4   :  { %2434 = vmatpush1.msra.mxu0 %v7317_v8  ;;  %2505 = vmatpush1.msra.mxu1 %v7320_v9  ;;  %9928 = vst [vmem:[#allocation67_spill] sm:$0xff] %v7329_v5  ;;  %9929 = vst [vmem:[#allocation68_spill] sm:$0xff] %v7332_v11  ;;  %v7335_v8 = vld [vmem:[#allocation8 + $0xc8] sm:$0xff]  ;;  %v7338_v9 = vld [vmem:[#allocation8 + $0xd8] sm:$0xff] }
 0x4d5   :  { %2435 = vmatprep.subr.mxu0 %v7323_v43  ;;  %2506 = vmatprep.subr.mxu1 %v7326_v7  ;;  %9930 = vst [vmem:[#allocation69_spill] sm:$0xff] %v7335_v8  ;;  %9931 = vst [vmem:[#allocation70_spill] sm:$0xff] %v7338_v9  ;;  %v7341_v43 = vld [vmem:[#allocation8 + $0xc0] sm:$0xff]  ;;  %v7344_v7 = vld [vmem:[#allocation8 + $0xd0] sm:$0xff] }
 0x4d6   :  { %2436 = vmatpush1.msra.mxu0 %v7329_v5  ;;  %2507 = vmatpush1.msra.mxu1 %v7332_v11  ;;  %9932 = vst [vmem:[#allocation71_spill] sm:$0xff] %v7341_v43  ;;  %9933 = vst [vmem:[#allocation72_spill] sm:$0xff] %v7344_v7  ;;  %v7347_v5 = vld [vmem:[#allocation8 + $0xa8] sm:$0xff]  ;;  %v7350_v11 = vld [vmem:[#allocation8 + $0xb8] sm:$0xff] }
 0x4d7   :  { %2437 = vmatprep.subr.mxu0 %v7335_v8  ;;  %2508 = vmatprep.subr.mxu1 %v7338_v9  ;;  %9934 = vst [vmem:[#allocation73_spill] sm:$0xff] %v7347_v5  ;;  %9935 = vst [vmem:[#allocation74_spill] sm:$0xff] %v7350_v11  ;;  %v7353_v8 = vld [vmem:[#allocation8 + $0xa0] sm:$0xff]  ;;  %v7356_v9 = vld [vmem:[#allocation8 + $0xb0] sm:$0xff] }
 0x4d8   :  { %2438 = vmatpush1.msra.mxu0 %v7341_v43  ;;  %2509 = vmatpush1.msra.mxu1 %v7344_v7  ;;  %9936 = vst [vmem:[#allocation75_spill] sm:$0xff] %v7353_v8  ;;  %9937 = vst [vmem:[#allocation76_spill] sm:$0xff] %v7356_v9  ;;  %v7359_v43 = vld [vmem:[#allocation8 + $0x88] sm:$0xff]  ;;  %v7362_v7 = vld [vmem:[#allocation8 + $0x98] sm:$0xff] }
 0x4d9   :  { %2439 = vmatprep.subr.mxu0 %v7347_v5  ;;  %2510 = vmatprep.subr.mxu1 %v7350_v11  ;;  %9938 = vst [vmem:[#allocation77_spill] sm:$0xff] %v7359_v43  ;;  %9939 = vst [vmem:[#allocation78_spill] sm:$0xff] %v7362_v7  ;;  %v7365_v5 = vld [vmem:[#allocation8 + $0x80] sm:$0xff]  ;;  %v7368_v11 = vld [vmem:[#allocation8 + $0x90] sm:$0xff] }
 0x4da   :  { %2440 = vmatpush1.msra.mxu0 %v7353_v8  ;;  %2511 = vmatpush1.msra.mxu1 %v7356_v9  ;;  %9940 = vst [vmem:[#allocation79_spill] sm:$0xff] %v7365_v5  ;;  %9941 = vst [vmem:[#allocation80_spill] sm:$0xff] %v7368_v11  ;;  %v7371_v8 = vld [vmem:[#allocation8 + $0x68] sm:$0xff]  ;;  %v7374_v9 = vld [vmem:[#allocation8 + $0x78] sm:$0xff] }
 0x4db   :  { %2441 = vmatprep.subr.mxu0 %v7359_v43  ;;  %2512 = vmatprep.subr.mxu1 %v7362_v7  ;;  %9942 = vst [vmem:[#allocation81_spill] sm:$0xff] %v7371_v8  ;;  %9943 = vst [vmem:[#allocation82_spill] sm:$0xff] %v7374_v9  ;;  %v7377_v43 = vld [vmem:[#allocation8 + $0x60] sm:$0xff]  ;;  %v7380_v7 = vld [vmem:[#allocation8 + $0x70] sm:$0xff] }
 0x4dc   :  { %2442 = vmatpush1.msra.mxu0 %v7365_v5  ;;  %2513 = vmatpush1.msra.mxu1 %v7368_v11  ;;  %9944 = vst [vmem:[#allocation83_spill] sm:$0xff] %v7377_v43  ;;  %9945 = vst [vmem:[#allocation84_spill] sm:$0xff] %v7380_v7  ;;  %v7383_v5 = vld [vmem:[#allocation8 + $0x48] sm:$0xff]  ;;  %v7386_v11 = vld [vmem:[#allocation8 + $0x58] sm:$0xff] }
 0x4dd   :  { %2443 = vmatprep.subr.mxu0 %v7371_v8  ;;  %2514 = vmatprep.subr.mxu1 %v7374_v9  ;;  %9946 = vst [vmem:[#allocation85_spill] sm:$0xff] %v7383_v5  ;;  %9947 = vst [vmem:[#allocation86_spill] sm:$0xff] %v7386_v11  ;;  %v7389_v8 = vld [vmem:[#allocation8 + $0x40] sm:$0xff]  ;;  %v7392_v9 = vld [vmem:[#allocation8 + $0x50] sm:$0xff] }
 0x4de   :  { %2444 = vmatpush1.msra.mxu0 %v7377_v43  ;;  %2515 = vmatpush1.msra.mxu1 %v7380_v7  ;;  %9948 = vst [vmem:[#allocation87_spill] sm:$0xff] %v7389_v8  ;;  %9949 = vst [vmem:[#allocation88_spill] sm:$0xff] %v7392_v9  ;;  %v7395_v43 = vld [vmem:[#allocation8 + $0x28] sm:$0xff]  ;;  %v7398_v7 = vld [vmem:[#allocation8 + $0x38] sm:$0xff] }
 0x4df   :  { %2445 = vmatprep.subr.mxu0 %v7383_v5  ;;  %2516 = vmatprep.subr.mxu1 %v7386_v11  ;;  %9950 = vst [vmem:[#allocation89_spill] sm:$0xff] %v7395_v43  ;;  %9951 = vst [vmem:[#allocation90_spill] sm:$0xff] %v7398_v7  ;;  %v7401_v5 = vld [vmem:[#allocation8 + $0x20] sm:$0xff]  ;;  %v7404_v11 = vld [vmem:[#allocation8 + $0x30] sm:$0xff] }
 0x4e0   :  { %2446 = vmatpush1.msra.mxu0 %v7389_v8  ;;  %2517 = vmatpush1.msra.mxu1 %v7392_v9  ;;  %9952 = vst [vmem:[#allocation91_spill] sm:$0xff] %v7401_v5  ;;  %9953 = vst [vmem:[#allocation92_spill] sm:$0xff] %v7404_v11  ;;  %v7407_v8 = vld [vmem:[#allocation8 + $0x8] sm:$0xff]  ;;  %v7410_v9 = vld [vmem:[#allocation8 + $0x18] sm:$0xff] }
 0x4e1   :  { %2447 = vmatprep.subr.mxu0 %v7395_v43  ;;  %2518 = vmatprep.subr.mxu1 %v7398_v7  ;;  %9954 = vst [vmem:[#allocation93_spill] sm:$0xff] %v7407_v8  ;;  %9955 = vst [vmem:[#allocation94_spill] sm:$0xff] %v7410_v9  ;;  %v7413_v43 = vld [vmem:[#allocation8] sm:$0xff]  ;;  %v7416_v7 = vld [vmem:[#allocation8 + $0x10] sm:$0xff] }
 0x4e2   :  { %2448 = vmatpush1.msra.mxu0 %v7401_v5  ;;  %2519 = vmatpush1.msra.mxu1 %v7404_v11  ;;  %9956 = vst [vmem:[#allocation95_spill] sm:$0xff] %v7413_v43  ;;  %9957 = vst [vmem:[#allocation96_spill] sm:$0xff] %v7416_v7  ;;  %v7421_v11 = vld [vmem:[#allocation7 + $0x1e8] sm:$0xff] }
 0x4e3   :  { %2449 = vmatprep.subr.mxu0 %v7407_v8  ;;  %2520 = vmatprep.subr.mxu1 %v7410_v9  ;;  %9958 = vst [vmem:[#allocation97_spill] sm:$0xff] %v7421_v11  ;;  %v7424_v8 = vld [vmem:[#allocation7 + $0x1f8] sm:$0xff] }
 0x4e4   :  { %2450 = vmatpush1.msra.mxu0 %v7413_v43  ;;  %2521 = vmatpush1.msra.mxu1 %v7416_v7  ;;  %9959 = vst [vmem:[#allocation98_spill] sm:$0xff] %v7424_v8 }
 0x4e5   :  { %2483 = vmatprep.mubr.f32.mxu0 %v9461_v20  ;;  %2554 = vmatprep.mubr.f32.mxu1 %v9461_v20 }
 0x4e6   :  { %2561 = vmatprep.subr.mxu0 %v7421_v11  ;;  %2632 = vmatprep.subr.mxu1 %v7424_v8 }
 0x541   :  { %v1998_v9 = vpop.f32.mrf.mxu0  ;;  %v2069_v5 = vpop.f32.mrf.mxu1 }
 0x543   :  { %v2000_v6 = vpop.f32.mrf.mxu0  ;;  %v2071_v4 = vpop.f32.mrf.mxu1 }
 0x562   :  { %v2140_v43 = vpop.f32.mrf.mxu0  ;;  %v2211_v55 = vpop.f32.mrf.mxu1 }
 0x563   :  { %v2141_v54 = vadd.f32 %v2140_v43, %v1998_v9  ;;  %v2212_v49 = vadd.f32 %v2211_v55, %v2069_v5 }
 0x564   :  { %v2142_v3 = vpop.f32.mrf.mxu0  ;;  %v2213_v62 = vpop.f32.mrf.mxu1 }
 0x565   :  { %v2216_v7 = vadd.f32 %v2141_v54, %v6128_v34  ;;  %v2143_v47 = vadd.f32 %v2142_v3, %v2000_v6  ;;  %v2214_v59 = vadd.f32 %v2213_v62, %v2071_v4  ;;  %v2218_v43 = vadd.f32 %v2212_v49, %v6137_v63 }
 0x567   :  { %v4315_v1 = vmul.f32 -1.442695, %v2216_v7  ;;  %v2217_v0 = vadd.f32 %v2143_v47, %v6130_v38  ;;  %v2219_v8 = vadd.f32 %v2214_v59, %v6134_v52  ;;  %v2245_v47 = vld [vmem:[#allocation3 + $0x80] sm:$0xff] }
 0x569   :  { %4515 = vpow2.f32 %v4315_v1  ;;  %v4316_v11 = vmul.f32 -1.442695, %v2217_v0  ;;  %v4317_v57 = vmul.f32 -1.442695, %v2219_v8  ;;  %v2246_v0 = vld [vmem:[#allocation3 + $0x88] sm:$0xff] }
 0x56b   :  { %4517 = vpow2.f32 %v4316_v11 }
 0x56c   :  { %4519 = vpow2.f32 %v4317_v57 }
 0x576   :  { %v4516_v53 = vpop.eup %4515 }
 0x577   :  { %v2223_v9 = vadd.f32 1.0, %v4516_v53 }
 0x578   :  { %v4518_v10 = vpop.eup %4517 }
 0x579   :  { %4521 = vrcp.f32 %v2223_v9  ;;  %v2229_v3 = vadd.f32 1.0, %v4518_v10  ;;  %v4520_v54 = vpop.eup %4519 }
 0x57a   :  { %4523 = vtanh.f32 %v2218_v43  ;;  %v2236_v8 = vadd.f32 1.0, %v4520_v54  ;;  %v2248_v43 = vld [vmem:[#allocation3 + $0x98] sm:$0xff] }
 0x57b   :  { %4525 = vrcp.f32 %v2229_v3 }
 0x584   :  { %v2315_v1 = vpop.f32.mrf.mxu0  ;;  %v2386_v57 = vpop.f32.mrf.mxu1 }
 0x585   :  { %v2391_v6 = vadd.f32 %v2315_v1, %v2245_v47  ;;  %v2247_v47 = vld [vmem:[#allocation3 + $0x90] sm:$0xff] }
 0x586   :  { %v4522_v62 = vpop.eup %4521  ;;  %v2317_v4 = vpop.f32.mrf.mxu0 }
 0x587   :  { %v4524_v59 = vpop.eup %4523  ;;  %v4318_v55 = vmul.f32 -1.442695, %v2391_v6  ;;  %v2392_v5 = vadd.f32 %v2317_v4, %v2246_v0  ;;  %v2388_v9 = vpop.f32.mrf.mxu1  ;;  %v2393_v6 = vadd.f32 %v2386_v57, %v2247_v47  ;;  %v7450_v57 = vld [vmem:[#allocation7 + $0x1d0] sm:$0xff]  ;;  %v7465_v47 = vld [vmem:[#allocation7 + $0x188] sm:$0xff] }
 0x588   :  { %v4526_v7 = vpop.eup %4525  ;;  %v2240_v49 = vmul.f32 %v4524_v59, %v4522_v62  ;;  %v2394_v3 = vadd.f32 %v2388_v9, %v2248_v43  ;;  %v7456_v43 = vld [vmem:[#allocation7 + $0x1b8] sm:$0xff]  ;;  %v7459_v9 = vld [vmem:[#allocation7 + $0x1a0] sm:$0xff]  ;;  %9962 = vst [vmem:[#allocation101_spill] sm:$0xff] %v7465_v47 }
 0x589   :  { %v2239_v53 = vmul.f32 %v4526_v7, %v6956_v51  ;;  %4527 = vpow2.f32 %v4318_v55  ;;  %v4319_v10 = vmul.f32 -1.442695, %v2392_v5  ;;  %v7435_v5 = vld [vmem:[#allocation7 + $0x1e0] sm:$0xff]  ;;  %v7438_v7 = vld [vmem:[#allocation7 + $0x1f0] sm:$0xff]  ;;  %9960 = vst [vmem:[#allocation99_spill] sm:$0xff] %v7459_v9 }
 0x58a   :  { %v4320_v1 = vmul.f32 -1.442695, %v2394_v3  ;;  %v7462_v3 = vld [vmem:[#allocation7 + $0x1b0] sm:$0xff] }
 0x58b   :  { %4529 = vpow2.f32 %v4319_v10  ;;  %v7432_v11 = vadd.f32 %v2240_v49, %v2239_v53  ;;  %v7444_v49 = vld [vmem:[#allocation7 + $0x1d8] sm:$0xff]  ;;  %v7447_v53 = vld [vmem:[#allocation7 + $0x1c0] sm:$0xff]  ;;  %v7453_v10 = vld [vmem:[#allocation7 + $0x1a8] sm:$0xff]  ;;  %9961 = vst [vmem:[#allocation100_spill] sm:$0xff] %v7462_v3 }
 0x58c   :  { %4531 = vrcp.f32 %v2236_v8  ;;  %v7441_v8 = vld [vmem:[#allocation7 + $0x1c8] sm:$0xff] }
 0x58d   :  { %4533 = vtanh.f32 %v7432_v11 }
 0x58e   :  { %4535 = vpow2.f32 %v4320_v1  ;;  %v7468_v1 = vld [vmem:[#allocation7 + $0x198] sm:$0xff] }
 0x58f   :  { %9963 = vst [vmem:[#allocation102_spill] sm:$0xff] %v7468_v1 }
 0x596   :  { %v4528_v0 = vpop.eup %4527 }
 0x597   :  { %v2398_v54 = vadd.f32 1.0, %v4528_v0  ;;  %v7471_v0 = vld [vmem:[#allocation7 + $0x180] sm:$0xff] }
 0x598   :  { %v4530_v62 = vpop.eup %4529  ;;  %9964 = vst [vmem:[#allocation103_spill] sm:$0xff] %v7471_v0 }
 0x599   :  { %v4532_v51 = vpop.eup %4531  ;;  %4537 = vrcp.f32 %v2398_v54  ;;  %v2404_v4 = vadd.f32 1.0, %v4530_v62  ;;  %v7477_v62 = vld [vmem:[#allocation7 + $0x168] sm:$0xff] }
 0x59a   :  { %v4534_v59 = vpop.eup %4533  ;;  %4539 = vtanh.f32 %v2393_v6  ;;  %v7474_v6 = vld [vmem:[#allocation7 + $0x190] sm:$0xff]  ;;  %9966 = vst [vmem:[#allocation105_spill] sm:$0xff] %v7477_v62 }
 0x59b   :  { %4541 = vrcp.f32 %v2404_v4  ;;  %v2243_v55 = vmul.f32 %v4534_v59, %v4532_v51  ;;  %9965 = vst [vmem:[#allocation104_spill] sm:$0xff] %v7474_v6  ;;  %v4536_v54 = vpop.eup %4535  ;;  %v7480_v51 = vld [vmem:[#allocation7 + $0x178] sm:$0xff]  ;;  %v7483_v59 = vld [vmem:[#allocation7 + $0x160] sm:$0xff] }
 0x59c   :  { %9967 = vst [vmem:[#allocation106_spill] sm:$0xff] %v7480_v51  ;;  %9968 = vst [vmem:[#allocation107_spill] sm:$0xff] %v7483_v59 }
 0x59d   :  { %2484 = vmatmul.mubr.f32.vlgmr.msra.gmra.mxu0 %v2243_v55  ;;  %2555 = vmatmul.mubr.f32.vlgmr.msra.gmra.mxu1 %v2243_v55  ;;  %v7486_v55 = vld [vmem:[#allocation7 + $0x170] sm:$0xff] }
 0x59e   :  { %2562 = vmatpush1.msra.mxu0 %v7435_v5  ;;  %2633 = vmatpush1.msra.mxu1 %v7438_v7  ;;  %9969 = vst [vmem:[#allocation108_spill] sm:$0xff] %v7486_v55 }
 0x59f   :  { %2563 = vmatprep.subr.mxu0 %v7441_v8  ;;  %2634 = vmatprep.subr.mxu1 %v7444_v49 }
 0x5a0   :  { %2564 = vmatpush1.msra.mxu0 %v7447_v53  ;;  %2635 = vmatpush1.msra.mxu1 %v7450_v57 }
 0x5a1   :  { %2565 = vmatprep.subr.mxu0 %v7453_v10  ;;  %2636 = vmatprep.subr.mxu1 %v7456_v43 }
 0x5a2   :  { %2566 = vmatpush1.msra.mxu0 %v7459_v9  ;;  %2637 = vmatpush1.msra.mxu1 %v7462_v3  ;;  %v7502_v9 = vld [vmem:[#allocation7 + $0x128] sm:$0xff] }
 0x5a3   :  { %2567 = vmatprep.subr.mxu0 %v7465_v47  ;;  %2638 = vmatprep.subr.mxu1 %v7468_v1  ;;  %v7492_v1 = vld [vmem:[#allocation7 + $0x158] sm:$0xff]  ;;  %v7495_v47 = vld [vmem:[#allocation7 + $0x140] sm:$0xff] }
 0x5a4   :  { %2568 = vmatpush1.msra.mxu0 %v7471_v0  ;;  %2639 = vmatpush1.msra.mxu1 %v7474_v6  ;;  %v7489_v6 = vld [vmem:[#allocation7 + $0x148] sm:$0xff]  ;;  %9971 = vst [vmem:[#allocation110_spill] sm:$0xff] %v7495_v47 }
 0x5a5   :  { %2569 = vmatprep.subr.mxu0 %v7477_v62  ;;  %2640 = vmatprep.subr.mxu1 %v7480_v51  ;;  %9970 = vst [vmem:[#allocation109_spill] sm:$0xff] %v7489_v6  ;;  %v2411_v51 = vadd.f32 1.0, %v4536_v54  ;;  %v7508_v54 = vld [vmem:[#allocation7 + $0x120] sm:$0xff] }
 0x5a6   :  { %v4538_v4 = vpop.eup %4537  ;;  %2570 = vmatpush1.msra.mxu0 %v7483_v59  ;;  %2641 = vmatpush1.msra.mxu1 %v7486_v55  ;;  %v7498_v59 = vld [vmem:[#allocation7 + $0x150] sm:$0xff] }
 0x5a7   :  { %v4540_v0 = vpop.eup %4539  ;;  %2571 = vmatprep.subr.mxu0 %v7489_v6  ;;  %2642 = vmatprep.subr.mxu1 %v7492_v1  ;;  %9972 = vst [vmem:[#allocation111_spill] sm:$0xff] %v7498_v59  ;;  %v7505_v6 = vld [vmem:[#allocation7 + $0x138] sm:$0xff]  ;;  %4543 = vrcp.f32 %v2411_v51  ;;  %v7538_v51 = vld [vmem:[#allocation7 + $0xf0] sm:$0xff] }
 0x5a8   :  { %v4542_v62 = vpop.eup %4541  ;;  %2572 = vmatpush1.msra.mxu0 %v7495_v47  ;;  %2643 = vmatpush1.msra.mxu1 %v7498_v59  ;;  %v2415_v55 = vmul.f32 %v4540_v0, %v4538_v4  ;;  %v7511_v47 = vld [vmem:[#allocation7 + $0x130] sm:$0xff]  ;;  %v7516_v0 = vld [vmem:[#allocation7 + $0x108] sm:$0xff]  ;;  %9981 = vst [vmem:[#allocation120_spill] sm:$0xff] %v7538_v51 }
 0x5a9   :  { %v2414_v3 = vmul.f32 %v4542_v62, %v6986_v60  ;;  %2573 = vmatprep.subr.mxu0 %v7502_v9  ;;  %2644 = vmatprep.subr.mxu1 %v7505_v6  ;;  %9973 = vst [vmem:[#allocation112_spill] sm:$0xff] %v7511_v47  ;;  %9974 = vst [vmem:[#allocation113_spill] sm:$0xff] %v7516_v0  ;;  %v7519_v60 = vld [vmem:[#allocation7 + $0x118] sm:$0xff]  ;;  %v7522_v62 = vld [vmem:[#allocation7 + $0x100] sm:$0xff] }
 0x5aa   :  { %2574 = vmatpush1.msra.mxu0 %v7508_v54  ;;  %2645 = vmatpush1.msra.mxu1 %v7511_v47  ;;  %9975 = vst [vmem:[#allocation114_spill] sm:$0xff] %v7519_v60  ;;  %9976 = vst [vmem:[#allocation115_spill] sm:$0xff] %v7522_v62  ;;  %v7525_v4 = vld [vmem:[#allocation7 + $0x110] sm:$0xff]  ;;  %v7528_v47 = vld [vmem:[#allocation7 + $0xe8] sm:$0xff] }
 0x5ab   :  { %v7514_v59 = vadd.f32 %v2415_v55, %v2414_v3  ;;  %2575 = vmatprep.subr.mxu0 %v7516_v0  ;;  %2646 = vmatprep.subr.mxu1 %v7519_v60  ;;  %9977 = vst [vmem:[#allocation116_spill] sm:$0xff] %v7525_v4  ;;  %9978 = vst [vmem:[#allocation117_spill] sm:$0xff] %v7528_v47  ;;  %v7531_v3 = vld [vmem:[#allocation7 + $0xf8] sm:$0xff]  ;;  %v7535_v55 = vld [vmem:[#allocation7 + $0xe0] sm:$0xff] }
 0x5ac   :  { %2576 = vmatpush1.msra.mxu0 %v7522_v62  ;;  %2647 = vmatpush1.msra.mxu1 %v7525_v4  ;;  %9979 = vst [vmem:[#allocation118_spill] sm:$0xff] %v7531_v3  ;;  %9980 = vst [vmem:[#allocation119_spill] sm:$0xff] %v7535_v55  ;;  %v7541_v62 = vld [vmem:[#allocation7 + $0xc8] sm:$0xff]  ;;  %v7544_v4 = vld [vmem:[#allocation7 + $0xd8] sm:$0xff] }
 0x5ad   :  { %2577 = vmatprep.subr.mxu0 %v7528_v47  ;;  %2648 = vmatprep.subr.mxu1 %v7531_v3  ;;  %4545 = vtanh.f32 %v7514_v59  ;;  %9982 = vst [vmem:[#allocation121_spill] sm:$0xff] %v7541_v62  ;;  %9983 = vst [vmem:[#allocation122_spill] sm:$0xff] %v7544_v4  ;;  %v7547_v47 = vld [vmem:[#allocation7 + $0xc0] sm:$0xff]  ;;  %v7550_v3 = vld [vmem:[#allocation7 + $0xd0] sm:$0xff] }
 0x5ae   :  { %2578 = vmatpush1.msra.mxu0 %v7535_v55  ;;  %2649 = vmatpush1.msra.mxu1 %v7538_v51  ;;  %9984 = vst [vmem:[#allocation123_spill] sm:$0xff] %v7547_v47  ;;  %9985 = vst [vmem:[#allocation124_spill] sm:$0xff] %v7550_v3  ;;  %v7553_v55 = vld [vmem:[#allocation7 + $0xa8] sm:$0xff]  ;;  %v7556_v51 = vld [vmem:[#allocation7 + $0xb8] sm:$0xff] }
 0x5af   :  { %2579 = vmatprep.subr.mxu0 %v7541_v62  ;;  %2650 = vmatprep.subr.mxu1 %v7544_v4  ;;  %9986 = vst [vmem:[#allocation125_spill] sm:$0xff] %v7553_v55  ;;  %9987 = vst [vmem:[#allocation126_spill] sm:$0xff] %v7556_v51  ;;  %v7559_v62 = vld [vmem:[#allocation7 + $0xa0] sm:$0xff]  ;;  %v7562_v4 = vld [vmem:[#allocation7 + $0xb0] sm:$0xff] }
 0x5b0   :  { %2580 = vmatpush1.msra.mxu0 %v7547_v47  ;;  %2651 = vmatpush1.msra.mxu1 %v7550_v3  ;;  %9988 = vst [vmem:[#allocation127_spill] sm:$0xff] %v7559_v62  ;;  %9989 = vst [vmem:[#allocation128_spill] sm:$0xff] %v7562_v4  ;;  %v7565_v47 = vld [vmem:[#allocation7 + $0x88] sm:$0xff]  ;;  %v7568_v3 = vld [vmem:[#allocation7 + $0x98] sm:$0xff] }
 0x5b1   :  { %2581 = vmatprep.subr.mxu0 %v7553_v55  ;;  %2652 = vmatprep.subr.mxu1 %v7556_v51  ;;  %9990 = vst [vmem:[#allocation129_spill] sm:$0xff] %v7565_v47  ;;  %9991 = vst [vmem:[#allocation130_spill] sm:$0xff] %v7568_v3  ;;  %v7571_v55 = vld [vmem:[#allocation7 + $0x80] sm:$0xff]  ;;  %v7574_v51 = vld [vmem:[#allocation7 + $0x90] sm:$0xff] }
 0x5b2   :  { %2582 = vmatpush1.msra.mxu0 %v7559_v62  ;;  %2653 = vmatpush1.msra.mxu1 %v7562_v4  ;;  %9992 = vst [vmem:[#allocation131_spill] sm:$0xff] %v7571_v55  ;;  %9993 = vst [vmem:[#allocation132_spill] sm:$0xff] %v7574_v51  ;;  %v7577_v62 = vld [vmem:[#allocation7 + $0x68] sm:$0xff]  ;;  %v7580_v4 = vld [vmem:[#allocation7 + $0x78] sm:$0xff] }
 0x5b3   :  { %2583 = vmatprep.subr.mxu0 %v7565_v47  ;;  %2654 = vmatprep.subr.mxu1 %v7568_v3  ;;  %9994 = vst [vmem:[#allocation133_spill] sm:$0xff] %v7577_v62  ;;  %9995 = vst [vmem:[#allocation134_spill] sm:$0xff] %v7580_v4  ;;  %v7583_v47 = vld [vmem:[#allocation7 + $0x60] sm:$0xff]  ;;  %v7586_v3 = vld [vmem:[#allocation7 + $0x70] sm:$0xff] }
 0x5b4   :  { %2584 = vmatpush1.msra.mxu0 %v7571_v55  ;;  %2655 = vmatpush1.msra.mxu1 %v7574_v51  ;;  %9996 = vst [vmem:[#allocation135_spill] sm:$0xff] %v7583_v47  ;;  %9997 = vst [vmem:[#allocation136_spill] sm:$0xff] %v7586_v3  ;;  %v7589_v55 = vld [vmem:[#allocation7 + $0x48] sm:$0xff]  ;;  %v7592_v51 = vld [vmem:[#allocation7 + $0x58] sm:$0xff] }
 0x5b5   :  { %2585 = vmatprep.subr.mxu0 %v7577_v62  ;;  %2656 = vmatprep.subr.mxu1 %v7580_v4  ;;  %9998 = vst [vmem:[#allocation137_spill] sm:$0xff] %v7589_v55  ;;  %9999 = vst [vmem:[#allocation138_spill] sm:$0xff] %v7592_v51  ;;  %v7595_v62 = vld [vmem:[#allocation7 + $0x40] sm:$0xff]  ;;  %v7598_v4 = vld [vmem:[#allocation7 + $0x50] sm:$0xff] }
 0x5b6   :  { %2586 = vmatpush1.msra.mxu0 %v7583_v47  ;;  %2657 = vmatpush1.msra.mxu1 %v7586_v3  ;;  %10000 = vst [vmem:[#allocation139_spill] sm:$0xff] %v7595_v62  ;;  %10001 = vst [vmem:[#allocation140_spill] sm:$0xff] %v7598_v4  ;;  %v4544_v47 = vpop.eup %4543  ;;  %v7601_v60 = vld [vmem:[#allocation7 + $0x28] sm:$0xff]  ;;  %v7604_v3 = vld [vmem:[#allocation7 + $0x38] sm:$0xff] }
 0x5b7   :  { %2587 = vmatprep.subr.mxu0 %v7589_v55  ;;  %2658 = vmatprep.subr.mxu1 %v7592_v51  ;;  %10002 = vst [vmem:[#allocation141_spill] sm:$0xff] %v7601_v60  ;;  %10003 = vst [vmem:[#allocation142_spill] sm:$0xff] %v7604_v3  ;;  %v7607_v0 = vld [vmem:[#allocation7 + $0x20] sm:$0xff]  ;;  %v7610_v51 = vld [vmem:[#allocation7 + $0x30] sm:$0xff] }
 0x5b8   :  { %2588 = vmatpush1.msra.mxu0 %v7595_v62  ;;  %2659 = vmatpush1.msra.mxu1 %v7598_v4  ;;  %10004 = vst [vmem:[#allocation143_spill] sm:$0xff] %v7607_v0  ;;  %v7613_v62 = vld [vmem:[#allocation7 + $0x8] sm:$0xff]  ;;  %v7616_v4 = vld [vmem:[#allocation7 + $0x18] sm:$0xff] }
 0x5b9   :  { %2589 = vmatprep.subr.mxu0 %v7601_v60  ;;  %2660 = vmatprep.subr.mxu1 %v7604_v3  ;;  %v7621_v3 = vld [vmem:[#allocation7] sm:$0xff] }
 0x5ba   :  { %v4546_v55 = vpop.eup %4545  ;;  %2590 = vmatpush1.msra.mxu0 %v7607_v0  ;;  %2661 = vmatpush1.msra.mxu1 %v7610_v51  ;;  %v7625_v0 = vld [vmem:[#allocation7 + $0x10] sm:$0xff] }
 0x5bb   :  { %2591 = vmatprep.subr.mxu0 %v7613_v62  ;;  %2662 = vmatprep.subr.mxu1 %v7616_v4  ;;  %v7619_v60 = vmul.f32 %v4546_v55, %v4544_v47  ;;  %v10042_v47 = vld [vmem:[#allocation44_spill] sm:$0xff]  ;;  %v10044_v55 = vld [vmem:[#allocation45_spill] sm:$0xff] }
 0x5bc   :  { %2592 = vmatpush1.msra.mxu0 %v7621_v3  ;;  %2625 = vmatprep.mubr.f32.mxu0 %v9461_v20 }
 0x5bd   :  { %2663 = vmatpush1.msra.mxu1 %v7625_v0  ;;  %2696 = vmatprep.mubr.f32.mxu1 %v9461_v20 }
 0x5be   :  { %2626 = vmatmul.mubr.f32.vlgmr.msra.gmra.mxu0 %v7619_v60  ;;  %2697 = vmatmul.mubr.f32.vlgmr.msra.gmra.mxu1 %v7619_v60 }
 0x5bf   :  { %2736 = vmatprep.subr.mxu0 %v7031_v39  ;;  %2807 = vmatprep.subr.mxu1 %v7034_v28  ;;  %v10005_v39 = vld [vmem:[#allocation151_spill] sm:$0xff]  ;;  %v10006_v28 = vld [vmem:[#allocation152_spill] sm:$0xff] }
 0x5c0   :  { %2737 = vmatpush1.msra.mxu0 %v7037_v36  ;;  %2808 = vmatpush1.msra.mxu1 %v7040_v33  ;;  %v10007_v36 = vld [vmem:[#allocation153_spill] sm:$0xff]  ;;  %v10008_v33 = vld [vmem:[#allocation154_spill] sm:$0xff] }
 0x5c1   :  { %2738 = vmatprep.subr.mxu0 %v7043_v29  ;;  %2809 = vmatprep.subr.mxu1 %v7046_v13  ;;  %v10009_v29 = vld [vmem:[#allocation155_spill] sm:$0xff]  ;;  %v10010_v13 = vld [vmem:[#allocation156_spill] sm:$0xff] }
 0x5c2   :  { %2739 = vmatpush1.msra.mxu0 %v7049_v41  ;;  %2810 = vmatpush1.msra.mxu1 %v7052_v42  ;;  %v10011_v41 = vld [vmem:[#allocation157_spill] sm:$0xff]  ;;  %v10012_v42 = vld [vmem:[#allocation18_spill] sm:$0xff] }
 0x5c3   :  { %2740 = vmatprep.subr.mxu0 %v7055_v26  ;;  %2811 = vmatprep.subr.mxu1 %v7058_v24  ;;  %v10013_v26 = vld [vmem:[#allocation13_spill] sm:$0xff]  ;;  %v10014_v24 = vld [vmem:[#allocation20_spill] sm:$0xff] }
 0x5c4   :  { %2741 = vmatpush1.msra.mxu0 %v7061_v25  ;;  %2812 = vmatpush1.msra.mxu1 %v7064_v23  ;;  %v10015_v25 = vld [vmem:[#allocation14_spill] sm:$0xff] }
 0x5c5   :  { %2742 = vmatprep.subr.mxu0 %v7067_v12  ;;  %2813 = vmatprep.subr.mxu1 %v7070_v37  ;;  %v10016_v23 = vld [vmem:[#allocation22_spill] sm:$0xff]  ;;  %v10017_v12 = vld [vmem:[#allocation15_spill] sm:$0xff]  ;;  %v10018_v37 = vld [vmem:[#allocation24_spill] sm:$0xff] }
 0x5c6   :  { %2743 = vmatpush1.msra.mxu0 %v7073_v14  ;;  %2814 = vmatpush1.msra.mxu1 %v7076_v15  ;;  %v10019_v14 = vld [vmem:[#allocation16_spill] sm:$0xff]  ;;  %v10020_v15 = vld [vmem:[#allocation25_spill] sm:$0xff] }
 0x5c7   :  { %2744 = vmatprep.subr.mxu0 %v7079_v16  ;;  %2815 = vmatprep.subr.mxu1 %v7082_v17  ;;  %v10021_v16 = vld [vmem:[#allocation17_spill] sm:$0xff]  ;;  %v10022_v17 = vld [vmem:[#allocation26_spill] sm:$0xff] }
 0x5c8   :  { %2745 = vmatpush1.msra.mxu0 %v7085_v18  ;;  %2816 = vmatpush1.msra.mxu1 %v7088_v19  ;;  %v10023_v18 = vld [vmem:[#allocation19_spill] sm:$0xff]  ;;  %v10024_v19 = vld [vmem:[#allocation28_spill] sm:$0xff] }
 0x5c9   :  { %2746 = vmatprep.subr.mxu0 %v7091_v21  ;;  %2817 = vmatprep.subr.mxu1 %v7094_v22  ;;  %v10025_v21 = vld [vmem:[#allocation21_spill] sm:$0xff]  ;;  %v10026_v22 = vld [vmem:[#allocation30_spill] sm:$0xff] }
 0x5ca   :  { %2747 = vmatpush1.msra.mxu0 %v7097_v31  ;;  %2818 = vmatpush1.msra.mxu1 %v7100_v30  ;;  %v10027_v31 = vld [vmem:[#allocation23_spill] sm:$0xff]  ;;  %v10028_v30 = vld [vmem:[#allocation32_spill] sm:$0xff] }
 0x5cb   :  { %2748 = vmatprep.subr.mxu0 %v7103_v32  ;;  %2819 = vmatprep.subr.mxu1 %v7106_v45  ;;  %v10029_v32 = vld [vmem:[#allocation27_spill] sm:$0xff]  ;;  %v10030_v45 = vld [vmem:[#allocation34_spill] sm:$0xff] }
 0x5cc   :  { %2749 = vmatpush1.msra.mxu0 %v7109_v46  ;;  %2820 = vmatpush1.msra.mxu1 %v7112_v27  ;;  %v10031_v46 = vld [vmem:[#allocation29_spill] sm:$0xff]  ;;  %v10032_v27 = vld [vmem:[#allocation35_spill] sm:$0xff] }
 0x5cd   :  { %2750 = vmatprep.subr.mxu0 %v7115_v44  ;;  %2821 = vmatprep.subr.mxu1 %v7118_v40  ;;  %v10033_v44 = vld [vmem:[#allocation31_spill] sm:$0xff]  ;;  %v10034_v40 = vld [vmem:[#allocation37_spill] sm:$0xff] }
 0x5ce   :  { %2751 = vmatpush1.msra.mxu0 %v7121_v35  ;;  %2822 = vmatpush1.msra.mxu1 %v7124_v48  ;;  %v10035_v35 = vld [vmem:[#allocation33_spill] sm:$0xff]  ;;  %v10036_v48 = vld [vmem:[#allocation39_spill] sm:$0xff] }
 0x5cf   :  { %2752 = vmatprep.subr.mxu0 %v7127_v50  ;;  %2823 = vmatprep.subr.mxu1 %v7130_v56  ;;  %v10037_v50 = vld [vmem:[#allocation36_spill] sm:$0xff]  ;;  %v10038_v56 = vld [vmem:[#allocation41_spill] sm:$0xff] }
 0x5d0   :  { %2753 = vmatpush1.msra.mxu0 %v7133_v58  ;;  %2824 = vmatpush1.msra.mxu1 %v7136_v61  ;;  %v10039_v58 = vld [vmem:[#allocation38_spill] sm:$0xff]  ;;  %v10040_v61 = vld [vmem:[#allocation43_spill] sm:$0xff] }
 0x5d1   :  { %2754 = vmatprep.subr.mxu0 %v7139_v2  ;;  %2825 = vmatprep.subr.mxu1 %v10005_v39  ;;  %v10041_v2 = vld [vmem:[#allocation40_spill] sm:$0xff]  ;;  %v10045_v39 = vld [vmem:[#allocation46_spill] sm:$0xff] }
 0x5d2   :  { %2755 = vmatpush1.msra.mxu0 %v10006_v28  ;;  %2826 = vmatpush1.msra.mxu1 %v10007_v36  ;;  %v10046_v28 = vld [vmem:[#allocation47_spill] sm:$0xff]  ;;  %v10047_v36 = vld [vmem:[#allocation48_spill] sm:$0xff] }
 0x5d3   :  { %2756 = vmatprep.subr.mxu0 %v10008_v33  ;;  %2827 = vmatprep.subr.mxu1 %v10009_v29  ;;  %v10048_v33 = vld [vmem:[#allocation49_spill] sm:$0xff]  ;;  %v10049_v29 = vld [vmem:[#allocation50_spill] sm:$0xff] }
 0x5d4   :  { %2757 = vmatpush1.msra.mxu0 %v10010_v13  ;;  %2828 = vmatpush1.msra.mxu1 %v10011_v41  ;;  %v10050_v13 = vld [vmem:[#allocation51_spill] sm:$0xff]  ;;  %v10051_v41 = vld [vmem:[#allocation52_spill] sm:$0xff] }
 0x5d5   :  { %2758 = vmatprep.subr.mxu0 %v10012_v42  ;;  %2829 = vmatprep.subr.mxu1 %v10013_v26  ;;  %v10052_v42 = vld [vmem:[#allocation53_spill] sm:$0xff]  ;;  %v10053_v26 = vld [vmem:[#allocation54_spill] sm:$0xff] }
 0x5d6   :  { %2759 = vmatpush1.msra.mxu0 %v10014_v24  ;;  %2830 = vmatpush1.msra.mxu1 %v10015_v25  ;;  %v10054_v24 = vld [vmem:[#allocation55_spill] sm:$0xff]  ;;  %v10055_v25 = vld [vmem:[#allocation56_spill] sm:$0xff] }
 0x5d7   :  { %2760 = vmatprep.subr.mxu0 %v10016_v23  ;;  %2831 = vmatprep.subr.mxu1 %v10017_v12  ;;  %v10056_v23 = vld [vmem:[#allocation57_spill] sm:$0xff]  ;;  %v10057_v12 = vld [vmem:[#allocation58_spill] sm:$0xff] }
 0x5d8   :  { %2761 = vmatpush1.msra.mxu0 %v10018_v37  ;;  %2832 = vmatpush1.msra.mxu1 %v10019_v14  ;;  %v10058_v37 = vld [vmem:[#allocation59_spill] sm:$0xff]  ;;  %v10059_v14 = vld [vmem:[#allocation60_spill] sm:$0xff] }
 0x5d9   :  { %2762 = vmatprep.subr.mxu0 %v10020_v15  ;;  %2833 = vmatprep.subr.mxu1 %v10021_v16  ;;  %v10060_v15 = vld [vmem:[#allocation61_spill] sm:$0xff]  ;;  %v10061_v16 = vld [vmem:[#allocation62_spill] sm:$0xff] }
 0x5da   :  { %2763 = vmatpush1.msra.mxu0 %v10022_v17  ;;  %2834 = vmatpush1.msra.mxu1 %v10023_v18  ;;  %v10062_v17 = vld [vmem:[#allocation63_spill] sm:$0xff]  ;;  %v10063_v18 = vld [vmem:[#allocation64_spill] sm:$0xff] }
 0x5db   :  { %2764 = vmatprep.subr.mxu0 %v10024_v19  ;;  %2835 = vmatprep.subr.mxu1 %v10025_v21  ;;  %v10064_v19 = vld [vmem:[#allocation65_spill] sm:$0xff]  ;;  %v10065_v21 = vld [vmem:[#allocation66_spill] sm:$0xff] }
 0x5dc   :  { %2765 = vmatpush1.msra.mxu0 %v10026_v22  ;;  %2836 = vmatpush1.msra.mxu1 %v10027_v31  ;;  %v10066_v22 = vld [vmem:[#allocation67_spill] sm:$0xff]  ;;  %v10067_v31 = vld [vmem:[#allocation68_spill] sm:$0xff] }
 0x5dd   :  { %2766 = vmatprep.subr.mxu0 %v10028_v30  ;;  %2837 = vmatprep.subr.mxu1 %v10029_v32  ;;  %v10068_v30 = vld [vmem:[#allocation69_spill] sm:$0xff]  ;;  %v10069_v32 = vld [vmem:[#allocation70_spill] sm:$0xff] }
 0x5de   :  { %2767 = vmatpush1.msra.mxu0 %v10030_v45  ;;  %2800 = vmatprep.mubr.f32.mxu0 %v9461_v20  ;;  %v10070_v45 = vld [vmem:[#allocation71_spill] sm:$0xff] }
 0x5df   :  { %2838 = vmatpush1.msra.mxu1 %v10031_v46  ;;  %2871 = vmatprep.mubr.f32.mxu1 %v9461_v20  ;;  %v10071_v46 = vld [vmem:[#allocation72_spill] sm:$0xff] }
 0x5e0   :  { %2801 = vmatmul.mubr.f32.vlgmr.msra.gmra.mxu0 %v7619_v60  ;;  %2872 = vmatmul.mubr.f32.vlgmr.msra.gmra.mxu1 %v7619_v60  ;;  %v10043_v60 = vld [vmem:[#allocation42_spill] sm:$0xff] }
 0x5e1   :  { %2906 = vmatprep.subr.mxu0 %v10032_v27  ;;  %2977 = vmatprep.subr.mxu1 %v10033_v44  ;;  %v10072_v27 = vld [vmem:[#allocation73_spill] sm:$0xff]  ;;  %v10073_v44 = vld [vmem:[#allocation74_spill] sm:$0xff] }
 0x5e2   :  { %2907 = vmatpush1.msra.mxu0 %v10034_v40  ;;  %2978 = vmatpush1.msra.mxu1 %v10035_v35  ;;  %v10074_v40 = vld [vmem:[#allocation75_spill] sm:$0xff]  ;;  %v10075_v35 = vld [vmem:[#allocation76_spill] sm:$0xff] }
 0x5e3   :  { %2908 = vmatprep.subr.mxu0 %v10036_v48  ;;  %2979 = vmatprep.subr.mxu1 %v10037_v50  ;;  %v10076_v48 = vld [vmem:[#allocation77_spill] sm:$0xff]  ;;  %v10077_v50 = vld [vmem:[#allocation78_spill] sm:$0xff] }
 0x5e4   :  { %2909 = vmatpush1.msra.mxu0 %v10038_v56  ;;  %2980 = vmatpush1.msra.mxu1 %v10039_v58  ;;  %v10078_v56 = vld [vmem:[#allocation79_spill] sm:$0xff]  ;;  %v10079_v58 = vld [vmem:[#allocation80_spill] sm:$0xff] }
 0x5e5   :  { %2910 = vmatprep.subr.mxu0 %v10040_v61  ;;  %2981 = vmatprep.subr.mxu1 %v10041_v2  ;;  %v10080_v61 = vld [vmem:[#allocation81_spill] sm:$0xff]  ;;  %v10081_v2 = vld [vmem:[#allocation82_spill] sm:$0xff] }
 0x5e6   :  { %2911 = vmatpush1.msra.mxu0 %v10042_v47  ;;  %2982 = vmatpush1.msra.mxu1 %v10043_v60  ;;  %v10082_v47 = vld [vmem:[#allocation83_spill] sm:$0xff]  ;;  %v10083_v60 = vld [vmem:[#allocation84_spill] sm:$0xff] }
 0x5e7   :  { %2912 = vmatprep.subr.mxu0 %v10044_v55  ;;  %2983 = vmatprep.subr.mxu1 %v10045_v39  ;;  %v10084_v55 = vld [vmem:[#allocation85_spill] sm:$0xff]  ;;  %v10085_v39 = vld [vmem:[#allocation86_spill] sm:$0xff] }
 0x5e8   :  { %2913 = vmatpush1.msra.mxu0 %v10046_v28  ;;  %2984 = vmatpush1.msra.mxu1 %v10047_v36  ;;  %v10086_v28 = vld [vmem:[#allocation87_spill] sm:$0xff]  ;;  %v10087_v36 = vld [vmem:[#allocation88_spill] sm:$0xff] }
 0x5e9   :  { %2914 = vmatprep.subr.mxu0 %v10048_v33  ;;  %2985 = vmatprep.subr.mxu1 %v10049_v29  ;;  %v10088_v33 = vld [vmem:[#allocation89_spill] sm:$0xff]  ;;  %v10089_v29 = vld [vmem:[#allocation90_spill] sm:$0xff] }
 0x5ea   :  { %2915 = vmatpush1.msra.mxu0 %v10050_v13  ;;  %2986 = vmatpush1.msra.mxu1 %v10051_v41  ;;  %v10090_v13 = vld [vmem:[#allocation91_spill] sm:$0xff]  ;;  %v10091_v41 = vld [vmem:[#allocation92_spill] sm:$0xff] }
 0x5eb   :  { %2916 = vmatprep.subr.mxu0 %v10052_v42  ;;  %2987 = vmatprep.subr.mxu1 %v10053_v26  ;;  %v10092_v42 = vld [vmem:[#allocation93_spill] sm:$0xff]  ;;  %v10093_v26 = vld [vmem:[#allocation94_spill] sm:$0xff] }
 0x5ec   :  { %2917 = vmatpush1.msra.mxu0 %v10054_v24  ;;  %2988 = vmatpush1.msra.mxu1 %v10055_v25  ;;  %v10094_v24 = vld [vmem:[#allocation95_spill] sm:$0xff]  ;;  %v10095_v25 = vld [vmem:[#allocation96_spill] sm:$0xff] }
 0x5ed   :  { %2918 = vmatprep.subr.mxu0 %v10056_v23  ;;  %2989 = vmatprep.subr.mxu1 %v10057_v12  ;;  %v10096_v23 = vld [vmem:[#allocation97_spill] sm:$0xff]  ;;  %v10097_v12 = vld [vmem:[#allocation98_spill] sm:$0xff] }
 0x5ee   :  { %2919 = vmatpush1.msra.mxu0 %v10058_v37  ;;  %2990 = vmatpush1.msra.mxu1 %v10059_v14 }
 0x5ef   :  { %2920 = vmatprep.subr.mxu0 %v10060_v15  ;;  %2991 = vmatprep.subr.mxu1 %v10061_v16 }
 0x5f0   :  { %2921 = vmatpush1.msra.mxu0 %v10062_v17  ;;  %2992 = vmatpush1.msra.mxu1 %v10063_v18 }
 0x5f1   :  { %2922 = vmatprep.subr.mxu0 %v10064_v19  ;;  %2993 = vmatprep.subr.mxu1 %v10065_v21 }
 0x5f2   :  { %2923 = vmatpush1.msra.mxu0 %v10066_v22  ;;  %2994 = vmatpush1.msra.mxu1 %v10067_v31 }
 0x5f3   :  { %2924 = vmatprep.subr.mxu0 %v10068_v30  ;;  %2995 = vmatprep.subr.mxu1 %v10069_v32 }
 0x5f4   :  { %2925 = vmatpush1.msra.mxu0 %v10070_v45  ;;  %2996 = vmatpush1.msra.mxu1 %v10071_v46 }
 0x5f5   :  { %2926 = vmatprep.subr.mxu0 %v10072_v27  ;;  %2997 = vmatprep.subr.mxu1 %v10073_v44 }
 0x5f6   :  { %2927 = vmatpush1.msra.mxu0 %v10074_v40  ;;  %2998 = vmatpush1.msra.mxu1 %v10075_v35 }
 0x5f7   :  { %2928 = vmatprep.subr.mxu0 %v10076_v48  ;;  %2999 = vmatprep.subr.mxu1 %v10077_v50 }
 0x5f8   :  { %2929 = vmatpush1.msra.mxu0 %v10078_v56  ;;  %3000 = vmatpush1.msra.mxu1 %v10079_v58 }
 0x5f9   :  { %2930 = vmatprep.subr.mxu0 %v10080_v61  ;;  %3001 = vmatprep.subr.mxu1 %v10081_v2  ;;  %v2732_v2 = vld [vmem:[#allocation3 + $0xa0] sm:$0xff] }
 0x5fa   :  { %2931 = vmatpush1.msra.mxu0 %v10082_v47  ;;  %3002 = vmatpush1.msra.mxu1 %v10083_v60  ;;  %v2733_v60 = vld [vmem:[#allocation3 + $0xa8] sm:$0xff] }
 0x5fb   :  { %2932 = vmatprep.subr.mxu0 %v10084_v55  ;;  %3003 = vmatprep.subr.mxu1 %v10085_v39 }
 0x5fc   :  { %2933 = vmatpush1.msra.mxu0 %v10086_v28  ;;  %3004 = vmatpush1.msra.mxu1 %v10087_v36 }
 0x5fd   :  { %2934 = vmatprep.subr.mxu0 %v10088_v33  ;;  %3005 = vmatprep.subr.mxu1 %v10089_v29 }
 0x5fe   :  { %2935 = vmatpush1.msra.mxu0 %v10090_v13  ;;  %3006 = vmatpush1.msra.mxu1 %v10091_v41 }
 0x5ff   :  { %2936 = vmatprep.subr.mxu0 %v10092_v42  ;;  %3007 = vmatprep.subr.mxu1 %v10093_v26 }
 0x600   :  { %2937 = vmatpush1.msra.mxu0 %v10094_v24  ;;  %3008 = vmatpush1.msra.mxu1 %v10095_v25 }
 0x601   :  { %2970 = vmatprep.mubr.f32.mxu0 %v9461_v20  ;;  %3041 = vmatprep.mubr.f32.mxu1 %v9461_v20 }
 0x602   :  { %3048 = vmatprep.subr.mxu0 %v10096_v23  ;;  %3119 = vmatprep.subr.mxu1 %v10097_v12 }
 0x65d   :  { %v2485_v37 = vpop.f32.mrf.mxu0  ;;  %v2556_v14 = vpop.f32.mrf.mxu1 }
 0x65f   :  { %v2487_v15 = vpop.f32.mrf.mxu0  ;;  %v2558_v17 = vpop.f32.mrf.mxu1 }
 0x67e   :  { %v2627_v16 = vpop.f32.mrf.mxu0  ;;  %v2698_v22 = vpop.f32.mrf.mxu1 }
 0x67f   :  { %v2628_v18 = vadd.f32 %v2627_v16, %v2485_v37  ;;  %v2699_v40 = vadd.f32 %v2698_v22, %v2556_v14  ;;  %v2735_v37 = vld [vmem:[#allocation3 + $0xb8] sm:$0xff]  ;;  %v2734_v16 = vld [vmem:[#allocation3 + $0xb0] sm:$0xff] }
 0x680   :  { %v2629_v19 = vpop.f32.mrf.mxu0  ;;  %v2700_v46 = vpop.f32.mrf.mxu1 }
 0x681   :  { %v2703_v21 = vadd.f32 %v2628_v18, %v6128_v34  ;;  %v2630_v31 = vadd.f32 %v2629_v19, %v2487_v15  ;;  %v2701_v27 = vadd.f32 %v2700_v46, %v2558_v17  ;;  %v2705_v50 = vadd.f32 %v2699_v40, %v6137_v63  ;;  %v10099_v46 = vld [vmem:[#allocation100_spill] sm:$0xff] }
 0x683   :  { %v4321_v30 = vmul.f32 -1.442695, %v2703_v21  ;;  %v2704_v32 = vadd.f32 %v2630_v31, %v6130_v38  ;;  %v2706_v44 = vadd.f32 %v2701_v27, %v6134_v52  ;;  %v10100_v27 = vld [vmem:[#allocation101_spill] sm:$0xff] }
 0x685   :  { %4547 = vpow2.f32 %v4321_v30  ;;  %v4322_v45 = vmul.f32 -1.442695, %v2704_v32  ;;  %v4323_v35 = vmul.f32 -1.442695, %v2706_v44  ;;  %v10106_v44 = vld [vmem:[#allocation107_spill] sm:$0xff] }
 0x687   :  { %4549 = vpow2.f32 %v4322_v45  ;;  %v10098_v45 = vld [vmem:[#allocation99_spill] sm:$0xff] }
 0x688   :  { %4551 = vpow2.f32 %v4323_v35  ;;  %v10108_v35 = vld [vmem:[#allocation109_spill] sm:$0xff] }
 0x692   :  { %v4548_v48 = vpop.eup %4547 }
 0x693   :  { %v2710_v56 = vadd.f32 1.0, %v4548_v48 }
 0x694   :  { %v4550_v58 = vpop.eup %4549 }
 0x695   :  { %4553 = vrcp.f32 %v2710_v56  ;;  %v2716_v61 = vadd.f32 1.0, %v4550_v58  ;;  %v4552_v55 = vpop.eup %4551  ;;  %v10109_v56 = vld [vmem:[#allocation110_spill] sm:$0xff]  ;;  %v10110_v58 = vld [vmem:[#allocation111_spill] sm:$0xff] }
 0x696   :  { %4555 = vtanh.f32 %v2705_v50  ;;  %v2723_v42 = vadd.f32 1.0, %v4552_v55  ;;  %v10113_v55 = vld [vmem:[#allocation114_spill] sm:$0xff] }
 0x697   :  { %4557 = vrcp.f32 %v2716_v61 }
 0x6a0   :  { %v2802_v47 = vpop.f32.mrf.mxu0  ;;  %v2873_v25 = vpop.f32.mrf.mxu1 }
 0x6a1   :  { %v2878_v39 = vadd.f32 %v2802_v47, %v2732_v2  ;;  %v2880_v19 = vadd.f32 %v2873_v25, %v2734_v16  ;;  %v10111_v47 = vld [vmem:[#allocation112_spill] sm:$0xff]  ;;  %v10128_v25 = vld [vmem:[#allocation129_spill] sm:$0xff]  ;;  %v10133_v16 = vld [vmem:[#allocation134_spill] sm:$0xff] }
 0x6a2   :  { %v4554_v28 = vpop.eup %4553  ;;  %v2804_v36 = vpop.f32.mrf.mxu0 }
 0x6a3   :  { %v4556_v33 = vpop.eup %4555  ;;  %v4324_v29 = vmul.f32 -1.442695, %v2878_v39  ;;  %v2879_v13 = vadd.f32 %v2804_v36, %v2733_v60  ;;  %v2875_v14 = vpop.f32.mrf.mxu1  ;;  %v10114_v39 = vld [vmem:[#allocation115_spill] sm:$0xff]  ;;  %v10120_v36 = vld [vmem:[#allocation121_spill] sm:$0xff] }
 0x6a4   :  { %v4558_v41 = vpop.eup %4557  ;;  %v2727_v26 = vmul.f32 %v4556_v33, %v4554_v28  ;;  %v2881_v15 = vadd.f32 %v2875_v14, %v2735_v37  ;;  %v10115_v28 = vld [vmem:[#allocation116_spill] sm:$0xff]  ;;  %v10121_v33 = vld [vmem:[#allocation122_spill] sm:$0xff]  ;;  %v10130_v37 = vld [vmem:[#allocation131_spill] sm:$0xff] }
 0x6a5   :  { %v2726_v24 = vmul.f32 %v4558_v41, %v7432_v11  ;;  %4559 = vpow2.f32 %v4324_v29  ;;  %v4325_v23 = vmul.f32 -1.442695, %v2879_v13  ;;  %v10122_v29 = vld [vmem:[#allocation123_spill] sm:$0xff]  ;;  %v10123_v13 = vld [vmem:[#allocation124_spill] sm:$0xff]  ;;  %v10124_v41 = vld [vmem:[#allocation125_spill] sm:$0xff] }
 0x6a6   :  { %v4326_v17 = vmul.f32 -1.442695, %v2881_v15  ;;  %v10131_v14 = vld [vmem:[#allocation132_spill] sm:$0xff]  ;;  %v10132_v15 = vld [vmem:[#allocation133_spill] sm:$0xff] }
 0x6a7   :  { %4561 = vpow2.f32 %v4325_v23  ;;  %v7772_v12 = vadd.f32 %v2727_v26, %v2726_v24  ;;  %v10126_v26 = vld [vmem:[#allocation127_spill] sm:$0xff]  ;;  %v10127_v24 = vld [vmem:[#allocation128_spill] sm:$0xff]  ;;  %v10129_v23 = vld [vmem:[#allocation130_spill] sm:$0xff] }
 0x6a8   :  { %4563 = vrcp.f32 %v2723_v42  ;;  %v10125_v42 = vld [vmem:[#allocation126_spill] sm:$0xff] }
 0x6a9   :  { %4565 = vtanh.f32 %v7772_v12 }
 0x6aa   :  { %4567 = vpow2.f32 %v4326_v17  ;;  %v10134_v17 = vld [vmem:[#allocation135_spill] sm:$0xff] }
 0x6b2   :  { %v4560_v18 = vpop.eup %4559 }
 0x6b3   :  { %v2885_v21 = vadd.f32 1.0, %v4560_v18  ;;  %v10135_v18 = vld [vmem:[#allocation136_spill] sm:$0xff] }
 0x6b4   :  { %v4562_v22 = vpop.eup %4561 }
 0x6b5   :  { %v4564_v11 = vpop.eup %4563  ;;  %4569 = vrcp.f32 %v2885_v21  ;;  %v2891_v31 = vadd.f32 1.0, %v4562_v22  ;;  %v10137_v21 = vld [vmem:[#allocation138_spill] sm:$0xff]  ;;  %v10138_v22 = vld [vmem:[#allocation139_spill] sm:$0xff] }
 0x6b6   :  { %v4566_v30 = vpop.eup %4565  ;;  %4571 = vtanh.f32 %v2880_v19  ;;  %v10136_v19 = vld [vmem:[#allocation137_spill] sm:$0xff] }
 0x6b7   :  { %4573 = vrcp.f32 %v2891_v31  ;;  %v2730_v32 = vmul.f32 %v4566_v30, %v4564_v11  ;;  %v10139_v11 = vld [vmem:[#allocation140_spill] sm:$0xff]  ;;  %v10140_v30 = vld [vmem:[#allocation141_spill] sm:$0xff] }
 0x6b9   :  { %2971 = vmatmul.mubr.f32.vlgmr.msra.gmra.mxu0 %v2730_v32  ;;  %3042 = vmatmul.mubr.f32.vlgmr.msra.gmra.mxu1 %v2730_v32  ;;  %v10141_v32 = vld [vmem:[#allocation142_spill] sm:$0xff] }
 0x6ba   :  { %3049 = vmatpush1.msra.mxu0 %v7435_v5  ;;  %3120 = vmatpush1.msra.mxu1 %v7438_v7  ;;  %v10101_v5 = vld [vmem:[#allocation102_spill] sm:$0xff]  ;;  %v10102_v7 = vld [vmem:[#allocation103_spill] sm:$0xff] }
 0x6bb   :  { %3050 = vmatprep.subr.mxu0 %v7441_v8  ;;  %3121 = vmatprep.subr.mxu1 %v7444_v49  ;;  %v10103_v8 = vld [vmem:[#allocation104_spill] sm:$0xff]  ;;  %v4568_v49 = vpop.eup %4567 }
 0x6bc   :  { %3051 = vmatpush1.msra.mxu0 %v7447_v53  ;;  %3122 = vmatpush1.msra.mxu1 %v7450_v57  ;;  %v10104_v53 = vld [vmem:[#allocation105_spill] sm:$0xff]  ;;  %v10105_v57 = vld [vmem:[#allocation106_spill] sm:$0xff]  ;;  %v2898_v50 = vadd.f32 1.0, %v4568_v49 }
 0x6bd   :  { %3052 = vmatprep.subr.mxu0 %v7453_v10  ;;  %3123 = vmatprep.subr.mxu1 %v7456_v43  ;;  %v10107_v43 = vld [vmem:[#allocation108_spill] sm:$0xff]  ;;  %v7871_v49 = vld [vmem:[#allocation5 + $0x1a8] sm:$0xff] }
 0x6be   :  { %3053 = vmatpush1.msra.mxu0 %v10098_v45  ;;  %3124 = vmatpush1.msra.mxu1 %v10099_v46  ;;  %4575 = vrcp.f32 %v2898_v50  ;;  %v10142_v46 = vld [vmem:[#allocation143_spill] sm:$0xff]  ;;  %v7898_v50 = vld [vmem:[#allocation5 + $0x178] sm:$0xff] }
 0x6bf   :  { %3054 = vmatprep.subr.mxu0 %v10100_v27  ;;  %3125 = vmatprep.subr.mxu1 %v10101_v5  ;;  %v7847_v5 = vld [vmem:[#allocation5 + $0x1e8] sm:$0xff] }
 0x6c0   :  { %3055 = vmatpush1.msra.mxu0 %v10102_v7  ;;  %3126 = vmatpush1.msra.mxu1 %v10103_v8  ;;  %v7865_v7 = vld [vmem:[#allocation5 + $0x1c0] sm:$0xff]  ;;  %v7868_v8 = vld [vmem:[#allocation5 + $0x1d0] sm:$0xff] }
 0x6c1   :  { %3056 = vmatprep.subr.mxu0 %v10104_v53  ;;  %3127 = vmatprep.subr.mxu1 %v10105_v57  ;;  %v7874_v53 = vld [vmem:[#allocation5 + $0x1b8] sm:$0xff]  ;;  %v7877_v57 = vld [vmem:[#allocation5 + $0x1a0] sm:$0xff] }
 0x6c2   :  { %v4570_v10 = vpop.eup %4569  ;;  %3057 = vmatpush1.msra.mxu0 %v10106_v44  ;;  %3128 = vmatpush1.msra.mxu1 %v10107_v43  ;;  %v7883_v44 = vld [vmem:[#allocation5 + $0x188] sm:$0xff]  ;;  %v7886_v43 = vld [vmem:[#allocation5 + $0x198] sm:$0xff] }
 0x6c3   :  { %v4572_v40 = vpop.eup %4571  ;;  %3058 = vmatprep.subr.mxu0 %v10108_v35  ;;  %3129 = vmatprep.subr.mxu1 %v7492_v1  ;;  %v10112_v1 = vld [vmem:[#allocation113_spill] sm:$0xff]  ;;  %v7892_v35 = vld [vmem:[#allocation5 + $0x190] sm:$0xff] }
 0x6c4   :  { %v4574_v48 = vpop.eup %4573  ;;  %3059 = vmatpush1.msra.mxu0 %v10109_v56  ;;  %3130 = vmatpush1.msra.mxu1 %v10110_v58  ;;  %v2902_v61 = vmul.f32 %v4572_v40, %v4570_v10  ;;  %v7880_v10 = vld [vmem:[#allocation5 + $0x1b0] sm:$0xff]  ;;  %v7889_v40 = vld [vmem:[#allocation5 + $0x180] sm:$0xff] }
 0x6c5   :  { %v2901_v2 = vmul.f32 %v4574_v48, %v7514_v59  ;;  %3060 = vmatprep.subr.mxu0 %v7502_v9  ;;  %3131 = vmatprep.subr.mxu1 %v7505_v6  ;;  %v10116_v59 = vld [vmem:[#allocation117_spill] sm:$0xff]  ;;  %v10117_v9 = vld [vmem:[#allocation118_spill] sm:$0xff]  ;;  %v10118_v6 = vld [vmem:[#allocation119_spill] sm:$0xff] }
 0x6c6   :  { %3061 = vmatpush1.msra.mxu0 %v7508_v54  ;;  %3132 = vmatpush1.msra.mxu1 %v10111_v47  ;;  %v10119_v54 = vld [vmem:[#allocation120_spill] sm:$0xff]  ;;  %v7895_v48 = vld [vmem:[#allocation5 + $0x168] sm:$0xff]  ;;  %v7901_v56 = vld [vmem:[#allocation5 + $0x160] sm:$0xff] }
 0x6c7   :  { %v7802_v60 = vadd.f32 %v2902_v61, %v2901_v2  ;;  %3062 = vmatprep.subr.mxu0 %v10112_v1  ;;  %3133 = vmatprep.subr.mxu1 %v10113_v55  ;;  %v7904_v58 = vld [vmem:[#allocation5 + $0x170] sm:$0xff]  ;;  %v7907_v61 = vld [vmem:[#allocation5 + $0x148] sm:$0xff]  ;;  %v7910_v2 = vld [vmem:[#allocation5 + $0x158] sm:$0xff] }
 0x6c8   :  { %3063 = vmatpush1.msra.mxu0 %v10114_v39  ;;  %3134 = vmatpush1.msra.mxu1 %v10115_v28  ;;  %v7913_v47 = vld [vmem:[#allocation5 + $0x140] sm:$0xff]  ;;  %v7916_v1 = vld [vmem:[#allocation5 + $0x150] sm:$0xff]  ;;  %v7919_v55 = vld [vmem:[#allocation5 + $0x128] sm:$0xff] }
 0x6c9   :  { %3064 = vmatprep.subr.mxu0 %v10116_v59  ;;  %3135 = vmatprep.subr.mxu1 %v10117_v9  ;;  %4577 = vtanh.f32 %v7802_v60  ;;  %v7922_v39 = vld [vmem:[#allocation5 + $0x138] sm:$0xff]  ;;  %v7925_v28 = vld [vmem:[#allocation5 + $0x120] sm:$0xff]  ;;  %v7928_v59 = vld [vmem:[#allocation5 + $0x130] sm:$0xff] }
 0x6ca   :  { %3065 = vmatpush1.msra.mxu0 %v10118_v6  ;;  %3136 = vmatpush1.msra.mxu1 %v10119_v54  ;;  %v7931_v9 = vld [vmem:[#allocation5 + $0x108] sm:$0xff]  ;;  %v7934_v6 = vld [vmem:[#allocation5 + $0x118] sm:$0xff]  ;;  %v7937_v54 = vld [vmem:[#allocation5 + $0x100] sm:$0xff] }
 0x6cb   :  { %3066 = vmatprep.subr.mxu0 %v10120_v36  ;;  %3137 = vmatprep.subr.mxu1 %v10121_v33  ;;  %v4576_v31 = vpop.eup %4575  ;;  %v7940_v36 = vld [vmem:[#allocation5 + $0x110] sm:$0xff]  ;;  %v7943_v33 = vld [vmem:[#allocation5 + $0xe8] sm:$0xff] }
 0x6cc   :  { %3067 = vmatpush1.msra.mxu0 %v10122_v29  ;;  %3138 = vmatpush1.msra.mxu1 %v10123_v13  ;;  %v7946_v29 = vld [vmem:[#allocation5 + $0xf8] sm:$0xff]  ;;  %v7949_v13 = vld [vmem:[#allocation5 + $0xe0] sm:$0xff] }
 0x6cd   :  { %3068 = vmatprep.subr.mxu0 %v10124_v41  ;;  %3139 = vmatprep.subr.mxu1 %v10125_v42  ;;  %v7952_v41 = vld [vmem:[#allocation5 + $0xf0] sm:$0xff]  ;;  %v7955_v42 = vld [vmem:[#allocation5 + $0xc8] sm:$0xff] }
 0x6ce   :  { %3069 = vmatpush1.msra.mxu0 %v10126_v26  ;;  %3140 = vmatpush1.msra.mxu1 %v10127_v24  ;;  %v7958_v26 = vld [vmem:[#allocation5 + $0xd8] sm:$0xff]  ;;  %v7961_v24 = vld [vmem:[#allocation5 + $0xc0] sm:$0xff] }
 0x6cf   :  { %3070 = vmatprep.subr.mxu0 %v10128_v25  ;;  %3141 = vmatprep.subr.mxu1 %v10129_v23  ;;  %10143 = vst [vmem:[#allocation144_spill] sm:$0xff] %v7958_v26  ;;  %10144 = vst [vmem:[#allocation145_spill] sm:$0xff] %v7961_v24  ;;  %v7964_v25 = vld [vmem:[#allocation5 + $0xd0] sm:$0xff]  ;;  %v7967_v23 = vld [vmem:[#allocation5 + $0xa8] sm:$0xff] }
 0x6d0   :  { %3071 = vmatpush1.msra.mxu0 %v10130_v37  ;;  %3142 = vmatpush1.msra.mxu1 %v10131_v14  ;;  %10145 = vst [vmem:[#allocation146_spill] sm:$0xff] %v7964_v25  ;;  %10146 = vst [vmem:[#allocation147_spill] sm:$0xff] %v7967_v23  ;;  %v7970_v37 = vld [vmem:[#allocation5 + $0xb8] sm:$0xff]  ;;  %v7973_v14 = vld [vmem:[#allocation5 + $0xa0] sm:$0xff] }
 0x6d1   :  { %3072 = vmatprep.subr.mxu0 %v10132_v15  ;;  %3143 = vmatprep.subr.mxu1 %v10133_v16  ;;  %10147 = vst [vmem:[#allocation148_spill] sm:$0xff] %v7970_v37  ;;  %10148 = vst [vmem:[#allocation149_spill] sm:$0xff] %v7973_v14  ;;  %v7976_v15 = vld [vmem:[#allocation5 + $0xb0] sm:$0xff]  ;;  %v7979_v16 = vld [vmem:[#allocation5 + $0x88] sm:$0xff] }
 0x6d2   :  { %3073 = vmatpush1.msra.mxu0 %v10134_v17  ;;  %3144 = vmatpush1.msra.mxu1 %v10135_v18  ;;  %10149 = vst [vmem:[#allocation150_spill] sm:$0xff] %v7976_v15  ;;  %10150 = vst [vmem:[#allocation151_spill] sm:$0xff] %v7979_v16  ;;  %v7982_v17 = vld [vmem:[#allocation5 + $0x98] sm:$0xff]  ;;  %v7985_v18 = vld [vmem:[#allocation5 + $0x80] sm:$0xff] }
 0x6d3   :  { %3074 = vmatprep.subr.mxu0 %v10136_v19  ;;  %3145 = vmatprep.subr.mxu1 %v10137_v21  ;;  %10151 = vst [vmem:[#allocation152_spill] sm:$0xff] %v7982_v17  ;;  %10152 = vst [vmem:[#allocation153_spill] sm:$0xff] %v7985_v18  ;;  %v7988_v19 = vld [vmem:[#allocation5 + $0x90] sm:$0xff]  ;;  %v7991_v21 = vld [vmem:[#allocation5 + $0x68] sm:$0xff] }
 0x6d4   :  { %3075 = vmatpush1.msra.mxu0 %v10138_v22  ;;  %3146 = vmatpush1.msra.mxu1 %v10139_v11  ;;  %10153 = vst [vmem:[#allocation154_spill] sm:$0xff] %v7988_v19  ;;  %10154 = vst [vmem:[#allocation155_spill] sm:$0xff] %v7991_v21  ;;  %v7994_v22 = vld [vmem:[#allocation5 + $0x78] sm:$0xff]  ;;  %v7997_v11 = vld [vmem:[#allocation5 + $0x60] sm:$0xff] }
 0x6d5   :  { %3076 = vmatprep.subr.mxu0 %v10140_v30  ;;  %3147 = vmatprep.subr.mxu1 %v10141_v32  ;;  %10155 = vst [vmem:[#allocation156_spill] sm:$0xff] %v7994_v22  ;;  %10156 = vst [vmem:[#allocation157_spill] sm:$0xff] %v7997_v11  ;;  %v8003_v30 = vld [vmem:[#allocation5 + $0x48] sm:$0xff]  ;;  %v8006_v32 = vld [vmem:[#allocation5 + $0x58] sm:$0xff] }
 0x6d6   :  { %v4578_v45 = vpop.eup %4577  ;;  %3077 = vmatpush1.msra.mxu0 %v10142_v46  ;;  %3148 = vmatpush1.msra.mxu1 %v7610_v51  ;;  %v7862_v51 = vld [vmem:[#allocation5 + $0x1d8] sm:$0xff]  ;;  %10158 = vst [vmem:[#allocation13_spill] sm:$0xff] %v8003_v30  ;;  %10159 = vst [vmem:[#allocation20_spill] sm:$0xff] %v8006_v32  ;;  %v8012_v46 = vld [vmem:[#allocation5 + $0x50] sm:$0xff] }
 0x6d7   :  { %3078 = vmatprep.subr.mxu0 %v7613_v62  ;;  %3149 = vmatprep.subr.mxu1 %v7616_v4  ;;  %v7839_v27 = vmul.f32 %v4578_v45, %v4576_v31  ;;  %v7850_v62 = vld [vmem:[#allocation5 + $0x1f8] sm:$0xff]  ;;  %v7853_v4 = vld [vmem:[#allocation5 + $0x1e0] sm:$0xff]  ;;  %v8000_v31 = vld [vmem:[#allocation5 + $0x70] sm:$0xff]  ;;  %10161 = vst [vmem:[#allocation22_spill] sm:$0xff] %v8012_v46 }
 0x6d8   :  { %3079 = vmatpush1.msra.mxu0 %v7621_v3  ;;  %3112 = vmatprep.mubr.f32.mxu0 %v9461_v20  ;;  %v7856_v3 = vld [vmem:[#allocation5 + $0x1f0] sm:$0xff]  ;;  %10157 = vst [vmem:[#allocation18_spill] sm:$0xff] %v8000_v31  ;;  %v8009_v45 = vld [vmem:[#allocation5 + $0x40] sm:$0xff] }
 0x6d9   :  { %3150 = vmatpush1.msra.mxu1 %v7625_v0  ;;  %3183 = vmatprep.mubr.f32.mxu1 %v9461_v20  ;;  %v7859_v0 = vld [vmem:[#allocation5 + $0x1c8] sm:$0xff]  ;;  %10160 = vst [vmem:[#allocation14_spill] sm:$0xff] %v8009_v45 }
 0x6da   :  { %3113 = vmatmul.mubr.f32.vlgmr.msra.gmra.mxu0 %v7839_v27  ;;  %3184 = vmatmul.mubr.f32.vlgmr.msra.gmra.mxu1 %v7839_v27 }
 0x6db   :  { %3223 = vmatprep.subr.mxu0 %v7847_v5  ;;  %3294 = vmatprep.subr.mxu1 %v7850_v62 }
 0x6dc   :  { %3224 = vmatpush1.msra.mxu0 %v7853_v4  ;;  %3295 = vmatpush1.msra.mxu1 %v7856_v3 }
 0x6dd   :  { %3225 = vmatprep.subr.mxu0 %v7859_v0  ;;  %3296 = vmatprep.subr.mxu1 %v7862_v51 }
 0x6de   :  { %3226 = vmatpush1.msra.mxu0 %v7865_v7  ;;  %3297 = vmatpush1.msra.mxu1 %v7868_v8 }
 0x6df   :  { %3227 = vmatprep.subr.mxu0 %v7871_v49  ;;  %3298 = vmatprep.subr.mxu1 %v7874_v53 }
 0x6e0   :  { %3228 = vmatpush1.msra.mxu0 %v7877_v57  ;;  %3299 = vmatpush1.msra.mxu1 %v7880_v10 }
 0x6e1   :  { %3229 = vmatprep.subr.mxu0 %v7883_v44  ;;  %3300 = vmatprep.subr.mxu1 %v7886_v43 }
 0x6e2   :  { %3230 = vmatpush1.msra.mxu0 %v7889_v40  ;;  %3301 = vmatpush1.msra.mxu1 %v7892_v35 }
 0x6e3   :  { %3231 = vmatprep.subr.mxu0 %v7895_v48  ;;  %3302 = vmatprep.subr.mxu1 %v7898_v50 }
 0x6e4   :  { %3232 = vmatpush1.msra.mxu0 %v7901_v56  ;;  %3303 = vmatpush1.msra.mxu1 %v7904_v58 }
 0x6e5   :  { %3233 = vmatprep.subr.mxu0 %v7907_v61  ;;  %3304 = vmatprep.subr.mxu1 %v7910_v2 }
 0x6e6   :  { %3234 = vmatpush1.msra.mxu0 %v7913_v47  ;;  %3305 = vmatpush1.msra.mxu1 %v7916_v1 }
 0x6e7   :  { %3235 = vmatprep.subr.mxu0 %v7919_v55  ;;  %3306 = vmatprep.subr.mxu1 %v7922_v39 }
 0x6e8   :  { %3236 = vmatpush1.msra.mxu0 %v7925_v28  ;;  %3307 = vmatpush1.msra.mxu1 %v7928_v59 }
 0x6e9   :  { %3237 = vmatprep.subr.mxu0 %v7931_v9  ;;  %3308 = vmatprep.subr.mxu1 %v7934_v6 }
 0x6ea   :  { %3238 = vmatpush1.msra.mxu0 %v7937_v54  ;;  %3309 = vmatpush1.msra.mxu1 %v7940_v36 }
 0x6eb   :  { %3239 = vmatprep.subr.mxu0 %v7943_v33  ;;  %3310 = vmatprep.subr.mxu1 %v7946_v29 }
 0x6ec   :  { %3240 = vmatpush1.msra.mxu0 %v7949_v13  ;;  %3311 = vmatpush1.msra.mxu1 %v7952_v41 }
 0x6ed   :  { %3241 = vmatprep.subr.mxu0 %v7955_v42  ;;  %3312 = vmatprep.subr.mxu1 %v7958_v26 }
 0x6ee   :  { %3242 = vmatpush1.msra.mxu0 %v7961_v24  ;;  %3313 = vmatpush1.msra.mxu1 %v7964_v25 }
 0x6ef   :  { %3243 = vmatprep.subr.mxu0 %v7967_v23  ;;  %3314 = vmatprep.subr.mxu1 %v7970_v37 }
 0x6f0   :  { %3244 = vmatpush1.msra.mxu0 %v7973_v14  ;;  %3315 = vmatpush1.msra.mxu1 %v7976_v15 }
 0x6f1   :  { %3245 = vmatprep.subr.mxu0 %v7979_v16  ;;  %3316 = vmatprep.subr.mxu1 %v7982_v17 }
 0x6f2   :  { %3246 = vmatpush1.msra.mxu0 %v7985_v18  ;;  %3317 = vmatpush1.msra.mxu1 %v7988_v19 }
 0x6f3   :  { %3247 = vmatprep.subr.mxu0 %v7991_v21  ;;  %3318 = vmatprep.subr.mxu1 %v7994_v22 }
 0x6f4   :  { %3248 = vmatpush1.msra.mxu0 %v7997_v11  ;;  %3319 = vmatpush1.msra.mxu1 %v8000_v31  ;;  %v8015_v11 = vld [vmem:[#allocation5 + $0x28] sm:$0xff]  ;;  %v8018_v31 = vld [vmem:[#allocation5 + $0x38] sm:$0xff] }
 0x6f5   :  { %3249 = vmatprep.subr.mxu0 %v8003_v30  ;;  %3320 = vmatprep.subr.mxu1 %v8006_v32  ;;  %10162 = vst [vmem:[#allocation15_spill] sm:$0xff] %v8015_v11  ;;  %10163 = vst [vmem:[#allocation24_spill] sm:$0xff] %v8018_v31  ;;  %v8021_v30 = vld [vmem:[#allocation5 + $0x20] sm:$0xff]  ;;  %v8024_v32 = vld [vmem:[#allocation5 + $0x30] sm:$0xff] }
 0x6f6   :  { %3250 = vmatpush1.msra.mxu0 %v8009_v45  ;;  %3321 = vmatpush1.msra.mxu1 %v8012_v46  ;;  %10164 = vst [vmem:[#allocation16_spill] sm:$0xff] %v8021_v30  ;;  %10165 = vst [vmem:[#allocation25_spill] sm:$0xff] %v8024_v32  ;;  %v8027_v45 = vld [vmem:[#allocation5 + $0x8] sm:$0xff]  ;;  %v8030_v46 = vld [vmem:[#allocation5 + $0x18] sm:$0xff] }
 0x6f7   :  { %3251 = vmatprep.subr.mxu0 %v8015_v11  ;;  %3322 = vmatprep.subr.mxu1 %v8018_v31  ;;  %10166 = vst [vmem:[#allocation17_spill] sm:$0xff] %v8027_v45  ;;  %10167 = vst [vmem:[#allocation26_spill] sm:$0xff] %v8030_v46  ;;  %v8033_v11 = vld [vmem:[#allocation5] sm:$0xff]  ;;  %v8037_v31 = vld [vmem:[#allocation5 + $0x10] sm:$0xff] }
 0x6f8   :  { %3252 = vmatpush1.msra.mxu0 %v8021_v30  ;;  %3323 = vmatpush1.msra.mxu1 %v8024_v32  ;;  %10168 = vst [vmem:[#allocation19_spill] sm:$0xff] %v8033_v11  ;;  %10169 = vst [vmem:[#allocation28_spill] sm:$0xff] %v8037_v31  ;;  %v8052_v32 = vld [vmem:[#allocation8 + $0x1f0] sm:$0xff] }
 0x6f9   :  { %3253 = vmatprep.subr.mxu0 %v8027_v45  ;;  %3324 = vmatprep.subr.mxu1 %v8030_v46  ;;  %v8043_v45 = vld [vmem:[#allocation8 + $0x1e8] sm:$0xff]  ;;  %v8046_v46 = vld [vmem:[#allocation8 + $0x1f8] sm:$0xff]  ;;  %10173 = vst [vmem:[#allocation32_spill] sm:$0xff] %v8052_v32 }
 0x6fa   :  { %3254 = vmatpush1.msra.mxu0 %v8033_v11  ;;  %3287 = vmatprep.mubr.f32.mxu0 %v9461_v20  ;;  %10170 = vst [vmem:[#allocation21_spill] sm:$0xff] %v8043_v45  ;;  %10171 = vst [vmem:[#allocation30_spill] sm:$0xff] %v8046_v46  ;;  %v8049_v11 = vld [vmem:[#allocation8 + $0x1e0] sm:$0xff] }
 0x6fb   :  { %3325 = vmatpush1.msra.mxu1 %v8037_v31  ;;  %3358 = vmatprep.mubr.f32.mxu1 %v9461_v20  ;;  %10172 = vst [vmem:[#allocation23_spill] sm:$0xff] %v8049_v11  ;;  %v8055_v31 = vld [vmem:[#allocation8 + $0x1c8] sm:$0xff] }
 0x6fc   :  { %3288 = vmatmul.mubr.f32.vlgmr.msra.gmra.mxu0 %v7839_v27  ;;  %3359 = vmatmul.mubr.f32.vlgmr.msra.gmra.mxu1 %v7839_v27  ;;  %10174 = vst [vmem:[#allocation27_spill] sm:$0xff] %v8055_v31  ;;  %v8058_v27 = vld [vmem:[#allocation8 + $0x1d8] sm:$0xff] }
 0x6fd   :  { %3393 = vmatprep.subr.mxu0 %v8043_v45  ;;  %3464 = vmatprep.subr.mxu1 %v8046_v46  ;;  %10175 = vst [vmem:[#allocation34_spill] sm:$0xff] %v8058_v27  ;;  %v8061_v45 = vld [vmem:[#allocation8 + $0x1c0] sm:$0xff]  ;;  %v8064_v46 = vld [vmem:[#allocation8 + $0x1d0] sm:$0xff] }
 0x6fe   :  { %3394 = vmatpush1.msra.mxu0 %v8049_v11  ;;  %3465 = vmatpush1.msra.mxu1 %v8052_v32  ;;  %10176 = vst [vmem:[#allocation29_spill] sm:$0xff] %v8061_v45  ;;  %10177 = vst [vmem:[#allocation35_spill] sm:$0xff] %v8064_v46  ;;  %v8067_v11 = vld [vmem:[#allocation8 + $0x1a8] sm:$0xff]  ;;  %v8070_v32 = vld [vmem:[#allocation8 + $0x1b8] sm:$0xff] }
 0x6ff   :  { %3395 = vmatprep.subr.mxu0 %v8055_v31  ;;  %3466 = vmatprep.subr.mxu1 %v8058_v27  ;;  %10178 = vst [vmem:[#allocation31_spill] sm:$0xff] %v8067_v11  ;;  %10179 = vst [vmem:[#allocation37_spill] sm:$0xff] %v8070_v32  ;;  %v8073_v31 = vld [vmem:[#allocation8 + $0x1a0] sm:$0xff]  ;;  %v8076_v27 = vld [vmem:[#allocation8 + $0x1b0] sm:$0xff] }
 0x700   :  { %3396 = vmatpush1.msra.mxu0 %v8061_v45  ;;  %3467 = vmatpush1.msra.mxu1 %v8064_v46  ;;  %10180 = vst [vmem:[#allocation33_spill] sm:$0xff] %v8073_v31  ;;  %10181 = vst [vmem:[#allocation39_spill] sm:$0xff] %v8076_v27  ;;  %v8079_v45 = vld [vmem:[#allocation8 + $0x188] sm:$0xff]  ;;  %v8082_v46 = vld [vmem:[#allocation8 + $0x198] sm:$0xff] }
 0x701   :  { %3397 = vmatprep.subr.mxu0 %v8067_v11  ;;  %3468 = vmatprep.subr.mxu1 %v8070_v32  ;;  %10182 = vst [vmem:[#allocation36_spill] sm:$0xff] %v8079_v45  ;;  %10183 = vst [vmem:[#allocation41_spill] sm:$0xff] %v8082_v46  ;;  %v8085_v11 = vld [vmem:[#allocation8 + $0x180] sm:$0xff]  ;;  %v8088_v32 = vld [vmem:[#allocation8 + $0x190] sm:$0xff] }
 0x702   :  { %3398 = vmatpush1.msra.mxu0 %v8073_v31  ;;  %3469 = vmatpush1.msra.mxu1 %v8076_v27  ;;  %10184 = vst [vmem:[#allocation38_spill] sm:$0xff] %v8085_v11  ;;  %10185 = vst [vmem:[#allocation43_spill] sm:$0xff] %v8088_v32  ;;  %v8091_v31 = vld [vmem:[#allocation8 + $0x168] sm:$0xff]  ;;  %v8094_v27 = vld [vmem:[#allocation8 + $0x178] sm:$0xff] }
 0x703   :  { %3399 = vmatprep.subr.mxu0 %v8079_v45  ;;  %3470 = vmatprep.subr.mxu1 %v8082_v46  ;;  %10186 = vst [vmem:[#allocation40_spill] sm:$0xff] %v8091_v31  ;;  %10187 = vst [vmem:[#allocation44_spill] sm:$0xff] %v8094_v27  ;;  %v8097_v45 = vld [vmem:[#allocation8 + $0x160] sm:$0xff]  ;;  %v8100_v46 = vld [vmem:[#allocation8 + $0x170] sm:$0xff] }
 0x704   :  { %3400 = vmatpush1.msra.mxu0 %v8085_v11  ;;  %3471 = vmatpush1.msra.mxu1 %v8088_v32  ;;  %10188 = vst [vmem:[#allocation42_spill] sm:$0xff] %v8097_v45  ;;  %10189 = vst [vmem:[#allocation45_spill] sm:$0xff] %v8100_v46  ;;  %v8103_v11 = vld [vmem:[#allocation8 + $0x148] sm:$0xff]  ;;  %v8106_v32 = vld [vmem:[#allocation8 + $0x158] sm:$0xff] }
 0x705   :  { %3401 = vmatprep.subr.mxu0 %v8091_v31  ;;  %3472 = vmatprep.subr.mxu1 %v8094_v27  ;;  %10190 = vst [vmem:[#allocation46_spill] sm:$0xff] %v8103_v11  ;;  %10191 = vst [vmem:[#allocation47_spill] sm:$0xff] %v8106_v32  ;;  %v8109_v31 = vld [vmem:[#allocation8 + $0x140] sm:$0xff]  ;;  %v8112_v27 = vld [vmem:[#allocation8 + $0x150] sm:$0xff] }
 0x706   :  { %3402 = vmatpush1.msra.mxu0 %v8097_v45  ;;  %3473 = vmatpush1.msra.mxu1 %v8100_v46  ;;  %10192 = vst [vmem:[#allocation48_spill] sm:$0xff] %v8109_v31  ;;  %10193 = vst [vmem:[#allocation49_spill] sm:$0xff] %v8112_v27  ;;  %v8115_v45 = vld [vmem:[#allocation8 + $0x128] sm:$0xff]  ;;  %v8118_v46 = vld [vmem:[#allocation8 + $0x138] sm:$0xff] }
 0x707   :  { %3403 = vmatprep.subr.mxu0 %v8103_v11  ;;  %3474 = vmatprep.subr.mxu1 %v8106_v32  ;;  %10194 = vst [vmem:[#allocation50_spill] sm:$0xff] %v8115_v45  ;;  %10195 = vst [vmem:[#allocation51_spill] sm:$0xff] %v8118_v46  ;;  %v8121_v11 = vld [vmem:[#allocation8 + $0x120] sm:$0xff]  ;;  %v8124_v32 = vld [vmem:[#allocation8 + $0x130] sm:$0xff] }
 0x708   :  { %3404 = vmatpush1.msra.mxu0 %v8109_v31  ;;  %3475 = vmatpush1.msra.mxu1 %v8112_v27  ;;  %10196 = vst [vmem:[#allocation52_spill] sm:$0xff] %v8121_v11  ;;  %10197 = vst [vmem:[#allocation53_spill] sm:$0xff] %v8124_v32  ;;  %v8127_v31 = vld [vmem:[#allocation8 + $0x108] sm:$0xff]  ;;  %v8130_v27 = vld [vmem:[#allocation8 + $0x118] sm:$0xff] }
 0x709   :  { %3405 = vmatprep.subr.mxu0 %v8115_v45  ;;  %3476 = vmatprep.subr.mxu1 %v8118_v46  ;;  %10198 = vst [vmem:[#allocation54_spill] sm:$0xff] %v8127_v31  ;;  %10199 = vst [vmem:[#allocation55_spill] sm:$0xff] %v8130_v27  ;;  %v8133_v45 = vld [vmem:[#allocation8 + $0x100] sm:$0xff]  ;;  %v8136_v46 = vld [vmem:[#allocation8 + $0x110] sm:$0xff] }
 0x70a   :  { %3406 = vmatpush1.msra.mxu0 %v8121_v11  ;;  %3477 = vmatpush1.msra.mxu1 %v8124_v32  ;;  %10200 = vst [vmem:[#allocation56_spill] sm:$0xff] %v8133_v45  ;;  %10201 = vst [vmem:[#allocation57_spill] sm:$0xff] %v8136_v46  ;;  %v8139_v11 = vld [vmem:[#allocation8 + $0xe8] sm:$0xff]  ;;  %v8142_v32 = vld [vmem:[#allocation8 + $0xf8] sm:$0xff] }
 0x70b   :  { %3407 = vmatprep.subr.mxu0 %v8127_v31  ;;  %3478 = vmatprep.subr.mxu1 %v8130_v27  ;;  %10202 = vst [vmem:[#allocation58_spill] sm:$0xff] %v8139_v11  ;;  %10203 = vst [vmem:[#allocation59_spill] sm:$0xff] %v8142_v32  ;;  %v8145_v31 = vld [vmem:[#allocation8 + $0xe0] sm:$0xff]  ;;  %v8148_v27 = vld [vmem:[#allocation8 + $0xf0] sm:$0xff] }
 0x70c   :  { %3408 = vmatpush1.msra.mxu0 %v8133_v45  ;;  %3479 = vmatpush1.msra.mxu1 %v8136_v46  ;;  %10204 = vst [vmem:[#allocation60_spill] sm:$0xff] %v8145_v31  ;;  %10205 = vst [vmem:[#allocation61_spill] sm:$0xff] %v8148_v27  ;;  %v8151_v45 = vld [vmem:[#allocation8 + $0xc8] sm:$0xff]  ;;  %v8154_v46 = vld [vmem:[#allocation8 + $0xd8] sm:$0xff] }
 0x70d   :  { %3409 = vmatprep.subr.mxu0 %v8139_v11  ;;  %3480 = vmatprep.subr.mxu1 %v8142_v32  ;;  %10206 = vst [vmem:[#allocation62_spill] sm:$0xff] %v8151_v45  ;;  %10207 = vst [vmem:[#allocation63_spill] sm:$0xff] %v8154_v46  ;;  %v8157_v11 = vld [vmem:[#allocation8 + $0xc0] sm:$0xff]  ;;  %v8160_v32 = vld [vmem:[#allocation8 + $0xd0] sm:$0xff] }
 0x70e   :  { %3410 = vmatpush1.msra.mxu0 %v8145_v31  ;;  %3481 = vmatpush1.msra.mxu1 %v8148_v27  ;;  %10208 = vst [vmem:[#allocation64_spill] sm:$0xff] %v8157_v11  ;;  %10209 = vst [vmem:[#allocation65_spill] sm:$0xff] %v8160_v32  ;;  %v8163_v31 = vld [vmem:[#allocation8 + $0xa8] sm:$0xff]  ;;  %v8166_v27 = vld [vmem:[#allocation8 + $0xb8] sm:$0xff] }
 0x70f   :  { %3411 = vmatprep.subr.mxu0 %v8151_v45  ;;  %3482 = vmatprep.subr.mxu1 %v8154_v46  ;;  %10210 = vst [vmem:[#allocation66_spill] sm:$0xff] %v8163_v31  ;;  %10211 = vst [vmem:[#allocation67_spill] sm:$0xff] %v8166_v27  ;;  %v8169_v45 = vld [vmem:[#allocation8 + $0xa0] sm:$0xff]  ;;  %v8172_v46 = vld [vmem:[#allocation8 + $0xb0] sm:$0xff] }
 0x710   :  { %3412 = vmatpush1.msra.mxu0 %v8157_v11  ;;  %3483 = vmatpush1.msra.mxu1 %v8160_v32  ;;  %10212 = vst [vmem:[#allocation68_spill] sm:$0xff] %v8169_v45  ;;  %10213 = vst [vmem:[#allocation69_spill] sm:$0xff] %v8172_v46  ;;  %v8175_v11 = vld [vmem:[#allocation8 + $0x88] sm:$0xff]  ;;  %v8178_v32 = vld [vmem:[#allocation8 + $0x98] sm:$0xff] }
 0x711   :  { %3413 = vmatprep.subr.mxu0 %v8163_v31  ;;  %3484 = vmatprep.subr.mxu1 %v8166_v27  ;;  %10214 = vst [vmem:[#allocation70_spill] sm:$0xff] %v8175_v11  ;;  %10215 = vst [vmem:[#allocation71_spill] sm:$0xff] %v8178_v32  ;;  %v8181_v31 = vld [vmem:[#allocation8 + $0x80] sm:$0xff]  ;;  %v8184_v27 = vld [vmem:[#allocation8 + $0x90] sm:$0xff] }
 0x712   :  { %3414 = vmatpush1.msra.mxu0 %v8169_v45  ;;  %3485 = vmatpush1.msra.mxu1 %v8172_v46  ;;  %10216 = vst [vmem:[#allocation72_spill] sm:$0xff] %v8181_v31  ;;  %10217 = vst [vmem:[#allocation73_spill] sm:$0xff] %v8184_v27  ;;  %v8187_v45 = vld [vmem:[#allocation8 + $0x68] sm:$0xff]  ;;  %v8190_v46 = vld [vmem:[#allocation8 + $0x78] sm:$0xff] }
 0x713   :  { %3415 = vmatprep.subr.mxu0 %v8175_v11  ;;  %3486 = vmatprep.subr.mxu1 %v8178_v32  ;;  %10218 = vst [vmem:[#allocation74_spill] sm:$0xff] %v8187_v45  ;;  %10219 = vst [vmem:[#allocation75_spill] sm:$0xff] %v8190_v46  ;;  %v8193_v11 = vld [vmem:[#allocation8 + $0x60] sm:$0xff]  ;;  %v8196_v32 = vld [vmem:[#allocation8 + $0x70] sm:$0xff] }
 0x714   :  { %3416 = vmatpush1.msra.mxu0 %v8181_v31  ;;  %3487 = vmatpush1.msra.mxu1 %v8184_v27  ;;  %10220 = vst [vmem:[#allocation76_spill] sm:$0xff] %v8193_v11  ;;  %10221 = vst [vmem:[#allocation77_spill] sm:$0xff] %v8196_v32  ;;  %v8199_v31 = vld [vmem:[#allocation8 + $0x48] sm:$0xff]  ;;  %v8202_v27 = vld [vmem:[#allocation8 + $0x58] sm:$0xff] }
 0x715   :  { %3417 = vmatprep.subr.mxu0 %v8187_v45  ;;  %3488 = vmatprep.subr.mxu1 %v8190_v46  ;;  %10222 = vst [vmem:[#allocation78_spill] sm:$0xff] %v8199_v31  ;;  %10223 = vst [vmem:[#allocation79_spill] sm:$0xff] %v8202_v27  ;;  %v8205_v45 = vld [vmem:[#allocation8 + $0x40] sm:$0xff]  ;;  %v8208_v46 = vld [vmem:[#allocation8 + $0x50] sm:$0xff] }
 0x716   :  { %3418 = vmatpush1.msra.mxu0 %v8193_v11  ;;  %3489 = vmatpush1.msra.mxu1 %v8196_v32  ;;  %10224 = vst [vmem:[#allocation80_spill] sm:$0xff] %v8205_v45  ;;  %10225 = vst [vmem:[#allocation81_spill] sm:$0xff] %v8208_v46  ;;  %v8211_v11 = vld [vmem:[#allocation8 + $0x28] sm:$0xff]  ;;  %v8214_v32 = vld [vmem:[#allocation8 + $0x38] sm:$0xff] }
 0x717   :  { %3419 = vmatprep.subr.mxu0 %v8199_v31  ;;  %3490 = vmatprep.subr.mxu1 %v8202_v27  ;;  %10226 = vst [vmem:[#allocation82_spill] sm:$0xff] %v8211_v11  ;;  %10227 = vst [vmem:[#allocation83_spill] sm:$0xff] %v8214_v32  ;;  %v8217_v31 = vld [vmem:[#allocation8 + $0x20] sm:$0xff]  ;;  %v8220_v27 = vld [vmem:[#allocation8 + $0x30] sm:$0xff] }
 0x718   :  { %3420 = vmatpush1.msra.mxu0 %v8205_v45  ;;  %3491 = vmatpush1.msra.mxu1 %v8208_v46  ;;  %10228 = vst [vmem:[#allocation84_spill] sm:$0xff] %v8217_v31  ;;  %10229 = vst [vmem:[#allocation85_spill] sm:$0xff] %v8220_v27  ;;  %v8223_v45 = vld [vmem:[#allocation8 + $0x8] sm:$0xff]  ;;  %v8226_v46 = vld [vmem:[#allocation8 + $0x18] sm:$0xff] }
 0x719   :  { %3421 = vmatprep.subr.mxu0 %v8211_v11  ;;  %3492 = vmatprep.subr.mxu1 %v8214_v32  ;;  %10230 = vst [vmem:[#allocation86_spill] sm:$0xff] %v8223_v45  ;;  %10231 = vst [vmem:[#allocation87_spill] sm:$0xff] %v8226_v46  ;;  %v8229_v11 = vld [vmem:[#allocation8] sm:$0xff]  ;;  %v8232_v32 = vld [vmem:[#allocation8 + $0x10] sm:$0xff] }
 0x71a   :  { %3422 = vmatpush1.msra.mxu0 %v8217_v31  ;;  %3493 = vmatpush1.msra.mxu1 %v8220_v27  ;;  %10232 = vst [vmem:[#allocation88_spill] sm:$0xff] %v8229_v11  ;;  %10233 = vst [vmem:[#allocation89_spill] sm:$0xff] %v8232_v32  ;;  %v8237_v27 = vld [vmem:[#allocation7 + $0x1e8] sm:$0xff] }
 0x71b   :  { %3423 = vmatprep.subr.mxu0 %v8223_v45  ;;  %3494 = vmatprep.subr.mxu1 %v8226_v46  ;;  %10234 = vst [vmem:[#allocation90_spill] sm:$0xff] %v8237_v27  ;;  %v8240_v45 = vld [vmem:[#allocation7 + $0x1f8] sm:$0xff] }
 0x71c   :  { %3424 = vmatpush1.msra.mxu0 %v8229_v11  ;;  %3495 = vmatpush1.msra.mxu1 %v8232_v32  ;;  %10235 = vst [vmem:[#allocation91_spill] sm:$0xff] %v8240_v45 }
 0x71d   :  { %3457 = vmatprep.mubr.f32.mxu0 %v9461_v20  ;;  %3528 = vmatprep.mubr.f32.mxu1 %v9461_v20 }
 0x71e   :  { %3535 = vmatprep.subr.mxu0 %v8237_v27  ;;  %3606 = vmatprep.subr.mxu1 %v8240_v45 }
 0x779   :  { %v2972_v46 = vpop.f32.mrf.mxu0  ;;  %v3043_v31 = vpop.f32.mrf.mxu1 }
 0x77b   :  { %v2974_v30 = vpop.f32.mrf.mxu0  ;;  %v3045_v22 = vpop.f32.mrf.mxu1 }
 0x79a   :  { %v3114_v11 = vpop.f32.mrf.mxu0  ;;  %v3185_v18 = vpop.f32.mrf.mxu1 }
 0x79b   :  { %v3115_v21 = vadd.f32 %v3114_v11, %v2972_v46  ;;  %v3186_v23 = vadd.f32 %v3185_v18, %v3043_v31 }
 0x79c   :  { %v3116_v19 = vpop.f32.mrf.mxu0  ;;  %v3187_v14 = vpop.f32.mrf.mxu1 }
 0x79d   :  { %v3190_v32 = vadd.f32 %v3115_v21, %v6128_v34  ;;  %v3117_v17 = vadd.f32 %v3116_v19, %v2974_v30  ;;  %v3188_v37 = vadd.f32 %v3187_v14, %v3045_v22  ;;  %v3192_v11 = vadd.f32 %v3186_v23, %v6137_v63 }
 0x79f   :  { %v4327_v16 = vmul.f32 -1.442695, %v3190_v32  ;;  %v3191_v15 = vadd.f32 %v3117_v17, %v6130_v38  ;;  %v3193_v45 = vadd.f32 %v3188_v37, %v6134_v52  ;;  %v3219_v17 = vld [vmem:[#allocation3 + $0xc0] sm:$0xff] }
 0x7a1   :  { %4579 = vpow2.f32 %v4327_v16  ;;  %v4328_v27 = vmul.f32 -1.442695, %v3191_v15  ;;  %v4329_v25 = vmul.f32 -1.442695, %v3193_v45  ;;  %v3220_v15 = vld [vmem:[#allocation3 + $0xc8] sm:$0xff] }
 0x7a3   :  { %4581 = vpow2.f32 %v4328_v27 }
 0x7a4   :  { %4583 = vpow2.f32 %v4329_v25 }
 0x7ae   :  { %v4580_v24 = vpop.eup %4579 }
 0x7af   :  { %v3197_v46 = vadd.f32 1.0, %v4580_v24 }
 0x7b0   :  { %v4582_v26 = vpop.eup %4581 }
 0x7b1   :  { %4585 = vrcp.f32 %v3197_v46  ;;  %v3203_v19 = vadd.f32 1.0, %v4582_v26  ;;  %v4584_v21 = vpop.eup %4583 }
 0x7b2   :  { %4587 = vtanh.f32 %v3192_v11  ;;  %v3210_v45 = vadd.f32 1.0, %v4584_v21  ;;  %v3222_v11 = vld [vmem:[#allocation3 + $0xd8] sm:$0xff] }
 0x7b3   :  { %4589 = vrcp.f32 %v3203_v19 }
 0x7bc   :  { %v3289_v16 = vpop.f32.mrf.mxu0  ;;  %v3360_v25 = vpop.f32.mrf.mxu1 }
 0x7bd   :  { %v3365_v30 = vadd.f32 %v3289_v16, %v3219_v17  ;;  %v3221_v17 = vld [vmem:[#allocation3 + $0xd0] sm:$0xff] }
 0x7be   :  { %v4586_v14 = vpop.eup %4585  ;;  %v3291_v22 = vpop.f32.mrf.mxu0 }
 0x7bf   :  { %v4588_v37 = vpop.eup %4587  ;;  %v4330_v18 = vmul.f32 -1.442695, %v3365_v30  ;;  %v3366_v31 = vadd.f32 %v3291_v22, %v3220_v15  ;;  %v3362_v46 = vpop.f32.mrf.mxu1  ;;  %v3367_v30 = vadd.f32 %v3360_v25, %v3221_v17  ;;  %v8266_v25 = vld [vmem:[#allocation7 + $0x1d0] sm:$0xff]  ;;  %v8281_v17 = vld [vmem:[#allocation7 + $0x188] sm:$0xff] }
 0x7c0   :  { %v4590_v32 = vpop.eup %4589  ;;  %v3214_v23 = vmul.f32 %v4588_v37, %v4586_v14  ;;  %v3368_v19 = vadd.f32 %v3362_v46, %v3222_v11  ;;  %v8272_v11 = vld [vmem:[#allocation7 + $0x1b8] sm:$0xff]  ;;  %v8275_v46 = vld [vmem:[#allocation7 + $0x1a0] sm:$0xff]  ;;  %10238 = vst [vmem:[#allocation94_spill] sm:$0xff] %v8281_v17 }
 0x7c1   :  { %v3213_v24 = vmul.f32 %v4590_v32, %v7772_v12  ;;  %4591 = vpow2.f32 %v4330_v18  ;;  %v4331_v26 = vmul.f32 -1.442695, %v3366_v31  ;;  %v8251_v31 = vld [vmem:[#allocation7 + $0x1e0] sm:$0xff]  ;;  %v8254_v32 = vld [vmem:[#allocation7 + $0x1f0] sm:$0xff]  ;;  %10236 = vst [vmem:[#allocation92_spill] sm:$0xff] %v8275_v46 }
 0x7c2   :  { %v4332_v16 = vmul.f32 -1.442695, %v3368_v19  ;;  %v8278_v19 = vld [vmem:[#allocation7 + $0x1b0] sm:$0xff] }
 0x7c3   :  { %4593 = vpow2.f32 %v4331_v26  ;;  %v8248_v27 = vadd.f32 %v3214_v23, %v3213_v24  ;;  %v8260_v23 = vld [vmem:[#allocation7 + $0x1d8] sm:$0xff]  ;;  %v8263_v24 = vld [vmem:[#allocation7 + $0x1c0] sm:$0xff]  ;;  %v8269_v26 = vld [vmem:[#allocation7 + $0x1a8] sm:$0xff]  ;;  %10237 = vst [vmem:[#allocation93_spill] sm:$0xff] %v8278_v19 }
 0x7c4   :  { %4595 = vrcp.f32 %v3210_v45  ;;  %v8257_v45 = vld [vmem:[#allocation7 + $0x1c8] sm:$0xff] }
 0x7c5   :  { %4597 = vtanh.f32 %v8248_v27 }
 0x7c6   :  { %4599 = vpow2.f32 %v4332_v16  ;;  %v8284_v16 = vld [vmem:[#allocation7 + $0x198] sm:$0xff] }
 0x7c7   :  { %10239 = vst [vmem:[#allocation95_spill] sm:$0xff] %v8284_v16 }
 0x7ce   :  { %v4592_v15 = vpop.eup %4591 }
 0x7cf   :  { %v3372_v21 = vadd.f32 1.0, %v4592_v15  ;;  %v8287_v15 = vld [vmem:[#allocation7 + $0x180] sm:$0xff] }
 0x7d0   :  { %v4594_v14 = vpop.eup %4593  ;;  %10240 = vst [vmem:[#allocation96_spill] sm:$0xff] %v8287_v15 }
 0x7d1   :  { %v4596_v12 = vpop.eup %4595  ;;  %4601 = vrcp.f32 %v3372_v21  ;;  %v3378_v22 = vadd.f32 1.0, %v4594_v14  ;;  %v8293_v14 = vld [vmem:[#allocation7 + $0x168] sm:$0xff] }
 0x7d2   :  { %v4598_v37 = vpop.eup %4597  ;;  %4603 = vtanh.f32 %v3367_v30  ;;  %v8290_v30 = vld [vmem:[#allocation7 + $0x190] sm:$0xff]  ;;  %10242 = vst [vmem:[#allocation98_spill] sm:$0xff] %v8293_v14 }
 0x7d3   :  { %4605 = vrcp.f32 %v3378_v22  ;;  %v3217_v18 = vmul.f32 %v4598_v37, %v4596_v12  ;;  %10241 = vst [vmem:[#allocation97_spill] sm:$0xff] %v8290_v30  ;;  %v4600_v21 = vpop.eup %4599  ;;  %v8296_v12 = vld [vmem:[#allocation7 + $0x178] sm:$0xff]  ;;  %v8299_v37 = vld [vmem:[#allocation7 + $0x160] sm:$0xff] }
 0x7d4   :  { %10243 = vst [vmem:[#allocation99_spill] sm:$0xff] %v8296_v12  ;;  %10244 = vst [vmem:[#allocation100_spill] sm:$0xff] %v8299_v37 }
 0x7d5   :  { %3458 = vmatmul.mubr.f32.vlgmr.msra.gmra.mxu0 %v3217_v18  ;;  %3529 = vmatmul.mubr.f32.vlgmr.msra.gmra.mxu1 %v3217_v18  ;;  %v8302_v18 = vld [vmem:[#allocation7 + $0x170] sm:$0xff] }
 0x7d6   :  { %3536 = vmatpush1.msra.mxu0 %v8251_v31  ;;  %3607 = vmatpush1.msra.mxu1 %v8254_v32  ;;  %10245 = vst [vmem:[#allocation101_spill] sm:$0xff] %v8302_v18 }
 0x7d7   :  { %3537 = vmatprep.subr.mxu0 %v8257_v45  ;;  %3608 = vmatprep.subr.mxu1 %v8260_v23 }
 0x7d8   :  { %3538 = vmatpush1.msra.mxu0 %v8263_v24  ;;  %3609 = vmatpush1.msra.mxu1 %v8266_v25 }
 0x7d9   :  { %3539 = vmatprep.subr.mxu0 %v8269_v26  ;;  %3610 = vmatprep.subr.mxu1 %v8272_v11 }
 0x7da   :  { %3540 = vmatpush1.msra.mxu0 %v8275_v46  ;;  %3611 = vmatpush1.msra.mxu1 %v8278_v19  ;;  %v8318_v46 = vld [vmem:[#allocation7 + $0x128] sm:$0xff] }
 0x7db   :  { %3541 = vmatprep.subr.mxu0 %v8281_v17  ;;  %3612 = vmatprep.subr.mxu1 %v8284_v16  ;;  %v8308_v16 = vld [vmem:[#allocation7 + $0x158] sm:$0xff]  ;;  %v8311_v17 = vld [vmem:[#allocation7 + $0x140] sm:$0xff] }
 0x7dc   :  { %3542 = vmatpush1.msra.mxu0 %v8287_v15  ;;  %3613 = vmatpush1.msra.mxu1 %v8290_v30  ;;  %v8305_v30 = vld [vmem:[#allocation7 + $0x148] sm:$0xff]  ;;  %10247 = vst [vmem:[#allocation103_spill] sm:$0xff] %v8311_v17 }
 0x7dd   :  { %3543 = vmatprep.subr.mxu0 %v8293_v14  ;;  %3614 = vmatprep.subr.mxu1 %v8296_v12  ;;  %10246 = vst [vmem:[#allocation102_spill] sm:$0xff] %v8305_v30  ;;  %v3385_v12 = vadd.f32 1.0, %v4600_v21  ;;  %v8324_v21 = vld [vmem:[#allocation7 + $0x120] sm:$0xff] }
 0x7de   :  { %v4602_v22 = vpop.eup %4601  ;;  %3544 = vmatpush1.msra.mxu0 %v8299_v37  ;;  %3615 = vmatpush1.msra.mxu1 %v8302_v18  ;;  %v8314_v37 = vld [vmem:[#allocation7 + $0x150] sm:$0xff] }
 0x7df   :  { %v4604_v15 = vpop.eup %4603  ;;  %3545 = vmatprep.subr.mxu0 %v8305_v30  ;;  %3616 = vmatprep.subr.mxu1 %v8308_v16  ;;  %10248 = vst [vmem:[#allocation104_spill] sm:$0xff] %v8314_v37  ;;  %v8321_v30 = vld [vmem:[#allocation7 + $0x138] sm:$0xff]  ;;  %4607 = vrcp.f32 %v3385_v12  ;;  %v8354_v12 = vld [vmem:[#allocation7 + $0xf0] sm:$0xff] }
 0x7e0   :  { %v4606_v14 = vpop.eup %4605  ;;  %3546 = vmatpush1.msra.mxu0 %v8311_v17  ;;  %3617 = vmatpush1.msra.mxu1 %v8314_v37  ;;  %v3389_v18 = vmul.f32 %v4604_v15, %v4602_v22  ;;  %v8327_v17 = vld [vmem:[#allocation7 + $0x130] sm:$0xff]  ;;  %v8332_v15 = vld [vmem:[#allocation7 + $0x108] sm:$0xff]  ;;  %10257 = vst [vmem:[#allocation113_spill] sm:$0xff] %v8354_v12 }
 0x7e1   :  { %v3388_v19 = vmul.f32 %v4606_v14, %v7802_v60  ;;  %3547 = vmatprep.subr.mxu0 %v8318_v46  ;;  %3618 = vmatprep.subr.mxu1 %v8321_v30  ;;  %10249 = vst [vmem:[#allocation105_spill] sm:$0xff] %v8327_v17  ;;  %10250 = vst [vmem:[#allocation106_spill] sm:$0xff] %v8332_v15  ;;  %v8335_v60 = vld [vmem:[#allocation7 + $0x118] sm:$0xff]  ;;  %v8338_v14 = vld [vmem:[#allocation7 + $0x100] sm:$0xff] }
 0x7e2   :  { %3548 = vmatpush1.msra.mxu0 %v8324_v21  ;;  %3619 = vmatpush1.msra.mxu1 %v8327_v17  ;;  %10251 = vst [vmem:[#allocation107_spill] sm:$0xff] %v8335_v60  ;;  %10252 = vst [vmem:[#allocation108_spill] sm:$0xff] %v8338_v14  ;;  %v8341_v22 = vld [vmem:[#allocation7 + $0x110] sm:$0xff]  ;;  %v8344_v17 = vld [vmem:[#allocation7 + $0xe8] sm:$0xff] }
 0x7e3   :  { %v8330_v37 = vadd.f32 %v3389_v18, %v3388_v19  ;;  %3549 = vmatprep.subr.mxu0 %v8332_v15  ;;  %3620 = vmatprep.subr.mxu1 %v8335_v60  ;;  %10253 = vst [vmem:[#allocation109_spill] sm:$0xff] %v8341_v22  ;;  %10254 = vst [vmem:[#allocation110_spill] sm:$0xff] %v8344_v17  ;;  %v8347_v19 = vld [vmem:[#allocation7 + $0xf8] sm:$0xff]  ;;  %v8351_v18 = vld [vmem:[#allocation7 + $0xe0] sm:$0xff] }
 0x7e4   :  { %3550 = vmatpush1.msra.mxu0 %v8338_v14  ;;  %3621 = vmatpush1.msra.mxu1 %v8341_v22  ;;  %10255 = vst [vmem:[#allocation111_spill] sm:$0xff] %v8347_v19  ;;  %10256 = vst [vmem:[#allocation112_spill] sm:$0xff] %v8351_v18  ;;  %v8357_v14 = vld [vmem:[#allocation7 + $0xc8] sm:$0xff]  ;;  %v8360_v22 = vld [vmem:[#allocation7 + $0xd8] sm:$0xff] }
 0x7e5   :  { %3551 = vmatprep.subr.mxu0 %v8344_v17  ;;  %3622 = vmatprep.subr.mxu1 %v8347_v19  ;;  %4609 = vtanh.f32 %v8330_v37  ;;  %10258 = vst [vmem:[#allocation114_spill] sm:$0xff] %v8357_v14  ;;  %10259 = vst [vmem:[#allocation115_spill] sm:$0xff] %v8360_v22  ;;  %v8363_v17 = vld [vmem:[#allocation7 + $0xc0] sm:$0xff]  ;;  %v8366_v19 = vld [vmem:[#allocation7 + $0xd0] sm:$0xff] }
 0x7e6   :  { %3552 = vmatpush1.msra.mxu0 %v8351_v18  ;;  %3623 = vmatpush1.msra.mxu1 %v8354_v12  ;;  %10260 = vst [vmem:[#allocation116_spill] sm:$0xff] %v8363_v17  ;;  %10261 = vst [vmem:[#allocation117_spill] sm:$0xff] %v8366_v19  ;;  %v8369_v18 = vld [vmem:[#allocation7 + $0xa8] sm:$0xff]  ;;  %v8372_v12 = vld [vmem:[#allocation7 + $0xb8] sm:$0xff] }
 0x7e7   :  { %3553 = vmatprep.subr.mxu0 %v8357_v14  ;;  %3624 = vmatprep.subr.mxu1 %v8360_v22  ;;  %10262 = vst [vmem:[#allocation118_spill] sm:$0xff] %v8369_v18  ;;  %10263 = vst [vmem:[#allocation119_spill] sm:$0xff] %v8372_v12  ;;  %v8375_v14 = vld [vmem:[#allocation7 + $0xa0] sm:$0xff]  ;;  %v8378_v22 = vld [vmem:[#allocation7 + $0xb0] sm:$0xff] }
 0x7e8   :  { %3554 = vmatpush1.msra.mxu0 %v8363_v17  ;;  %3625 = vmatpush1.msra.mxu1 %v8366_v19  ;;  %10264 = vst [vmem:[#allocation120_spill] sm:$0xff] %v8375_v14  ;;  %10265 = vst [vmem:[#allocation121_spill] sm:$0xff] %v8378_v22  ;;  %v8381_v17 = vld [vmem:[#allocation7 + $0x88] sm:$0xff]  ;;  %v8384_v19 = vld [vmem:[#allocation7 + $0x98] sm:$0xff] }
 0x7e9   :  { %3555 = vmatprep.subr.mxu0 %v8369_v18  ;;  %3626 = vmatprep.subr.mxu1 %v8372_v12  ;;  %10266 = vst [vmem:[#allocation122_spill] sm:$0xff] %v8381_v17  ;;  %10267 = vst [vmem:[#allocation123_spill] sm:$0xff] %v8384_v19  ;;  %v8387_v18 = vld [vmem:[#allocation7 + $0x80] sm:$0xff]  ;;  %v8390_v12 = vld [vmem:[#allocation7 + $0x90] sm:$0xff] }
 0x7ea   :  { %3556 = vmatpush1.msra.mxu0 %v8375_v14  ;;  %3627 = vmatpush1.msra.mxu1 %v8378_v22  ;;  %10268 = vst [vmem:[#allocation124_spill] sm:$0xff] %v8387_v18  ;;  %10269 = vst [vmem:[#allocation125_spill] sm:$0xff] %v8390_v12  ;;  %v8393_v14 = vld [vmem:[#allocation7 + $0x68] sm:$0xff]  ;;  %v8396_v22 = vld [vmem:[#allocation7 + $0x78] sm:$0xff] }
 0x7eb   :  { %3557 = vmatprep.subr.mxu0 %v8381_v17  ;;  %3628 = vmatprep.subr.mxu1 %v8384_v19  ;;  %10270 = vst [vmem:[#allocation126_spill] sm:$0xff] %v8393_v14  ;;  %10271 = vst [vmem:[#allocation127_spill] sm:$0xff] %v8396_v22  ;;  %v8399_v17 = vld [vmem:[#allocation7 + $0x60] sm:$0xff]  ;;  %v8402_v19 = vld [vmem:[#allocation7 + $0x70] sm:$0xff] }
 0x7ec   :  { %3558 = vmatpush1.msra.mxu0 %v8387_v18  ;;  %3629 = vmatpush1.msra.mxu1 %v8390_v12  ;;  %10272 = vst [vmem:[#allocation128_spill] sm:$0xff] %v8399_v17  ;;  %10273 = vst [vmem:[#allocation129_spill] sm:$0xff] %v8402_v19  ;;  %v8405_v18 = vld [vmem:[#allocation7 + $0x48] sm:$0xff]  ;;  %v8408_v12 = vld [vmem:[#allocation7 + $0x58] sm:$0xff] }
 0x7ed   :  { %3559 = vmatprep.subr.mxu0 %v8393_v14  ;;  %3630 = vmatprep.subr.mxu1 %v8396_v22  ;;  %10274 = vst [vmem:[#allocation130_spill] sm:$0xff] %v8405_v18  ;;  %10275 = vst [vmem:[#allocation131_spill] sm:$0xff] %v8408_v12  ;;  %v8411_v14 = vld [vmem:[#allocation7 + $0x40] sm:$0xff]  ;;  %v8414_v22 = vld [vmem:[#allocation7 + $0x50] sm:$0xff] }
 0x7ee   :  { %3560 = vmatpush1.msra.mxu0 %v8399_v17  ;;  %3631 = vmatpush1.msra.mxu1 %v8402_v19  ;;  %10276 = vst [vmem:[#allocation132_spill] sm:$0xff] %v8411_v14  ;;  %10277 = vst [vmem:[#allocation133_spill] sm:$0xff] %v8414_v22  ;;  %v4608_v17 = vpop.eup %4607  ;;  %v8417_v60 = vld [vmem:[#allocation7 + $0x28] sm:$0xff]  ;;  %v8420_v19 = vld [vmem:[#allocation7 + $0x38] sm:$0xff] }
 0x7ef   :  { %3561 = vmatprep.subr.mxu0 %v8405_v18  ;;  %3632 = vmatprep.subr.mxu1 %v8408_v12  ;;  %10278 = vst [vmem:[#allocation134_spill] sm:$0xff] %v8417_v60  ;;  %10279 = vst [vmem:[#allocation135_spill] sm:$0xff] %v8420_v19  ;;  %v8423_v15 = vld [vmem:[#allocation7 + $0x20] sm:$0xff]  ;;  %v8426_v12 = vld [vmem:[#allocation7 + $0x30] sm:$0xff] }
 0x7f0   :  { %3562 = vmatpush1.msra.mxu0 %v8411_v14  ;;  %3633 = vmatpush1.msra.mxu1 %v8414_v22  ;;  %10280 = vst [vmem:[#allocation136_spill] sm:$0xff] %v8423_v15  ;;  %v8429_v14 = vld [vmem:[#allocation7 + $0x8] sm:$0xff]  ;;  %v8432_v22 = vld [vmem:[#allocation7 + $0x18] sm:$0xff] }
 0x7f1   :  { %3563 = vmatprep.subr.mxu0 %v8417_v60  ;;  %3634 = vmatprep.subr.mxu1 %v8420_v19  ;;  %v8437_v19 = vld [vmem:[#allocation7] sm:$0xff] }
 0x7f2   :  { %v4610_v18 = vpop.eup %4609  ;;  %3564 = vmatpush1.msra.mxu0 %v8423_v15  ;;  %3635 = vmatpush1.msra.mxu1 %v8426_v12  ;;  %v8441_v15 = vld [vmem:[#allocation7 + $0x10] sm:$0xff] }
 0x7f3   :  { %3565 = vmatprep.subr.mxu0 %v8429_v14  ;;  %3636 = vmatprep.subr.mxu1 %v8432_v22  ;;  %v8435_v60 = vmul.f32 %v4610_v18, %v4608_v17  ;;  %v10318_v17 = vld [vmem:[#allocation33_spill] sm:$0xff]  ;;  %v10320_v18 = vld [vmem:[#allocation36_spill] sm:$0xff] }
 0x7f4   :  { %3566 = vmatpush1.msra.mxu0 %v8437_v19  ;;  %3599 = vmatprep.mubr.f32.mxu0 %v9461_v20 }
 0x7f5   :  { %3637 = vmatpush1.msra.mxu1 %v8441_v15  ;;  %3670 = vmatprep.mubr.f32.mxu1 %v9461_v20 }
 0x7f6   :  { %3600 = vmatmul.mubr.f32.vlgmr.msra.gmra.mxu0 %v8435_v60  ;;  %3671 = vmatmul.mubr.f32.vlgmr.msra.gmra.mxu1 %v8435_v60 }
 0x7f7   :  { %3710 = vmatprep.subr.mxu0 %v7847_v5  ;;  %3781 = vmatprep.subr.mxu1 %v7850_v62  ;;  %v10281_v5 = vld [vmem:[#allocation144_spill] sm:$0xff]  ;;  %v10282_v62 = vld [vmem:[#allocation145_spill] sm:$0xff] }
 0x7f8   :  { %3711 = vmatpush1.msra.mxu0 %v7853_v4  ;;  %3782 = vmatpush1.msra.mxu1 %v7856_v3  ;;  %v10283_v4 = vld [vmem:[#allocation146_spill] sm:$0xff]  ;;  %v10284_v3 = vld [vmem:[#allocation147_spill] sm:$0xff] }
 0x7f9   :  { %3712 = vmatprep.subr.mxu0 %v7859_v0  ;;  %3783 = vmatprep.subr.mxu1 %v7862_v51  ;;  %v10285_v0 = vld [vmem:[#allocation148_spill] sm:$0xff]  ;;  %v10286_v51 = vld [vmem:[#allocation149_spill] sm:$0xff] }
 0x7fa   :  { %3713 = vmatpush1.msra.mxu0 %v7865_v7  ;;  %3784 = vmatpush1.msra.mxu1 %v7868_v8  ;;  %v10287_v7 = vld [vmem:[#allocation150_spill] sm:$0xff]  ;;  %v10288_v8 = vld [vmem:[#allocation151_spill] sm:$0xff] }
 0x7fb   :  { %3714 = vmatprep.subr.mxu0 %v7871_v49  ;;  %3785 = vmatprep.subr.mxu1 %v7874_v53  ;;  %v10289_v49 = vld [vmem:[#allocation152_spill] sm:$0xff]  ;;  %v10290_v53 = vld [vmem:[#allocation153_spill] sm:$0xff] }
 0x7fc   :  { %3715 = vmatpush1.msra.mxu0 %v7877_v57  ;;  %3786 = vmatpush1.msra.mxu1 %v7880_v10  ;;  %v10291_v57 = vld [vmem:[#allocation154_spill] sm:$0xff]  ;;  %v10292_v10 = vld [vmem:[#allocation155_spill] sm:$0xff] }
 0x7fd   :  { %3716 = vmatprep.subr.mxu0 %v7883_v44  ;;  %3787 = vmatprep.subr.mxu1 %v7886_v43  ;;  %v10293_v44 = vld [vmem:[#allocation156_spill] sm:$0xff]  ;;  %v10294_v43 = vld [vmem:[#allocation157_spill] sm:$0xff] }
 0x7fe   :  { %3717 = vmatpush1.msra.mxu0 %v7889_v40  ;;  %3788 = vmatpush1.msra.mxu1 %v7892_v35  ;;  %v10295_v40 = vld [vmem:[#allocation18_spill] sm:$0xff]  ;;  %v10296_v35 = vld [vmem:[#allocation13_spill] sm:$0xff] }
 0x7ff   :  { %3718 = vmatprep.subr.mxu0 %v7895_v48  ;;  %3789 = vmatprep.subr.mxu1 %v7898_v50  ;;  %v10297_v48 = vld [vmem:[#allocation20_spill] sm:$0xff]  ;;  %v10298_v50 = vld [vmem:[#allocation14_spill] sm:$0xff] }
 0x800   :  { %3719 = vmatpush1.msra.mxu0 %v7901_v56  ;;  %3790 = vmatpush1.msra.mxu1 %v7904_v58  ;;  %v10299_v56 = vld [vmem:[#allocation22_spill] sm:$0xff]  ;;  %v10300_v58 = vld [vmem:[#allocation15_spill] sm:$0xff] }
 0x801   :  { %3720 = vmatprep.subr.mxu0 %v7907_v61  ;;  %3791 = vmatprep.subr.mxu1 %v7910_v2  ;;  %v10301_v61 = vld [vmem:[#allocation24_spill] sm:$0xff] }
 0x802   :  { %3721 = vmatpush1.msra.mxu0 %v7913_v47  ;;  %3792 = vmatpush1.msra.mxu1 %v7916_v1  ;;  %v10302_v2 = vld [vmem:[#allocation16_spill] sm:$0xff]  ;;  %v10303_v47 = vld [vmem:[#allocation25_spill] sm:$0xff] }
 0x803   :  { %3722 = vmatprep.subr.mxu0 %v7919_v55  ;;  %3793 = vmatprep.subr.mxu1 %v7922_v39  ;;  %v10304_v1 = vld [vmem:[#allocation17_spill] sm:$0xff]  ;;  %v10305_v55 = vld [vmem:[#allocation26_spill] sm:$0xff]  ;;  %v10306_v39 = vld [vmem:[#allocation19_spill] sm:$0xff] }
 0x804   :  { %3723 = vmatpush1.msra.mxu0 %v7925_v28  ;;  %3794 = vmatpush1.msra.mxu1 %v7928_v59  ;;  %v10307_v28 = vld [vmem:[#allocation28_spill] sm:$0xff]  ;;  %v10308_v59 = vld [vmem:[#allocation21_spill] sm:$0xff] }
 0x805   :  { %3724 = vmatprep.subr.mxu0 %v7931_v9  ;;  %3795 = vmatprep.subr.mxu1 %v7934_v6  ;;  %v10309_v9 = vld [vmem:[#allocation30_spill] sm:$0xff]  ;;  %v10310_v6 = vld [vmem:[#allocation23_spill] sm:$0xff] }
 0x806   :  { %3725 = vmatpush1.msra.mxu0 %v7937_v54  ;;  %3796 = vmatpush1.msra.mxu1 %v7940_v36  ;;  %v10311_v54 = vld [vmem:[#allocation32_spill] sm:$0xff]  ;;  %v10312_v36 = vld [vmem:[#allocation27_spill] sm:$0xff] }
 0x807   :  { %3726 = vmatprep.subr.mxu0 %v7943_v33  ;;  %3797 = vmatprep.subr.mxu1 %v7946_v29  ;;  %v10313_v33 = vld [vmem:[#allocation34_spill] sm:$0xff]  ;;  %v10314_v29 = vld [vmem:[#allocation29_spill] sm:$0xff] }
 0x808   :  { %3727 = vmatpush1.msra.mxu0 %v7949_v13  ;;  %3798 = vmatpush1.msra.mxu1 %v7952_v41  ;;  %v10315_v13 = vld [vmem:[#allocation35_spill] sm:$0xff] }
 0x809   :  { %3728 = vmatprep.subr.mxu0 %v7955_v42  ;;  %3799 = vmatprep.subr.mxu1 %v10281_v5  ;;  %v10316_v41 = vld [vmem:[#allocation31_spill] sm:$0xff]  ;;  %v10317_v42 = vld [vmem:[#allocation37_spill] sm:$0xff] }
 0x80a   :  { %3729 = vmatpush1.msra.mxu0 %v10282_v62  ;;  %3800 = vmatpush1.msra.mxu1 %v10283_v4  ;;  %v10321_v5 = vld [vmem:[#allocation41_spill] sm:$0xff]  ;;  %v10322_v62 = vld [vmem:[#allocation38_spill] sm:$0xff]  ;;  %v10323_v4 = vld [vmem:[#allocation43_spill] sm:$0xff] }
 0x80b   :  { %3730 = vmatprep.subr.mxu0 %v10284_v3  ;;  %3801 = vmatprep.subr.mxu1 %v10285_v0  ;;  %v10324_v3 = vld [vmem:[#allocation40_spill] sm:$0xff] }
 0x80c   :  { %3731 = vmatpush1.msra.mxu0 %v10286_v51  ;;  %3802 = vmatpush1.msra.mxu1 %v10287_v7  ;;  %v10325_v0 = vld [vmem:[#allocation44_spill] sm:$0xff]  ;;  %v10326_v51 = vld [vmem:[#allocation42_spill] sm:$0xff]  ;;  %v10327_v7 = vld [vmem:[#allocation45_spill] sm:$0xff] }
 0x80d   :  { %3732 = vmatprep.subr.mxu0 %v10288_v8  ;;  %3803 = vmatprep.subr.mxu1 %v10289_v49  ;;  %v10328_v8 = vld [vmem:[#allocation46_spill] sm:$0xff]  ;;  %v10329_v49 = vld [vmem:[#allocation47_spill] sm:$0xff] }
 0x80e   :  { %3733 = vmatpush1.msra.mxu0 %v10290_v53  ;;  %3804 = vmatpush1.msra.mxu1 %v10291_v57  ;;  %v10330_v53 = vld [vmem:[#allocation48_spill] sm:$0xff]  ;;  %v10331_v57 = vld [vmem:[#allocation49_spill] sm:$0xff] }
 0x80f   :  { %3734 = vmatprep.subr.mxu0 %v10292_v10  ;;  %3805 = vmatprep.subr.mxu1 %v10293_v44  ;;  %v10332_v10 = vld [vmem:[#allocation50_spill] sm:$0xff]  ;;  %v10333_v44 = vld [vmem:[#allocation51_spill] sm:$0xff] }
 0x810   :  { %3735 = vmatpush1.msra.mxu0 %v10294_v43  ;;  %3806 = vmatpush1.msra.mxu1 %v10295_v40  ;;  %v10334_v43 = vld [vmem:[#allocation52_spill] sm:$0xff]  ;;  %v10335_v40 = vld [vmem:[#allocation53_spill] sm:$0xff] }
 0x811   :  { %3736 = vmatprep.subr.mxu0 %v10296_v35  ;;  %3807 = vmatprep.subr.mxu1 %v10297_v48  ;;  %v10336_v35 = vld [vmem:[#allocation54_spill] sm:$0xff]  ;;  %v10337_v48 = vld [vmem:[#allocation55_spill] sm:$0xff] }
 0x812   :  { %3737 = vmatpush1.msra.mxu0 %v10298_v50  ;;  %3808 = vmatpush1.msra.mxu1 %v10299_v56  ;;  %v10338_v50 = vld [vmem:[#allocation56_spill] sm:$0xff]  ;;  %v10339_v56 = vld [vmem:[#allocation57_spill] sm:$0xff] }
 0x813   :  { %3738 = vmatprep.subr.mxu0 %v10300_v58  ;;  %3809 = vmatprep.subr.mxu1 %v10301_v61  ;;  %v10340_v58 = vld [vmem:[#allocation58_spill] sm:$0xff]  ;;  %v10341_v61 = vld [vmem:[#allocation59_spill] sm:$0xff] }
 0x814   :  { %3739 = vmatpush1.msra.mxu0 %v10302_v2  ;;  %3810 = vmatpush1.msra.mxu1 %v10303_v47  ;;  %v10342_v2 = vld [vmem:[#allocation60_spill] sm:$0xff]  ;;  %v10343_v47 = vld [vmem:[#allocation61_spill] sm:$0xff] }
 0x815   :  { %3740 = vmatprep.subr.mxu0 %v10304_v1  ;;  %3811 = vmatprep.subr.mxu1 %v10305_v55  ;;  %v10344_v1 = vld [vmem:[#allocation62_spill] sm:$0xff]  ;;  %v10345_v55 = vld [vmem:[#allocation63_spill] sm:$0xff] }
 0x816   :  { %3741 = vmatpush1.msra.mxu0 %v10306_v39  ;;  %3774 = vmatprep.mubr.f32.mxu0 %v9461_v20  ;;  %v10346_v39 = vld [vmem:[#allocation64_spill] sm:$0xff] }
 0x817   :  { %3812 = vmatpush1.msra.mxu1 %v10307_v28  ;;  %3845 = vmatprep.mubr.f32.mxu1 %v9461_v20  ;;  %v10347_v28 = vld [vmem:[#allocation65_spill] sm:$0xff] }
 0x818   :  { %3775 = vmatmul.mubr.f32.vlgmr.msra.gmra.mxu0 %v8435_v60  ;;  %3846 = vmatmul.mubr.f32.vlgmr.msra.gmra.mxu1 %v8435_v60  ;;  %v10319_v60 = vld [vmem:[#allocation39_spill] sm:$0xff] }
 0x819   :  { %3880 = vmatprep.subr.mxu0 %v10308_v59  ;;  %3951 = vmatprep.subr.mxu1 %v10309_v9  ;;  %v10348_v59 = vld [vmem:[#allocation66_spill] sm:$0xff]  ;;  %v10349_v9 = vld [vmem:[#allocation67_spill] sm:$0xff] }
 0x81a   :  { %3881 = vmatpush1.msra.mxu0 %v10310_v6  ;;  %3952 = vmatpush1.msra.mxu1 %v10311_v54  ;;  %v10350_v6 = vld [vmem:[#allocation68_spill] sm:$0xff]  ;;  %v10351_v54 = vld [vmem:[#allocation69_spill] sm:$0xff] }
 0x81b   :  { %3882 = vmatprep.subr.mxu0 %v10312_v36  ;;  %3953 = vmatprep.subr.mxu1 %v10313_v33  ;;  %v10352_v36 = vld [vmem:[#allocation70_spill] sm:$0xff]  ;;  %v10353_v33 = vld [vmem:[#allocation71_spill] sm:$0xff] }
 0x81c   :  { %3883 = vmatpush1.msra.mxu0 %v10314_v29  ;;  %3954 = vmatpush1.msra.mxu1 %v10315_v13  ;;  %v10354_v29 = vld [vmem:[#allocation72_spill] sm:$0xff]  ;;  %v10355_v13 = vld [vmem:[#allocation73_spill] sm:$0xff] }
 0x81d   :  { %3884 = vmatprep.subr.mxu0 %v10316_v41  ;;  %3955 = vmatprep.subr.mxu1 %v10317_v42  ;;  %v10356_v41 = vld [vmem:[#allocation74_spill] sm:$0xff]  ;;  %v10357_v42 = vld [vmem:[#allocation75_spill] sm:$0xff] }
 0x81e   :  { %3885 = vmatpush1.msra.mxu0 %v10318_v17  ;;  %3956 = vmatpush1.msra.mxu1 %v10319_v60  ;;  %v10358_v17 = vld [vmem:[#allocation76_spill] sm:$0xff]  ;;  %v10359_v60 = vld [vmem:[#allocation77_spill] sm:$0xff] }
 0x81f   :  { %3886 = vmatprep.subr.mxu0 %v10320_v18  ;;  %3957 = vmatprep.subr.mxu1 %v10321_v5  ;;  %v10360_v18 = vld [vmem:[#allocation78_spill] sm:$0xff]  ;;  %v10361_v5 = vld [vmem:[#allocation79_spill] sm:$0xff] }
 0x820   :  { %3887 = vmatpush1.msra.mxu0 %v10322_v62  ;;  %3958 = vmatpush1.msra.mxu1 %v10323_v4  ;;  %v10362_v62 = vld [vmem:[#allocation80_spill] sm:$0xff]  ;;  %v10363_v4 = vld [vmem:[#allocation81_spill] sm:$0xff] }
 0x821   :  { %3888 = vmatprep.subr.mxu0 %v10324_v3  ;;  %3959 = vmatprep.subr.mxu1 %v10325_v0  ;;  %v10364_v3 = vld [vmem:[#allocation82_spill] sm:$0xff]  ;;  %v10365_v0 = vld [vmem:[#allocation83_spill] sm:$0xff] }
 0x822   :  { %3889 = vmatpush1.msra.mxu0 %v10326_v51  ;;  %3960 = vmatpush1.msra.mxu1 %v10327_v7  ;;  %v10366_v51 = vld [vmem:[#allocation84_spill] sm:$0xff]  ;;  %v10367_v7 = vld [vmem:[#allocation85_spill] sm:$0xff] }
 0x823   :  { %3890 = vmatprep.subr.mxu0 %v10328_v8  ;;  %3961 = vmatprep.subr.mxu1 %v10329_v49  ;;  %v10368_v8 = vld [vmem:[#allocation86_spill] sm:$0xff]  ;;  %v10369_v49 = vld [vmem:[#allocation87_spill] sm:$0xff] }
 0x824   :  { %3891 = vmatpush1.msra.mxu0 %v10330_v53  ;;  %3962 = vmatpush1.msra.mxu1 %v10331_v57  ;;  %v10370_v53 = vld [vmem:[#allocation88_spill] sm:$0xff]  ;;  %v10371_v57 = vld [vmem:[#allocation89_spill] sm:$0xff] }
 0x825   :  { %3892 = vmatprep.subr.mxu0 %v10332_v10  ;;  %3963 = vmatprep.subr.mxu1 %v10333_v44  ;;  %v10372_v10 = vld [vmem:[#allocation90_spill] sm:$0xff]  ;;  %v10373_v44 = vld [vmem:[#allocation91_spill] sm:$0xff] }
 0x826   :  { %3893 = vmatpush1.msra.mxu0 %v10334_v43  ;;  %3964 = vmatpush1.msra.mxu1 %v10335_v40 }
 0x827   :  { %3894 = vmatprep.subr.mxu0 %v10336_v35  ;;  %3965 = vmatprep.subr.mxu1 %v10337_v48 }
 0x828   :  { %3895 = vmatpush1.msra.mxu0 %v10338_v50  ;;  %3966 = vmatpush1.msra.mxu1 %v10339_v56 }
 0x829   :  { %3896 = vmatprep.subr.mxu0 %v10340_v58  ;;  %3967 = vmatprep.subr.mxu1 %v10341_v61 }
 0x82a   :  { %3897 = vmatpush1.msra.mxu0 %v10342_v2  ;;  %3968 = vmatpush1.msra.mxu1 %v10343_v47 }
 0x82b   :  { %3898 = vmatprep.subr.mxu0 %v10344_v1  ;;  %3969 = vmatprep.subr.mxu1 %v10345_v55 }
 0x82c   :  { %3899 = vmatpush1.msra.mxu0 %v10346_v39  ;;  %3970 = vmatpush1.msra.mxu1 %v10347_v28 }
 0x82d   :  { %3900 = vmatprep.subr.mxu0 %v10348_v59  ;;  %3971 = vmatprep.subr.mxu1 %v10349_v9 }
 0x82e   :  { %3901 = vmatpush1.msra.mxu0 %v10350_v6  ;;  %3972 = vmatpush1.msra.mxu1 %v10351_v54 }
 0x82f   :  { %3902 = vmatprep.subr.mxu0 %v10352_v36  ;;  %3973 = vmatprep.subr.mxu1 %v10353_v33 }
 0x830   :  { %3903 = vmatpush1.msra.mxu0 %v10354_v29  ;;  %3974 = vmatpush1.msra.mxu1 %v10355_v13 }
 0x831   :  { %3904 = vmatprep.subr.mxu0 %v10356_v41  ;;  %3975 = vmatprep.subr.mxu1 %v10357_v42  ;;  %v3706_v42 = vld [vmem:[#allocation3 + $0xe0] sm:$0xff] }
 0x832   :  { %3905 = vmatpush1.msra.mxu0 %v10358_v17  ;;  %3976 = vmatpush1.msra.mxu1 %v10359_v60  ;;  %v3707_v60 = vld [vmem:[#allocation3 + $0xe8] sm:$0xff] }
 0x833   :  { %3906 = vmatprep.subr.mxu0 %v10360_v18  ;;  %3977 = vmatprep.subr.mxu1 %v10361_v5 }
 0x834   :  { %3907 = vmatpush1.msra.mxu0 %v10362_v62  ;;  %3978 = vmatpush1.msra.mxu1 %v10363_v4 }
 0x835   :  { %3908 = vmatprep.subr.mxu0 %v10364_v3  ;;  %3979 = vmatprep.subr.mxu1 %v10365_v0 }
 0x836   :  { %3909 = vmatpush1.msra.mxu0 %v10366_v51  ;;  %3980 = vmatpush1.msra.mxu1 %v10367_v7 }
 0x837   :  { %3910 = vmatprep.subr.mxu0 %v10368_v8  ;;  %3981 = vmatprep.subr.mxu1 %v10369_v49 }
 0x838   :  { %3911 = vmatpush1.msra.mxu0 %v10370_v53  ;;  %3982 = vmatpush1.msra.mxu1 %v10371_v57 }
 0x839   :  { %3944 = vmatprep.mubr.f32.mxu0 %v9461_v20  ;;  %4015 = vmatprep.mubr.f32.mxu1 %v9461_v20 }
 0x83a   :  { %4022 = vmatprep.subr.mxu0 %v10372_v10  ;;  %4093 = vmatprep.subr.mxu1 %v10373_v44 }
 0x895   :  { %v3459_v43 = vpop.f32.mrf.mxu0  ;;  %v3530_v40 = vpop.f32.mrf.mxu1 }
 0x897   :  { %v3461_v35 = vpop.f32.mrf.mxu0  ;;  %v3532_v50 = vpop.f32.mrf.mxu1 }
 0x8b6   :  { %v3601_v48 = vpop.f32.mrf.mxu0  ;;  %v3672_v2 = vpop.f32.mrf.mxu1 }
 0x8b7   :  { %v3602_v56 = vadd.f32 %v3601_v48, %v3459_v43  ;;  %v3673_v6 = vadd.f32 %v3672_v2, %v3530_v40  ;;  %v3709_v43 = vld [vmem:[#allocation3 + $0xf8] sm:$0xff]  ;;  %v3708_v48 = vld [vmem:[#allocation3 + $0xf0] sm:$0xff] }
 0x8b8   :  { %v3603_v58 = vpop.f32.mrf.mxu0  ;;  %v3674_v28 = vpop.f32.mrf.mxu1 }
 0x8b9   :  { %v3677_v61 = vadd.f32 %v3602_v56, %v6128_v34  ;;  %v3604_v47 = vadd.f32 %v3603_v58, %v3461_v35  ;;  %v3675_v59 = vadd.f32 %v3674_v28, %v3532_v50  ;;  %v3679_v33 = vadd.f32 %v3673_v6, %v6137_v63  ;;  %v10375_v28 = vld [vmem:[#allocation93_spill] sm:$0xff] }
 0x8bb   :  { %v4333_v1 = vmul.f32 -1.442695, %v3677_v61  ;;  %v3678_v55 = vadd.f32 %v3604_v47, %v6130_v38  ;;  %v3680_v9 = vadd.f32 %v3675_v59, %v6134_v52  ;;  %v10376_v59 = vld [vmem:[#allocation94_spill] sm:$0xff] }
 0x8bd   :  { %4611 = vpow2.f32 %v4333_v1  ;;  %v4334_v39 = vmul.f32 -1.442695, %v3678_v55  ;;  %v4335_v54 = vmul.f32 -1.442695, %v3680_v9  ;;  %v10382_v9 = vld [vmem:[#allocation100_spill] sm:$0xff] }
 0x8bf   :  { %4613 = vpow2.f32 %v4334_v39  ;;  %v10374_v39 = vld [vmem:[#allocation92_spill] sm:$0xff] }
 0x8c0   :  { %4615 = vpow2.f32 %v4335_v54  ;;  %v10384_v54 = vld [vmem:[#allocation102_spill] sm:$0xff] }
 0x8ca   :  { %v4612_v36 = vpop.eup %4611 }
 0x8cb   :  { %v3684_v29 = vadd.f32 1.0, %v4612_v36 }
 0x8cc   :  { %v4614_v13 = vpop.eup %4613 }
 0x8cd   :  { %4617 = vrcp.f32 %v3684_v29  ;;  %v3690_v41 = vadd.f32 1.0, %v4614_v13  ;;  %v4616_v18 = vpop.eup %4615  ;;  %v10385_v29 = vld [vmem:[#allocation103_spill] sm:$0xff]  ;;  %v10386_v13 = vld [vmem:[#allocation104_spill] sm:$0xff] }
 0x8ce   :  { %4619 = vtanh.f32 %v3679_v33  ;;  %v3697_v8 = vadd.f32 1.0, %v4616_v18  ;;  %v10388_v18 = vld [vmem:[#allocation106_spill] sm:$0xff] }
 0x8cf   :  { %4621 = vrcp.f32 %v3690_v41 }
 0x8d8   :  { %v3776_v17 = vpop.f32.mrf.mxu0  ;;  %v3847_v57 = vpop.f32.mrf.mxu1 }
 0x8d9   :  { %v3852_v5 = vadd.f32 %v3776_v17, %v3706_v42  ;;  %v3854_v58 = vadd.f32 %v3847_v57, %v3708_v48  ;;  %v10387_v17 = vld [vmem:[#allocation105_spill] sm:$0xff]  ;;  %v10404_v57 = vld [vmem:[#allocation122_spill] sm:$0xff]  ;;  %v10409_v48 = vld [vmem:[#allocation127_spill] sm:$0xff] }
 0x8da   :  { %v4618_v62 = vpop.eup %4617  ;;  %v3778_v4 = vpop.f32.mrf.mxu0 }
 0x8db   :  { %v4620_v3 = vpop.eup %4619  ;;  %v4336_v0 = vmul.f32 -1.442695, %v3852_v5  ;;  %v3853_v51 = vadd.f32 %v3778_v4, %v3707_v60  ;;  %v3849_v40 = vpop.f32.mrf.mxu1  ;;  %v10390_v5 = vld [vmem:[#allocation108_spill] sm:$0xff]  ;;  %v10392_v4 = vld [vmem:[#allocation110_spill] sm:$0xff] }
 0x8dc   :  { %v4622_v7 = vpop.eup %4621  ;;  %v3701_v49 = vmul.f32 %v4620_v3, %v4618_v62  ;;  %v3855_v35 = vadd.f32 %v3849_v40, %v3709_v43  ;;  %v10391_v62 = vld [vmem:[#allocation109_spill] sm:$0xff]  ;;  %v10397_v3 = vld [vmem:[#allocation115_spill] sm:$0xff]  ;;  %v10406_v43 = vld [vmem:[#allocation124_spill] sm:$0xff] }
 0x8dd   :  { %v3700_v53 = vmul.f32 %v4622_v7, %v8248_v27  ;;  %4623 = vpow2.f32 %v4336_v0  ;;  %v4337_v10 = vmul.f32 -1.442695, %v3853_v51  ;;  %v10398_v0 = vld [vmem:[#allocation116_spill] sm:$0xff]  ;;  %v10399_v51 = vld [vmem:[#allocation117_spill] sm:$0xff]  ;;  %v10400_v7 = vld [vmem:[#allocation118_spill] sm:$0xff] }
 0x8de   :  { %v4338_v50 = vmul.f32 -1.442695, %v3855_v35  ;;  %v10407_v40 = vld [vmem:[#allocation125_spill] sm:$0xff]  ;;  %v10408_v35 = vld [vmem:[#allocation126_spill] sm:$0xff] }
 0x8df   :  { %4625 = vpow2.f32 %v4337_v10  ;;  %v8588_v44 = vadd.f32 %v3701_v49, %v3700_v53  ;;  %v10402_v49 = vld [vmem:[#allocation120_spill] sm:$0xff]  ;;  %v10403_v53 = vld [vmem:[#allocation121_spill] sm:$0xff]  ;;  %v10405_v10 = vld [vmem:[#allocation123_spill] sm:$0xff] }
 0x8e0   :  { %4627 = vrcp.f32 %v3697_v8  ;;  %v10401_v8 = vld [vmem:[#allocation119_spill] sm:$0xff] }
 0x8e1   :  { %4629 = vtanh.f32 %v8588_v44 }
 0x8e2   :  { %4631 = vpow2.f32 %v4338_v50  ;;  %v10410_v50 = vld [vmem:[#allocation128_spill] sm:$0xff] }
 0x8ea   :  { %v4624_v56 = vpop.eup %4623 }
 0x8eb   :  { %v3859_v61 = vadd.f32 1.0, %v4624_v56  ;;  %v10411_v56 = vld [vmem:[#allocation129_spill] sm:$0xff] }
 0x8ec   :  { %v4626_v2 = vpop.eup %4625 }
 0x8ed   :  { %v4628_v27 = vpop.eup %4627  ;;  %4633 = vrcp.f32 %v3859_v61  ;;  %v3865_v47 = vadd.f32 1.0, %v4626_v2  ;;  %v10413_v61 = vld [vmem:[#allocation131_spill] sm:$0xff]  ;;  %v10414_v2 = vld [vmem:[#allocation132_spill] sm:$0xff] }
 0x8ee   :  { %v4630_v1 = vpop.eup %4629  ;;  %4635 = vtanh.f32 %v3854_v58  ;;  %v10412_v58 = vld [vmem:[#allocation130_spill] sm:$0xff] }
 0x8ef   :  { %4637 = vrcp.f32 %v3865_v47  ;;  %v3704_v55 = vmul.f32 %v4630_v1, %v4628_v27  ;;  %v10415_v27 = vld [vmem:[#allocation133_spill] sm:$0xff]  ;;  %v10416_v1 = vld [vmem:[#allocation134_spill] sm:$0xff] }
 0x8f1   :  { %3945 = vmatmul.mubr.f32.vlgmr.msra.gmra.mxu0 %v3704_v55  ;;  %4016 = vmatmul.mubr.f32.vlgmr.msra.gmra.mxu1 %v3704_v55  ;;  %v10417_v55 = vld [vmem:[#allocation135_spill] sm:$0xff] }
 0x8f2   :  { %4023 = vmatpush1.msra.mxu0 %v8251_v31  ;;  %4094 = vmatpush1.msra.mxu1 %v8254_v32  ;;  %v10377_v31 = vld [vmem:[#allocation95_spill] sm:$0xff]  ;;  %v10378_v32 = vld [vmem:[#allocation96_spill] sm:$0xff] }
 0x8f3   :  { %4024 = vmatprep.subr.mxu0 %v8257_v45  ;;  %4095 = vmatprep.subr.mxu1 %v8260_v23  ;;  %v10379_v45 = vld [vmem:[#allocation97_spill] sm:$0xff]  ;;  %v4632_v23 = vpop.eup %4631 }
 0x8f4   :  { %4025 = vmatpush1.msra.mxu0 %v8263_v24  ;;  %4096 = vmatpush1.msra.mxu1 %v8266_v25  ;;  %v10380_v24 = vld [vmem:[#allocation98_spill] sm:$0xff]  ;;  %v10381_v25 = vld [vmem:[#allocation99_spill] sm:$0xff]  ;;  %v3872_v33 = vadd.f32 1.0, %v4632_v23 }
 0x8f5   :  { %4026 = vmatprep.subr.mxu0 %v8269_v26  ;;  %4097 = vmatprep.subr.mxu1 %v8272_v11  ;;  %v10383_v11 = vld [vmem:[#allocation101_spill] sm:$0xff]  ;;  %v4199_v23 = vld [vmem:[%s8734_s5 + $0x38] sm:$0xff] }
 0x8f6   :  { %4027 = vmatpush1.msra.mxu0 %v10374_v39  ;;  %4098 = vmatpush1.msra.mxu1 %v10375_v28  ;;  %4639 = vrcp.f32 %v3872_v33  ;;  %v10418_v28 = vld [vmem:[#allocation136_spill] sm:$0xff] }
 0x8f7   :  { %4028 = vmatprep.subr.mxu0 %v10376_v59  ;;  %4099 = vmatprep.subr.mxu1 %v10377_v31  ;;  %v4202_v31 = vld [vmem:[%s8734_s5 + $0x50] sm:$0xff] }
 0x8f8   :  { %4029 = vmatpush1.msra.mxu0 %v10378_v32  ;;  %4100 = vmatpush1.msra.mxu1 %v10379_v45  ;;  %v4201_v32 = vld [vmem:[%s8734_s5 + $0x48] sm:$0xff]  ;;  %v4200_v45 = vld [vmem:[%s8734_s5 + $0x40] sm:$0xff] }
 0x8f9   :  { %4030 = vmatprep.subr.mxu0 %v10380_v24  ;;  %4101 = vmatprep.subr.mxu1 %v10381_v25  ;;  %v4198_v24 = vld [vmem:[%s8734_s5 + $0x30] sm:$0xff]  ;;  %v4197_v25 = vld [vmem:[%s8734_s5 + $0x28] sm:$0xff] }
 0x8fa   :  { %v4634_v26 = vpop.eup %4633  ;;  %4031 = vmatpush1.msra.mxu0 %v10382_v9  ;;  %4102 = vmatpush1.msra.mxu1 %v10383_v11  ;;  %v4195_v9 = vld [vmem:[%s8734_s5 + $0x18] sm:$0xff]  ;;  %v4194_v11 = vld [vmem:[%s8734_s5 + $0x10] sm:$0xff] }
 0x8fb   :  { %v4636_v6 = vpop.eup %4635  ;;  %4032 = vmatprep.subr.mxu0 %v10384_v54  ;;  %4103 = vmatprep.subr.mxu1 %v8308_v16  ;;  %v10389_v16 = vld [vmem:[#allocation107_spill] sm:$0xff]  ;;  %v4192_v54 = vld [vmem:[%s8734_s5] sm:$0xff] }
 0x8fc   :  { %v4638_v36 = vpop.eup %4637  ;;  %4033 = vmatpush1.msra.mxu0 %v10385_v29  ;;  %4104 = vmatpush1.msra.mxu1 %v10386_v13  ;;  %v3876_v41 = vmul.f32 %v4636_v6, %v4634_v26  ;;  %v4196_v26 = vld [vmem:[%s8734_s5 + $0x20] sm:$0xff]  ;;  %v4193_v6 = vld [vmem:[%s8734_s5 + $0x8] sm:$0xff] }
 0x8fd   :  { %v3875_v42 = vmul.f32 %v4638_v36, %v8330_v37  ;;  %4034 = vmatprep.subr.mxu0 %v8318_v46  ;;  %4105 = vmatprep.subr.mxu1 %v8321_v30  ;;  %v10393_v37 = vld [vmem:[#allocation111_spill] sm:$0xff]  ;;  %v10394_v46 = vld [vmem:[#allocation112_spill] sm:$0xff]  ;;  %v10395_v30 = vld [vmem:[#allocation113_spill] sm:$0xff] }
 0x8fe   :  { %4035 = vmatpush1.msra.mxu0 %v8324_v21  ;;  %4106 = vmatpush1.msra.mxu1 %v10387_v17  ;;  %v10396_v21 = vld [vmem:[#allocation114_spill] sm:$0xff] }
 0x8ff   :  { %v3877_v60 = vadd.f32 %v3876_v41, %v3875_v42  ;;  %4036 = vmatprep.subr.mxu0 %v10388_v18  ;;  %4107 = vmatprep.subr.mxu1 %v10389_v16 }
 0x900   :  { %4037 = vmatpush1.msra.mxu0 %v10390_v5  ;;  %4108 = vmatpush1.msra.mxu1 %v10391_v62 }
 0x901   :  { %4038 = vmatprep.subr.mxu0 %v10392_v4  ;;  %4109 = vmatprep.subr.mxu1 %v10393_v37  ;;  %4641 = vtanh.f32 %v3877_v60 }
 0x902   :  { %4039 = vmatpush1.msra.mxu0 %v10394_v46  ;;  %4110 = vmatpush1.msra.mxu1 %v10395_v30 }
 0x903   :  { %4040 = vmatprep.subr.mxu0 %v10396_v21  ;;  %4111 = vmatprep.subr.mxu1 %v10397_v3  ;;  %v4640_v47 = vpop.eup %4639 }
 0x904   :  { %4041 = vmatpush1.msra.mxu0 %v10398_v0  ;;  %4112 = vmatpush1.msra.mxu1 %v10399_v51 }
 0x905   :  { %4042 = vmatprep.subr.mxu0 %v10400_v7  ;;  %4113 = vmatprep.subr.mxu1 %v10401_v8 }
 0x906   :  { %4043 = vmatpush1.msra.mxu0 %v10402_v49  ;;  %4114 = vmatpush1.msra.mxu1 %v10403_v53 }
 0x907   :  { %4044 = vmatprep.subr.mxu0 %v10404_v57  ;;  %4115 = vmatprep.subr.mxu1 %v10405_v10 }
 0x908   :  { %4045 = vmatpush1.msra.mxu0 %v10406_v43  ;;  %4116 = vmatpush1.msra.mxu1 %v10407_v40 }
 0x909   :  { %4046 = vmatprep.subr.mxu0 %v10408_v35  ;;  %4117 = vmatprep.subr.mxu1 %v10409_v48  ;;  %v4342_v48 = vld [vmem:[#allocation2] ss:$0 sm:$0xff] }
 0x90a   :  { %4047 = vmatpush1.msra.mxu0 %v10410_v50  ;;  %4118 = vmatpush1.msra.mxu1 %v10411_v56 }
 0x90b   :  { %4048 = vmatprep.subr.mxu0 %v10412_v58  ;;  %4119 = vmatprep.subr.mxu1 %v10413_v61 }
 0x90c   :  { %4049 = vmatpush1.msra.mxu0 %v10414_v2  ;;  %4120 = vmatpush1.msra.mxu1 %v10415_v27 }
 0x90d   :  { %4050 = vmatprep.subr.mxu0 %v10416_v1  ;;  %4121 = vmatprep.subr.mxu1 %v10417_v55 }
 0x90e   :  { %v4642_v39 = vpop.eup %4641  ;;  %4051 = vmatpush1.msra.mxu0 %v10418_v28  ;;  %4122 = vmatpush1.msra.mxu1 %v8426_v12  ;;  %v4207_v12 = vld [vmem:[%s8734_s5 + $0x78] sm:$0xff] }
 0x90f   :  { %4052 = vmatprep.subr.mxu0 %v8429_v14  ;;  %4123 = vmatprep.subr.mxu1 %v8432_v22  ;;  %v3879_v59 = vmul.f32 %v4642_v39, %v4640_v47  ;;  %v4206_v14 = vld [vmem:[%s8734_s5 + $0x70] sm:$0xff]  ;;  %v4204_v22 = vld [vmem:[%s8734_s5 + $0x60] sm:$0xff] }
 0x910   :  { %4053 = vmatpush1.msra.mxu0 %v8437_v19  ;;  %4086 = vmatprep.mubr.f32.mxu0 %v9461_v20  ;;  %v4203_v19 = vld [vmem:[%s8734_s5 + $0x58] sm:$0xff] }
 0x911   :  { %4124 = vmatpush1.msra.mxu1 %v8441_v15  ;;  %4157 = vmatprep.mubr.f32.mxu1 %v9461_v20  ;;  %v4205_v15 = vld [vmem:[%s8734_s5 + $0x68] sm:$0xff] }
 0x912   :  { %4087 = vmatmul.mubr.f32.vlgmr.msra.gmra.mxu0 %v3879_v59  ;;  %4158 = vmatmul.mubr.f32.vlgmr.msra.gmra.mxu1 %v3879_v59 }
 0x913   :  { %4360 = vmatprep.subr.mxu0 %v9461_v20  ;;  %4392 = vmatprep.mubr.msk.f32.mxu0 %vm5328_vm0, %v9461_v20 }
 0x914   :  { %4361 = vmatpush3.msra.mxu0 %v4207_v12 }
 0x915   :  { %4362 = vmatprep.subr.mxu0 %v9461_v20 }
 0x916   :  { %4363 = vmatpush3.msra.mxu0 %v4206_v14 }
 0x917   :  { %4364 = vmatprep.subr.mxu0 %v9461_v20 }
 0x918   :  { %4365 = vmatpush3.msra.mxu0 %v4205_v15 }
 0x919   :  { %4366 = vmatprep.subr.mxu0 %v9461_v20 }
 0x91a   :  { %4367 = vmatpush3.msra.mxu0 %v4204_v22 }
 0x91b   :  { %4368 = vmatprep.subr.mxu0 %v9461_v20 }
 0x91c   :  { %4369 = vmatpush3.msra.mxu0 %v4203_v19 }
 0x91d   :  { %4370 = vmatprep.subr.mxu0 %v9461_v20 }
 0x91e   :  { %4371 = vmatpush3.msra.mxu0 %v4202_v31 }
 0x91f   :  { %4372 = vmatprep.subr.mxu0 %v9461_v20 }
 0x920   :  { %4373 = vmatpush3.msra.mxu0 %v4201_v32 }
 0x921   :  { %4374 = vmatprep.subr.mxu0 %v9461_v20 }
 0x922   :  { %4375 = vmatpush3.msra.mxu0 %v4200_v45 }
 0x923   :  { %4376 = vmatprep.subr.mxu0 %v9461_v20 }
 0x924   :  { %4377 = vmatpush3.msra.mxu0 %v4199_v23 }
 0x925   :  { %4378 = vmatprep.subr.mxu0 %v9461_v20 }
 0x926   :  { %4379 = vmatpush3.msra.mxu0 %v4198_v24 }
 0x927   :  { %4380 = vmatprep.subr.mxu0 %v9461_v20 }
 0x928   :  { %4381 = vmatpush3.msra.mxu0 %v4197_v25 }
 0x929   :  { %4382 = vmatprep.subr.mxu0 %v9461_v20 }
 0x92a   :  { %4383 = vmatpush3.msra.mxu0 %v4196_v26 }
 0x92b   :  { %4384 = vmatprep.subr.mxu0 %v9461_v20 }
 0x92c   :  { %4385 = vmatpush3.msra.mxu0 %v4195_v9 }
 0x92d   :  { %4386 = vmatprep.subr.mxu0 %v9461_v20 }
 0x92e   :  { %4387 = vmatpush3.msra.mxu0 %v4194_v11 }
 0x92f   :  { %4388 = vmatprep.subr.mxu0 %v9461_v20 }
 0x930   :  { %4389 = vmatpush3.msra.mxu0 %v4193_v6 }
 0x931   :  { %4390 = vmatprep.subr.mxu0 %v9461_v20 }
 0x932   :  { %4391 = vmatpush3.msra.mxu0 %v4192_v54 }
 0x9b1   :  { %v3946_v36 = vpop.f32.mrf.mxu0  ;;  %v4017_v33 = vpop.f32.mrf.mxu1 }
 0x9b3   :  { %v3948_v29 = vpop.f32.mrf.mxu0  ;;  %v4019_v41 = vpop.f32.mrf.mxu1 }
 0x9d2   :  { %v4088_v13 = vpop.f32.mrf.mxu0  ;;  %v4159_v18 = vpop.f32.mrf.mxu1 }
 0x9d3   :  { %v4089_v42 = vadd.f32 %v4088_v13, %v3946_v36  ;;  %v4160_v30 = vadd.f32 %v4159_v18, %v4017_v33 }
 0x9d4   :  { %v4090_v17 = vpop.f32.mrf.mxu0  ;;  %v4161_v37 = vpop.f32.mrf.mxu1 }
 0x9d5   :  { %v4164_v60 = vadd.f32 %v4089_v42, %v6128_v34  ;;  %v4091_v16 = vadd.f32 %v4090_v17, %v3948_v29  ;;  %v4162_v20 = vadd.f32 %v4161_v37, %v4019_v41  ;;  %v4166_v0 = vadd.f32 %v4160_v30, %v6137_v63 }
 0x9d7   :  { %v4339_v5 = vmul.f32 -1.442695, %v4164_v60  ;;  %v4165_v62 = vadd.f32 %v4091_v16, %v6130_v38  ;;  %v4167_v46 = vadd.f32 %v4162_v20, %v6134_v52 }
 0x9d9   :  { %4643 = vpow2.f32 %v4339_v5  ;;  %v4340_v4 = vmul.f32 -1.442695, %v4165_v62  ;;  %v4341_v21 = vmul.f32 -1.442695, %v4167_v46 }
 0x9db   :  { %4645 = vpow2.f32 %v4340_v4 }
 0x9dc   :  { %4647 = vpow2.f32 %v4341_v21 }
 0x9e6   :  { %v4644_v3 = vpop.eup %4643 }
 0x9e7   :  { %v4171_v51 = vadd.f32 1.0, %v4644_v3 }
 0x9e8   :  { %v4646_v7 = vpop.eup %4645 }
 0x9e9   :  { %4649 = vrcp.f32 %v4171_v51  ;;  %v4177_v34 = vadd.f32 1.0, %v4646_v7  ;;  %v4648_v38 = vpop.eup %4647 }
 0x9ea   :  { %4651 = vtanh.f32 %v4166_v0  ;;  %v4184_v57 = vadd.f32 1.0, %v4648_v38 }
 0x9eb   :  { %4653 = vrcp.f32 %v4177_v34 }
 0x9ec   :  { %4655 = vrcp.f32 %v4184_v57 }
 0x9f6   :  { %v4650_v8 = vpop.eup %4649 }
 0x9f7   :  { %v4652_v49 = vpop.eup %4651 }
 0x9f8   :  { %v4654_v53 = vpop.eup %4653  ;;  %v4188_v10 = vmul.f32 %v4652_v49, %v4650_v8 }
 0x9f9   :  { %v4187_v52 = vmul.f32 %v4654_v53, %v8588_v44  ;;  %v4656_v40 = vpop.eup %4655 }
 0x9fb   :  { %v4189_v43 = vadd.f32 %v4188_v10, %v4187_v52 }
 0x9fd   :  { %4657 = vtanh.f32 %v4189_v43 }
 0xa0a   :  { %v4658_v63 = vpop.eup %4657 }
 0xa0b   :  { %v4191_v35 = vmul.f32 %v4658_v63, %v4656_v40 }
 0xa0d   :  { %4393 = vmatmul.mubr.f32.vlgmr.msra.gmra.mxu0 %v4191_v35 }
 0xacd   :  { %v4281_v50 = vpop.f32.mrf.mxu0 }
 0xace   :  { %v4282_v56 = vadd.f32 %v4342_v48, %v4281_v50 }
 0xacf   :  { %v4394_v58 = vpop.f32.mrf.mxu0 }
 0xad0   :  { %4286 = vst.msk [vmem:[%s8736_s7] sm:$0xff] %vm4285_vm1, %v4282_v56 }
 0xad1   :  { %4291 = vsyncpa [#allocation4], 1 }
 0xad2   :  { %4292 = vsyncpa [#allocation6], 1 }
 0xad3   :  { %4293 = vsyncpa [#allocation9], 1 }

</bundles_post_ra>
